<compile_context>
chip_gen: v5e
topology: v5e:2x2
jax: 0.10.0
libtpu: 0.0.40
codegen_flags: <defaults>
</compile_context>

<pallas_src>
import functools

import jax
import jax.numpy as jnp
from jax import lax
from jax.experimental import pallas as pl
from jax.experimental.pallas import tpu as pltpu

keyVocabSize = 24
KERNEL_SIZE = 9
PAD = KERNEL_SIZE // 2          # 4
HALO = 3 * PAD                  # halo needed for 3 stacked k=9 convs
BN_EPS = 1e-5
VMEM_LIMIT_BYTES = 48 * 1024 * 1024


def get_in_features():
    # pitch one-hot (128) + normalized IOI + normalized duration + normalized velocity
    return 128 + 3


# ---------------------------------------------------------------------------
# encode_note_sequence: cheap one-hot / normalization glue, kept in plain JAX.
# TODO(synk): exact PM2S feature-encoding constants are not in the prompt;
#             reconstruction = pitch one-hot + IOI/dur clipped to 4s + vel/127.
# ---------------------------------------------------------------------------
def encode_note_sequence(x):
    pitch = x[..., 0].astype(jnp.int32)
    onset = x[..., 1]
    dur = x[..., 2]
    vel = x[..., 3]
    pitch_oh = jax.nn.one_hot(pitch, 128, dtype=jnp.float32)
    ioi = jnp.concatenate(
        [jnp.zeros_like(onset[:, :1]), onset[:, 1:] - onset[:, :-1]], axis=1)
    ioi = jnp.clip(ioi, 0.0, 4.0) / 4.0
    durn = jnp.clip(dur, 0.0, 4.0) / 4.0
    veln = vel / 127.0
    return jnp.concatenate(
        [pitch_oh, ioi[..., None], durn[..., None], veln[..., None]], axis=-1)


# ---------------------------------------------------------------------------
# Tile-size helpers (T must be tileable; demo/production T are).
# ---------------------------------------------------------------------------
def _pick_time_tile(T, cap=256):
    # Largest divisor of T that is a multiple of 8, >= the 12-row conv halo,
    # and <= cap (keeps per-step VMEM bounded on every TPU generation).
    # TODO(synk): ragged T (no such divisor) would need pad + backward-GRU masking.
    best = None
    for d in range(16, min(T, cap) + 1, 8):
        if T % d == 0:
            best = d
    assert best is not None, "T must have a divisor that is a multiple of 8 and >= 16"
    return best


def _pick_out_tile(T, cap=512):
    # Output time tile must be a multiple of 128 (lane-dense stores) or == T.
    best = T
    for d in range(128, min(T, cap) + 1, 128):
        if T % d == 0:
            best = d
    return best


# ---------------------------------------------------------------------------
# Conv block kernel: per (batch, time-tile) step, 3 x (Conv1d k=9 + folded BN + ELU).
# The conv is computed as 9 shifted MXU matmuls on a haloed window; rows outside
# the real sequence are zeroed so each layer sees PyTorch's per-layer zero padding.
# ---------------------------------------------------------------------------
def _conv_block_kernel(prev_ref, cur_ref, next_ref,
                       w1_ref, s1_ref, t1_ref,
                       w2_ref, s2_ref, t2_ref,
                       w3_ref, s3_ref, t3_ref,
                       out_ref, buf0, buf1, buf2, *, seq_len):
    Tt = cur_ref.shape[0]
    t0 = pl.program_id(1) * Tt                      # global time of first output row

    # Assemble haloed input window (Tt + 2*HALO, Cin); outside-sequence rows are
    # already zero because the input was zero-padded by one full tile per side.
    buf0[0:HALO, :] = prev_ref[Tt - HALO:, :]
    buf0[HALO:HALO + Tt, :] = cur_ref[...]
    buf0[HALO + Tt:, :] = next_ref[0:HALO, :]

    def conv_layer(src_ref, w_ref, scale_ref, shift_ref, dst_ref, g_start):
        cout = w_ref.shape[2]
        l_out = dst_ref.shape[0]
        acc = jnp.zeros((l_out, cout), jnp.float32)
        for k in range(KERNEL_SIZE):                # conv(k=9) = 9 shifted matmuls
            acc = acc + jnp.dot(src_ref[k:k + l_out, :], w_ref[k],
                                preferred_element_type=jnp.float32)
        y = acc * scale_ref[...] + shift_ref[...]   # eval BN, conv bias folded in
        y = jnp.where(y > 0, y, jnp.exp(jnp.minimum(y, 0.0)) - 1.0)   # ELU
        # Zero rows outside [0, T): this *is* the next layer's conv zero padding.
        g = jax.lax.broadcasted_iota(jnp.int32, (l_out, 1), 0) + g_start
        dst_ref[...] = jnp.where((g >= 0) & (g < seq_len), y, 0.0).astype(dst_ref.dtype)

    conv_layer(buf0, w1_ref, s1_ref, t1_ref, buf1, t0 - (HALO - PAD))
    conv_layer(buf1, w2_ref, s2_ref, t2_ref, buf2, t0 - (HALO - 2 * PAD))
    conv_layer(buf2, w3_ref, s3_ref, t3_ref, out_ref, t0)


def conv_block(x_enc, conv_params, hidden_size, time_tile):
    B, T, cin = x_enc.shape
    c3 = hidden_size
    Tt = time_tile
    nT = T // Tt
    assert Tt >= HALO and Tt % 8 == 0 and T % Tt == 0

    # Pad time by one full tile of zeros per side so prev/cur/next halo blocks
    # are always in-bounds (and zero outside the sequence).  bf16 MXU operands.
    x_pad = jnp.pad(x_enc.astype(jnp.bfloat16), ((0, 0), (Tt, Tt), (0, 0)))

    def shifted(off):
        return pl.BlockSpec((None, Tt, cin), lambda b, t, off=off: (b, t + off, 0))

    def full(a):
        n = a.ndim
        return pl.BlockSpec(a.shape, lambda b, t, n=n: (0,) * n)

    w1, s1, t1, w2, s2, t2, w3, s3, t3 = conv_params
    c1, c2 = w1.shape[2], w2.shape[2]

    kern = functools.partial(_conv_block_kernel, seq_len=T)
    return pl.pallas_call(
        kern,
        out_shape=jax.ShapeDtypeStruct((B, T, c3), jnp.bfloat16),
        grid=(B, nT),
        in_specs=[shifted(0), shifted(1), shifted(2)] + [full(p) for p in conv_params],
        out_specs=pl.BlockSpec((None, Tt, c3), lambda b, t: (b, t, 0)),
        scratch_shapes=[
            pltpu.VMEM((Tt + 2 * HALO, cin), jnp.bfloat16),
            pltpu.VMEM((Tt + 2 * (HALO - PAD), c1), jnp.bfloat16),
            pltpu.VMEM((Tt + 2 * (HALO - 2 * PAD), c2), jnp.bfloat16),
        ],
        compiler_params=pltpu.CompilerParams(
            dimension_semantics=("parallel", "parallel"),
            vmem_limit_bytes=VMEM_LIMIT_BYTES),
    )(x_pad, x_pad, x_pad, w1, s1, t1, w2, s2, t2, w3, s3, t3)


# ---------------------------------------------------------------------------
# Bidirectional GRU layer kernel.
# grid = (direction in {fwd, bwd} : "parallel", time-tile : "arbitrary")
# Fused gate weights (PyTorch order r|z|n).  Input projection (x @ W_ih + b) is
# hoisted out of the recurrence as one big matmul per tile; the sequential loop
# only does h @ W_hh plus the gate nonlinearities.  Hidden state (f32) is carried
# across tiles in VMEM scratch; the backward direction walks tiles in reverse via
# the index_map.  Each direction writes its own half of the (T, B, hidden) output.
# ---------------------------------------------------------------------------
def _bigru_layer_kernel(x_ref, wih_ref, whh_ref, bx_ref, bhn_ref,
                        out_ref, h_ref, xp_ref):
    d = pl.program_id(0)                     # 0 = forward, 1 = backward
    t = pl.program_id(1)
    Tt, Bsz, _ = x_ref.shape
    H2 = whh_ref.shape[0]

    @pl.when(t == 0)
    def _():
        h_ref[...] = jnp.zeros_like(h_ref)

    # --- hoisted input projection: big MXU matmul, outside the recurrence ---
    wih = wih_ref[...]                       # (Fin, 3*H2)  bf16
    bx = bx_ref[...]                         # (1, 3*H2)    f32  (b_i + b_h for r,z; b_in)
    for b in range(Bsz):
        xb = x_ref[:, b, :]                  # (Tt, Fin)    bf16
        xp_ref[:, b, :] = jnp.dot(xb, wih, preferred_element_type=jnp.float32) + bx

    whh = whh_ref[...]                       # (H2, 3*H2)   bf16
    bhn = bhn_ref[...]                       # (1, H2)      f32

    def step(s, h):
        idx = d * (Tt - 1) + (1 - 2 * d) * s                 # fwd: s, bwd: Tt-1-s
        xp_t = xp_ref[idx]                                   # (B, 3*H2) f32
        hp = jnp.dot(h.astype(whh.dtype), whh,
                     preferred_element_type=jnp.float32)     # (B, 3*H2)
        r = jax.nn.sigmoid(xp_t[:, :H2] + hp[:, :H2])
        z = jax.nn.sigmoid(xp_t[:, H2:2 * H2] + hp[:, H2:2 * H2])
        n = jnp.tanh(xp_t[:, 2 * H2:] + r * (hp[:, 2 * H2:] + bhn))
        h_new = (1.0 - z) * n + z * h
        out_ref[idx] = h_new.astype(out_ref.dtype)
        return h_new

    h_ref[...] = lax.fori_loop(0, Tt, step, h_ref[...])


def bigru_layer(x_tm, layer_params, hidden_size, time_tile):
    T, B, fin = x_tm.shape
    H2 = hidden_size // 2
    Tt = time_tile
    nT = T // Tt
    wih, whh, bx, bhn = layer_params

    def xmap(d, t):
        return (d * (nT - 1) + (1 - 2 * d) * t, 0, 0)

    def omap(d, t):
        return (d * (nT - 1) + (1 - 2 * d) * t, 0, d)

    cost = pl.CostEstimate(
        flops=4 * T * B * 3 * H2 * (fin + H2),
        transcendentals=2 * T * B * 3 * H2,
        bytes_accessed=2 * (x_tm.size + T * B * 2 * H2 + wih.size + whh.size),
    )
    return pl.pallas_call(
        _bigru_layer_kernel,
        out_shape=jax.ShapeDtypeStruct((T, B, 2 * H2), jnp.bfloat16),
        grid=(2, nT),
        in_specs=[
            pl.BlockSpec((Tt, B, fin), xmap),
            pl.BlockSpec((None, fin, 3 * H2), lambda d, t: (d, 0, 0)),
            pl.BlockSpec((None, H2, 3 * H2), lambda d, t: (d, 0, 0)),
            pl.BlockSpec((None, 1, 3 * H2), lambda d, t: (d, 0, 0)),
            pl.BlockSpec((None, 1, H2), lambda d, t: (d, 0, 0)),
        ],
        out_specs=pl.BlockSpec((Tt, B, H2), omap),
        scratch_shapes=[
            pltpu.VMEM((B, H2), jnp.float32),            # hidden-state carry
            pltpu.VMEM((Tt, B, 3 * H2), jnp.float32),    # hoisted input projection
        ],
        compiler_params=pltpu.CompilerParams(
            dimension_semantics=("parallel", "arbitrary"),
            vmem_limit_bytes=VMEM_LIMIT_BYTES),
        cost_estimate=cost,
    )(x_tm, wih, whh, bx, bhn)


# ---------------------------------------------------------------------------
# Output kernel: Linear(hidden -> keyVocabSize) + softmax, producing (B, K, T)
# directly.  Logits are computed transposed (classes on sublanes, time on lanes)
# so stores are lane-dense and the PyTorch transpose(1, 2) is fused in.
# ---------------------------------------------------------------------------
def _output_kernel(x_ref, w_ref, b_ref, out_ref):
    Bsz = x_ref.shape[1]
    xv = x_ref[...]                          # (Tt, B, H) bf16
    w = w_ref[...]                           # (K, H)     bf16  (PyTorch Linear layout)
    bias = b_ref[...]                        # (K, 1)     f32
    for b in range(Bsz):
        xb = xv[:, b, :]                     # (Tt, H)
        logits = jax.lax.dot_general(        # (K, Tt): classes x time
            w, xb, dimension_numbers=(((1,), (1,)), ((), ())),
            preferred_element_type=jnp.float32) + bias
        m = jnp.max(logits, axis=0, keepdims=True)
        e = jnp.exp(logits - m)
        out_ref[b] = (e / jnp.sum(e, axis=0, keepdims=True)).astype(out_ref.dtype)


def output_block(h_tm, out_w, out_b, time_tile):
    T, B, H = h_tm.shape
    K = out_w.shape[0]
    Tt = time_tile
    nT = T // Tt
    cost = pl.CostEstimate(flops=2 * T * B * H * K,
                           transcendentals=T * B * K,
                           bytes_accessed=2 * h_tm.size + 4 * B * K * T)
    return pl.pallas_call(
        _output_kernel,
        out_shape=jax.ShapeDtypeStruct((B, K, T), jnp.float32),
        grid=(nT,),
        in_specs=[pl.BlockSpec((Tt, B, H), lambda t: (t, 0, 0)),
                  pl.BlockSpec((K, H), lambda t: (0, 0)),
                  pl.BlockSpec((K, 1), lambda t: (0, 0))],
        out_specs=pl.BlockSpec((B, K, Tt), lambda t: (0, 0, t)),
        compiler_params=pltpu.CompilerParams(
            dimension_semantics=("parallel",),
            vmem_limit_bytes=VMEM_LIMIT_BYTES),
        cost_estimate=cost,
    )(h_tm, out_w, out_b)


# ---------------------------------------------------------------------------
# Full model forward
# ---------------------------------------------------------------------------
def rnn_key_signature_forward(x, params, hidden_size):
    assert hidden_size % 4 == 0 and (hidden_size // 2) % 128 == 0, \
        "hidden_size//2 must be a multiple of 128 (lane-aligned fwd/bwd halves)"
    feats = encode_note_sequence(x)                        # (B, T, 131) plain-JAX glue
    B, T, _ = feats.shape
    Tt = _pick_time_tile(T)
    Tto = _pick_out_tile(T)

    h = conv_block(feats, params["conv"], hidden_size, Tt)     # (B, T, hidden) bf16
    # TODO(synk): single remaining layout pass (batch-major -> time-major); could be
    #             fused into the conv out_spec with an in-kernel relayout.
    h = jnp.transpose(h, (1, 0, 2))                            # (T, B, hidden)
    for layer_params in params["gru"]:                         # 2 bi-GRU layers
        h = bigru_layer(h, layer_params, hidden_size, Tt)      # (T, B, hidden) bf16
    return output_block(h, params["out_w"], params["out_b"], Tto)   # (B, K, T) f32


# ---------------------------------------------------------------------------
# Deterministic synthetic parameter initialization (fused/folded layouts)
# ---------------------------------------------------------------------------
def init_params(key, hidden_size):
    in_f = get_in_features()
    H2 = hidden_size // 2
    keys = iter(jax.random.split(key, 64))

    def nrm(shape, scale=0.1):
        return jax.random.normal(next(keys), shape, jnp.float32) * scale

    conv = []
    cin = in_f
    for cout in (hidden_size // 4, hidden_size // 2, hidden_size):
        w = nrm((KERNEL_SIZE, cin, cout), 0.05)            # (K, Cin, Cout)
        b = nrm((1, cout), 0.05)
        gamma = 1.0 + nrm((1, cout), 0.05)
        beta = nrm((1, cout), 0.05)
        mean = nrm((1, cout), 0.05)
        var = 1.0 + jnp.abs(nrm((1, cout), 0.05))
        scale = gamma / jnp.sqrt(var + BN_EPS)             # folded eval BatchNorm
        shift = beta + (b - mean) * scale                  # conv bias folded into shift
        conv += [w.astype(jnp.bfloat16), scale, shift]
        cin = cout

    gru = []
    fin = hidden_size
    for _layer in range(2):
        wih_d, whh_d, bx_d, bhn_d = [], [], [], []
        for _d in range(2):                                # fwd, bwd
            wih = nrm((fin, 3 * H2), 0.1)                  # columns [r | z | n]
            whh = nrm((H2, 3 * H2), 0.1)
            bih = nrm((1, 3 * H2), 0.1)
            bhh = nrm((1, 3 * H2), 0.1)
            # r/z input+hidden biases pre-summed; n keeps b_hn separate (gated by r)
            bx = jnp.concatenate(
                [bih[:, :2 * H2] + bhh[:, :2 * H2], bih[:, 2 * H2:]], axis=1)
            bhn = bhh[:, 2 * H2:]
            wih_d.append(wih); whh_d.append(whh); bx_d.append(bx); bhn_d.append(bhn)
        gru.append((jnp.stack(wih_d).astype(jnp.bfloat16),   # (2, Fin, 3*H2)
                    jnp.stack(whh_d).astype(jnp.bfloat16),   # (2, H2, 3*H2)
                    jnp.stack(bx_d),                          # (2, 1, 3*H2)
                    jnp.stack(bhn_d)))                        # (2, 1, H2)
        fin = hidden_size                                     # bidirectional concat

    out_w = nrm((keyVocabSize, hidden_size), 0.1).astype(jnp.bfloat16)  # (K, H)
    out_b = nrm((keyVocabSize, 1), 0.1)                                  # (K, 1)
    return {"conv": conv, "gru": gru, "out_w": out_w, "out_b": out_b}


if __name__ == "__main__":
    hidden_size = 256      # demo size (module default is 512); hidden//2 must be 128-aligned
    B, T = 2, 16

    key = jax.random.PRNGKey(0)
    kp, kx = jax.random.split(key)
    params = init_params(kp, hidden_size)

    k1, k2, k3, k4 = jax.random.split(kx, 4)
    pitch = jax.random.randint(k1, (B, T), 0, 128).astype(jnp.float32)
    ioi = jax.random.uniform(k2, (B, T), minval=0.05, maxval=0.5)
    onset = jnp.cumsum(ioi, axis=1)
    dur = jax.random.uniform(k3, (B, T), minval=0.05, maxval=1.0)
    vel = jax.random.randint(k4, (B, T), 1, 128).astype(jnp.float32)
    x = jnp.stack([pitch, onset, dur, vel], axis=-1)      # (B, T, 4)

    fwd = jax.jit(functools.partial(rnn_key_signature_forward,
                                    hidden_size=hidden_size))
    y = jax.block_until_ready(fwd(x, params))
    assert y.shape == (B, keyVocabSize, T), y.shape
    assert bool(jnp.all(jnp.isfinite(y)))
    # softmax over the class axis (axis=1 of (B, K, T)) sums to 1
    assert bool(jnp.allclose(jnp.sum(y, axis=1), 1.0, atol=1e-4))
    print("KERNEL_OK")
</pallas_src>

<mosaic_0001>
module attributes {stable_mosaic.version = 11 : i64} {
  func.func @_conv_block_kernel(%arg0: i32, %arg1: i32, %arg2: memref<1x16x131xbf16, #tpu.memory_space<vmem>>, %arg3: memref<1x16x131xbf16, #tpu.memory_space<vmem>>, %arg4: memref<1x16x131xbf16, #tpu.memory_space<vmem>>, %arg5: memref<9x131x64xbf16, #tpu.memory_space<vmem>>, %arg6: memref<1x64xf32, #tpu.memory_space<vmem>>, %arg7: memref<1x64xf32, #tpu.memory_space<vmem>>, %arg8: memref<9x64x128xbf16, #tpu.memory_space<vmem>>, %arg9: memref<1x128xf32, #tpu.memory_space<vmem>>, %arg10: memref<1x128xf32, #tpu.memory_space<vmem>>, %arg11: memref<9x128x256xbf16, #tpu.memory_space<vmem>>, %arg12: memref<1x256xf32, #tpu.memory_space<vmem>>, %arg13: memref<1x256xf32, #tpu.memory_space<vmem>>, %arg14: memref<1x16x256xbf16, #tpu.memory_space<vmem>>, %arg15: memref<40x131xbf16, #tpu.memory_space<vmem>>, %arg16: memref<32x64xbf16, #tpu.memory_space<vmem>>, %arg17: memref<24x128xbf16, #tpu.memory_space<vmem>>) attributes {dimension_semantics = [#tpu.dimension_semantics<parallel>, #tpu.dimension_semantics<parallel>], iteration_bounds = array<i64: 2, 1>, scalar_prefetch = 0 : i64, scratch_operands = 3 : i64, tpu.core_type = #tpu.core_type<tc>, window_params = [{transform_indices = @transform_0, window_bounds = array<i64: 1, 16, 131>}, {transform_indices = @transform_1, window_bounds = array<i64: 1, 16, 131>}, {transform_indices = @transform_2, window_bounds = array<i64: 1, 16, 131>}, {pipeline_mode = #tpu.pipeline_mode<synchronous>, transform_indices = @transform_3, window_bounds = array<i64: 9, 131, 64>}, {pipeline_mode = #tpu.pipeline_mode<synchronous>, transform_indices = @transform_4, window_bounds = array<i64: 1, 64>}, {pipeline_mode = #tpu.pipeline_mode<synchronous>, transform_indices = @transform_5, window_bounds = array<i64: 1, 64>}, {pipeline_mode = #tpu.pipeline_mode<synchronous>, transform_indices = @transform_6, window_bounds = array<i64: 9, 64, 128>}, {pipeline_mode = #tpu.pipeline_mode<synchronous>, transform_indices = @transform_7, window_bounds = array<i64: 1, 128>}, {pipeline_mode = #tpu.pipeline_mode<synchronous>, transform_indices = @transform_8, window_bounds = array<i64: 1, 128>}, {pipeline_mode = #tpu.pipeline_mode<synchronous>, transform_indices = @transform_9, window_bounds = array<i64: 9, 128, 256>}, {pipeline_mode = #tpu.pipeline_mode<synchronous>, transform_indices = @transform_10, window_bounds = array<i64: 1, 256>}, {pipeline_mode = #tpu.pipeline_mode<synchronous>, transform_indices = @transform_11, window_bounds = array<i64: 1, 256>}, {transform_indices = @transform_12, window_bounds = array<i64: 1, 16, 256>}]} {
    %c16_i32 = arith.constant 16 : i32
    %0 = arith.muli %arg1, %c16_i32 : i32
    %c0 = arith.constant 0 : index
    %c4 = arith.constant 4 : index
    %c0_0 = arith.constant 0 : index
    %1 = vector.load %arg2[%c0, %c4, %c0_0] : memref<1x16x131xbf16, #tpu.memory_space<vmem>>, vector<1x12x131xbf16>
    %2 = vector.shape_cast %1 : vector<1x12x131xbf16> to vector<12x131xbf16>
    %c0_1 = arith.constant 0 : index
    %c0_2 = arith.constant 0 : index
    %3 = vector.load %arg15[%c0_1, %c0_2] : memref<40x131xbf16, #tpu.memory_space<vmem>>, vector<12x131xbf16>
    tpu.vector_store %arg15[%c0_1, %c0_2], %2 {strides = array<i32>} : memref<40x131xbf16, #tpu.memory_space<vmem>>, vector<12x131xbf16>,
    %c0_3 = arith.constant 0 : index
    %c0_4 = arith.constant 0 : index
    %c0_5 = arith.constant 0 : index
    %4 = vector.load %arg3[%c0_3, %c0_4, %c0_5] : memref<1x16x131xbf16, #tpu.memory_space<vmem>>, vector<1x16x131xbf16>
    %5 = vector.shape_cast %4 : vector<1x16x131xbf16> to vector<16x131xbf16>
    %c12 = arith.constant 12 : index
    %c0_6 = arith.constant 0 : index
    %6 = vector.load %arg15[%c12, %c0_6] : memref<40x131xbf16, #tpu.memory_space<vmem>>, vector<16x131xbf16>
    tpu.vector_store %arg15[%c12, %c0_6], %5 {strides = array<i32>} : memref<40x131xbf16, #tpu.memory_space<vmem>>, vector<16x131xbf16>,
    %c0_7 = arith.constant 0 : index
    %c0_8 = arith.constant 0 : index
    %c0_9 = arith.constant 0 : index
    %7 = vector.load %arg4[%c0_7, %c0_8, %c0_9] : memref<1x16x131xbf16, #tpu.memory_space<vmem>>, vector<1x12x131xbf16>
    %8 = vector.shape_cast %7 : vector<1x12x131xbf16> to vector<12x131xbf16>
    %c28 = arith.constant 28 : index
    %c0_10 = arith.constant 0 : index
    %9 = vector.load %arg15[%c28, %c0_10] : memref<40x131xbf16, #tpu.memory_space<vmem>>, vector<12x131xbf16>
    tpu.vector_store %arg15[%c28, %c0_10], %8 {strides = array<i32>} : memref<40x131xbf16, #tpu.memory_space<vmem>>, vector<12x131xbf16>,
    %c8_i32 = arith.constant 8 : i32
    %10 = arith.subi %0, %c8_i32 : i32
    %cst = arith.constant 0.000000e+00 : f32
    %11 = vector.broadcast %cst : f32 to vector<32x64xf32>
    %c0_11 = arith.constant 0 : index
    %c0_12 = arith.constant 0 : index
    %12 = vector.load %arg15[%c0_11, %c0_12] : memref<40x131xbf16, #tpu.memory_space<vmem>>, vector<32x131xbf16>
    %c0_13 = arith.constant 0 : index
    %c0_14 = arith.constant 0 : index
    %c0_15 = arith.constant 0 : index
    %13 = vector.load %arg5[%c0_13, %c0_14, %c0_15] : memref<9x131x64xbf16, #tpu.memory_space<vmem>>, vector<1x131x64xbf16>
    %14 = vector.shape_cast %13 : vector<1x131x64xbf16> to vector<131x64xbf16>
    %cst_16 = arith.constant dense<0.000000e+00> : vector<32x64xf32>
    %15 = tpu.matmul %12, %14, %cst_16 {dimension_numbers = #tpu.dot_dimension_numbers<[1], [0], [0], [1], [0, 0, 1, 1], [], []>} : vector<32x131xbf16>, vector<131x64xbf16>, vector<32x64xf32> -> vector<32x64xf32>
    %16 = arith.addf %11, %15 : vector<32x64xf32>
    %c1 = arith.constant 1 : index
    %c0_17 = arith.constant 0 : index
    %17 = vector.load %arg15[%c1, %c0_17] : memref<40x131xbf16, #tpu.memory_space<vmem>>, vector<32x131xbf16>
    %c1_18 = arith.constant 1 : index
    %c0_19 = arith.constant 0 : index
    %c0_20 = arith.constant 0 : index
    %18 = vector.load %arg5[%c1_18, %c0_19, %c0_20] : memref<9x131x64xbf16, #tpu.memory_space<vmem>>, vector<1x131x64xbf16>
    %19 = vector.shape_cast %18 : vector<1x131x64xbf16> to vector<131x64xbf16>
    %cst_21 = arith.constant dense<0.000000e+00> : vector<32x64xf32>
    %20 = tpu.matmul %17, %19, %cst_21 {dimension_numbers = #tpu.dot_dimension_numbers<[1], [0], [0], [1], [0, 0, 1, 1], [], []>} : vector<32x131xbf16>, vector<131x64xbf16>, vector<32x64xf32> -> vector<32x64xf32>
    %21 = arith.addf %16, %20 : vector<32x64xf32>
    %c2 = arith.constant 2 : index
    %c0_22 = arith.constant 0 : index
    %22 = vector.load %arg15[%c2, %c0_22] : memref<40x131xbf16, #tpu.memory_space<vmem>>, vector<32x131xbf16>
    %c2_23 = arith.constant 2 : index
    %c0_24 = arith.constant 0 : index
    %c0_25 = arith.constant 0 : index
    %23 = vector.load %arg5[%c2_23, %c0_24, %c0_25] : memref<9x131x64xbf16, #tpu.memory_space<vmem>>, vector<1x131x64xbf16>
    %24 = vector.shape_cast %23 : vector<1x131x64xbf16> to vector<131x64xbf16>
    %cst_26 = arith.constant dense<0.000000e+00> : vector<32x64xf32>
    %25 = tpu.matmul %22, %24, %cst_26 {dimension_numbers = #tpu.dot_dimension_numbers<[1], [0], [0], [1], [0, 0, 1, 1], [], []>} : vector<32x131xbf16>, vector<131x64xbf16>, vector<32x64xf32> -> vector<32x64xf32>
    %26 = arith.addf %21, %25 : vector<32x64xf32>
    %c3 = arith.constant 3 : index
    %c0_27 = arith.constant 0 : index
    %27 = vector.load %arg15[%c3, %c0_27] : memref<40x131xbf16, #tpu.memory_space<vmem>>, vector<32x131xbf16>
    %c3_28 = arith.constant 3 : index
    %c0_29 = arith.constant 0 : index
    %c0_30 = arith.constant 0 : index
    %28 = vector.load %arg5[%c3_28, %c0_29, %c0_30] : memref<9x131x64xbf16, #tpu.memory_space<vmem>>, vector<1x131x64xbf16>
    %29 = vector.shape_cast %28 : vector<1x131x64xbf16> to vector<131x64xbf16>
    %cst_31 = arith.constant dense<0.000000e+00> : vector<32x64xf32>
    %30 = tpu.matmul %27, %29, %cst_31 {dimension_numbers = #tpu.dot_dimension_numbers<[1], [0], [0], [1], [0, 0, 1, 1], [], []>} : vector<32x131xbf16>, vector<131x64xbf16>, vector<32x64xf32> -> vector<32x64xf32>
    %31 = arith.addf %26, %30 : vector<32x64xf32>
    %c4_32 = arith.constant 4 : index
    %c0_33 = arith.constant 0 : index
    %32 = vector.load %arg15[%c4_32, %c0_33] : memref<40x131xbf16, #tpu.memory_space<vmem>>, vector<32x131xbf16>
    %c4_34 = arith.constant 4 : index
    %c0_35 = arith.constant 0 : index
    %c0_36 = arith.constant 0 : index
    %33 = vector.load %arg5[%c4_34, %c0_35, %c0_36] : memref<9x131x64xbf16, #tpu.memory_space<vmem>>, vector<1x131x64xbf16>
    %34 = vector.shape_cast %33 : vector<1x131x64xbf16> to vector<131x64xbf16>
    %cst_37 = arith.constant dense<0.000000e+00> : vector<32x64xf32>
    %35 = tpu.matmul %32, %34, %cst_37 {dimension_numbers = #tpu.dot_dimension_numbers<[1], [0], [0], [1], [0, 0, 1, 1], [], []>} : vector<32x131xbf16>, vector<131x64xbf16>, vector<32x64xf32> -> vector<32x64xf32>
    %36 = arith.addf %31, %35 : vector<32x64xf32>
    %c5 = arith.constant 5 : index
    %c0_38 = arith.constant 0 : index
    %37 = vector.load %arg15[%c5, %c0_38] : memref<40x131xbf16, #tpu.memory_space<vmem>>, vector<32x131xbf16>
    %c5_39 = arith.constant 5 : index
    %c0_40 = arith.constant 0 : index
    %c0_41 = arith.constant 0 : index
    %38 = vector.load %arg5[%c5_39, %c0_40, %c0_41] : memref<9x131x64xbf16, #tpu.memory_space<vmem>>, vector<1x131x64xbf16>
    %39 = vector.shape_cast %38 : vector<1x131x64xbf16> to vector<131x64xbf16>
    %cst_42 = arith.constant dense<0.000000e+00> : vector<32x64xf32>
    %40 = tpu.matmul %37, %39, %cst_42 {dimension_numbers = #tpu.dot_dimension_numbers<[1], [0], [0], [1], [0, 0, 1, 1], [], []>} : vector<32x131xbf16>, vector<131x64xbf16>, vector<32x64xf32> -> vector<32x64xf32>
    %41 = arith.addf %36, %40 : vector<32x64xf32>
    %c6 = arith.constant 6 : index
    %c0_43 = arith.constant 0 : index
    %42 = vector.load %arg15[%c6, %c0_43] : memref<40x131xbf16, #tpu.memory_space<vmem>>, vector<32x131xbf16>
    %c6_44 = arith.constant 6 : index
    %c0_45 = arith.constant 0 : index
    %c0_46 = arith.constant 0 : index
    %43 = vector.load %arg5[%c6_44, %c0_45, %c0_46] : memref<9x131x64xbf16, #tpu.memory_space<vmem>>, vector<1x131x64xbf16>
    %44 = vector.shape_cast %43 : vector<1x131x64xbf16> to vector<131x64xbf16>
    %cst_47 = arith.constant dense<0.000000e+00> : vector<32x64xf32>
    %45 = tpu.matmul %42, %44, %cst_47 {dimension_numbers = #tpu.dot_dimension_numbers<[1], [0], [0], [1], [0, 0, 1, 1], [], []>} : vector<32x131xbf16>, vector<131x64xbf16>, vector<32x64xf32> -> vector<32x64xf32>
    %46 = arith.addf %41, %45 : vector<32x64xf32>
    %c7 = arith.constant 7 : index
    %c0_48 = arith.constant 0 : index
    %47 = vector.load %arg15[%c7, %c0_48] : memref<40x131xbf16, #tpu.memory_space<vmem>>, vector<32x131xbf16>
    %c7_49 = arith.constant 7 : index
    %c0_50 = arith.constant 0 : index
    %c0_51 = arith.constant 0 : index
    %48 = vector.load %arg5[%c7_49, %c0_50, %c0_51] : memref<9x131x64xbf16, #tpu.memory_space<vmem>>, vector<1x131x64xbf16>
    %49 = vector.shape_cast %48 : vector<1x131x64xbf16> to vector<131x64xbf16>
    %cst_52 = arith.constant dense<0.000000e+00> : vector<32x64xf32>
    %50 = tpu.matmul %47, %49, %cst_52 {dimension_numbers = #tpu.dot_dimension_numbers<[1], [0], [0], [1], [0, 0, 1, 1], [], []>} : vector<32x131xbf16>, vector<131x64xbf16>, vector<32x64xf32> -> vector<32x64xf32>
    %51 = arith.addf %46, %50 : vector<32x64xf32>
    %c8 = arith.constant 8 : index
    %c0_53 = arith.constant 0 : index
    %52 = vector.load %arg15[%c8, %c0_53] : memref<40x131xbf16, #tpu.memory_space<vmem>>, vector<32x131xbf16>
    %c8_54 = arith.constant 8 : index
    %c0_55 = arith.constant 0 : index
    %c0_56 = arith.constant 0 : index
    %53 = vector.load %arg5[%c8_54, %c0_55, %c0_56] : memref<9x131x64xbf16, #tpu.memory_space<vmem>>, vector<1x131x64xbf16>
    %54 = vector.shape_cast %53 : vector<1x131x64xbf16> to vector<131x64xbf16>
    %cst_57 = arith.constant dense<0.000000e+00> : vector<32x64xf32>
    %55 = tpu.matmul %52, %54, %cst_57 {dimension_numbers = #tpu.dot_dimension_numbers<[1], [0], [0], [1], [0, 0, 1, 1], [], []>} : vector<32x131xbf16>, vector<131x64xbf16>, vector<32x64xf32> -> vector<32x64xf32>
    %56 = arith.addf %51, %55 : vector<32x64xf32>
    %c0_58 = arith.constant 0 : index
    %c0_59 = arith.constant 0 : index
    %57 = vector.load %arg6[%c0_58, %c0_59] : memref<1x64xf32, #tpu.memory_space<vmem>>, vector<1x64xf32>
    %58 = vector.broadcast %57 : vector<1x64xf32> to vector<32x64xf32>
    %59 = arith.mulf %56, %58 : vector<32x64xf32>
    %c0_60 = arith.constant 0 : index
    %c0_61 = arith.constant 0 : index
    %60 = vector.load %arg7[%c0_60, %c0_61] : memref<1x64xf32, #tpu.memory_space<vmem>>, vector<1x64xf32>
    %61 = vector.broadcast %60 : vector<1x64xf32> to vector<32x64xf32>
    %62 = arith.addf %59, %61 : vector<32x64xf32>
    %cst_62 = arith.constant 0.000000e+00 : f32
    %63 = vector.broadcast %cst_62 : f32 to vector<32x64xf32>
    %64 = arith.cmpf ogt, %62, %63 : vector<32x64xf32>
    %cst_63 = arith.constant 0.000000e+00 : f32
    %65 = vector.broadcast %cst_63 : f32 to vector<32x64xf32>
    %66 = arith.minimumf %62, %65 : vector<32x64xf32>
    %67 = math.exp %66 : vector<32x64xf32>
    %cst_64 = arith.constant 1.000000e+00 : f32
    %68 = vector.broadcast %cst_64 : f32 to vector<32x64xf32>
    %69 = arith.subf %67, %68 : vector<32x64xf32>
    %70 = arith.select %64, %62, %69 : vector<32x64xi1>, vector<32x64xf32>
    %71 = tpu.iota {dimensions = array<i32: 0>} : vector<32x1xi32>
    %72 = vector.broadcast %10 : i32 to vector<32x1xi32>
    %73 = arith.addi %71, %72 : vector<32x1xi32>
    %c0_i32 = arith.constant 0 : i32
    %74 = vector.broadcast %c0_i32 : i32 to vector<32x1xi32>
    %75 = arith.cmpi sge, %73, %74 : vector<32x1xi32>
    %c16_i32_65 = arith.constant 16 : i32
    %76 = vector.broadcast %c16_i32_65 : i32 to vector<32x1xi32>
    %77 = arith.cmpi slt, %73, %76 : vector<32x1xi32>
    %78 = arith.andi %75, %77 : vector<32x1xi1>
    %cst_66 = arith.constant 0.000000e+00 : f32
    %79 = vector.shape_cast %78 : vector<32x1xi1> to vector<32x1xi1>
    %80 = vector.broadcast %79 : vector<32x1xi1> to vector<32x64xi1>
    %81 = vector.broadcast %cst_66 : f32 to vector<32x64xf32>
    %82 = arith.select %80, %70, %81 : vector<32x64xi1>, vector<32x64xf32>
    %83 = arith.truncf %82 : vector<32x64xf32> to vector<32x64xbf16>
    %c0_67 = arith.constant 0 : index
    %c0_68 = arith.constant 0 : index
    %84 = vector.load %arg16[%c0_67, %c0_68] : memref<32x64xbf16, #tpu.memory_space<vmem>>, vector<32x64xbf16>
    tpu.vector_store %arg16[%c0_67, %c0_68], %83 {strides = array<i32>} : memref<32x64xbf16, #tpu.memory_space<vmem>>, vector<32x64xbf16>,
    %c4_i32 = arith.constant 4 : i32
    %85 = arith.subi %0, %c4_i32 : i32
    %cst_69 = arith.constant 0.000000e+00 : f32
    %86 = vector.broadcast %cst_69 : f32 to vector<24x128xf32>
    %c0_70 = arith.constant 0 : index
    %c0_71 = arith.constant 0 : index
    %87 = vector.load %arg16[%c0_70, %c0_71] : memref<32x64xbf16, #tpu.memory_space<vmem>>, vector<24x64xbf16>
    %c0_72 = arith.constant 0 : index
    %c0_73 = arith.constant 0 : index
    %c0_74 = arith.constant 0 : index
    %88 = vector.load %arg8[%c0_72, %c0_73, %c0_74] : memref<9x64x128xbf16, #tpu.memory_space<vmem>>, vector<1x64x128xbf16>
    %89 = vector.shape_cast %88 : vector<1x64x128xbf16> to vector<64x128xbf16>
    %cst_75 = arith.constant dense<0.000000e+00> : vector<24x128xf32>
    %90 = tpu.matmul %87, %89, %cst_75 {dimension_numbers = #tpu.dot_dimension_numbers<[1], [0], [0], [1], [0, 0, 1, 1], [], []>} : vector<24x64xbf16>, vector<64x128xbf16>, vector<24x128xf32> -> vector<24x128xf32>
    %91 = arith.addf %86, %90 : vector<24x128xf32>
    %c1_76 = arith.constant 1 : index
    %c0_77 = arith.constant 0 : index
    %92 = vector.load %arg16[%c1_76, %c0_77] : memref<32x64xbf16, #tpu.memory_space<vmem>>, vector<24x64xbf16>
    %c1_78 = arith.constant 1 : index
    %c0_79 = arith.constant 0 : index
    %c0_80 = arith.constant 0 : index
    %93 = vector.load %arg8[%c1_78, %c0_79, %c0_80] : memref<9x64x128xbf16, #tpu.memory_space<vmem>>, vector<1x64x128xbf16>
    %94 = vector.shape_cast %93 : vector<1x64x128xbf16> to vector<64x128xbf16>
    %cst_81 = arith.constant dense<0.000000e+00> : vector<24x128xf32>
    %95 = tpu.matmul %92, %94, %cst_81 {dimension_numbers = #tpu.dot_dimension_numbers<[1], [0], [0], [1], [0, 0, 1, 1], [], []>} : vector<24x64xbf16>, vector<64x128xbf16>, vector<24x128xf32> -> vector<24x128xf32>
    %96 = arith.addf %91, %95 : vector<24x128xf32>
    %c2_82 = arith.constant 2 : index
    %c0_83 = arith.constant 0 : index
    %97 = vector.load %arg16[%c2_82, %c0_83] : memref<32x64xbf16, #tpu.memory_space<vmem>>, vector<24x64xbf16>
    %c2_84 = arith.constant 2 : index
    %c0_85 = arith.constant 0 : index
    %c0_86 = arith.constant 0 : index
    %98 = vector.load %arg8[%c2_84, %c0_85, %c0_86] : memref<9x64x128xbf16, #tpu.memory_space<vmem>>, vector<1x64x128xbf16>
    %99 = vector.shape_cast %98 : vector<1x64x128xbf16> to vector<64x128xbf16>
    %cst_87 = arith.constant dense<0.000000e+00> : vector<24x128xf32>
    %100 = tpu.matmul %97, %99, %cst_87 {dimension_numbers = #tpu.dot_dimension_numbers<[1], [0], [0], [1], [0, 0, 1, 1], [], []>} : vector<24x64xbf16>, vector<64x128xbf16>, vector<24x128xf32> -> vector<24x128xf32>
    %101 = arith.addf %96, %100 : vector<24x128xf32>
    %c3_88 = arith.constant 3 : index
    %c0_89 = arith.constant 0 : index
    %102 = vector.load %arg16[%c3_88, %c0_89] : memref<32x64xbf16, #tpu.memory_space<vmem>>, vector<24x64xbf16>
    %c3_90 = arith.constant 3 : index
    %c0_91 = arith.constant 0 : index
    %c0_92 = arith.constant 0 : index
    %103 = vector.load %arg8[%c3_90, %c0_91, %c0_92] : memref<9x64x128xbf16, #tpu.memory_space<vmem>>, vector<1x64x128xbf16>
    %104 = vector.shape_cast %103 : vector<1x64x128xbf16> to vector<64x128xbf16>
    %cst_93 = arith.constant dense<0.000000e+00> : vector<24x128xf32>
    %105 = tpu.matmul %102, %104, %cst_93 {dimension_numbers = #tpu.dot_dimension_numbers<[1], [0], [0], [1], [0, 0, 1, 1], [], []>} : vector<24x64xbf16>, vector<64x128xbf16>, vector<24x128xf32> -> vector<24x128xf32>
    %106 = arith.addf %101, %105 : vector<24x128xf32>
    %c4_94 = arith.constant 4 : index
    %c0_95 = arith.constant 0 : index
    %107 = vector.load %arg16[%c4_94, %c0_95] : memref<32x64xbf16, #tpu.memory_space<vmem>>, vector<24x64xbf16>
    %c4_96 = arith.constant 4 : index
    %c0_97 = arith.constant 0 : index
    %c0_98 = arith.constant 0 : index
    %108 = vector.load %arg8[%c4_96, %c0_97, %c0_98] : memref<9x64x128xbf16, #tpu.memory_space<vmem>>, vector<1x64x128xbf16>
    %109 = vector.shape_cast %108 : vector<1x64x128xbf16> to vector<64x128xbf16>
    %cst_99 = arith.constant dense<0.000000e+00> : vector<24x128xf32>
    %110 = tpu.matmul %107, %109, %cst_99 {dimension_numbers = #tpu.dot_dimension_numbers<[1], [0], [0], [1], [0, 0, 1, 1], [], []>} : vector<24x64xbf16>, vector<64x128xbf16>, vector<24x128xf32> -> vector<24x128xf32>
    %111 = arith.addf %106, %110 : vector<24x128xf32>
    %c5_100 = arith.constant 5 : index
    %c0_101 = arith.constant 0 : index
    %112 = vector.load %arg16[%c5_100, %c0_101] : memref<32x64xbf16, #tpu.memory_space<vmem>>, vector<24x64xbf16>
    %c5_102 = arith.constant 5 : index
    %c0_103 = arith.constant 0 : index
    %c0_104 = arith.constant 0 : index
    %113 = vector.load %arg8[%c5_102, %c0_103, %c0_104] : memref<9x64x128xbf16, #tpu.memory_space<vmem>>, vector<1x64x128xbf16>
    %114 = vector.shape_cast %113 : vector<1x64x128xbf16> to vector<64x128xbf16>
    %cst_105 = arith.constant dense<0.000000e+00> : vector<24x128xf32>
    %115 = tpu.matmul %112, %114, %cst_105 {dimension_numbers = #tpu.dot_dimension_numbers<[1], [0], [0], [1], [0, 0, 1, 1], [], []>} : vector<24x64xbf16>, vector<64x128xbf16>, vector<24x128xf32> -> vector<24x128xf32>
    %116 = arith.addf %111, %115 : vector<24x128xf32>
    %c6_106 = arith.constant 6 : index
    %c0_107 = arith.constant 0 : index
    %117 = vector.load %arg16[%c6_106, %c0_107] : memref<32x64xbf16, #tpu.memory_space<vmem>>, vector<24x64xbf16>
    %c6_108 = arith.constant 6 : index
    %c0_109 = arith.constant 0 : index
    %c0_110 = arith.constant 0 : index
    %118 = vector.load %arg8[%c6_108, %c0_109, %c0_110] : memref<9x64x128xbf16, #tpu.memory_space<vmem>>, vector<1x64x128xbf16>
    %119 = vector.shape_cast %118 : vector<1x64x128xbf16> to vector<64x128xbf16>
    %cst_111 = arith.constant dense<0.000000e+00> : vector<24x128xf32>
    %120 = tpu.matmul %117, %119, %cst_111 {dimension_numbers = #tpu.dot_dimension_numbers<[1], [0], [0], [1], [0, 0, 1, 1], [], []>} : vector<24x64xbf16>, vector<64x128xbf16>, vector<24x128xf32> -> vector<24x128xf32>
    %121 = arith.addf %116, %120 : vector<24x128xf32>
    %c7_112 = arith.constant 7 : index
    %c0_113 = arith.constant 0 : index
    %122 = vector.load %arg16[%c7_112, %c0_113] : memref<32x64xbf16, #tpu.memory_space<vmem>>, vector<24x64xbf16>
    %c7_114 = arith.constant 7 : index
    %c0_115 = arith.constant 0 : index
    %c0_116 = arith.constant 0 : index
    %123 = vector.load %arg8[%c7_114, %c0_115, %c0_116] : memref<9x64x128xbf16, #tpu.memory_space<vmem>>, vector<1x64x128xbf16>
    %124 = vector.shape_cast %123 : vector<1x64x128xbf16> to vector<64x128xbf16>
    %cst_117 = arith.constant dense<0.000000e+00> : vector<24x128xf32>
    %125 = tpu.matmul %122, %124, %cst_117 {dimension_numbers = #tpu.dot_dimension_numbers<[1], [0], [0], [1], [0, 0, 1, 1], [], []>} : vector<24x64xbf16>, vector<64x128xbf16>, vector<24x128xf32> -> vector<24x128xf32>
    %126 = arith.addf %121, %125 : vector<24x128xf32>
    %c8_118 = arith.constant 8 : index
    %c0_119 = arith.constant 0 : index
    %127 = vector.load %arg16[%c8_118, %c0_119] : memref<32x64xbf16, #tpu.memory_space<vmem>>, vector<24x64xbf16>
    %c8_120 = arith.constant 8 : index
    %c0_121 = arith.constant 0 : index
    %c0_122 = arith.constant 0 : index
    %128 = vector.load %arg8[%c8_120, %c0_121, %c0_122] : memref<9x64x128xbf16, #tpu.memory_space<vmem>>, vector<1x64x128xbf16>
    %129 = vector.shape_cast %128 : vector<1x64x128xbf16> to vector<64x128xbf16>
    %cst_123 = arith.constant dense<0.000000e+00> : vector<24x128xf32>
    %130 = tpu.matmul %127, %129, %cst_123 {dimension_numbers = #tpu.dot_dimension_numbers<[1], [0], [0], [1], [0, 0, 1, 1], [], []>} : vector<24x64xbf16>, vector<64x128xbf16>, vector<24x128xf32> -> vector<24x128xf32>
    %131 = arith.addf %126, %130 : vector<24x128xf32>
    %c0_124 = arith.constant 0 : index
    %c0_125 = arith.constant 0 : index
    %132 = vector.load %arg9[%c0_124, %c0_125] : memref<1x128xf32, #tpu.memory_space<vmem>>, vector<1x128xf32>
    %133 = vector.broadcast %132 : vector<1x128xf32> to vector<24x128xf32>
    %134 = arith.mulf %131, %133 : vector<24x128xf32>
    %c0_126 = arith.constant 0 : index
    %c0_127 = arith.constant 0 : index
    %135 = vector.load %arg10[%c0_126, %c0_127] : memref<1x128xf32, #tpu.memory_space<vmem>>, vector<1x128xf32>
    %136 = vector.broadcast %135 : vector<1x128xf32> to vector<24x128xf32>
    %137 = arith.addf %134, %136 : vector<24x128xf32>
    %cst_128 = arith.constant 0.000000e+00 : f32
    %138 = vector.broadcast %cst_128 : f32 to vector<24x128xf32>
    %139 = arith.cmpf ogt, %137, %138 : vector<24x128xf32>
    %cst_129 = arith.constant 0.000000e+00 : f32
    %140 = vector.broadcast %cst_129 : f32 to vector<24x128xf32>
    %141 = arith.minimumf %137, %140 : vector<24x128xf32>
    %142 = math.exp %141 : vector<24x128xf32>
    %cst_130 = arith.constant 1.000000e+00 : f32
    %143 = vector.broadcast %cst_130 : f32 to vector<24x128xf32>
    %144 = arith.subf %142, %143 : vector<24x128xf32>
    %145 = arith.select %139, %137, %144 : vector<24x128xi1>, vector<24x128xf32>
    %146 = tpu.iota {dimensions = array<i32: 0>} : vector<24x1xi32>
    %147 = vector.broadcast %85 : i32 to vector<24x1xi32>
    %148 = arith.addi %146, %147 : vector<24x1xi32>
    %c0_i32_131 = arith.constant 0 : i32
    %149 = vector.broadcast %c0_i32_131 : i32 to vector<24x1xi32>
    %150 = arith.cmpi sge, %148, %149 : vector<24x1xi32>
    %c16_i32_132 = arith.constant 16 : i32
    %151 = vector.broadcast %c16_i32_132 : i32 to vector<24x1xi32>
    %152 = arith.cmpi slt, %148, %151 : vector<24x1xi32>
    %153 = arith.andi %150, %152 : vector<24x1xi1>
    %cst_133 = arith.constant 0.000000e+00 : f32
    %154 = vector.shape_cast %153 : vector<24x1xi1> to vector<24x1xi1>
    %155 = vector.broadcast %154 : vector<24x1xi1> to vector<24x128xi1>
    %156 = vector.broadcast %cst_133 : f32 to vector<24x128xf32>
    %157 = arith.select %155, %145, %156 : vector<24x128xi1>, vector<24x128xf32>
    %158 = arith.truncf %157 : vector<24x128xf32> to vector<24x128xbf16>
    %c0_134 = arith.constant 0 : index
    %c0_135 = arith.constant 0 : index
    %159 = vector.load %arg17[%c0_134, %c0_135] : memref<24x128xbf16, #tpu.memory_space<vmem>>, vector<24x128xbf16>
    tpu.vector_store %arg17[%c0_134, %c0_135], %158 {strides = array<i32>} : memref<24x128xbf16, #tpu.memory_space<vmem>>, vector<24x128xbf16>,
    %cst_136 = arith.constant 0.000000e+00 : f32
    %160 = vector.broadcast %cst_136 : f32 to vector<16x256xf32>
    %c0_137 = arith.constant 0 : index
    %c0_138 = arith.constant 0 : index
    %161 = vector.load %arg17[%c0_137, %c0_138] : memref<24x128xbf16, #tpu.memory_space<vmem>>, vector<16x128xbf16>
    %c0_139 = arith.constant 0 : index
    %c0_140 = arith.constant 0 : index
    %c0_141 = arith.constant 0 : index
    %162 = vector.load %arg11[%c0_139, %c0_140, %c0_141] : memref<9x128x256xbf16, #tpu.memory_space<vmem>>, vector<1x128x256xbf16>
    %163 = vector.shape_cast %162 : vector<1x128x256xbf16> to vector<128x256xbf16>
    %cst_142 = arith.constant dense<0.000000e+00> : vector<16x256xf32>
    %164 = tpu.matmul %161, %163, %cst_142 {dimension_numbers = #tpu.dot_dimension_numbers<[1], [0], [0], [1], [0, 0, 1, 1], [], []>} : vector<16x128xbf16>, vector<128x256xbf16>, vector<16x256xf32> -> vector<16x256xf32>
    %165 = arith.addf %160, %164 : vector<16x256xf32>
    %c1_143 = arith.constant 1 : index
    %c0_144 = arith.constant 0 : index
    %166 = vector.load %arg17[%c1_143, %c0_144] : memref<24x128xbf16, #tpu.memory_space<vmem>>, vector<16x128xbf16>
    %c1_145 = arith.constant 1 : index
    %c0_146 = arith.constant 0 : index
    %c0_147 = arith.constant 0 : index
    %167 = vector.load %arg11[%c1_145, %c0_146, %c0_147] : memref<9x128x256xbf16, #tpu.memory_space<vmem>>, vector<1x128x256xbf16>
    %168 = vector.shape_cast %167 : vector<1x128x256xbf16> to vector<128x256xbf16>
    %cst_148 = arith.constant dense<0.000000e+00> : vector<16x256xf32>
    %169 = tpu.matmul %166, %168, %cst_148 {dimension_numbers = #tpu.dot_dimension_numbers<[1], [0], [0], [1], [0, 0, 1, 1], [], []>} : vector<16x128xbf16>, vector<128x256xbf16>, vector<16x256xf32> -> vector<16x256xf32>
    %170 = arith.addf %165, %169 : vector<16x256xf32>
    %c2_149 = arith.constant 2 : index
    %c0_150 = arith.constant 0 : index
    %171 = vector.load %arg17[%c2_149, %c0_150] : memref<24x128xbf16, #tpu.memory_space<vmem>>, vector<16x128xbf16>
    %c2_151 = arith.constant 2 : index
    %c0_152 = arith.constant 0 : index
    %c0_153 = arith.constant 0 : index
    %172 = vector.load %arg11[%c2_151, %c0_152, %c0_153] : memref<9x128x256xbf16, #tpu.memory_space<vmem>>, vector<1x128x256xbf16>
    %173 = vector.shape_cast %172 : vector<1x128x256xbf16> to vector<128x256xbf16>
    %cst_154 = arith.constant dense<0.000000e+00> : vector<16x256xf32>
    %174 = tpu.matmul %171, %173, %cst_154 {dimension_numbers = #tpu.dot_dimension_numbers<[1], [0], [0], [1], [0, 0, 1, 1], [], []>} : vector<16x128xbf16>, vector<128x256xbf16>, vector<16x256xf32> -> vector<16x256xf32>
    %175 = arith.addf %170, %174 : vector<16x256xf32>
    %c3_155 = arith.constant 3 : index
    %c0_156 = arith.constant 0 : index
    %176 = vector.load %arg17[%c3_155, %c0_156] : memref<24x128xbf16, #tpu.memory_space<vmem>>, vector<16x128xbf16>
    %c3_157 = arith.constant 3 : index
    %c0_158 = arith.constant 0 : index
    %c0_159 = arith.constant 0 : index
    %177 = vector.load %arg11[%c3_157, %c0_158, %c0_159] : memref<9x128x256xbf16, #tpu.memory_space<vmem>>, vector<1x128x256xbf16>
    %178 = vector.shape_cast %177 : vector<1x128x256xbf16> to vector<128x256xbf16>
    %cst_160 = arith.constant dense<0.000000e+00> : vector<16x256xf32>
    %179 = tpu.matmul %176, %178, %cst_160 {dimension_numbers = #tpu.dot_dimension_numbers<[1], [0], [0], [1], [0, 0, 1, 1], [], []>} : vector<16x128xbf16>, vector<128x256xbf16>, vector<16x256xf32> -> vector<16x256xf32>
    %180 = arith.addf %175, %179 : vector<16x256xf32>
    %c4_161 = arith.constant 4 : index
    %c0_162 = arith.constant 0 : index
    %181 = vector.load %arg17[%c4_161, %c0_162] : memref<24x128xbf16, #tpu.memory_space<vmem>>, vector<16x128xbf16>
    %c4_163 = arith.constant 4 : index
    %c0_164 = arith.constant 0 : index
    %c0_165 = arith.constant 0 : index
    %182 = vector.load %arg11[%c4_163, %c0_164, %c0_165] : memref<9x128x256xbf16, #tpu.memory_space<vmem>>, vector<1x128x256xbf16>
    %183 = vector.shape_cast %182 : vector<1x128x256xbf16> to vector<128x256xbf16>
    %cst_166 = arith.constant dense<0.000000e+00> : vector<16x256xf32>
    %184 = tpu.matmul %181, %183, %cst_166 {dimension_numbers = #tpu.dot_dimension_numbers<[1], [0], [0], [1], [0, 0, 1, 1], [], []>} : vector<16x128xbf16>, vector<128x256xbf16>, vector<16x256xf32> -> vector<16x256xf32>
    %185 = arith.addf %180, %184 : vector<16x256xf32>
    %c5_167 = arith.constant 5 : index
    %c0_168 = arith.constant 0 : index
    %186 = vector.load %arg17[%c5_167, %c0_168] : memref<24x128xbf16, #tpu.memory_space<vmem>>, vector<16x128xbf16>
    %c5_169 = arith.constant 5 : index
    %c0_170 = arith.constant 0 : index
    %c0_171 = arith.constant 0 : index
    %187 = vector.load %arg11[%c5_169, %c0_170, %c0_171] : memref<9x128x256xbf16, #tpu.memory_space<vmem>>, vector<1x128x256xbf16>
    %188 = vector.shape_cast %187 : vector<1x128x256xbf16> to vector<128x256xbf16>
    %cst_172 = arith.constant dense<0.000000e+00> : vector<16x256xf32>
    %189 = tpu.matmul %186, %188, %cst_172 {dimension_numbers = #tpu.dot_dimension_numbers<[1], [0], [0], [1], [0, 0, 1, 1], [], []>} : vector<16x128xbf16>, vector<128x256xbf16>, vector<16x256xf32> -> vector<16x256xf32>
    %190 = arith.addf %185, %189 : vector<16x256xf32>
    %c6_173 = arith.constant 6 : index
    %c0_174 = arith.constant 0 : index
    %191 = vector.load %arg17[%c6_173, %c0_174] : memref<24x128xbf16, #tpu.memory_space<vmem>>, vector<16x128xbf16>
    %c6_175 = arith.constant 6 : index
    %c0_176 = arith.constant 0 : index
    %c0_177 = arith.constant 0 : index
    %192 = vector.load %arg11[%c6_175, %c0_176, %c0_177] : memref<9x128x256xbf16, #tpu.memory_space<vmem>>, vector<1x128x256xbf16>
    %193 = vector.shape_cast %192 : vector<1x128x256xbf16> to vector<128x256xbf16>
    %cst_178 = arith.constant dense<0.000000e+00> : vector<16x256xf32>
    %194 = tpu.matmul %191, %193, %cst_178 {dimension_numbers = #tpu.dot_dimension_numbers<[1], [0], [0], [1], [0, 0, 1, 1], [], []>} : vector<16x128xbf16>, vector<128x256xbf16>, vector<16x256xf32> -> vector<16x256xf32>
    %195 = arith.addf %190, %194 : vector<16x256xf32>
    %c7_179 = arith.constant 7 : index
    %c0_180 = arith.constant 0 : index
    %196 = vector.load %arg17[%c7_179, %c0_180] : memref<24x128xbf16, #tpu.memory_space<vmem>>, vector<16x128xbf16>
    %c7_181 = arith.constant 7 : index
    %c0_182 = arith.constant 0 : index
    %c0_183 = arith.constant 0 : index
    %197 = vector.load %arg11[%c7_181, %c0_182, %c0_183] : memref<9x128x256xbf16, #tpu.memory_space<vmem>>, vector<1x128x256xbf16>
    %198 = vector.shape_cast %197 : vector<1x128x256xbf16> to vector<128x256xbf16>
    %cst_184 = arith.constant dense<0.000000e+00> : vector<16x256xf32>
    %199 = tpu.matmul %196, %198, %cst_184 {dimension_numbers = #tpu.dot_dimension_numbers<[1], [0], [0], [1], [0, 0, 1, 1], [], []>} : vector<16x128xbf16>, vector<128x256xbf16>, vector<16x256xf32> -> vector<16x256xf32>
    %200 = arith.addf %195, %199 : vector<16x256xf32>
    %c8_185 = arith.constant 8 : index
    %c0_186 = arith.constant 0 : index
    %201 = vector.load %arg17[%c8_185, %c0_186] : memref<24x128xbf16, #tpu.memory_space<vmem>>, vector<16x128xbf16>
    %c8_187 = arith.constant 8 : index
    %c0_188 = arith.constant 0 : index
    %c0_189 = arith.constant 0 : index
    %202 = vector.load %arg11[%c8_187, %c0_188, %c0_189] : memref<9x128x256xbf16, #tpu.memory_space<vmem>>, vector<1x128x256xbf16>
    %203 = vector.shape_cast %202 : vector<1x128x256xbf16> to vector<128x256xbf16>
    %cst_190 = arith.constant dense<0.000000e+00> : vector<16x256xf32>
    %204 = tpu.matmul %201, %203, %cst_190 {dimension_numbers = #tpu.dot_dimension_numbers<[1], [0], [0], [1], [0, 0, 1, 1], [], []>} : vector<16x128xbf16>, vector<128x256xbf16>, vector<16x256xf32> -> vector<16x256xf32>
    %205 = arith.addf %200, %204 : vector<16x256xf32>
    %c0_191 = arith.constant 0 : index
    %c0_192 = arith.constant 0 : index
    %206 = vector.load %arg12[%c0_191, %c0_192] : memref<1x256xf32, #tpu.memory_space<vmem>>, vector<1x256xf32>
    %207 = vector.broadcast %206 : vector<1x256xf32> to vector<16x256xf32>
    %208 = arith.mulf %205, %207 : vector<16x256xf32>
    %c0_193 = arith.constant 0 : index
    %c0_194 = arith.constant 0 : index
    %209 = vector.load %arg13[%c0_193, %c0_194] : memref<1x256xf32, #tpu.memory_space<vmem>>, vector<1x256xf32>
    %210 = vector.broadcast %209 : vector<1x256xf32> to vector<16x256xf32>
    %211 = arith.addf %208, %210 : vector<16x256xf32>
    %cst_195 = arith.constant 0.000000e+00 : f32
    %212 = vector.broadcast %cst_195 : f32 to vector<16x256xf32>
    %213 = arith.cmpf ogt, %211, %212 : vector<16x256xf32>
    %cst_196 = arith.constant 0.000000e+00 : f32
    %214 = vector.broadcast %cst_196 : f32 to vector<16x256xf32>
    %215 = arith.minimumf %211, %214 : vector<16x256xf32>
    %216 = math.exp %215 : vector<16x256xf32>
    %cst_197 = arith.constant 1.000000e+00 : f32
    %217 = vector.broadcast %cst_197 : f32 to vector<16x256xf32>
    %218 = arith.subf %216, %217 : vector<16x256xf32>
    %219 = arith.select %213, %211, %218 : vector<16x256xi1>, vector<16x256xf32>
    %220 = tpu.iota {dimensions = array<i32: 0>} : vector<16x1xi32>
    %221 = vector.broadcast %0 : i32 to vector<16x1xi32>
    %222 = arith.addi %220, %221 : vector<16x1xi32>
    %c0_i32_198 = arith.constant 0 : i32
    %223 = vector.broadcast %c0_i32_198 : i32 to vector<16x1xi32>
    %224 = arith.cmpi sge, %222, %223 : vector<16x1xi32>
    %c16_i32_199 = arith.constant 16 : i32
    %225 = vector.broadcast %c16_i32_199 : i32 to vector<16x1xi32>
    %226 = arith.cmpi slt, %222, %225 : vector<16x1xi32>
    %227 = arith.andi %224, %226 : vector<16x1xi1>
    %cst_200 = arith.constant 0.000000e+00 : f32
    %228 = vector.shape_cast %227 : vector<16x1xi1> to vector<16x1xi1>
    %229 = vector.broadcast %228 : vector<16x1xi1> to vector<16x256xi1>
    %230 = vector.broadcast %cst_200 : f32 to vector<16x256xf32>
    %231 = arith.select %229, %219, %230 : vector<16x256xi1>, vector<16x256xf32>
    %232 = arith.truncf %231 : vector<16x256xf32> to vector<16x256xbf16>
    %c0_201 = arith.constant 0 : index
    %c0_202 = arith.constant 0 : index
    %c0_203 = arith.constant 0 : index
    %233 = vector.load %arg14[%c0_201, %c0_202, %c0_203] : memref<1x16x256xbf16, #tpu.memory_space<vmem>>, vector<1x16x256xbf16>
    %234 = vector.shape_cast %233 : vector<1x16x256xbf16> to vector<16x256xbf16>
    %235 = vector.shape_cast %232 : vector<16x256xbf16> to vector<1x16x256xbf16>
    tpu.vector_store %arg14[%c0_201, %c0_202, %c0_203], %235 {strides = array<i32>} : memref<1x16x256xbf16, #tpu.memory_space<vmem>>, vector<1x16x256xbf16>,
    return
  }
  func.func @transform_0(%arg0: i32, %arg1: i32) -> (i32, i32, i32) {
    %c0_i32 = arith.constant 0 : i32
    %0 = arith.addi %arg1, %c0_i32 : i32
    %c0_i32_0 = arith.constant 0 : i32
    %c0_i32_1 = arith.constant 0 : i32
    return %arg0, %0, %c0_i32_0 : i32, i32, i32
  }
  func.func @transform_1(%arg0: i32, %arg1: i32) -> (i32, i32, i32) {
    %c1_i32 = arith.constant 1 : i32
    %0 = arith.addi %arg1, %c1_i32 : i32
    %c0_i32 = arith.constant 0 : i32
    %c0_i32_0 = arith.constant 0 : i32
    return %arg0, %0, %c0_i32 : i32, i32, i32
  }
  func.func @transform_2(%arg0: i32, %arg1: i32) -> (i32, i32, i32) {
    %c2_i32 = arith.constant 2 : i32
    %0 = arith.addi %arg1, %c2_i32 : i32
    %c0_i32 = arith.constant 0 : i32
    %c0_i32_0 = arith.constant 0 : i32
    return %arg0, %0, %c0_i32 : i32, i32, i32
  }
  func.func @transform_3(%arg0: i32, %arg1: i32) -> (i32, i32, i32) {
    %c0_i32 = arith.constant 0 : i32
    %c0_i32_0 = arith.constant 0 : i32
    %c0_i32_1 = arith.constant 0 : i32
    %c0_i32_2 = arith.constant 0 : i32
    return %c0_i32, %c0_i32_0, %c0_i32_1 : i32, i32, i32
  }
  func.func @transform_4(%arg0: i32, %arg1: i32) -> (i32, i32) {
    %c0_i32 = arith.constant 0 : i32
    %c0_i32_0 = arith.constant 0 : i32
    %c0_i32_1 = arith.constant 0 : i32
    return %c0_i32, %c0_i32_0 : i32, i32
  }
  func.func @transform_5(%arg0: i32, %arg1: i32) -> (i32, i32) {
    %c0_i32 = arith.constant 0 : i32
    %c0_i32_0 = arith.constant 0 : i32
    %c0_i32_1 = arith.constant 0 : i32
    return %c0_i32, %c0_i32_0 : i32, i32
  }
  func.func @transform_6(%arg0: i32, %arg1: i32) -> (i32, i32, i32) {
    %c0_i32 = arith.constant 0 : i32
    %c0_i32_0 = arith.constant 0 : i32
    %c0_i32_1 = arith.constant 0 : i32
    %c0_i32_2 = arith.constant 0 : i32
    return %c0_i32, %c0_i32_0, %c0_i32_1 : i32, i32, i32
  }
  func.func @transform_7(%arg0: i32, %arg1: i32) -> (i32, i32) {
    %c0_i32 = arith.constant 0 : i32
    %c0_i32_0 = arith.constant 0 : i32
    %c0_i32_1 = arith.constant 0 : i32
    return %c0_i32, %c0_i32_0 : i32, i32
  }
  func.func @transform_8(%arg0: i32, %arg1: i32) -> (i32, i32) {
    %c0_i32 = arith.constant 0 : i32
    %c0_i32_0 = arith.constant 0 : i32
    %c0_i32_1 = arith.constant 0 : i32
    return %c0_i32, %c0_i32_0 : i32, i32
  }
  func.func @transform_9(%arg0: i32, %arg1: i32) -> (i32, i32, i32) {
    %c0_i32 = arith.constant 0 : i32
    %c0_i32_0 = arith.constant 0 : i32
    %c0_i32_1 = arith.constant 0 : i32
    %c0_i32_2 = arith.constant 0 : i32
    return %c0_i32, %c0_i32_0, %c0_i32_1 : i32, i32, i32
  }
  func.func @transform_10(%arg0: i32, %arg1: i32) -> (i32, i32) {
    %c0_i32 = arith.constant 0 : i32
    %c0_i32_0 = arith.constant 0 : i32
    %c0_i32_1 = arith.constant 0 : i32
    return %c0_i32, %c0_i32_0 : i32, i32
  }
  func.func @transform_11(%arg0: i32, %arg1: i32) -> (i32, i32) {
    %c0_i32 = arith.constant 0 : i32
    %c0_i32_0 = arith.constant 0 : i32
    %c0_i32_1 = arith.constant 0 : i32
    return %c0_i32, %c0_i32_0 : i32, i32
  }
  func.func @transform_12(%arg0: i32, %arg1: i32) -> (i32, i32, i32) {
    %c0_i32 = arith.constant 0 : i32
    %c0_i32_0 = arith.constant 0 : i32
    return %arg0, %arg1, %c0_i32 : i32, i32, i32
  }
}

module attributes {stable_mosaic.version = 11 : i64} {
  func.func @_bigru_layer_kernel(%arg0: i32, %arg1: i32, %arg2: memref<16x2x256xbf16, #tpu.memory_space<vmem>>, %arg3: memref<1x256x384xbf16, #tpu.memory_space<vmem>>, %arg4: memref<1x128x384xbf16, #tpu.memory_space<vmem>>, %arg5: memref<1x1x384xf32, #tpu.memory_space<vmem>>, %arg6: memref<1x1x128xf32, #tpu.memory_space<vmem>>, %arg7: memref<16x2x128xbf16, #tpu.memory_space<vmem>>, %arg8: memref<2x128xf32, #tpu.memory_space<vmem>>, %arg9: memref<16x2x384xf32, #tpu.memory_space<vmem>>) attributes {dimension_semantics = [#tpu.dimension_semantics<parallel>, #tpu.dimension_semantics<arbitrary>], iteration_bounds = array<i64: 2, 1>, scalar_prefetch = 0 : i64, scratch_operands = 2 : i64, tpu.core_type = #tpu.core_type<tc>, window_params = [{transform_indices = @transform_0, window_bounds = array<i64: 16, 2, 256>}, {transform_indices = @transform_1, window_bounds = array<i64: 1, 256, 384>}, {transform_indices = @transform_2, window_bounds = array<i64: 1, 128, 384>}, {transform_indices = @transform_3, window_bounds = array<i64: 1, 1, 384>}, {transform_indices = @transform_4, window_bounds = array<i64: 1, 1, 128>}, {transform_indices = @transform_5, window_bounds = array<i64: 16, 2, 128>}]} {
    %c0_i32 = arith.constant 0 : i32
    %0 = arith.cmpi eq, %arg1, %c0_i32 : i32
    %1 = arith.extui %0 : i1 to i32
    %c0_i32_0 = arith.constant 0 : i32
    %2 = arith.cmpi ne, %1, %c0_i32_0 : i32
    scf.if %2 {
      %cst_30 = arith.constant 0.000000e+00 : f32
      %31 = vector.broadcast %cst_30 : f32 to vector<2x128xf32>
      %c0_31 = arith.constant 0 : index
      %c0_32 = arith.constant 0 : index
      %32 = vector.load %arg8[%c0_31, %c0_32] : memref<2x128xf32, #tpu.memory_space<vmem>>, vector<2x128xf32>
      tpu.vector_store %arg8[%c0_31, %c0_32], %31 {strides = array<i32>} : memref<2x128xf32, #tpu.memory_space<vmem>>, vector<2x128xf32>,
    } else {
    }
    %c0 = arith.constant 0 : index
    %c0_1 = arith.constant 0 : index
    %c0_2 = arith.constant 0 : index
    %3 = vector.load %arg3[%c0, %c0_1, %c0_2] : memref<1x256x384xbf16, #tpu.memory_space<vmem>>, vector<1x256x384xbf16>
    %4 = vector.shape_cast %3 : vector<1x256x384xbf16> to vector<256x384xbf16>
    %c0_3 = arith.constant 0 : index
    %c0_4 = arith.constant 0 : index
    %c0_5 = arith.constant 0 : index
    %5 = vector.load %arg5[%c0_3, %c0_4, %c0_5] : memref<1x1x384xf32, #tpu.memory_space<vmem>>, vector<1x1x384xf32>
    %6 = vector.shape_cast %5 : vector<1x1x384xf32> to vector<1x384xf32>
    %c0_6 = arith.constant 0 : index
    %c0_7 = arith.constant 0 : index
    %c0_8 = arith.constant 0 : index
    %7 = vector.load %arg2[%c0_6, %c0_7, %c0_8] : memref<16x2x256xbf16, #tpu.memory_space<vmem>>, vector<16x1x256xbf16>
    %8 = vector.shape_cast %7 : vector<16x1x256xbf16> to vector<16x256xbf16>
    %cst = arith.constant dense<0.000000e+00> : vector<16x384xf32>
    %9 = tpu.matmul %8, %4, %cst {dimension_numbers = #tpu.dot_dimension_numbers<[1], [0], [0], [1], [0, 0, 1, 1], [], []>} : vector<16x256xbf16>, vector<256x384xbf16>, vector<16x384xf32> -> vector<16x384xf32>
    %10 = vector.broadcast %6 : vector<1x384xf32> to vector<16x384xf32>
    %11 = arith.addf %9, %10 : vector<16x384xf32>
    %c0_9 = arith.constant 0 : index
    %c0_10 = arith.constant 0 : index
    %c0_11 = arith.constant 0 : index
    %12 = vector.load %arg9[%c0_9, %c0_10, %c0_11] : memref<16x2x384xf32, #tpu.memory_space<vmem>>, vector<16x1x384xf32>
    %13 = vector.shape_cast %12 : vector<16x1x384xf32> to vector<16x384xf32>
    %14 = vector.shape_cast %11 : vector<16x384xf32> to vector<16x1x384xf32>
    tpu.vector_store %arg9[%c0_9, %c0_10, %c0_11], %14 {strides = array<i32>} : memref<16x2x384xf32, #tpu.memory_space<vmem>>, vector<16x1x384xf32>,
    %c0_12 = arith.constant 0 : index
    %c1 = arith.constant 1 : index
    %c0_13 = arith.constant 0 : index
    %15 = vector.load %arg2[%c0_12, %c1, %c0_13] : memref<16x2x256xbf16, #tpu.memory_space<vmem>>, vector<16x1x256xbf16>
    %16 = vector.shape_cast %15 : vector<16x1x256xbf16> to vector<16x256xbf16>
    %cst_14 = arith.constant dense<0.000000e+00> : vector<16x384xf32>
    %17 = tpu.matmul %16, %4, %cst_14 {dimension_numbers = #tpu.dot_dimension_numbers<[1], [0], [0], [1], [0, 0, 1, 1], [], []>} : vector<16x256xbf16>, vector<256x384xbf16>, vector<16x384xf32> -> vector<16x384xf32>
    %18 = vector.broadcast %6 : vector<1x384xf32> to vector<16x384xf32>
    %19 = arith.addf %17, %18 : vector<16x384xf32>
    %c0_15 = arith.constant 0 : index
    %c1_16 = arith.constant 1 : index
    %c0_17 = arith.constant 0 : index
    %20 = vector.load %arg9[%c0_15, %c1_16, %c0_17] : memref<16x2x384xf32, #tpu.memory_space<vmem>>, vector<16x1x384xf32>
    %21 = vector.shape_cast %20 : vector<16x1x384xf32> to vector<16x384xf32>
    %22 = vector.shape_cast %19 : vector<16x384xf32> to vector<16x1x384xf32>
    tpu.vector_store %arg9[%c0_15, %c1_16, %c0_17], %22 {strides = array<i32>} : memref<16x2x384xf32, #tpu.memory_space<vmem>>, vector<16x1x384xf32>,
    %c0_18 = arith.constant 0 : index
    %c0_19 = arith.constant 0 : index
    %c0_20 = arith.constant 0 : index
    %23 = vector.load %arg4[%c0_18, %c0_19, %c0_20] : memref<1x128x384xbf16, #tpu.memory_space<vmem>>, vector<1x128x384xbf16>
    %24 = vector.shape_cast %23 : vector<1x128x384xbf16> to vector<128x384xbf16>
    %c0_21 = arith.constant 0 : index
    %c0_22 = arith.constant 0 : index
    %c0_23 = arith.constant 0 : index
    %25 = vector.load %arg6[%c0_21, %c0_22, %c0_23] : memref<1x1x128xf32, #tpu.memory_space<vmem>>, vector<1x1x128xf32>
    %26 = vector.shape_cast %25 : vector<1x1x128xf32> to vector<1x128xf32>
    %c0_24 = arith.constant 0 : index
    %c0_25 = arith.constant 0 : index
    %27 = vector.load %arg8[%c0_24, %c0_25] : memref<2x128xf32, #tpu.memory_space<vmem>>, vector<2x128xf32>
    %c0_i32_26 = arith.constant 0 : i32
    %c16_i32 = arith.constant 16 : i32
    %28 = arith.addi %c0_i32_26, %c16_i32 : i32
    %c1_i32 = arith.constant 1 : i32
    %29 = scf.for %arg10 = %c0_i32_26 to %28 step %c1_i32 iter_args(%arg11 = %27) -> (vector<2x128xf32>)  : i32 {
      %c15_i32 = arith.constant 15 : i32
      %31 = arith.muli %arg0, %c15_i32 : i32
      %c2_i32 = arith.constant 2 : i32
      %32 = arith.muli %c2_i32, %arg0 : i32
      %c1_i32_30 = arith.constant 1 : i32
      %33 = arith.subi %c1_i32_30, %32 : i32
      %34 = arith.muli %33, %arg10 : i32
      %35 = arith.addi %31, %34 : i32
      %36 = arith.index_cast %35 : i32 to index
      %c0_31 = arith.constant 0 : index
      %c0_32 = arith.constant 0 : index
      %37 = vector.load %arg9[%36, %c0_31, %c0_32] : memref<16x2x384xf32, #tpu.memory_space<vmem>>, vector<1x2x384xf32>
      %38 = vector.shape_cast %37 : vector<1x2x384xf32> to vector<2x384xf32>
      %39 = arith.truncf %arg11 : vector<2x128xf32> to vector<2x128xbf16>
      %cst_33 = arith.constant dense<0.000000e+00> : vector<2x384xf32>
      %40 = tpu.matmul %39, %24, %cst_33 {dimension_numbers = #tpu.dot_dimension_numbers<[1], [0], [0], [1], [0, 0, 1, 1], [], []>} : vector<2x128xbf16>, vector<128x384xbf16>, vector<2x384xf32> -> vector<2x384xf32>
      %41 = vector.extract_strided_slice %38 {offsets = [0, 0], sizes = [2, 128], strides = [1, 1]} : vector<2x384xf32> to vector<2x128xf32>
      %42 = vector.extract_strided_slice %40 {offsets = [0, 0], sizes = [2, 128], strides = [1, 1]} : vector<2x384xf32> to vector<2x128xf32>
      %43 = arith.addf %41, %42 : vector<2x128xf32>
      %44 = arith.negf %43 : vector<2x128xf32>
      %45 = math.exp %44 : vector<2x128xf32>
      %cst_34 = arith.constant 1.000000e+00 : f32
      %46 = vector.broadcast %cst_34 : f32 to vector<2x128xf32>
      %47 = arith.addf %46, %45 : vector<2x128xf32>
      %48 = arith.divf %46, %47 : vector<2x128xf32>
      %49 = vector.extract_strided_slice %38 {offsets = [0, 128], sizes = [2, 128], strides = [1, 1]} : vector<2x384xf32> to vector<2x128xf32>
      %50 = vector.extract_strided_slice %40 {offsets = [0, 128], sizes = [2, 128], strides = [1, 1]} : vector<2x384xf32> to vector<2x128xf32>
      %51 = arith.addf %49, %50 : vector<2x128xf32>
      %52 = arith.negf %51 : vector<2x128xf32>
      %53 = math.exp %52 : vector<2x128xf32>
      %cst_35 = arith.constant 1.000000e+00 : f32
      %54 = vector.broadcast %cst_35 : f32 to vector<2x128xf32>
      %55 = arith.addf %54, %53 : vector<2x128xf32>
      %56 = arith.divf %54, %55 : vector<2x128xf32>
      %57 = vector.extract_strided_slice %38 {offsets = [0, 256], sizes = [2, 128], strides = [1, 1]} : vector<2x384xf32> to vector<2x128xf32>
      %58 = vector.extract_strided_slice %40 {offsets = [0, 256], sizes = [2, 128], strides = [1, 1]} : vector<2x384xf32> to vector<2x128xf32>
      %59 = vector.broadcast %26 : vector<1x128xf32> to vector<2x128xf32>
      %60 = arith.addf %58, %59 : vector<2x128xf32>
      %61 = arith.mulf %48, %60 : vector<2x128xf32>
      %62 = arith.addf %57, %61 : vector<2x128xf32>
      %63 = math.tanh %62 : vector<2x128xf32>
      %cst_36 = arith.constant 1.000000e+00 : f32
      %64 = vector.broadcast %cst_36 : f32 to vector<2x128xf32>
      %65 = arith.subf %64, %56 : vector<2x128xf32>
      %66 = arith.mulf %65, %63 : vector<2x128xf32>
      %67 = arith.mulf %56, %arg11 : vector<2x128xf32>
      %68 = arith.addf %66, %67 : vector<2x128xf32>
      %69 = arith.truncf %68 : vector<2x128xf32> to vector<2x128xbf16>
      %70 = arith.index_cast %35 : i32 to index
      %c0_37 = arith.constant 0 : index
      %c0_38 = arith.constant 0 : index
      %71 = vector.load %arg7[%70, %c0_37, %c0_38] : memref<16x2x128xbf16, #tpu.memory_space<vmem>>, vector<1x2x128xbf16>
      %72 = vector.shape_cast %71 : vector<1x2x128xbf16> to vector<2x128xbf16>
      %73 = vector.shape_cast %69 : vector<2x128xbf16> to vector<1x2x128xbf16>
      tpu.vector_store %arg7[%70, %c0_37, %c0_38], %73 {strides = array<i32>} : memref<16x2x128xbf16, #tpu.memory_space<vmem>>, vector<1x2x128xbf16>,
      scf.yield %68 : vector<2x128xf32>
    }
    %c16_i32_27 = arith.constant 16 : i32
    %c0_28 = arith.constant 0 : index
    %c0_29 = arith.constant 0 : index
    %30 = vector.load %arg8[%c0_28, %c0_29] : memref<2x128xf32, #tpu.memory_space<vmem>>, vector<2x128xf32>
    tpu.vector_store %arg8[%c0_28, %c0_29], %29 {strides = array<i32>} : memref<2x128xf32, #tpu.memory_space<vmem>>, vector<2x128xf32>,
    return
  }
  func.func @transform_0(%arg0: i32, %arg1: i32) -> (i32, i32, i32) {
    %c0_i32 = arith.constant 0 : i32
    %0 = arith.muli %arg0, %c0_i32 : i32
    %c2_i32 = arith.constant 2 : i32
    %1 = arith.muli %c2_i32, %arg0 : i32
    %c1_i32 = arith.constant 1 : i32
    %2 = arith.subi %c1_i32, %1 : i32
    %3 = arith.muli %2, %arg1 : i32
    %4 = arith.addi %0, %3 : i32
    %c0_i32_0 = arith.constant 0 : i32
    %c0_i32_1 = arith.constant 0 : i32
    %c0_i32_2 = arith.constant 0 : i32
    return %4, %c0_i32_0, %c0_i32_1 : i32, i32, i32
  }
  func.func @transform_1(%arg0: i32, %arg1: i32) -> (i32, i32, i32) {
    %c0_i32 = arith.constant 0 : i32
    %c0_i32_0 = arith.constant 0 : i32
    %c0_i32_1 = arith.constant 0 : i32
    return %arg0, %c0_i32, %c0_i32_0 : i32, i32, i32
  }
  func.func @transform_2(%arg0: i32, %arg1: i32) -> (i32, i32, i32) {
    %c0_i32 = arith.constant 0 : i32
    %c0_i32_0 = arith.constant 0 : i32
    %c0_i32_1 = arith.constant 0 : i32
    return %arg0, %c0_i32, %c0_i32_0 : i32, i32, i32
  }
  func.func @transform_3(%arg0: i32, %arg1: i32) -> (i32, i32, i32) {
    %c0_i32 = arith.constant 0 : i32
    %c0_i32_0 = arith.constant 0 : i32
    %c0_i32_1 = arith.constant 0 : i32
    return %arg0, %c0_i32, %c0_i32_0 : i32, i32, i32
  }
  func.func @transform_4(%arg0: i32, %arg1: i32) -> (i32, i32, i32) {
    %c0_i32 = arith.constant 0 : i32
    %c0_i32_0 = arith.constant 0 : i32
    %c0_i32_1 = arith.constant 0 : i32
    return %arg0, %c0_i32, %c0_i32_0 : i32, i32, i32
  }
  func.func @transform_5(%arg0: i32, %arg1: i32) -> (i32, i32, i32) {
    %c0_i32 = arith.constant 0 : i32
    %0 = arith.muli %arg0, %c0_i32 : i32
    %c2_i32 = arith.constant 2 : i32
    %1 = arith.muli %c2_i32, %arg0 : i32
    %c1_i32 = arith.constant 1 : i32
    %2 = arith.subi %c1_i32, %1 : i32
    %3 = arith.muli %2, %arg1 : i32
    %4 = arith.addi %0, %3 : i32
    %c0_i32_0 = arith.constant 0 : i32
    %c0_i32_1 = arith.constant 0 : i32
    return %4, %c0_i32_0, %arg0 : i32, i32, i32
  }
}

module attributes {stable_mosaic.version = 11 : i64} {
  func.func @_output_kernel(%arg0: i32, %arg1: memref<16x2x256xbf16, #tpu.memory_space<vmem>>, %arg2: memref<24x256xbf16, #tpu.memory_space<vmem>>, %arg3: memref<24x1xf32, #tpu.memory_space<vmem>>, %arg4: memref<2x24x16xf32, #tpu.memory_space<vmem>>) attributes {dimension_semantics = [#tpu.dimension_semantics<parallel>], iteration_bounds = array<i64: 1>, scalar_prefetch = 0 : i64, scratch_operands = 0 : i64, tpu.core_type = #tpu.core_type<tc>, window_params = [{transform_indices = @transform_0, window_bounds = array<i64: 16, 2, 256>}, {pipeline_mode = #tpu.pipeline_mode<synchronous>, transform_indices = @transform_1, window_bounds = array<i64: 24, 256>}, {pipeline_mode = #tpu.pipeline_mode<synchronous>, transform_indices = @transform_2, window_bounds = array<i64: 24, 1>}, {transform_indices = @transform_3, window_bounds = array<i64: 2, 24, 16>}]} {
    %c0 = arith.constant 0 : index
    %c0_0 = arith.constant 0 : index
    %c0_1 = arith.constant 0 : index
    %0 = vector.load %arg1[%c0, %c0_0, %c0_1] : memref<16x2x256xbf16, #tpu.memory_space<vmem>>, vector<16x2x256xbf16>
    %c0_2 = arith.constant 0 : index
    %c0_3 = arith.constant 0 : index
    %1 = vector.load %arg2[%c0_2, %c0_3] : memref<24x256xbf16, #tpu.memory_space<vmem>>, vector<24x256xbf16>
    %c0_4 = arith.constant 0 : index
    %c0_5 = arith.constant 0 : index
    %2 = vector.load %arg3[%c0_4, %c0_5] : memref<24x1xf32, #tpu.memory_space<vmem>>, vector<24x1xf32>
    %3 = vector.extract_strided_slice %0 {offsets = [0, 0, 0], sizes = [16, 1, 256], strides = [1, 1, 1]} : vector<16x2x256xbf16> to vector<16x1x256xbf16>
    %4 = vector.shape_cast %3 : vector<16x1x256xbf16> to vector<16x256xbf16>
    %cst = arith.constant dense<0.000000e+00> : vector<24x16xf32>
    %5 = tpu.matmul %1, %4, %cst {dimension_numbers = #tpu.dot_dimension_numbers<[1], [1], [0], [0], [0, 0, 1, 0], [], []>} : vector<24x256xbf16>, vector<16x256xbf16>, vector<24x16xf32> -> vector<24x16xf32>
    %6 = vector.broadcast %2 : vector<24x1xf32> to vector<24x16xf32>
    %7 = arith.addf %5, %6 : vector<24x16xf32>
    %cst_6 = arith.constant dense<0xFF800000> : vector<16xf32>
    %8 = vector.multi_reduction <maximumf>, %7, %cst_6 [0] : vector<24x16xf32> to vector<16xf32>
    %9 = vector.shape_cast %8 : vector<16xf32> to vector<1x16xf32>
    %10 = vector.broadcast %9 : vector<1x16xf32> to vector<24x16xf32>
    %11 = arith.subf %7, %10 : vector<24x16xf32>
    %12 = math.exp %11 : vector<24x16xf32>
    %cst_7 = arith.constant dense<0.000000e+00> : vector<16xf32>
    %13 = vector.multi_reduction <add>, %12, %cst_7 [0] : vector<24x16xf32> to vector<16xf32>
    %14 = vector.shape_cast %13 : vector<16xf32> to vector<1x16xf32>
    %15 = vector.broadcast %14 : vector<1x16xf32> to vector<24x16xf32>
    %16 = arith.divf %12, %15 : vector<24x16xf32>
    %c0_8 = arith.constant 0 : index
    %c0_9 = arith.constant 0 : index
    %c0_10 = arith.constant 0 : index
    %17 = vector.load %arg4[%c0_8, %c0_9, %c0_10] : memref<2x24x16xf32, #tpu.memory_space<vmem>>, vector<1x24x16xf32>
    %18 = vector.shape_cast %17 : vector<1x24x16xf32> to vector<24x16xf32>
    %19 = vector.shape_cast %16 : vector<24x16xf32> to vector<1x24x16xf32>
    tpu.vector_store %arg4[%c0_8, %c0_9, %c0_10], %19 {strides = array<i32>} : memref<2x24x16xf32, #tpu.memory_space<vmem>>, vector<1x24x16xf32>,
    %20 = vector.extract_strided_slice %0 {offsets = [0, 1, 0], sizes = [16, 1, 256], strides = [1, 1, 1]} : vector<16x2x256xbf16> to vector<16x1x256xbf16>
    %21 = vector.shape_cast %20 : vector<16x1x256xbf16> to vector<16x256xbf16>
    %cst_11 = arith.constant dense<0.000000e+00> : vector<24x16xf32>
    %22 = tpu.matmul %1, %21, %cst_11 {dimension_numbers = #tpu.dot_dimension_numbers<[1], [1], [0], [0], [0, 0, 1, 0], [], []>} : vector<24x256xbf16>, vector<16x256xbf16>, vector<24x16xf32> -> vector<24x16xf32>
    %23 = vector.broadcast %2 : vector<24x1xf32> to vector<24x16xf32>
    %24 = arith.addf %22, %23 : vector<24x16xf32>
    %cst_12 = arith.constant dense<0xFF800000> : vector<16xf32>
    %25 = vector.multi_reduction <maximumf>, %24, %cst_12 [0] : vector<24x16xf32> to vector<16xf32>
    %26 = vector.shape_cast %25 : vector<16xf32> to vector<1x16xf32>
    %27 = vector.broadcast %26 : vector<1x16xf32> to vector<24x16xf32>
    %28 = arith.subf %24, %27 : vector<24x16xf32>
    %29 = math.exp %28 : vector<24x16xf32>
    %cst_13 = arith.constant dense<0.000000e+00> : vector<16xf32>
    %30 = vector.multi_reduction <add>, %29, %cst_13 [0] : vector<24x16xf32> to vector<16xf32>
    %31 = vector.shape_cast %30 : vector<16xf32> to vector<1x16xf32>
    %32 = vector.broadcast %31 : vector<1x16xf32> to vector<24x16xf32>
    %33 = arith.divf %29, %32 : vector<24x16xf32>
    %c1 = arith.constant 1 : index
    %c0_14 = arith.constant 0 : index
    %c0_15 = arith.constant 0 : index
    %34 = vector.load %arg4[%c1, %c0_14, %c0_15] : memref<2x24x16xf32, #tpu.memory_space<vmem>>, vector<1x24x16xf32>
    %35 = vector.shape_cast %34 : vector<1x24x16xf32> to vector<24x16xf32>
    %36 = vector.shape_cast %33 : vector<24x16xf32> to vector<1x24x16xf32>
    tpu.vector_store %arg4[%c1, %c0_14, %c0_15], %36 {strides = array<i32>} : memref<2x24x16xf32, #tpu.memory_space<vmem>>, vector<1x24x16xf32>,
    return
  }
  func.func @transform_0(%arg0: i32) -> (i32, i32, i32) {
    %c0_i32 = arith.constant 0 : i32
    %c0_i32_0 = arith.constant 0 : i32
    %c0_i32_1 = arith.constant 0 : i32
    return %arg0, %c0_i32, %c0_i32_0 : i32, i32, i32
  }
  func.func @transform_1(%arg0: i32) -> (i32, i32) {
    %c0_i32 = arith.constant 0 : i32
    %c0_i32_0 = arith.constant 0 : i32
    %c0_i32_1 = arith.constant 0 : i32
    return %c0_i32, %c0_i32_0 : i32, i32
  }
  func.func @transform_2(%arg0: i32) -> (i32, i32) {
    %c0_i32 = arith.constant 0 : i32
    %c0_i32_0 = arith.constant 0 : i32
    %c0_i32_1 = arith.constant 0 : i32
    return %c0_i32, %c0_i32_0 : i32, i32
  }
  func.func @transform_3(%arg0: i32) -> (i32, i32, i32) {
    %c0_i32 = arith.constant 0 : i32
    %c0_i32_0 = arith.constant 0 : i32
    %c0_i32_1 = arith.constant 0 : i32
    return %c0_i32, %c0_i32_0, %arg0 : i32, i32, i32
  }
}

</mosaic_0001>

<bundles_post_ra>
// kernel: rnn_key_signature_forward.7
= control target key start
LH: loop header
LB: loop body
LE: loop exit
PB: predicated region body
PF: predicated region fallthrough
CT: control target
= control target key end

     0   :  { %vm198_vm0 = vcmask 1041409   ;;  %vm201_vm1 = vcmask 1042434   ;;  %vm204_vm2 = vcmask 1043459   ;;  %vm207_vm3 = vcmask 1044484   ;;  %s1000_s0 = inlined_call_operand.vmem [shape: bf16[16,2,256], index: 0, kind: input, shape index: {}]   ;;  %s1001_s2 = inlined_call_operand.vmem [shape: f32[24,1], index: 2, kind: input, shape index: {}]   ;;  %s1002_s1 = inlined_call_operand.vmem [shape: bf16[24,256], index: 1, kind: input, shape index: {}]   ;;  %s1003_s3 = inlined_call_operand.vmem [shape: f32[2,24,16], index: 3, kind: output, shape index: {}]  }
   0x1   :  { %v672_v0 = vld [vmem:[%s1000_s0] sm:$0x3]  ;;  %v678_v1 = vld [vmem:[%s1000_s0 + $0x2] sm:$0x3]  ;;  %v688_v4 = vld [vmem:[%s1000_s0 + $0x4] sm:$0x3] }
   0x2   :  { %70 = vst [vmem:[#allocation1] ss:$9 sm:$0xff] %v672_v0  ;;  %v694_v7 = vld [vmem:[%s1000_s0 + $0x6] sm:$0x3]  ;;  %v702_v10 = vld [vmem:[%s1000_s0 + $0x8] sm:$0x3] }
   0x3   :  { %v712_v13 = vld [vmem:[%s1000_s0 + $0xa] sm:$0x3]  ;;  %v722_v16 = vld [vmem:[%s1000_s0 + $0xc] sm:$0x3]  ;;  %v732_v19 = vld [vmem:[%s1000_s0 + $0xe] sm:$0x3] }
   0x4   :  { %v742_v22 = vld [vmem:[%s1000_s0 + $0x10] sm:$0x3]  ;;  %v752_v25 = vld [vmem:[%s1000_s0 + $0x12] sm:$0x3]  ;;  %v758_v28 = vld [vmem:[%s1000_s0 + $0x14] sm:$0x3] }
   0x5   :  { %v764_v31 = vld [vmem:[%s1000_s0 + $0x16] sm:$0x3]  ;;  %v770_v34 = vld [vmem:[%s1000_s0 + $0x18] sm:$0x3]  ;;  %v776_v37 = vld [vmem:[%s1000_s0 + $0x1a] sm:$0x3] }
   0x6   :  { %v792_v53 = vld [vmem:[%s1000_s0 + $0x1c] sm:$0x3]  ;;  %vm210_vm4 = vcmask 1045509   ;;  %vm213_vm5 = vcmask 1046534   ;;  %vm216_vm6 = vcmask 1047559   ;;  %vm300_vm7 = vcmask 130048  }
   0x9   :  { %v680_v2 = vld [vmem:[#allocation1] sm:$0xf]  ;;  %v682_v3 = vld [vmem:[#allocation1 + $0x9] sm:$0xf] }
   0xa   :  { %76 = vst [vmem:[#allocation1] ss:$9 sm:$0xff] %v678_v1  ;;  %v165_v43 = vunpack.c.l.b16 %v680_v2  ;;  %v166_v51 = vunpack.c.l.b16 %v682_v3 }
  0x11   :  { %v77_v5 = vld [vmem:[#allocation1] sm:$0xf]  ;;  %v79_v6 = vld [vmem:[#allocation1 + $0x9] sm:$0xf] }
  0x12   :  { %82 = vst [vmem:[#allocation1] ss:$9 sm:$0xff] %v688_v4  ;;  %v167_v40 = vunpack.c.l.b16 %v77_v5  ;;  %v168_v41 = vunpack.c.l.b16 %v79_v6 }
  0x14   :  { %v197_v47 = vrot.slane %v167_v40, 7  ;;  %v218_v52 = vrot.slane %v168_v41, 7 }
  0x16   :  { %v199_v3 = vsel %vm198_vm0, %v197_v47, %v165_v43 }
  0x19   :  { %v83_v8 = vld [vmem:[#allocation1] sm:$0xf]  ;;  %v696_v9 = vld [vmem:[#allocation1 + $0x9] sm:$0xf] }
  0x1a   :  { %88 = vst [vmem:[#allocation1] ss:$9 sm:$0xff] %v694_v7  ;;  %v169_v42 = vunpack.c.l.b16 %v83_v8  ;;  %v170_v48 = vunpack.c.l.b16 %v696_v9  ;;  %v219_v9 = vsel %vm198_vm0, %v218_v52, %v166_v51 }
  0x1c   :  { %v200_v56 = vrot.slane %v169_v42, 6  ;;  %v220_v5 = vrot.slane %v170_v48, 6  ;;  %v809_v42 = vld [vmem:[%s1000_s0 + $0x1e] sm:$0x3] }
  0x21   :  { %v704_v11 = vld [vmem:[#allocation1] sm:$0xf]  ;;  %v706_v12 = vld [vmem:[#allocation1 + $0x9] sm:$0xf] }
  0x22   :  { %94 = vst [vmem:[#allocation1] ss:$9 sm:$0xff] %v702_v10  ;;  %v171_v44 = vunpack.c.l.b16 %v704_v11  ;;  %v172_v59 = vunpack.c.l.b16 %v706_v12 }
  0x24   :  { %v203_v6 = vrot.slane %v171_v44, 5 }
  0x29   :  { %v714_v14 = vld [vmem:[#allocation1] sm:$0xf]  ;;  %v716_v15 = vld [vmem:[#allocation1 + $0x9] sm:$0xf] }
  0x2a   :  { %100 = vst [vmem:[#allocation1] ss:$9 sm:$0xff] %v712_v13  ;;  %v173_v46 = vunpack.c.l.b16 %v714_v14  ;;  %v174_v12 = vunpack.c.l.b16 %v716_v15  ;;  %v648_v15 = vmov 0  }
  0x2b   :  { %630 = vset.pattern.permute.xlu0 %v648_v15  ;;  %631 = vset.pattern.permute.xlu1 %v648_v15 }
  0x2c   :  { %v206_v11 = vrot.slane %v173_v46, 4  ;;  %v224_v44 = vrot.slane %v174_v12, 4 }
  0x31   :  { %v724_v17 = vld [vmem:[#allocation1] sm:$0xf]  ;;  %v726_v18 = vld [vmem:[#allocation1 + $0x9] sm:$0xf] }
  0x32   :  { %106 = vst [vmem:[#allocation1] ss:$9 sm:$0xff] %v722_v16  ;;  %v175_v50 = vunpack.c.l.b16 %v724_v17  ;;  %v176_v40 = vunpack.c.l.b16 %v726_v18 }
  0x34   :  { %v209_v43 = vrot.slane %v175_v50, 3 }
  0x39   :  { %v734_v20 = vld [vmem:[#allocation1] sm:$0xf]  ;;  %v736_v21 = vld [vmem:[#allocation1 + $0x9] sm:$0xf] }
  0x3a   :  { %112 = vst [vmem:[#allocation1] ss:$9 sm:$0xff] %v732_v19  ;;  %v177_v51 = vunpack.c.l.b16 %v734_v20 }
  0x41   :  { %v744_v23 = vld [vmem:[#allocation1] sm:$0xf]  ;;  %v746_v24 = vld [vmem:[#allocation1 + $0x9] sm:$0xf] }
  0x42   :  { %118 = vst [vmem:[#allocation1] ss:$9 sm:$0xff] %v742_v22  ;;  %v179_v20 = vunpack.c.l.b16 %v744_v23 }
  0x44   :  { %v215_v12 = vrot.slane %v179_v20, 1 }
  0x49   :  { %v119_v26 = vld [vmem:[#allocation1] sm:$0xf]  ;;  %v121_v27 = vld [vmem:[#allocation1 + $0x9] sm:$0xf] }
  0x4a   :  { %124 = vst [vmem:[#allocation1] ss:$9 sm:$0xff] %v752_v25  ;;  %v181_v54 = vunpack.c.l.b16 %v119_v26  ;;  %v182_v60 = vunpack.c.l.b16 %v121_v27  ;;  %v202_v26 = vsel %vm201_vm1, %v200_v56, %v199_v3  ;;  %v226_v56 = vrot.slane %v176_v40, 3 }
  0x4b   :  { %v205_v46 = vsel %vm204_vm2, %v203_v6, %v202_v26  ;;  %v34_v26 = vld [vmem:[%s1001_s2] sm:$0xff] }
  0x4c   :  { %39 = vperm.xlu0 %630, %v34_v26  }
  0x51   :  { %v125_v29 = vld [vmem:[#allocation1] sm:$0xf]  ;;  %v127_v30 = vld [vmem:[#allocation1 + $0x9] sm:$0xf] }
  0x52   :  { %130 = vst [vmem:[#allocation1] ss:$9 sm:$0xff] %v758_v28  ;;  %v183_v45 = vunpack.c.l.b16 %v125_v29  ;;  %v184_v49 = vunpack.c.l.b16 %v127_v30  ;;  %v222_v29 = vrot.slane %v172_v59, 5  ;;  %v208_v59 = vsel %vm207_vm3, %v206_v11, %v205_v46 }
  0x54   :  { %v232_v58 = vrot.slane %v183_v45, 7  ;;  %v246_v61 = vrot.slane %v184_v49, 7 }
  0x56   :  { %v233_v27 = vsel %vm198_vm0, %v232_v58, %v181_v54  ;;  %v247_v30 = vsel %vm198_vm0, %v246_v61, %v182_v60  ;;  %v178_v54 = vunpack.c.l.b16 %v736_v21  ;;  %v180_v21 = vunpack.c.l.b16 %v746_v24 }
  0x59   :  { %v131_v32 = vld [vmem:[#allocation1] sm:$0xf]  ;;  %v133_v33 = vld [vmem:[#allocation1 + $0x9] sm:$0xf] }
  0x5a   :  { %136 = vst [vmem:[#allocation1] ss:$9 sm:$0xff] %v764_v31  ;;  %v185_v55 = vunpack.c.l.b16 %v131_v32  ;;  %v186_v57 = vunpack.c.l.b16 %v133_v33 }
  0x5c   :  { %v234_v14 = vrot.slane %v185_v55, 6  ;;  %v248_v17 = vrot.slane %v186_v57, 6 }
  0x61   :  { %v137_v35 = vld [vmem:[#allocation1] sm:$0xf]  ;;  %v139_v36 = vld [vmem:[#allocation1 + $0x9] sm:$0xf] }
  0x62   :  { %142 = vst [vmem:[#allocation1] ss:$9 sm:$0xff] %v770_v34  ;;  %v187_v2 = vunpack.c.l.b16 %v137_v35  ;;  %v188_v8 = vunpack.c.l.b16 %v139_v36  ;;  %v221_v35 = vsel %vm201_vm1, %v220_v5, %v219_v9  ;;  %v228_v5 = vrot.slane %v178_v54, 2 }
  0x63   :  { %v223_v18 = vsel %vm204_vm2, %v222_v29, %v221_v35 }
  0x64   :  { %v236_v36 = vrot.slane %v187_v2, 5  ;;  %v250_v41 = vrot.slane %v188_v8, 5  ;;  %v225_v61 = vsel %vm207_vm3, %v224_v44, %v223_v18  ;;  %v212_v2 = vrot.slane %v177_v51, 2  ;;  %v618_v18 = vld [vmem:[%s1002_s1] sm:$0xf] }
  0x65   :  { %v211_v8 = vsel %vm210_vm4, %v209_v43, %v208_v59  ;;  %v227_v9 = vsel %vm210_vm4, %v226_v56, %v225_v61  ;;  %v620_v51 = vld [vmem:[%s1002_s1 + $0x8] sm:$0xf0] }
  0x69   :  { %v778_v38 = vld [vmem:[#allocation1] sm:$0xf]  ;;  %v780_v39 = vld [vmem:[#allocation1 + $0x9] sm:$0xf] }
  0x6a   :  { %148 = vst [vmem:[#allocation1] ss:$9 sm:$0xff] %v776_v37  ;;  %v189_v32 = vunpack.c.l.b16 %v778_v38  ;;  %v190_v33 = vunpack.c.l.b16 %v780_v39  ;;  %v235_v38 = vsel %vm201_vm1, %v234_v14, %v233_v27  ;;  %v249_v39 = vsel %vm201_vm1, %v248_v17, %v247_v30  ;;  %v36_v27 = vld [vmem:[%s1001_s2 + $0x10] sm:$0xff] }
  0x6b   :  { %v237_v50 = vsel %vm204_vm2, %v236_v36, %v235_v38  ;;  %v251_v57 = vsel %vm204_vm2, %v250_v41, %v249_v39  ;;  %v230_v17 = vrot.slane %v180_v21, 1  ;;  %v214_v30 = vsel %vm213_vm5, %v212_v2, %v211_v8  ;;  %49 = vperm.xlu1 %631, %v36_v27  }
  0x6c   :  { %v238_v52 = vrot.slane %v189_v32, 4  ;;  %v252_v55 = vrot.slane %v190_v33, 4  ;;  %v229_v33 = vsel %vm213_vm5, %v228_v5, %v227_v9  ;;  %v217_v15 = vsel %vm216_vm6, %v215_v12, %v214_v30 }
  0x6d   :  { %v231_v38 = vsel %vm216_vm6, %v230_v17, %v229_v33 }
  0x6e   :  { %v239_v3 = vsel %vm207_vm3, %v238_v52, %v237_v50  ;;  %v253_v6 = vsel %vm207_vm3, %v252_v55, %v251_v57 }
  0x71   :  { %v149_v62 = vld [vmem:[#allocation1] sm:$0xf]  ;;  %v151_v63 = vld [vmem:[#allocation1 + $0x9] sm:$0xf] }
  0x72   :  { %154 = vst [vmem:[#allocation1] ss:$9 sm:$0xff] %v792_v53  ;;  %v191_v45 = vunpack.c.l.b16 %v149_v62  ;;  %v192_v47 = vunpack.c.l.b16 %v151_v63 }
  0x74   :  { %v240_v62 = vrot.slane %v191_v45, 3  ;;  %v254_v63 = vrot.slane %v192_v47, 3 }
  0x76   :  { %v241_v23 = vsel %vm210_vm4, %v240_v62, %v239_v3  ;;  %v255_v24 = vsel %vm210_vm4, %v254_v63, %v253_v6 }
  0x79   :  { %v155_v48 = vld [vmem:[#allocation1] sm:$0xf]  ;;  %v157_v49 = vld [vmem:[#allocation1 + $0x9] sm:$0xf] }
  0x7a   :  { %160 = vst [vmem:[#allocation1] ss:$9 sm:$0xff] %v809_v42  ;;  %v193_v58 = vunpack.c.l.b16 %v155_v48  ;;  %v194_v60 = vunpack.c.l.b16 %v157_v49  ;;  %v628_v48 = vld [vmem:[%s1002_s1 + $0x4] sm:$0xf0]  ;;  %v627_v49 = vld [vmem:[%s1002_s1 + $0x4] sm:$0xf] }
  0x7b   :  { %v863_v55 = vor.u32 %v628_v48, %v618_v18  ;;  %v865_v50 = vor.u32 %v627_v49, %v620_v51 }
  0x7c   :  { %v242_v11 = vrot.slane %v193_v58, 2  ;;  %v256_v14 = vrot.slane %v194_v60, 2  ;;  %v33_v58 = vld [vmem:[%s1002_s1 + $0x10] sm:$0xff] }
  0x7d   :  { %v59_v59 = vunpack.c.l.b16 %v33_v58  ;;  %v60_v60 = vunpack.c.h.b16 %v33_v58 }
  0x7e   :  { %v243_v40 = vsel %vm213_vm5, %v242_v11, %v241_v23  ;;  %v257_v41 = vsel %vm213_vm5, %v256_v14, %v255_v24 }
  0x7f   :  { %v878_v20 = vpack.c.b16 %v59_v59, %v59_v59  ;;  %v880_v62 = vpack.c.b16 %v60_v60, %v60_v60 }
  0x81   :  { %v161_v29 = vld [vmem:[#allocation1] sm:$0xf]  ;;  %v163_v32 = vld [vmem:[#allocation1 + $0x9] sm:$0xf] }
  0x82   :  { %v195_v35 = vunpack.c.l.b16 %v161_v29  ;;  %v196_v36 = vunpack.c.l.b16 %v163_v32  ;;  %352 = vst [vmem:[#allocation1] ss:$9 sm:$0xff] %v672_v0  ;;  %v35_v0 = vld [vmem:[%s1001_s2 + $0x8] sm:$0xff] }
  0x83   :  { %44 = vperm.xlu0 %630, %v35_v0  }
  0x84   :  { %v244_v43 = vrot.slane %v195_v35, 1  ;;  %v258_v44 = vrot.slane %v196_v36, 1 }
  0x86   :  { %v245_v39 = vsel %vm216_vm6, %v244_v43, %v243_v40  ;;  %v259_v45 = vsel %vm216_vm6, %v258_v44, %v257_v41 }
  0x87   :  { %v260_v46 = vpack.c.b16 %v245_v39, %v217_v15  ;;  %v261_v47 = vpack.c.b16 %v259_v45, %v231_v38 }
  0x89   :  { %271 = vmatpush.bf16.xpose.msra.mxu0 %v260_v46  ;;  %289 = vmatpush.bf16.xpose.msra.mxu1 %v261_v47  ;;  %v353_v52 = vld [vmem:[#allocation1] sm:$0xf]  ;;  %v860_v54 = vld [vmem:[#allocation1 + $0x9] sm:$0xf] }
  0x8a   :  { %357 = vst [vmem:[#allocation1] ss:$9 sm:$0xff] %v678_v1  ;;  %v433_v15 = vunpack.c.l.b16 %v860_v54 }
  0x90   :  { %272 = vmatmul.bf16.vlgmr.msra.gmra.mxu0 %v863_v55  ;;  %290 = vmatmul.bf16.vlgmr.msra.gmra.mxu1 %v865_v50 }
  0x91   :  { %v358_v56 = vld [vmem:[#allocation1] sm:$0xf]  ;;  %v869_v57 = vld [vmem:[#allocation1 + $0x9] sm:$0xf] }
  0x92   :  { %362 = vst [vmem:[#allocation1] ss:$9 sm:$0xff] %v688_v4  ;;  %v434_v23 = vunpack.c.l.b16 %v358_v56  ;;  %v435_v18 = vunpack.c.l.b16 %v869_v57 }
  0x99   :  { %v363_v1 = vld [vmem:[#allocation1] sm:$0xf]  ;;  %v875_v61 = vld [vmem:[#allocation1 + $0x9] sm:$0xf] }
  0x9a   :  { %367 = vst [vmem:[#allocation1] ss:$9 sm:$0xff] %v694_v7  ;;  %v437_v39 = vunpack.c.l.b16 %v875_v61 }
  0x9c   :  { %v480_v54 = vrot.slane %v437_v39, 7 }
  0xa0   :  { %277 = vmatmul.bf16.gmra.mxu0 %v878_v20  ;;  %295 = vmatmul.bf16.gmra.mxu1 %v880_v62 }
  0xa1   :  { %v368_v4 = vld [vmem:[#allocation1] sm:$0xf]  ;;  %v370_v21 = vld [vmem:[#allocation1 + $0x9] sm:$0xf] }
  0xa2   :  { %372 = vst [vmem:[#allocation1] ss:$9 sm:$0xff] %v702_v10  ;;  %v438_v17 = vunpack.c.l.b16 %v368_v4  ;;  %v439_v46 = vunpack.c.l.b16 %v370_v21 }
  0xa4   :  { %v468_v30 = vrot.slane %v438_v17, 6  ;;  %v482_v56 = vrot.slane %v439_v46, 6 }
  0xa9   :  { %v373_v63 = vld [vmem:[#allocation1] sm:$0xf]  ;;  %v375_v2 = vld [vmem:[#allocation1 + $0x9] sm:$0xf] }
  0xaa   :  { %377 = vst [vmem:[#allocation1] ss:$9 sm:$0xff] %v712_v13  ;;  %v440_v26 = vunpack.c.l.b16 %v373_v63  ;;  %v441_v47 = vunpack.c.l.b16 %v375_v2 }
  0xac   :  { %v470_v40 = vrot.slane %v440_v26, 5  ;;  %v484_v58 = vrot.slane %v441_v47, 5 }
  0xb1   :  { %v378_v3 = vld [vmem:[#allocation1] sm:$0xf]  ;;  %v380_v5 = vld [vmem:[#allocation1 + $0x9] sm:$0xf] }
  0xb2   :  { %382 = vst [vmem:[#allocation1] ss:$9 sm:$0xff] %v722_v16 }
  0xb9   :  { %v383_v7 = vld [vmem:[#allocation1] sm:$0xf]  ;;  %v385_v6 = vld [vmem:[#allocation1 + $0x9] sm:$0xf] }
  0xba   :  { %387 = vst [vmem:[#allocation1] ss:$9 sm:$0xff] %v732_v19  ;;  %v432_v19 = vunpack.c.l.b16 %v353_v52  ;;  %v445_v49 = vunpack.c.l.b16 %v385_v6  ;;  %v478_v52 = vrot.slane %v433_v15, 1 }
  0xbc   :  { %v464_v24 = vrot.slane %v432_v19, 1  ;;  %v488_v57 = vrot.slane %v445_v49, 3 }
  0xbe   :  { %v465_v29 = vsel %vm198_vm0, %v434_v23, %v464_v24 }
  0xc1   :  { %v388_v8 = vld [vmem:[#allocation1] sm:$0xf]  ;;  %v390_v9 = vld [vmem:[#allocation1 + $0x9] sm:$0xf] }
  0xc2   :  { %392 = vst [vmem:[#allocation1] ss:$9 sm:$0xff] %v742_v22  ;;  %v436_v22 = vunpack.c.l.b16 %v363_v1  ;;  %v446_v35 = vunpack.c.l.b16 %v388_v8  ;;  %v447_v51 = vunpack.c.l.b16 %v390_v9  ;;  %v479_v1 = vsel %vm198_vm0, %v435_v18, %v478_v52 }
  0xc3   :  { %v481_v4 = vsel %vm201_vm1, %v480_v54, %v479_v1 }
  0xc4   :  { %v466_v27 = vrot.slane %v436_v22, 7  ;;  %v476_v44 = vrot.slane %v446_v35, 2  ;;  %v483_v21 = vsel %vm204_vm2, %v482_v56, %v481_v4  ;;  %v490_v63 = vrot.slane %v447_v51, 2 }
  0xc6   :  { %v467_v36 = vsel %vm201_vm1, %v466_v27, %v465_v29 }
  0xc9   :  { %v889_v11 = vld [vmem:[#allocation1] sm:$0xf]  ;;  %v891_v14 = vld [vmem:[#allocation1 + $0x9] sm:$0xf] }
  0xca   :  { %397 = vst [vmem:[#allocation1] ss:$9 sm:$0xff] %v752_v25  ;;  %v442_v25 = vunpack.c.l.b16 %v378_v3  ;;  %v448_v2 = vunpack.c.l.b16 %v889_v11  ;;  %v449_v3 = vunpack.c.l.b16 %v891_v14 }
  0xcc   :  { %v472_v41 = vrot.slane %v442_v25, 4  ;;  %v492_v22 = vrot.slane %v448_v2, 1  ;;  %v506_v11 = vrot.slane %v449_v3, 1 }
  0xd1   :  { %v894_v10 = vld [vmem:[#allocation1] sm:$0xf]  ;;  %v896_v13 = vld [vmem:[#allocation1 + $0x9] sm:$0xf] }
  0xd2   :  { %402 = vst [vmem:[#allocation1] ss:$9 sm:$0xff] %v758_v28  ;;  %v444_v28 = vunpack.c.l.b16 %v383_v7  ;;  %v450_v19 = vunpack.c.l.b16 %v894_v10  ;;  %v451_v23 = vunpack.c.l.b16 %v896_v13 }
  0xd4   :  { %v474_v38 = vrot.slane %v444_v28, 3 }
  0xd9   :  { %v899_v16 = vld [vmem:[#allocation1] sm:$0xf]  ;;  %v901_v12 = vld [vmem:[#allocation1 + $0x9] sm:$0xf] }
  0xda   :  { %407 = vst [vmem:[#allocation1] ss:$9 sm:$0xff] %v764_v31  ;;  %v469_v31 = vsel %vm204_vm2, %v468_v30, %v467_v36  ;;  %v452_v8 = vunpack.c.l.b16 %v899_v16  ;;  %v493_v16 = vsel %vm198_vm0, %v450_v19, %v492_v22 }
  0xdb   :  { %v471_v43 = vsel %vm207_vm3, %v470_v40, %v469_v31 }
  0xdc   :  { %v473_v45 = vsel %vm210_vm4, %v472_v41, %v471_v43  ;;  %v494_v27 = vrot.slane %v452_v8, 7 }
  0xdd   :  { %v475_v0 = vsel %vm213_vm5, %v474_v38, %v473_v45 }
  0xde   :  { %v915_v48 = vsel %vm216_vm6, %v476_v44, %v475_v0  ;;  %v495_v35 = vsel %vm201_vm1, %v494_v27, %v493_v16 }
  0xe1   :  { %v408_v32 = vld [vmem:[#allocation1] sm:$0xf]  ;;  %v410_v33 = vld [vmem:[#allocation1 + $0x9] sm:$0xf] }
  0xe2   :  { %412 = vst [vmem:[#allocation1] ss:$9 sm:$0xff] %v770_v34  ;;  %v443_v34 = vunpack.c.l.b16 %v380_v5  ;;  %v485_v5 = vsel %vm207_vm3, %v484_v58, %v483_v21  ;;  %v454_v24 = vunpack.c.l.b16 %v408_v32  ;;  %v455_v26 = vunpack.c.l.b16 %v410_v33 }
  0xe4   :  { %v486_v61 = vrot.slane %v443_v34, 4  ;;  %v496_v28 = vrot.slane %v454_v24, 6  ;;  %v510_v10 = vrot.slane %v455_v26, 6 }
  0xe6   :  { %v487_v7 = vsel %vm210_vm4, %v486_v61, %v485_v5  ;;  %v497_v41 = vsel %vm204_vm2, %v496_v28, %v495_v35 }
  0xe7   :  { %v489_v6 = vsel %vm213_vm5, %v488_v57, %v487_v7  ;;  %v948_v57 = vpop.permute.xlu0 %39 }
  0xe8   :  { %v491_v9 = vsel %vm216_vm6, %v490_v63, %v489_v6 }
  0xe9   :  { %v413_v59 = vld [vmem:[#allocation1] sm:$0xf]  ;;  %v415_v60 = vld [vmem:[#allocation1 + $0x9] sm:$0xf] }
  0xea   :  { %417 = vst [vmem:[#allocation1] ss:$9 sm:$0xff] %v776_v37  ;;  %v453_v37 = vunpack.c.l.b16 %v901_v12  ;;  %v507_v12 = vsel %vm198_vm0, %v451_v23, %v506_v11  ;;  %v456_v29 = vunpack.c.l.b16 %v413_v59  ;;  %v457_v30 = vunpack.c.l.b16 %v415_v60 }
  0xec   :  { %v508_v25 = vrot.slane %v453_v37, 7  ;;  %v498_v32 = vrot.slane %v456_v29, 5  ;;  %v512_v33 = vrot.slane %v457_v30, 5  ;;  %v956_v37 = vpop.permute.xlu1 %49 }
  0xee   :  { %v509_v13 = vsel %vm201_vm1, %v508_v25, %v507_v12  ;;  %v499_v45 = vsel %vm207_vm3, %v498_v32, %v497_v41 }
  0xef   :  { %v511_v15 = vsel %vm204_vm2, %v510_v10, %v509_v13 }
  0xf0   :  { %v513_v46 = vsel %vm207_vm3, %v512_v33, %v511_v15 }
  0xf1   :  { %v418_v17 = vld [vmem:[#allocation1] sm:$0xf]  ;;  %v420_v14 = vld [vmem:[#allocation1 + $0x9] sm:$0xf] }
  0xf2   :  { %422 = vst [vmem:[#allocation1] ss:$9 sm:$0xff] %v792_v53  ;;  %v458_v36 = vunpack.c.l.b16 %v418_v17  ;;  %v459_v40 = vunpack.c.l.b16 %v420_v14 }
  0xf4   :  { %v500_v44 = vrot.slane %v458_v36, 4  ;;  %v514_v39 = vrot.slane %v459_v40, 4 }
  0xf5   :  { %v952_v2 = vpop.permute.xlu0 %44 }
  0xf6   :  { %v501_v18 = vsel %vm210_vm4, %v500_v44, %v499_v45  ;;  %v515_v34 = vsel %vm210_vm4, %v514_v39, %v513_v46 }
  0xf9   :  { %v423_v31 = vld [vmem:[#allocation1] sm:$0xf]  ;;  %v425_v53 = vld [vmem:[#allocation1 + $0x9] sm:$0xf] }
  0xfa   :  { %427 = vst [vmem:[#allocation1] ss:$9 sm:$0xff] %v809_v42  ;;  %v460_v43 = vunpack.c.l.b16 %v423_v31  ;;  %v461_v38 = vunpack.c.l.b16 %v425_v53 }
  0xfc   :  { %v502_v47 = vrot.slane %v460_v43, 3  ;;  %v516_v0 = vrot.slane %v461_v38, 3 }
  0xfe   :  { %v503_v54 = vsel %vm213_vm5, %v502_v47, %v501_v18  ;;  %v517_v56 = vsel %vm213_vm5, %v516_v0, %v515_v34 }
 0x101   :  { %v428_v49 = vld [vmem:[#allocation1] sm:$0xf]  ;;  %v430_v42 = vld [vmem:[#allocation1 + $0x9] sm:$0xf] }
 0x102   :  { %v462_v51 = vunpack.c.l.b16 %v428_v49  ;;  %v463_v52 = vunpack.c.l.b16 %v430_v42 }
 0x104   :  { %v504_v58 = vrot.slane %v462_v51, 2  ;;  %v518_v59 = vrot.slane %v463_v52, 2 }
 0x106   :  { %v505_v60 = vsel %vm216_vm6, %v504_v58, %v503_v54  ;;  %v519_v1 = vsel %vm216_vm6, %v518_v59, %v517_v56 }
 0x107   :  { %v520_v61 = vpack.c.b16 %v505_v60, %v915_v48  ;;  %v521_v4 = vpack.c.b16 %v519_v1, %v491_v9 }
 0x109   :  { %531 = vmatpush.bf16.xpose.msra.mxu2 %v520_v61  ;;  %549 = vmatpush.bf16.xpose.msra.mxu3 %v521_v4 }
 0x10d   :  { %v273_v21 = vpop.f32.mrf.mxu0  ;;  %v291_v63 = vpop.f32.mrf.mxu1 }
 0x10e   :  { %v274_v3 = vadd.f32 %v273_v21, %v948_v57 }
 0x110   :  { %532 = vmatmul.bf16.vlgmr.msra.gmra.mxu2 %v863_v55  ;;  %550 = vmatmul.bf16.vlgmr.msra.gmra.mxu3 %v865_v50  ;;  %v292_v48 = vadd.f32 %v291_v63, %v274_v3 }
 0x112   :  { %v301_v9 = vsel %vm300_vm7, %v292_v48, -inf }
 0x115   :  { %v275_v5 = vpop.f32.mrf.mxu0  ;;  %v293_v7 = vpop.f32.mrf.mxu1 }
 0x116   :  { %v276_v6 = vadd.f32 %v275_v5, %v952_v2 }
 0x118   :  { %v294_v8 = vadd.f32 %v293_v7, %v276_v6 }
 0x11a   :  { %v302_v19 = vsel %vm300_vm7, %v294_v8, -inf }
 0x11b   :  { %v304_v23 = vmax.f32 %v301_v9, %v302_v19 }
 0x11d   :  { %v278_v55 = vpop.f32.mrf.mxu0  ;;  %v296_v22 = vpop.f32.mrf.mxu1 }
 0x11e   :  { %v279_v50 = vadd.f32 %v278_v55, %v956_v37 }
 0x120   :  { %537 = vmatmul.bf16.gmra.mxu2 %v878_v20  ;;  %555 = vmatmul.bf16.gmra.mxu3 %v880_v62  ;;  %v297_v11 = vadd.f32 %v296_v22, %v279_v50 }
 0x122   :  { %v303_v17 = vsel %vm300_vm7, %v297_v11, -inf }
 0x123   :  { %v305_v14 = vmax.f32 %v304_v23, %v303_v17 }
 0x125   :  { %v306_v24 = vrot.slane %v305_v14, 4  ;;  %v280_v26 = vpop.f32.mrf.mxu0  ;;  %v298_v27 = vpop.f32.mrf.mxu1 }
 0x127   :  { %v307_v25 = vmax.f32 %v305_v14, %v306_v24 }
 0x129   :  { %v308_v16 = vrot.slane %v307_v25, 2 }
 0x12b   :  { %v309_v12 = vmax.f32 %v307_v25, %v308_v16 }
 0x12d   :  { %v310_v29 = vrot.slane %v309_v12, 1 }
 0x12f   :  { %v311_v30 = vmax.f32 %v309_v12, %v310_v29 }
 0x131   :  { %v312_v28 = vsub.f32 %v292_v48, %v311_v30  ;;  %v313_v10 = vsub.f32 %v294_v8, %v311_v30  ;;  %v314_v35 = vsub.f32 %v297_v11, %v311_v30 }
 0x133   :  { %v315_v13 = vmul.f32 1.442695, %v312_v28  ;;  %v317_v36 = vmul.f32 1.442695, %v313_v10  ;;  %v319_v20 = vmul.f32 1.442695, %v314_v35 }
 0x135   :  { %632 = vpow2.f32 %v315_v13 }
 0x136   :  { %634 = vpow2.f32 %v317_v36 }
 0x137   :  { %636 = vpow2.f32 %v319_v20 }
 0x13b   :  { %v633_v62 = vpop.eup %632 }
 0x13c   :  { %v635_v40 = vpop.eup %634  ;;  %v321_v31 = vsel %vm300_vm7, %v633_v62, 0.0 }
 0x13d   :  { %v637_v53 = vpop.eup %636  ;;  %v322_v32 = vsel %vm300_vm7, %v635_v40, 0.0 }
 0x13e   :  { %v323_v33 = vadd.f32 %v322_v32, %v321_v31  ;;  %v324_v41 = vsel %vm300_vm7, %v637_v53, 0.0 }
 0x140   :  { %v325_v15 = vadd.f32 %v324_v41, %v323_v33 }
 0x142   :  { %v326_v43 = vrot.slane %v325_v15, 4 }
 0x144   :  { %v327_v38 = vadd.f32 %v326_v43, %v325_v15 }
 0x146   :  { %v328_v44 = vrot.slane %v327_v38, 2 }
 0x148   :  { %v329_v39 = vadd.f32 %v328_v44, %v327_v38 }
 0x14a   :  { %v330_v45 = vrot.slane %v329_v39, 1 }
 0x14c   :  { %v331_v46 = vadd.f32 %v330_v45, %v329_v39 }
 0x14e   :  { %638 = vrcp.f32 %v331_v46  ;;  %v343_v18 = vand.u32 2147483648, %v331_v46  ;;  %vm337_vm8 = vweird.f32 %v331_v46  ;;  %v341_v49 = vand.u32 2147483647, %v331_v46 }
 0x150   :  { %v344_v51 = vor.u32 1.1754944e-38, %v343_v18  ;;  %vm342_vm11 = vcmp.eq.f32.partialorder %v341_v49, 8.507059e+37 }
 0x154   :  { %v639_v47 = vpop.eup %638 }
 0x155   :  { %v333_v0 = vmul.f32 %v639_v47, %v331_v46  ;;  %vm338_vm9 = vweird.f32 %v639_v47 }
 0x156   :  { %vm339_vm10 = vmor %vm337_vm8, %vm338_vm9 }
 0x157   :  { %v334_v34 = vsub.f32 1.0, %v333_v0 }
 0x159   :  { %v335_v42 = vmul.f32 %v639_v47, %v334_v34 }
 0x15b   :  { %v336_v52 = vadd.f32 %v639_v47, %v335_v42 }
 0x15d   :  { %v340_v54 = vsel %vm339_vm10, %v639_v47, %v336_v52 }
 0x15e   :  { %v345_v56 = vsel %vm342_vm11, %v344_v51, %v340_v54 }
 0x15f   :  { %v346_v58 = vmul.f32 %v633_v62, %v345_v56  ;;  %v347_v59 = vmul.f32 %v635_v40, %v345_v56  ;;  %v348_v60 = vmul.f32 %v637_v53, %v345_v56 }
 0x161   :  { %349 = vst.msk [vmem:[%s1003_s3] sm:$0xff] %vm300_vm7, %v346_v58 }
 0x162   :  { %350 = vst.msk [vmem:[%s1003_s3 + $0x8] sm:$0xff] %vm300_vm7, %v347_v59 }
 0x163   :  { %351 = vst.msk [vmem:[%s1003_s3 + $0x10] sm:$0xff] %vm300_vm7, %v348_v60 }
 0x193   :  { %v533_v1 = vpop.f32.mrf.mxu2  ;;  %v551_v61 = vpop.f32.mrf.mxu3 }
 0x194   :  { %v534_v3 = vadd.f32 %v533_v1, %v948_v57 }
 0x196   :  { %v552_v7 = vadd.f32 %v551_v61, %v534_v3 }
 0x198   :  { %v560_v19 = vsel %vm300_vm7, %v552_v7, -inf }
 0x19b   :  { %v535_v4 = vpop.f32.mrf.mxu2  ;;  %v553_v21 = vpop.f32.mrf.mxu3 }
 0x19c   :  { %v536_v63 = vadd.f32 %v535_v4, %v952_v2 }
 0x19e   :  { %v554_v5 = vadd.f32 %v553_v21, %v536_v63 }
 0x1a0   :  { %v561_v8 = vsel %vm300_vm7, %v554_v5, -inf }
 0x1a1   :  { %v563_v22 = vmax.f32 %v560_v19, %v561_v8 }
 0x1a3   :  { %v538_v6 = vpop.f32.mrf.mxu2  ;;  %v556_v48 = vpop.f32.mrf.mxu3 }
 0x1a4   :  { %v539_v9 = vadd.f32 %v538_v6, %v956_v37 }
 0x1a6   :  { %v557_v55 = vadd.f32 %v556_v48, %v539_v9 }
 0x1a8   :  { %v562_v50 = vsel %vm300_vm7, %v557_v55, -inf }
 0x1a9   :  { %v564_v23 = vmax.f32 %v563_v22, %v562_v50 }
 0x1ab   :  { %v565_v11 = vrot.slane %v564_v23, 4  ;;  %v540_v17 = vpop.f32.mrf.mxu2  ;;  %v558_v2 = vpop.f32.mrf.mxu3 }
 0x1ad   :  { %v566_v14 = vmax.f32 %v564_v23, %v565_v11 }
 0x1af   :  { %v567_v57 = vrot.slane %v566_v14, 2 }
 0x1b1   :  { %v568_v24 = vmax.f32 %v566_v14, %v567_v57 }
 0x1b3   :  { %v569_v26 = vrot.slane %v568_v24, 1 }
 0x1b5   :  { %v570_v27 = vmax.f32 %v568_v24, %v569_v26 }
 0x1b7   :  { %v571_v25 = vsub.f32 %v552_v7, %v570_v27  ;;  %v572_v16 = vsub.f32 %v554_v5, %v570_v27  ;;  %v573_v12 = vsub.f32 %v557_v55, %v570_v27 }
 0x1b9   :  { %v574_v29 = vmul.f32 1.442695, %v571_v25  ;;  %v576_v37 = vmul.f32 1.442695, %v572_v16  ;;  %v578_v30 = vmul.f32 1.442695, %v573_v12 }
 0x1bb   :  { %640 = vpow2.f32 %v574_v29 }
 0x1bc   :  { %642 = vpow2.f32 %v576_v37 }
 0x1bd   :  { %644 = vpow2.f32 %v578_v30 }
 0x1c1   :  { %v641_v28 = vpop.eup %640 }
 0x1c2   :  { %v643_v10 = vpop.eup %642  ;;  %v580_v35 = vsel %vm300_vm7, %v641_v28, 0.0 }
 0x1c3   :  { %v645_v13 = vpop.eup %644  ;;  %v581_v36 = vsel %vm300_vm7, %v643_v10, 0.0 }
 0x1c4   :  { %v582_v20 = vadd.f32 %v581_v36, %v580_v35  ;;  %v583_v62 = vsel %vm300_vm7, %v645_v13, 0.0 }
 0x1c6   :  { %v584_v40 = vadd.f32 %v583_v62, %v582_v20 }
 0x1c8   :  { %v585_v31 = vrot.slane %v584_v40, 4 }
 0x1ca   :  { %v586_v53 = vadd.f32 %v585_v31, %v584_v40 }
 0x1cc   :  { %v587_v32 = vrot.slane %v586_v53, 2 }
 0x1ce   :  { %v588_v33 = vadd.f32 %v587_v32, %v586_v53 }
 0x1d0   :  { %v589_v41 = vrot.slane %v588_v33, 1 }
 0x1d2   :  { %v590_v15 = vadd.f32 %v589_v41, %v588_v33 }
 0x1d4   :  { %646 = vrcp.f32 %v590_v15  ;;  %v602_v39 = vand.u32 2147483648, %v590_v15  ;;  %v600_v46 = vand.u32 2147483647, %v590_v15  ;;  %vm596_vm13 = vweird.f32 %v590_v15 }
 0x1d6   :  { %v603_v0 = vor.u32 1.1754944e-38, %v602_v39  ;;  %vm601_vm15 = vcmp.eq.f32.partialorder %v600_v46, 8.507059e+37 }
 0x1da   :  { %v647_v43 = vpop.eup %646 }
 0x1db   :  { %v592_v38 = vmul.f32 %v647_v43, %v590_v15  ;;  %vm597_vm12 = vweird.f32 %v647_v43 }
 0x1dc   :  { %vm598_vm14 = vmor %vm596_vm13, %vm597_vm12 }
 0x1dd   :  { %v593_v44 = vsub.f32 1.0, %v592_v38 }
 0x1df   :  { %v594_v45 = vmul.f32 %v647_v43, %v593_v44 }
 0x1e1   :  { %v595_v47 = vadd.f32 %v647_v43, %v594_v45 }
 0x1e3   :  { %v599_v18 = vsel %vm598_vm14, %v647_v43, %v595_v47 }
 0x1e4   :  { %v604_v34 = vsel %vm601_vm15, %v603_v0, %v599_v18 }
 0x1e5   :  { %v605_v49 = vmul.f32 %v641_v28, %v604_v34  ;;  %v606_v42 = vmul.f32 %v643_v10, %v604_v34  ;;  %v607_v51 = vmul.f32 %v645_v13, %v604_v34 }
 0x1e7   :  { %624 = vst.msk [vmem:[%s1003_s3 + $0x18] sm:$0xff] %vm300_vm7, %v605_v49 }
 0x1e8   :  { %625 = vst.msk [vmem:[%s1003_s3 + $0x20] sm:$0xff] %vm300_vm7, %v606_v42 }
 0x1e9   :  { %626 = vst.msk [vmem:[%s1003_s3 + $0x28] sm:$0xff] %vm300_vm7, %v607_v51 }

// kernel: rnn_key_signature_forward.5
= control target key start
LH: loop header
LB: loop body
LE: loop exit
PB: predicated region body
PF: predicated region fallthrough
CT: control target
= control target key end

     0   :  { %s2527_s18 = smov 0   ;;  %s2529_s19 = smov 0   ;;  %s3582_s0 = inlined_call_operand.vmem [shape: bf16[16,2,256], index: 0, kind: input, shape index: {}]   ;;  %s3583_s1 = inlined_call_operand.vmem [shape: bf16[2,256,384], index: 1, kind: input, shape index: {}]   ;;  %s3584_s2 = inlined_call_operand.vmem [shape: bf16[2,128,384], index: 2, kind: input, shape index: {}]   ;;  %s3585_s3 = inlined_call_operand.vmem [shape: f32[2,1,384], index: 3, kind: input, shape index: {}]   ;;  %s3586_s4 = inlined_call_operand.vmem [shape: f32[2,1,128], index: 4, kind: input, shape index: {}]   ;;  %s3587_s5 = inlined_call_operand.vmem [shape: bf16[16,2,256], index: 5, kind: output, shape index: {}]  }
   0x1   :  { %s2531_s20 = smov 0   ;;  %s2533_s21 = smov 0  }
   0x2   :  { %s2535_s22 = smov 0  }
   0x3 LB: > { %s1987_s23 = sadd.s32 4294967295, %s2486_s22   ;;  %s27_s24 = sadd.s32 1, %s2482_s21  ;;  %s2486_s22 = sphi %s2535_s22, %s15_s22   ;;  %s2482_s21 = sphi %s2533_s21, %s3725_s21   ;;  %s2478_s20 = sphi %s2531_s20, %s3724_s20   ;;  %s2474_s19 = sphi %s2529_s19, %s3723_s19   ;;  %s2470_s18 = sphi %s2527_s18, %s3722_s18  }
   0x4   : > { %p29_p0 = scmp.ge.s32.totalorder %s27_s24, 2  ;;  %s178_s25 = sadd.s32 1, %s2474_s19 }
   0x5   : > { %p188_p1 = scmp.ne.s32.totalorder %s2474_s19, %s2470_s18  ;;  %p189_p2 = scmp.eq.s32.totalorder %s1987_s23, 1 }
   0x6   : > { %s3727_s24 = smov (%p29_p0, %s27_s24), 0  ;;  %p1996_p4 = scmp.ge.s32.totalorder %s2486_s22, 1 }
   0x7   : > { %p2556_p3 = por %p189_p2, %p188_p1  ;;  %s174_s27 = ssub.s32 %s2482_s21, %s3727_s24 }
   0x8   : > { %p257_p5 = scmp.lt.s32.totalorder %s2486_s22, 3  ;;  %p176_p6 = scmp.eq.s32.totalorder %s174_s27, 0 }
   0xa   : > { %p258_p7 = pnand %p1996_p4, %p257_p5 }
   0xb   : > { %s2565_s28 = scalar_select %p176_p6, %s2474_s19, %s178_s25  }
   0xc   : > { %261 = sbr.rel (%p258_p7) target bundleno = 742 (0x2e6), region = 40 }
  0x11   : > { %s301_s29 = sand.u32 1, %s2470_s18   ;;  %p316_p8 = scmp.lt.s32.totalorder %s2478_s20, 1  ;;  %v407_v0 = vld [vmem:[%s3582_s0] sm:$0x3]  ;;  %v2496_v1 = vmov 0.0   ;;  %vm559_vm0 = vcmask 1041409  }
  0x12   : > { %s2571_s7 = sshll.u32 %s301_s29, 4  ;;  %341 = vst [vmem:[#allocation2] sm:$0x3] %v2496_v1  ;;  %vm562_vm1 = vcmask 1042434   ;;  %vm565_vm2 = vcmask 1043459   ;;  %vm3596_vm3 = vcmask 1044484  }
  0x13   : > { %s2574_s8 = scalar_select %p316_p8, %s2478_s20, 1  ;;  %431 = vst [vmem:[#allocation1] ss:$9 sm:$0xff] %v407_v0  ;;  %vm571_vm4 = vcmask 1045509   ;;  %vm574_vm5 = vcmask 1046534   ;;  %vm577_vm6 = vcmask 1047559  }
  0x14   : > { %vm975_vm7 = vcmask 1040384   ;;  %vm1003_vm8 = vcmask 1046528   ;;  %vm977_vm9 = vcmask 1041408   ;;  %vm980_vm10 = vcmask 1042433   ;;  %s3454_s30 = smov 0  }
  0x15   : > { %s2370_s9 = smul.u32 384, %s2574_s8  ;;  %s332_s12 = scalar_lea.vmem %s3586_s4, %s2574_s8  ;;  %vm984_vm11 = vcmask 1043458   ;;  %vm988_vm12 = vcmask 1044483   ;;  %vm996_vm14 = vcmask 1046533   ;;  %vm1000_vm15 = vcmask 1045504  }
  0x16   : > { %s2371_s13 = smul.u32 192, %s2574_s8  ;;  %v2582_v2 = vld [vmem:[%s332_s12] sm:$0x1] }
  0x17   : > { %3598 = vst [vmem:[#allocation5_spill] sm:$0xff] %v2582_v2  ;;  %s2587_s16 = scalar_lea.vmem %s3583_s1, %s2370_s9 }
  0x18   : > { %s2592_s23 = scalar_lea.vmem %s3584_s2, %s2371_s13  ;;  %v2087_v3 = vld [vmem:[%s2587_s16 + $0xa8] sm:$0xf]  ;;  %v2319_v4 = vld [vmem:[%s2587_s16 + $0xb0] sm:$0xf0]  ;;  %v2075_v56 = vld [vmem:[%s2587_s16 + $0x90] sm:$0xf] }
  0x19   : > { %v2596_v5 = vor.u32 %v2319_v4, %v2087_v3  ;;  %v2599_v6 = vld [vmem:[%s2592_s23 + $0x4] sm:$0xf]  ;;  %v2602_v7 = vld [vmem:[%s2592_s23] sm:$0xf]  ;;  %v2605_v8 = vld [vmem:[%s2592_s23 + $0x8] sm:$0xf] }
  0x1a   : > { %3599 = vst [vmem:[#allocation6_spill] sm:$0xff] %v2599_v6  ;;  %v2608_v9 = vld [vmem:[%s2592_s23 + $0xc] sm:$0xf0]  ;;  %v2611_v10 = vld [vmem:[%s2592_s23 + $0x8] sm:$0xf0] }
  0x1b   : > { %3600 = vst [vmem:[#allocation7_spill] sm:$0xff] %v2602_v7  ;;  %v2614_v11 = vld [vmem:[%s2592_s23 + $0x10] sm:$0xf0]  ;;  %881 = vmatpush.bf16.msra.mxu0 %v2596_v5  ;;  %v2618_v12 = vld [vmem:[%s2592_s23 + $0x1c] sm:$0xf] }
  0x1c   : > { %3601 = vst [vmem:[#allocation8_spill] sm:$0xff] %v2605_v8  ;;  %v2621_v13 = vld [vmem:[%s2592_s23 + $0x18] sm:$0xf]  ;;  %v2624_v14 = vld [vmem:[%s2592_s23 + $0x20] sm:$0xf] }
  0x1d   : > { %3602 = vst [vmem:[#allocation9_spill] sm:$0xff] %v2608_v9  ;;  %v2627_v15 = vld [vmem:[%s2592_s23 + $0x24] sm:$0xf0]  ;;  %v2630_v16 = vld [vmem:[%s2592_s23 + $0x20] sm:$0xf0] }
  0x1e   : > { %3603 = vst [vmem:[#allocation10_spill] sm:$0xff] %v2611_v10  ;;  %v2633_v17 = vld [vmem:[%s2592_s23 + $0x28] sm:$0xf0]  ;;  %v2636_v18 = vld [vmem:[%s2592_s23 + $0x34] sm:$0xf] }
  0x1f   : > { %3604 = vst [vmem:[#allocation11_spill] sm:$0xff] %v2614_v11  ;;  %v2639_v19 = vld [vmem:[%s2592_s23 + $0x30] sm:$0xf]  ;;  %v2642_v20 = vld [vmem:[%s2592_s23 + $0x38] sm:$0xf] }
  0x20   : > { %3605 = vst [vmem:[#allocation12_spill] sm:$0xff] %v2618_v12  ;;  %v2645_v21 = vld [vmem:[%s2592_s23 + $0x3c] sm:$0xf0]  ;;  %v2648_v22 = vld [vmem:[%s2592_s23 + $0x38] sm:$0xf0] }
  0x21   : > { %3606 = vst [vmem:[#allocation13_spill] sm:$0xff] %v2621_v13  ;;  %v2651_v23 = vld [vmem:[%s2592_s23 + $0x40] sm:$0xf0]  ;;  %v2654_v24 = vld [vmem:[%s2592_s23 + $0x4c] sm:$0xf] }
  0x22   : > { %3607 = vst [vmem:[#allocation14_spill] sm:$0xff] %v2624_v14  ;;  %v2657_v25 = vld [vmem:[%s2592_s23 + $0x48] sm:$0xf]  ;;  %v2660_v26 = vld [vmem:[%s2592_s23 + $0x50] sm:$0xf] }
  0x23   : > { %3608 = vst [vmem:[#allocation15_spill] sm:$0xff] %v2627_v15  ;;  %v2663_v27 = vld [vmem:[%s2592_s23 + $0x54] sm:$0xf0]  ;;  %v2666_v28 = vld [vmem:[%s2592_s23 + $0x50] sm:$0xf0] }
  0x24   : > { %3609 = vst [vmem:[#allocation16_spill] sm:$0xff] %v2630_v16  ;;  %v2669_v29 = vld [vmem:[%s2592_s23 + $0x58] sm:$0xf0]  ;;  %v2672_v30 = vld [vmem:[%s2592_s23 + $0x64] sm:$0xf] }
  0x25   : > { %3610 = vst [vmem:[#allocation17_spill] sm:$0xff] %v2633_v17  ;;  %v2675_v31 = vld [vmem:[%s2592_s23 + $0x60] sm:$0xf]  ;;  %v2678_v32 = vld [vmem:[%s2592_s23 + $0x68] sm:$0xf] }
  0x26   : > { %3611 = vst [vmem:[#allocation18_spill] sm:$0xff] %v2636_v18  ;;  %v2681_v33 = vld [vmem:[%s2592_s23 + $0x6c] sm:$0xf0]  ;;  %v2684_v34 = vld [vmem:[%s2592_s23 + $0x68] sm:$0xf0] }
  0x27   : > { %3612 = vst [vmem:[#allocation19_spill] sm:$0xff] %v2639_v19  ;;  %v2687_v35 = vld [vmem:[%s2592_s23 + $0x70] sm:$0xf0]  ;;  %v2690_v36 = vld [vmem:[%s2592_s23 + $0x7c] sm:$0xf] }
  0x28   : > { %3613 = vst [vmem:[#allocation20_spill] sm:$0xff] %v2642_v20  ;;  %v2693_v37 = vld [vmem:[%s2592_s23 + $0x78] sm:$0xf]  ;;  %v2696_v38 = vld [vmem:[%s2592_s23 + $0x80] sm:$0xf] }
  0x29   : > { %3614 = vst [vmem:[#allocation21_spill] sm:$0xff] %v2645_v21  ;;  %v2699_v39 = vld [vmem:[%s2592_s23 + $0x84] sm:$0xf0]  ;;  %v2702_v40 = vld [vmem:[%s2592_s23 + $0x80] sm:$0xf0] }
  0x2a   : > { %3615 = vst [vmem:[#allocation22_spill] sm:$0xff] %v2648_v22  ;;  %v2705_v41 = vld [vmem:[%s2592_s23 + $0x88] sm:$0xf0]  ;;  %v2708_v42 = vld [vmem:[%s2592_s23 + $0x94] sm:$0xf] }
  0x2b   : > { %3616 = vst [vmem:[#allocation23_spill] sm:$0xff] %v2651_v23  ;;  %v2711_v43 = vld [vmem:[%s2592_s23 + $0x90] sm:$0xf]  ;;  %v2714_v44 = vld [vmem:[%s2592_s23 + $0x98] sm:$0xf] }
  0x2c   : > { %3617 = vst [vmem:[#allocation24_spill] sm:$0xff] %v2654_v24  ;;  %v2183_v45 = vld [vmem:[%s2587_s16 + $0x168] sm:$0xf]  ;;  %v2718_v46 = vld [vmem:[%s2592_s23 + $0x9c] sm:$0xf0] }
  0x2d   : > { %3618 = vst [vmem:[#allocation25_spill] sm:$0xff] %v2657_v25  ;;  %v2721_v47 = vld [vmem:[%s2592_s23 + $0x98] sm:$0xf0]  ;;  %v2724_v48 = vld [vmem:[%s2592_s23 + $0xa0] sm:$0xf0] }
  0x2e   : > { %3619 = vst [vmem:[#allocation26_spill] sm:$0xff] %v2660_v26  ;;  %v2727_v49 = vld [vmem:[%s2592_s23 + $0xac] sm:$0xf]  ;;  %v2730_v50 = vld [vmem:[%s2592_s23 + $0xa8] sm:$0xf] }
  0x2f   : > { %3620 = vst [vmem:[#allocation27_spill] sm:$0xff] %v2663_v27  ;;  %v2733_v51 = vld [vmem:[%s2592_s23 + $0xb0] sm:$0xf]  ;;  %v2736_v52 = vld [vmem:[%s2592_s23 + $0xb4] sm:$0xf0] }
  0x30   : > { %3621 = vst [vmem:[#allocation28_spill] sm:$0xff] %v2666_v28  ;;  %v2739_v53 = vld [vmem:[%s2592_s23 + $0xb0] sm:$0xf0]  ;;  %v2742_v54 = vld [vmem:[%s2592_s23 + $0xb8] sm:$0xf0] }
  0x31   : > { %3622 = vst [vmem:[#allocation29_spill] sm:$0xff] %v2669_v29  ;;  %v2343_v55 = vld [vmem:[%s2587_s16 + $0x170] sm:$0xf0]  ;;  %v2316_v57 = vld [vmem:[%s2587_s16 + $0x98] sm:$0xf0] }
  0x32   : > { %3623 = vst [vmem:[#allocation30_spill] sm:$0xff] %v2672_v30  ;;  %v2747_v58 = vor.u32 %v2343_v55, %v2183_v45  ;;  %v2749_v59 = vor.u32 %v2316_v57, %v2075_v56  ;;  %v2171_v60 = vld [vmem:[%s2587_s16 + $0x150] sm:$0xf]  ;;  %v2340_v61 = vld [vmem:[%s2587_s16 + $0x158] sm:$0xf0] }
  0x33   : > { %3624 = vst [vmem:[#allocation31_spill] sm:$0xff] %v2675_v31  ;;  %v2063_v62 = vld [vmem:[%s2587_s16 + $0x78] sm:$0xf]  ;;  %v2313_v63 = vld [vmem:[%s2587_s16 + $0x80] sm:$0xf0]  ;;  %v2759_v3 = vor.u32 %v2340_v61, %v2171_v60 }
  0x34   : > { %3625 = vst [vmem:[#allocation32_spill] sm:$0xff] %v2678_v32  ;;  %v2159_v0 = vld [vmem:[%s2587_s16 + $0x138] sm:$0xf]  ;;  %v2337_v1 = vld [vmem:[%s2587_s16 + $0x140] sm:$0xf0]  ;;  %895 = vmatpush.bf16.msra.mxu1 %v2747_v58  ;;  %882 = vmatpush.bf16.msra.mxu0 %v2749_v59  ;;  %v2761_v4 = vor.u32 %v2313_v63, %v2063_v62 }
  0x35   : > { %3626 = vst [vmem:[#allocation33_spill] sm:$0xff] %v2681_v33  ;;  %v2051_v45 = vld [vmem:[%s2587_s16 + $0x60] sm:$0xf]  ;;  %v2310_v55 = vld [vmem:[%s2587_s16 + $0x68] sm:$0xf0]  ;;  %v2777_v62 = vor.u32 %v2337_v1, %v2159_v0 }
  0x36   : > { %3627 = vst [vmem:[#allocation34_spill] sm:$0xff] %v2684_v34  ;;  %v2318_v56 = vld [vmem:[%s2587_s16 + $0xac] sm:$0xf]  ;;  %v2089_v57 = vld [vmem:[%s2587_s16 + $0xb4] sm:$0xf0]  ;;  %v2779_v63 = vor.u32 %v2310_v55, %v2051_v45 }
  0x37   : > { %3628 = vst [vmem:[#allocation35_spill] sm:$0xff] %v2687_v35  ;;  %v2342_v2 = vld [vmem:[%s2587_s16 + $0x16c] sm:$0xf]  ;;  %v2185_v11 = vld [vmem:[%s2587_s16 + $0x174] sm:$0xf0]  ;;  %v2769_v8 = vor.u32 %v2318_v56, %v2089_v57 }
  0x38   : > { %3629 = vst [vmem:[#allocation36_spill] sm:$0xff] %v2690_v36  ;;  %v2771_v6 = vor.u32 %v2342_v2, %v2185_v11  ;;  %v2315_v60 = vld [vmem:[%s2587_s16 + $0x94] sm:$0xf]  ;;  %v2077_v61 = vld [vmem:[%s2587_s16 + $0x9c] sm:$0xf0]  ;;  %896 = vmatpush.bf16.msra.mxu1 %v2759_v3  ;;  %883 = vmatpush.bf16.msra.mxu0 %v2761_v4 }
  0x39   : > { %3630 = vst [vmem:[#allocation37_spill] sm:$0xff] %v2693_v37  ;;  %v2147_v9 = vld [vmem:[%s2587_s16 + $0x120] sm:$0xf]  ;;  %v2339_v10 = vld [vmem:[%s2587_s16 + $0x154] sm:$0xf]  ;;  %909 = vmatpush.bf16.msra.mxu2 %v2769_v8  ;;  %v2789_v7 = vor.u32 %v2315_v60, %v2077_v61 }
  0x3a   : > { %3631 = vst [vmem:[#allocation38_spill] sm:$0xff] %v2696_v38  ;;  %v2173_v56 = vld [vmem:[%s2587_s16 + $0x15c] sm:$0xf0]  ;;  %923 = vmatpush.bf16.msra.mxu3 %v2771_v6  ;;  %v2334_v2 = vld [vmem:[%s2587_s16 + $0x128] sm:$0xf0] }
  0x3b   : > { %3632 = vst [vmem:[#allocation39_spill] sm:$0xff] %v2699_v39  ;;  %v2039_v11 = vld [vmem:[%s2587_s16 + $0x48] sm:$0xf]  ;;  %v2307_v57 = vld [vmem:[%s2587_s16 + $0x50] sm:$0xf0]  ;;  %v2791_v0 = vor.u32 %v2339_v10, %v2173_v56  ;;  %v2799_v14 = vor.u32 %v2334_v2, %v2147_v9 }
  0x3c   : > { %3633 = vst [vmem:[#allocation40_spill] sm:$0xff] %v2702_v40  ;;  %v2312_v1 = vld [vmem:[%s2587_s16 + $0x7c] sm:$0xf]  ;;  %v2065_v45 = vld [vmem:[%s2587_s16 + $0x84] sm:$0xf0]  ;;  %897 = vmatpush.bf16.msra.mxu1 %v2777_v62  ;;  %884 = vmatpush.bf16.msra.mxu0 %v2779_v63  ;;  %v2801_v12 = vor.u32 %v2307_v57, %v2039_v11 }
  0x3d   : > { %3634 = vst [vmem:[#allocation41_spill] sm:$0xff] %v2705_v41  ;;  %v2336_v55 = vld [vmem:[%s2587_s16 + $0x13c] sm:$0xf]  ;;  %v2161_v17 = vld [vmem:[%s2587_s16 + $0x144] sm:$0xf0]  ;;  %910 = vmatpush.bf16.msra.mxu2 %v2789_v7  ;;  %v2809_v15 = vor.u32 %v2312_v1, %v2065_v45 }
  0x3e   : > { %3635 = vst [vmem:[#allocation42_spill] sm:$0xff] %v2708_v42  ;;  %v2135_v60 = vld [vmem:[%s2587_s16 + $0x108] sm:$0xf]  ;;  %v2331_v10 = vld [vmem:[%s2587_s16 + $0x110] sm:$0xf0]  ;;  %924 = vmatpush.bf16.msra.mxu3 %v2791_v0  ;;  %v2811_v16 = vor.u32 %v2336_v55, %v2161_v17 }
  0x3f   : > { %3636 = vst [vmem:[#allocation43_spill] sm:$0xff] %v2711_v43  ;;  %v2027_v61 = vld [vmem:[%s2587_s16 + $0x30] sm:$0xf]  ;;  %v2304_v56 = vld [vmem:[%s2587_s16 + $0x38] sm:$0xf0]  ;;  %v2819_v13 = vor.u32 %v2331_v10, %v2135_v60 }
  0x40   : > { %3637 = vst [vmem:[#allocation44_spill] sm:$0xff] %v2714_v44  ;;  %v2309_v9 = vld [vmem:[%s2587_s16 + $0x64] sm:$0xf]  ;;  %v2053_v2 = vld [vmem:[%s2587_s16 + $0x6c] sm:$0xf0]  ;;  %898 = vmatpush.bf16.msra.mxu1 %v2799_v14  ;;  %885 = vmatpush.bf16.msra.mxu0 %v2801_v12  ;;  %v2821_v23 = vor.u32 %v2304_v56, %v2027_v61 }
  0x41   : > { %3638 = vst [vmem:[#allocation45_spill] sm:$0xff] %v2718_v46  ;;  %v2333_v11 = vld [vmem:[%s2587_s16 + $0x124] sm:$0xf]  ;;  %v2149_v57 = vld [vmem:[%s2587_s16 + $0x12c] sm:$0xf0]  ;;  %911 = vmatpush.bf16.msra.mxu2 %v2809_v15  ;;  %v2829_v20 = vor.u32 %v2309_v9, %v2053_v2 }
  0x42   : > { %3639 = vst [vmem:[#allocation46_spill] sm:$0xff] %v2721_v47  ;;  %v2123_v1 = vld [vmem:[%s2587_s16 + $0xf0] sm:$0xf]  ;;  %v2328_v17 = vld [vmem:[%s2587_s16 + $0xf8] sm:$0xf0]  ;;  %925 = vmatpush.bf16.msra.mxu3 %v2811_v16  ;;  %v2831_v18 = vor.u32 %v2333_v11, %v2149_v57 }
  0x43   : > { %3640 = vst [vmem:[#allocation47_spill] sm:$0xff] %v2724_v48  ;;  %v2015_v45 = vld [vmem:[%s2587_s16 + $0x18] sm:$0xf]  ;;  %v2301_v55 = vld [vmem:[%s2587_s16 + $0x20] sm:$0xf0]  ;;  %v2839_v21 = vor.u32 %v2328_v17, %v2123_v1 }
  0x44   : > { %3641 = vst [vmem:[#allocation48_spill] sm:$0xff] %v2727_v49  ;;  %v2306_v60 = vld [vmem:[%s2587_s16 + $0x4c] sm:$0xf]  ;;  %v2041_v10 = vld [vmem:[%s2587_s16 + $0x54] sm:$0xf0]  ;;  %899 = vmatpush.bf16.msra.mxu1 %v2819_v13  ;;  %886 = vmatpush.bf16.msra.mxu0 %v2821_v23  ;;  %v2841_v9 = vor.u32 %v2301_v55, %v2015_v45 }
  0x45   : > { %3642 = vst [vmem:[#allocation49_spill] sm:$0xff] %v2730_v50  ;;  %v2330_v61 = vld [vmem:[%s2587_s16 + $0x10c] sm:$0xf]  ;;  %v2137_v56 = vld [vmem:[%s2587_s16 + $0x114] sm:$0xf0]  ;;  %912 = vmatpush.bf16.msra.mxu2 %v2829_v20  ;;  %v2849_v19 = vor.u32 %v2306_v60, %v2041_v10 }
  0x46   : > { %3643 = vst [vmem:[#allocation50_spill] sm:$0xff] %v2733_v51  ;;  %v2111_v2 = vld [vmem:[%s2587_s16 + $0xd8] sm:$0xf]  ;;  %v2325_v11 = vld [vmem:[%s2587_s16 + $0xe0] sm:$0xf0]  ;;  %926 = vmatpush.bf16.msra.mxu3 %v2831_v18  ;;  %v2851_v29 = vor.u32 %v2330_v61, %v2137_v56 }
  0x47   : > { %3644 = vst [vmem:[#allocation51_spill] sm:$0xff] %v2736_v52  ;;  %v2003_v57 = vld [vmem:[%s2587_s16] sm:$0xf]  ;;  %v2298_v22 = vld [vmem:[%s2587_s16 + $0x8] sm:$0xf0]  ;;  %v2861_v60 = vor.u32 %v2325_v11, %v2111_v2 }
  0x48   : > { %3645 = vst [vmem:[#allocation52_spill] sm:$0xff] %v2739_v53  ;;  %v2095_v26 = vld [vmem:[%s2587_s16 + $0xb0] sm:$0xf]  ;;  %v2320_v1 = vld [vmem:[%s2587_s16 + $0xb8] sm:$0xf0]  ;;  %900 = vmatpush.bf16.msra.mxu1 %v2839_v21  ;;  %887 = vmatpush.bf16.msra.mxu0 %v2841_v9  ;;  %v2863_v10 = vor.u32 %v2298_v22, %v2003_v57 }
  0x49   : > { %3646 = vst [vmem:[#allocation53_spill] sm:$0xff] %v2742_v54  ;;  %v2303_v17 = vld [vmem:[%s2587_s16 + $0x34] sm:$0xf]  ;;  %v2029_v45 = vld [vmem:[%s2587_s16 + $0x3c] sm:$0xf0]  ;;  %913 = vmatpush.bf16.msra.mxu2 %v2849_v19  ;;  %v2868_v56 = vor.u32 %v2320_v1, %v2095_v26 }
  0x4a   : > { %v2327_v55 = vld [vmem:[%s2587_s16 + $0xf4] sm:$0xf]  ;;  %v2125_v24 = vld [vmem:[%s2587_s16 + $0xfc] sm:$0xf0]  ;;  %927 = vmatpush.bf16.msra.mxu3 %v2851_v29  ;;  %v2322_v27 = vld [vmem:[%s2587_s16 + $0xc8] sm:$0xf0]  ;;  %v2873_v35 = vor.u32 %v2303_v17, %v2029_v45 }
  0x4b   : > { %v2099_v61 = vld [vmem:[%s2587_s16 + $0xc0] sm:$0xf]  ;;  %v2191_v28 = vld [vmem:[%s2587_s16 + $0x170] sm:$0xf]  ;;  %v2344_v25 = vld [vmem:[%s2587_s16 + $0x178] sm:$0xf0]  ;;  %v2875_v32 = vor.u32 %v2327_v55, %v2125_v24 }
  0x4c   : > { %3647 = vst [vmem:[#allocation54_spill] sm:$0xff] %v2873_v35  ;;  %v2083_v2 = vld [vmem:[%s2587_s16 + $0x98] sm:$0xf]  ;;  %v2317_v22 = vld [vmem:[%s2587_s16 + $0xa0] sm:$0xf0]  ;;  %901 = vmatpush.bf16.msra.mxu1 %v2861_v60  ;;  %888 = vmatpush.bf16.msra.mxu0 %v2863_v10  ;;  %v2885_v26 = vor.u32 %v2322_v27, %v2099_v61  ;;  %v2891_v1 = vor.u32 %v2344_v25, %v2191_v28 }
  0x4d   : > { %3648 = vst [vmem:[#allocation55_spill] sm:$0xff] %v2875_v32  ;;  %v2300_v11 = vld [vmem:[%s2587_s16 + $0x1c] sm:$0xf]  ;;  %v2017_v57 = vld [vmem:[%s2587_s16 + $0x24] sm:$0xf0]  ;;  %914 = vmatpush.bf16.msra.mxu2 %v2873_v35  ;;  %v2894_v17 = vor.u32 %v2317_v22, %v2083_v2 }
  0x4e   : > { %v2324_v30 = vld [vmem:[%s2587_s16 + $0xdc] sm:$0xf]  ;;  %v2113_v33 = vld [vmem:[%s2587_s16 + $0xe4] sm:$0xf0]  ;;  %v408_v24 = vld [vmem:[%s3582_s0 + $0x2] sm:$0x3]  ;;  %928 = vmatpush.bf16.msra.mxu3 %v2875_v32  ;;  %v2900_v27 = vor.u32 %v2300_v11, %v2017_v57 }
  0x4f   : > { %v2179_v45 = vld [vmem:[%s2587_s16 + $0x158] sm:$0xf]  ;;  %v2341_v55 = vld [vmem:[%s2587_s16 + $0x160] sm:$0xf0]  ;;  %v2071_v34 = vld [vmem:[%s2587_s16 + $0x80] sm:$0xf]  ;;  %v2902_v61 = vor.u32 %v2324_v30, %v2113_v33 }
  0x50   : > { %937 = vmatpush.bf16.msrb.mxu0 %v2868_v56  ;;  %3649 = vst [vmem:[#allocation56_spill] sm:$0xff] %v2900_v27  ;;  %v2314_v31 = vld [vmem:[%s2587_s16 + $0x88] sm:$0xf0]  ;;  %v2297_v41 = vld [vmem:[%s2587_s16 + $0x4] sm:$0xf]  ;;  %902 = vmatpush.bf16.msra.mxu1 %v2885_v26  ;;  %v2916_v30 = vor.u32 %v2341_v55, %v2179_v45 }
  0x51   : > { %3650 = vst [vmem:[#allocation57_spill] sm:$0xff] %v2902_v61  ;;  %v2005_v38 = vld [vmem:[%s2587_s16 + $0xc] sm:$0xf0]  ;;  %v2321_v25 = vld [vmem:[%s2587_s16 + $0xc4] sm:$0xf]  ;;  %v2918_v33 = vor.u32 %v2314_v31, %v2071_v34  ;;  %915 = vmatpush.bf16.msra.mxu2 %v2900_v27 }
  0x52   : > { %v2101_v28 = vld [vmem:[%s2587_s16 + $0xcc] sm:$0xf0]  ;;  %v2909_v2 = vld [vmem:[#allocation1] sm:$0xf]  ;;  %v2912_v22 = vld [vmem:[#allocation1 + $0x9] sm:$0xf]  ;;  %929 = vmatpush.bf16.msra.mxu3 %v2902_v61  ;;  %v2924_v36 = vor.u32 %v2297_v41, %v2005_v38 }
  0x53   : > { %v2167_v11 = vld [vmem:[%s2587_s16 + $0x140] sm:$0xf]  ;;  %437 = vst [vmem:[#allocation1] ss:$9 sm:$0xff] %v408_v24  ;;  %v2338_v57 = vld [vmem:[%s2587_s16 + $0x148] sm:$0xf0]  ;;  %v2926_v39 = vor.u32 %v2321_v25, %v2101_v28  ;;  %v526_v46 = vunpack.c.l.b16 %v2909_v2 }
  0x54   : > { %951 = vmatpush.bf16.msrb.mxu1 %v2891_v1  ;;  %938 = vmatpush.bf16.msrb.mxu0 %v2894_v17  ;;  %3651 = vst [vmem:[#allocation58_spill] sm:$0xff] %v2924_v36  ;;  %v2059_v40 = vld [vmem:[%s2587_s16 + $0x68] sm:$0xf]  ;;  %v2311_v37 = vld [vmem:[%s2587_s16 + $0x70] sm:$0xf0]  ;;  %v2932_v31 = vor.u32 %v2338_v57, %v2167_v11 }
  0x55   : > { %3652 = vst [vmem:[#allocation59_spill] sm:$0xff] %v2926_v39  ;;  %v2934_v34 = vor.u32 %v2311_v37, %v2059_v40  ;;  %v2155_v24 = vld [vmem:[%s2587_s16 + $0x128] sm:$0xf]  ;;  %v409_v45 = vld [vmem:[%s3582_s0 + $0x4] sm:$0x3]  ;;  %916 = vmatpush.bf16.msra.mxu2 %v2924_v36 }
  0x56   : > { %930 = vmatpush.bf16.msra.mxu3 %v2926_v39  ;;  %v2335_v38 = vld [vmem:[%s2587_s16 + $0x130] sm:$0xf0]  ;;  %v2047_v41 = vld [vmem:[%s2587_s16 + $0x50] sm:$0xf]  ;;  %v2308_v55 = vld [vmem:[%s2587_s16 + $0x58] sm:$0xf0] }
  0x57   : > { %v2953_v25 = vor.u32 %v2335_v38, %v2155_v24  ;;  %v2955_v28 = vor.u32 %v2308_v55, %v2047_v41  ;;  %v2143_v11 = vld [vmem:[%s2587_s16 + $0x110] sm:$0xf]  ;;  %v2332_v57 = vld [vmem:[%s2587_s16 + $0x118] sm:$0xf0]  ;;  %v2035_v42 = vld [vmem:[%s2587_s16 + $0x38] sm:$0xf] }
  0x58   : > { %952 = vmatpush.bf16.msrb.mxu1 %v2916_v30  ;;  %939 = vmatpush.bf16.msrb.mxu0 %v2918_v33  ;;  %v416_v41 = vld [vmem:[%s3582_s0 + $0x12] sm:$0x3]  ;;  %v2305_v43 = vld [vmem:[%s2587_s16 + $0x40] sm:$0xf0]  ;;  %v421_v2 = vld [vmem:[%s3582_s0 + $0x1c] sm:$0x3] }
  0x59   : > { %1286 = vmatpush.bf16.msrb.mxu2 %v2596_v5  ;;  %v2963_v5 = vor.u32 %v2332_v57, %v2143_v11  ;;  %v417_v57 = vld [vmem:[%s3582_s0 + $0x14] sm:$0x3]  ;;  %v3054_v52 = vor.u32 %v2305_v43, %v2035_v42  ;;  %v2023_v36 = vld [vmem:[%s2587_s16 + $0x20] sm:$0xf]  ;;  %v2302_v61 = vld [vmem:[%s2587_s16 + $0x28] sm:$0xf0] }
  0x5a   : > { %1300 = vmatpush.bf16.msrb.mxu3 %v2747_v58  ;;  %v2947_v37 = vld [vmem:[#allocation1] sm:$0xf]  ;;  %v2949_v40 = vld [vmem:[#allocation1 + $0x9] sm:$0xf]  ;;  %v410_v58 = vld [vmem:[%s3582_s0 + $0x6] sm:$0x3] }
  0x5b   : > { %443 = vst [vmem:[#allocation1] ss:$9 sm:$0xff] %v409_v45  ;;  %v528_v44 = vunpack.c.l.b16 %v2947_v37  ;;  %v529_v37 = vunpack.c.l.b16 %v2949_v40 }
  0x5c   : > { %953 = vmatpush.bf16.msrb.mxu1 %v2932_v31  ;;  %940 = vmatpush.bf16.msrb.mxu0 %v2934_v34  ;;  %3653 = vst [vmem:[#allocation60_spill] sm:$0xff] %v2963_v5 }
  0x5d   : > { %1287 = vmatpush.bf16.msrb.mxu2 %v2749_v59  ;;  %v411_v59 = vld [vmem:[%s3582_s0 + $0x8] sm:$0x3]  ;;  %v558_v49 = vrot.slane %v528_v44, 7  ;;  %3654 = vst [vmem:[#allocation61_spill] sm:$0xff] %v3054_v52  ;;  %v579_v39 = vrot.slane %v529_v37, 7 }
  0x5e   : > { %1301 = vmatpush.bf16.msrb.mxu3 %v2759_v3  ;;  %v2011_v37 = vld [vmem:[%s2587_s16 + $0x8] sm:$0xf] }
  0x60   : > { %954 = vmatpush.bf16.msrb.mxu1 %v2953_v25  ;;  %941 = vmatpush.bf16.msrb.mxu0 %v2955_v28 }
  0x61   : > { %1288 = vmatpush.bf16.msrb.mxu2 %v2761_v4 }
  0x62   : > { %1302 = vmatpush.bf16.msrb.mxu3 %v2777_v62  ;;  %v2970_v24 = vld [vmem:[#allocation1] sm:$0xf]  ;;  %v2972_v45 = vld [vmem:[#allocation1 + $0x9] sm:$0xf] }
  0x63   : > { %449 = vst [vmem:[#allocation1] ss:$9 sm:$0xff] %v410_v58  ;;  %v531_v42 = vunpack.c.l.b16 %v2972_v45 }
  0x64   : > { %955 = vmatpush.bf16.msrb.mxu1 %v2963_v5  ;;  %942 = vmatpush.bf16.msrb.mxu0 %v3054_v52 }
  0x65   : > { %1289 = vmatpush.bf16.msrb.mxu2 %v2779_v63  ;;  %v414_v63 = vld [vmem:[%s3582_s0 + $0xe] sm:$0x3] }
  0x66   : > { %1303 = vmatpush.bf16.msrb.mxu3 %v2799_v14  ;;  %v412_v14 = vld [vmem:[%s3582_s0 + $0xa] sm:$0x3] }
  0x69   : > { %1290 = vmatpush.bf16.msrb.mxu2 %v2801_v12 }
  0x6a   : > { %1304 = vmatpush.bf16.msrb.mxu3 %v2819_v13  ;;  %v2982_v3 = vld [vmem:[#allocation1] sm:$0xf]  ;;  %v2984_v4 = vld [vmem:[#allocation1 + $0x9] sm:$0xf] }
  0x6b   : > { %455 = vst [vmem:[#allocation1] ss:$9 sm:$0xff] %v411_v59  ;;  %v532_v47 = vunpack.c.l.b16 %v2982_v3  ;;  %v527_v3 = vunpack.c.l.b16 %v2912_v22  ;;  %v533_v45 = vunpack.c.l.b16 %v2984_v4  ;;  %v2326_v22 = vld [vmem:[%s2587_s16 + $0xe8] sm:$0xf0] }
  0x6d   : > { %1291 = vmatpush.bf16.msrb.mxu2 %v2821_v23  ;;  %v564_v40 = vrot.slane %v532_v47, 5 }
  0x6e   : > { %1305 = vmatpush.bf16.msrb.mxu3 %v2839_v21  ;;  %v413_v21 = vld [vmem:[%s3582_s0 + $0xc] sm:$0x3] }
  0x71   : > { %1292 = vmatpush.bf16.msrb.mxu2 %v2841_v9 }
  0x72   : > { %1306 = vmatpush.bf16.msrb.mxu3 %v2861_v60  ;;  %v2993_v12 = vld [vmem:[#allocation1] sm:$0xf]  ;;  %v2995_v13 = vld [vmem:[#allocation1 + $0x9] sm:$0xf] }
  0x73   : > { %461 = vst [vmem:[#allocation1] ss:$9 sm:$0xff] %v412_v14  ;;  %v418_v14 = vld [vmem:[%s3582_s0 + $0x16] sm:$0x3] }
  0x75   : > { %1293 = vmatpush.bf16.msrb.mxu2 %v2863_v10  ;;  %v415_v10 = vld [vmem:[%s3582_s0 + $0x10] sm:$0x3] }
  0x76   : > { %1307 = vmatpush.bf16.msrb.mxu3 %v2885_v26 }
  0x7a   : > { %v3002_v23 = vld [vmem:[#allocation1] sm:$0xf]  ;;  %v3004_v62 = vld [vmem:[#allocation1 + $0x9] sm:$0xf] }
  0x7b   : > { %467 = vst [vmem:[#allocation1] ss:$9 sm:$0xff] %v413_v21 }
  0x82   : > { %v3009_v9 = vld [vmem:[#allocation1] sm:$0xf]  ;;  %v3011_v60 = vld [vmem:[#allocation1 + $0x9] sm:$0xf] }
  0x83   : > { %473 = vst [vmem:[#allocation1] ss:$9 sm:$0xff] %v414_v63 }
  0x8a   : > { %v3016_v26 = vld [vmem:[#allocation1] sm:$0xf]  ;;  %v3018_v38 = vld [vmem:[#allocation1 + $0x9] sm:$0xf] }
  0x8b   : > { %479 = vst [vmem:[#allocation1] ss:$9 sm:$0xff] %v415_v10  ;;  %v419_v10 = vld [vmem:[%s3582_s0 + $0x18] sm:$0x3] }
  0x92   : > { %v3023_v55 = vld [vmem:[#allocation1] sm:$0xf]  ;;  %v3025_v11 = vld [vmem:[#allocation1 + $0x9] sm:$0xf] }
  0x93   : > { %485 = vst [vmem:[#allocation1] ss:$9 sm:$0xff] %v416_v41  ;;  %v542_v53 = vunpack.c.l.b16 %v3023_v55  ;;  %v2329_v55 = vld [vmem:[%s2587_s16 + $0x100] sm:$0xf0]  ;;  %v543_v47 = vunpack.c.l.b16 %v3025_v11 }
  0x9a   : > { %v486_v58 = vld [vmem:[#allocation1] sm:$0xf]  ;;  %v488_v59 = vld [vmem:[#allocation1 + $0x9] sm:$0xf] }
  0x9b   : > { %491 = vst [vmem:[#allocation1] ss:$9 sm:$0xff] %v417_v57  ;;  %v420_v57 = vld [vmem:[%s3582_s0 + $0x1a] sm:$0x3]  ;;  %v544_v50 = vunpack.c.l.b16 %v486_v58  ;;  %v545_v43 = vunpack.c.l.b16 %v488_v59  ;;  %v560_v58 = vsel %vm559_vm0, %v558_v49, %v526_v46  ;;  %v536_v46 = vunpack.c.l.b16 %v3002_v23 }
  0x9c   : > { %v581_v49 = vrot.slane %v531_v42, 6  ;;  %v535_v23 = vunpack.c.l.b16 %v2995_v13  ;;  %v3086_v42 = vor.u32 %v2302_v61, %v2023_v36 }
  0x9d   : > { %v593_v27 = vrot.slane %v544_v50, 7  ;;  %v607_v59 = vrot.slane %v545_v43, 7  ;;  %v2299_v43 = vld [vmem:[%s2587_s16 + $0x10] sm:$0xf0]  ;;  %v570_v36 = vrot.slane %v536_v46, 3 }
  0x9e   : > { %943 = vmatpush.bf16.msrb.mxu0 %v3086_v42 }
  0xa2   : > { %v492_v21 = vld [vmem:[#allocation1] sm:$0xf]  ;;  %v494_v63 = vld [vmem:[#allocation1 + $0x9] sm:$0xf] }
  0xa3   : > { %497 = vst [vmem:[#allocation1] ss:$9 sm:$0xff] %v418_v14  ;;  %v530_v14 = vunpack.c.l.b16 %v2970_v24  ;;  %v546_v44 = vunpack.c.l.b16 %v492_v21  ;;  %v2119_v21 = vld [vmem:[%s2587_s16 + $0xe0] sm:$0xf] }
  0xa4   : > { %v3096_v13 = vor.u32 %v2326_v22, %v2119_v21 }
  0xa5   : > { %v561_v24 = vrot.slane %v530_v14, 6  ;;  %v547_v14 = vunpack.c.l.b16 %v494_v63  ;;  %v595_v35 = vrot.slane %v546_v44, 6 }
  0xa7   : > { %v563_v4 = vsel %vm562_vm1, %v561_v24, %v560_v58  ;;  %v609_v5 = vrot.slane %v547_v14, 6  ;;  %v608_v24 = vsel %vm559_vm0, %v607_v59, %v543_v47 }
  0xa8   : > { %v566_v59 = vsel %vm565_vm2, %v564_v40, %v563_v4 }
  0xa9   : > { %v610_v14 = vsel %vm562_vm1, %v609_v5, %v608_v24 }
  0xaa   : > { %v3036_v41 = vld [vmem:[#allocation1] sm:$0xf]  ;;  %v3038_v48 = vld [vmem:[#allocation1 + $0x9] sm:$0xf] }
  0xab   : > { %503 = vst [vmem:[#allocation1] ss:$9 sm:$0xff] %v419_v10  ;;  %v534_v10 = vunpack.c.l.b16 %v2993_v12  ;;  %v2131_v12 = vld [vmem:[%s2587_s16 + $0xf8] sm:$0xf]  ;;  %v548_v50 = vunpack.c.l.b16 %v3036_v41  ;;  %v549_v11 = vunpack.c.l.b16 %v3038_v48  ;;  %v594_v41 = vsel %vm559_vm0, %v593_v27, %v542_v53  ;;  %v2107_v48 = vld [vmem:[%s2587_s16 + $0xc8] sm:$0xf] }
  0xac   : > { %v3076_v63 = vor.u32 %v2329_v55, %v2131_v12  ;;  %v583_v12 = vrot.slane %v533_v45, 5  ;;  %v2323_v55 = vld [vmem:[%s2587_s16 + $0xd0] sm:$0xf0]  ;;  %v422_v27 = vld [vmem:[%s3582_s0 + $0x1e] sm:$0x3]  ;;  %v596_v58 = vsel %vm562_vm1, %v595_v35, %v594_v41  ;;  %v539_v35 = vunpack.c.l.b16 %v3011_v60  ;;  %s2372_s16 = smul.u32 3, %s2574_s8 }
  0xad   : > { %v597_v61 = vrot.slane %v548_v50, 5  ;;  %v611_v53 = vrot.slane %v549_v11, 5  ;;  %v3107_v45 = vor.u32 %v2323_v55, %v2107_v48  ;;  %v540_v60 = vunpack.c.l.b16 %v3016_v26  ;;  %v1082_v26 = vld [vmem:[%s3582_s0] sm:$0x3]  ;;  %s3449_s8 = scalar_lea.vmem [#allocation4], %s2571_s7 }
  0xae   : > { %956 = vmatpush.bf16.msrb.mxu1 %v3076_v63  ;;  %s329_s29 = scalar_lea.vmem %s3585_s3, %s2372_s16 }
  0xaf   : > { %v598_v5 = vsel %vm565_vm2, %v597_v61, %v596_v58  ;;  %v612_v40 = vsel %vm565_vm2, %v611_v53, %v610_v14 }
  0xb2   : > { %v3044_v54 = vld [vmem:[#allocation1] sm:$0xf]  ;;  %v3046_v51 = vld [vmem:[#allocation1 + $0x9] sm:$0xf]  ;;  %957 = vmatpush.bf16.msrb.mxu1 %v3096_v13 }
  0xb3   : > { %509 = vst [vmem:[#allocation1] ss:$9 sm:$0xff] %v420_v57  ;;  %v3067_v57 = vrot.slane %v534_v10, 4  ;;  %v580_v10 = vsel %vm559_vm0, %v579_v39, %v527_v3  ;;  %v551_v39 = vunpack.c.l.b16 %v3046_v51  ;;  %v3098_v3 = vor.u32 %v2299_v43, %v2011_v37 }
  0xb4   : > { %v582_v44 = vsel %vm562_vm1, %v581_v49, %v580_v10  ;;  %v585_v51 = vrot.slane %v535_v23, 4  ;;  %v538_v49 = vunpack.c.l.b16 %v3009_v9  ;;  %v541_v43 = vunpack.c.l.b16 %v3018_v38 }
  0xb5   : > { %v613_v11 = vrot.slane %v551_v39, 4  ;;  %944 = vmatpush.bf16.msrb.mxu0 %v3098_v3  ;;  %v569_v4 = vsel %vm3596_vm3, %v3067_v57, %v566_v59 }
  0xb6   : > { %958 = vmatpush.bf16.msrb.mxu1 %v3107_v45  ;;  %v572_v48 = vsel %vm571_vm4, %v570_v36, %v569_v4  ;;  %v591_v61 = vrot.slane %v541_v43, 1 }
  0xb7   : > { %v614_v24 = vsel %vm3596_vm3, %v613_v11, %v612_v40 }
  0xba   : > { %v510_v52 = vld [vmem:[#allocation1] sm:$0xf]  ;;  %v512_v32 = vld [vmem:[#allocation1 + $0x9] sm:$0xf] }
  0xbb   : > { %515 = vst [vmem:[#allocation1] ss:$9 sm:$0xff] %v421_v2  ;;  %v550_v2 = vunpack.c.l.b16 %v3044_v54  ;;  %v537_v54 = vunpack.c.l.b16 %v3004_v62  ;;  %v552_v47 = vunpack.c.l.b16 %v510_v52  ;;  %v553_v21 = vunpack.c.l.b16 %v512_v32 }
  0xbc   : > { %v584_v62 = vsel %vm565_vm2, %v583_v12, %v582_v44  ;;  %v589_v12 = vrot.slane %v539_v35, 2  ;;  %v576_v44 = vrot.slane %v540_v60, 1 }
  0xbd   : > { %v599_v50 = vrot.slane %v550_v2, 4  ;;  %v587_v52 = vrot.slane %v537_v54, 3  ;;  %v586_v9 = vsel %vm3596_vm3, %v585_v51, %v584_v62  ;;  %v601_v37 = vrot.slane %v552_v47, 3 }
  0xbe   : > { %v615_v23 = vrot.slane %v553_v21, 3  ;;  %v573_v2 = vrot.slane %v538_v49, 2 }
  0xbf   : > { %v600_v41 = vsel %vm3596_vm3, %v599_v50, %v598_v5  ;;  %v588_v57 = vsel %vm571_vm4, %v587_v52, %v586_v9  ;;  %v1083_v5 = vld [vmem:[%s3582_s0 + $0x2] sm:$0x3] }
  0xc0   : > { %v602_v38 = vsel %vm571_vm4, %v601_v37, %v600_v41  ;;  %v616_v54 = vsel %vm571_vm4, %v615_v23, %v614_v24  ;;  %v590_v58 = vsel %vm574_vm5, %v589_v12, %v588_v57  ;;  %v1091_v37 = vld [vmem:[%s3582_s0 + $0x12] sm:$0x3]  ;;  %v1093_v24 = vld [vmem:[%s3582_s0 + $0x16] sm:$0x3] }
  0xc2   : > { %v516_v22 = vld [vmem:[#allocation1] sm:$0xf]  ;;  %v518_v46 = vld [vmem:[#allocation1 + $0x9] sm:$0xf] }
  0xc3   : > { %521 = vst [vmem:[#allocation1] ss:$9 sm:$0xff] %v422_v27  ;;  %v554_v32 = vunpack.c.l.b16 %v516_v22  ;;  %v555_v10 = vunpack.c.l.b16 %v518_v46  ;;  %v575_v27 = vsel %vm574_vm5, %v573_v2, %v572_v48  ;;  %v592_v22 = vsel %vm577_vm6, %v591_v61, %v590_v58  ;;  %v1092_v2 = vld [vmem:[%s3582_s0 + $0x14] sm:$0x3]  ;;  %v1094_v61 = vld [vmem:[%s3582_s0 + $0x18] sm:$0x3] }
  0xc4   : > { %v578_v21 = vsel %vm577_vm6, %v576_v44, %v575_v27 }
  0xc5   : > { %v603_v55 = vrot.slane %v554_v32, 2  ;;  %v617_v39 = vrot.slane %v555_v10, 2  ;;  %v1084_v32 = vld [vmem:[%s3582_s0 + $0x4] sm:$0x3] }
  0xc7   : > { %v604_v47 = vsel %vm574_vm5, %v603_v55, %v602_v38  ;;  %v618_v59 = vsel %vm574_vm5, %v617_v39, %v616_v54 }
  0xca   : > { %v522_v53 = vld [vmem:[#allocation1] sm:$0xf]  ;;  %v524_v36 = vld [vmem:[#allocation1 + $0x9] sm:$0xf] }
  0xcb   : > { %v556_v51 = vunpack.c.l.b16 %v522_v53  ;;  %v557_v14 = vunpack.c.l.b16 %v524_v36  ;;  %1099 = vst [vmem:[#allocation1] ss:$9 sm:$0xff] %v1082_v26 }
  0xcd   : > { %v605_v62 = vrot.slane %v556_v51, 1  ;;  %v619_v46 = vrot.slane %v557_v14, 1 }
  0xcf   : > { %v606_v49 = vsel %vm577_vm6, %v605_v62, %v604_v47  ;;  %v620_v50 = vsel %vm577_vm6, %v619_v46, %v618_v59 }
  0xd0   : > { %v621_v35 = vpack.c.b16 %v606_v49, %v578_v21  ;;  %v622_v11 = vpack.c.b16 %v620_v50, %v592_v22 }
  0xd2   : > { %889 = vmatmul.bf16.vlgmr.msra.gmra.mxu0 %v621_v35  ;;  %903 = vmatmul.bf16.vlgmr.msra.gmra.mxu1 %v622_v11  ;;  %v3142_v52 = vld [vmem:[#allocation1] sm:$0xf]  ;;  %v3144_v40 = vld [vmem:[#allocation1 + $0x9] sm:$0xf] }
  0xd3   : > { %917 = vmatmul.bf16.vlgmr.msra.gmra.mxu2 %v621_v35  ;;  %1314 = vmatpush.bf16.msra.mxu0 %v2769_v8  ;;  %1105 = vst [vmem:[#allocation1] ss:$9 sm:$0xff] %v1083_v5  ;;  %v1194_v55 = vunpack.c.l.b16 %v3142_v52  ;;  %v1195_v49 = vunpack.c.l.b16 %v3144_v40 }
  0xd4   : > { %931 = vmatmul.bf16.vlgmr.msra.gmra.mxu3 %v622_v11  ;;  %1328 = vmatpush.bf16.msra.mxu1 %v2771_v6  ;;  %v1085_v6 = vld [vmem:[%s3582_s0 + $0x6] sm:$0x3] }
  0xd5   : > { %1342 = vmatpush.bf16.msra.mxu2 %v2868_v56  ;;  %1356 = vmatpush.bf16.msra.mxu3 %v2891_v1  ;;  %v3658_v56 = vld [vmem:[#allocation61_spill] sm:$0xff]  ;;  %v1226_v38 = vrot.slane %v1194_v55, 1 }
  0xd7   : > { %1315 = vmatpush.bf16.msra.mxu0 %v2789_v7 }
  0xd8   : > { %1329 = vmatpush.bf16.msra.mxu1 %v2791_v0  ;;  %v1086_v0 = vld [vmem:[%s3582_s0 + $0x8] sm:$0x3] }
  0xd9   : > { %1343 = vmatpush.bf16.msra.mxu2 %v2894_v17  ;;  %1357 = vmatpush.bf16.msra.mxu3 %v2916_v30  ;;  %v3660_v17 = vld [vmem:[#allocation57_spill] sm:$0xff]  ;;  %v3661_v30 = vld [vmem:[#allocation58_spill] sm:$0xff] }
  0xda   : > { %v3157_v8 = vld [vmem:[#allocation1] sm:$0xf]  ;;  %v3159_v4 = vld [vmem:[#allocation1 + $0x9] sm:$0xf] }
  0xdb   : > { %1316 = vmatpush.bf16.msra.mxu0 %v2809_v15  ;;  %1111 = vst [vmem:[#allocation1] ss:$9 sm:$0xff] %v1084_v32  ;;  %v1196_v26 = vunpack.c.l.b16 %v3157_v8 }
  0xdc   : > { %1330 = vmatpush.bf16.msra.mxu1 %v2811_v16  ;;  %v3655_v16 = vld [vmem:[#allocation60_spill] sm:$0xff] }
  0xdd   : > { %1344 = vmatpush.bf16.msra.mxu2 %v2918_v33  ;;  %1358 = vmatpush.bf16.msra.mxu3 %v2932_v31  ;;  %v1087_v33 = vld [vmem:[%s3582_s0 + $0xa] sm:$0x3]  ;;  %v3662_v31 = vld [vmem:[#allocation59_spill] sm:$0xff]  ;;  %v1227_v36 = vsel %vm559_vm0, %v1196_v26, %v1226_v38 }
  0xdf   : > { %1317 = vmatpush.bf16.msra.mxu0 %v2829_v20  ;;  %v3657_v20 = vld [vmem:[#allocation55_spill] sm:$0xff] }
  0xe0   : > { %1331 = vmatpush.bf16.msra.mxu1 %v2831_v18  ;;  %v3656_v18 = vld [vmem:[#allocation54_spill] sm:$0xff] }
  0xe1   : > { %1345 = vmatpush.bf16.msra.mxu2 %v2934_v34  ;;  %1359 = vmatpush.bf16.msra.mxu3 %v2953_v25 }
  0xe2   : > { %945 = vmatmul.bf16.vlgmr.msrb.gmra.mxu0 %v621_v35  ;;  %959 = vmatmul.bf16.vlgmr.msrb.gmra.mxu1 %v622_v11  ;;  %v1112_v7 = vld [vmem:[#allocation1] sm:$0xf]  ;;  %v3172_v15 = vld [vmem:[#allocation1 + $0x9] sm:$0xf] }
  0xe3   : > { %1318 = vmatpush.bf16.msra.mxu0 %v2849_v19  ;;  %1117 = vst [vmem:[#allocation1] ss:$9 sm:$0xff] %v1085_v6  ;;  %v1198_v39 = vunpack.c.l.b16 %v1112_v7  ;;  %v1199_v5 = vunpack.c.l.b16 %v3172_v15  ;;  %v1197_v7 = vunpack.c.l.b16 %v3159_v4  ;;  %v1095_v15 = vld [vmem:[%s3582_s0 + $0x1a] sm:$0x3] }
  0xe4   : > { %1332 = vmatpush.bf16.msra.mxu1 %v2851_v29  ;;  %v3659_v29 = vld [vmem:[#allocation56_spill] sm:$0xff] }
  0xe5   : > { %1346 = vmatpush.bf16.msra.mxu2 %v2955_v28  ;;  %1360 = vmatpush.bf16.msra.mxu3 %v3655_v16  ;;  %v1088_v28 = vld [vmem:[%s3582_s0 + $0xc] sm:$0x3]  ;;  %v1228_v53 = vrot.slane %v1198_v39, 7 }
  0xe7   : > { %1319 = vmatpush.bf16.msra.mxu0 %v3656_v18  ;;  %v1229_v21 = vsel %vm562_vm1, %v1228_v53, %v1227_v36 }
  0xe8   : > { %1333 = vmatpush.bf16.msra.mxu1 %v3657_v20 }
  0xe9   : > { %1347 = vmatpush.bf16.msra.mxu2 %v3658_v56  ;;  %1361 = vmatpush.bf16.msra.mxu3 %v3076_v63  ;;  %v1242_v56 = vrot.slane %v1199_v5, 7 }
  0xea   : > { %v1118_v19 = vld [vmem:[#allocation1] sm:$0xf]  ;;  %v3185_v1 = vld [vmem:[#allocation1 + $0x9] sm:$0xf] }
  0xeb   : > { %1320 = vmatpush.bf16.msra.mxu0 %v3659_v29  ;;  %1123 = vst [vmem:[#allocation1] ss:$9 sm:$0xff] %v1086_v0  ;;  %v1200_v44 = vunpack.c.l.b16 %v1118_v19  ;;  %v1201_v32 = vunpack.c.l.b16 %v3185_v1  ;;  %v1240_v0 = vrot.slane %v1195_v49, 1 }
  0xec   : > { %1334 = vmatpush.bf16.msra.mxu1 %v3660_v17 }
  0xed   : > { %1348 = vmatpush.bf16.msra.mxu2 %v3086_v42  ;;  %1362 = vmatpush.bf16.msra.mxu3 %v3096_v13  ;;  %v1089_v13 = vld [vmem:[%s3582_s0 + $0xe] sm:$0x3]  ;;  %v1230_v58 = vrot.slane %v1200_v44, 6  ;;  %v1244_v19 = vrot.slane %v1201_v32, 6  ;;  %v1241_v4 = vsel %vm559_vm0, %v1197_v7, %v1240_v0 }
  0xef   : > { %1321 = vmatpush.bf16.msra.mxu0 %v3661_v30  ;;  %v1231_v22 = vsel %vm565_vm2, %v1230_v58, %v1229_v21 }
  0xf0   : > { %1335 = vmatpush.bf16.msra.mxu1 %v3662_v31 }
  0xf1   : > { %1349 = vmatpush.bf16.msra.mxu2 %v3098_v3  ;;  %1363 = vmatpush.bf16.msra.mxu3 %v3107_v45  ;;  %v1090_v45 = vld [vmem:[%s3582_s0 + $0x10] sm:$0x3] }
  0xf2   : > { %v1124_v34 = vld [vmem:[#allocation1] sm:$0xf]  ;;  %v3198_v25 = vld [vmem:[#allocation1 + $0x9] sm:$0xf] }
  0xf3   : > { %1129 = vst [vmem:[#allocation1] ss:$9 sm:$0xff] %v1087_v33  ;;  %v1202_v54 = vunpack.c.l.b16 %v1124_v34  ;;  %v1203_v8 = vunpack.c.l.b16 %v3198_v25  ;;  %v1243_v33 = vsel %vm562_vm1, %v1242_v56, %v1241_v4 }
  0xf4   : > { %v1245_v34 = vsel %vm565_vm2, %v1244_v19, %v1243_v33 }
  0xf5   : > { %v1232_v62 = vrot.slane %v1202_v54, 5  ;;  %v1246_v1 = vrot.slane %v1203_v8, 5 }
  0xf7   : > { %v1233_v50 = vsel %vm3596_vm3, %v1232_v62, %v1231_v22 }
  0xfa   : > { %v1130_v63 = vld [vmem:[#allocation1] sm:$0xf]  ;;  %v3203_v42 = vld [vmem:[#allocation1 + $0x9] sm:$0xf] }
  0xfb   : > { %1135 = vst [vmem:[#allocation1] ss:$9 sm:$0xff] %v1088_v28  ;;  %v1204_v27 = vunpack.c.l.b16 %v1130_v63  ;;  %v1205_v16 = vunpack.c.l.b16 %v3203_v42  ;;  %v1247_v42 = vsel %vm3596_vm3, %v1246_v1, %v1245_v34 }
  0xfd   : > { %v1234_v46 = vrot.slane %v1204_v27, 4  ;;  %v1248_v30 = vrot.slane %v1205_v16, 4 }
  0xff   : > { %v1235_v52 = vsel %vm571_vm4, %v1234_v46, %v1233_v50 }
 0x102   : > { %v1136_v10 = vld [vmem:[#allocation1] sm:$0xf]  ;;  %v3208_v3 = vld [vmem:[#allocation1 + $0x9] sm:$0xf] }
 0x103   : > { %1141 = vst [vmem:[#allocation1] ss:$9 sm:$0xff] %v1089_v13  ;;  %v1206_v47 = vunpack.c.l.b16 %v1136_v10  ;;  %v1207_v18 = vunpack.c.l.b16 %v3208_v3  ;;  %v1249_v13 = vsel %vm571_vm4, %v1248_v30, %v1247_v42  ;;  %v1096_v3 = vld [vmem:[%s3582_s0 + $0x1c] sm:$0x3] }
 0x105   : > { %v1236_v35 = vrot.slane %v1206_v47, 3  ;;  %v1250_v31 = vrot.slane %v1207_v18, 3 }
 0x107   : > { %v1237_v6 = vsel %vm574_vm5, %v1236_v35, %v1235_v52  ;;  %v1251_v10 = vsel %vm574_vm5, %v1250_v31, %v1249_v13  ;;  %v406_v31 = vld [vmem:[%s329_s29] sm:$0x7] }
 0x108   : > { %v3296_v34 = vperm.slane %v406_v31, 1 }
 0x10a   : > { %v1142_v9 = vld [vmem:[#allocation1] sm:$0xf]  ;;  %v1144_v60 = vld [vmem:[#allocation1 + $0x9] sm:$0xf] }
 0x10b   : > { %1147 = vst [vmem:[#allocation1] ss:$9 sm:$0xff] %v1090_v45  ;;  %v1208_v59 = vunpack.c.l.b16 %v1142_v9  ;;  %v1209_v20 = vunpack.c.l.b16 %v1144_v60 }
 0x10d   : > { %v1238_v11 = vrot.slane %v1208_v59, 2  ;;  %v1252_v25 = vrot.slane %v1209_v20, 2 }
 0x10f   : > { %v3252_v40 = vsel %vm577_vm6, %v1238_v11, %v1237_v6  ;;  %v1253_v60 = vsel %vm577_vm6, %v1252_v25, %v1251_v10 }
 0x112   : > { %v3216_v43 = vld [vmem:[#allocation1] sm:$0xf]  ;;  %v3218_v23 = vld [vmem:[#allocation1 + $0x9] sm:$0xf] }
 0x113   : > { %1153 = vst [vmem:[#allocation1] ss:$9 sm:$0xff] %v1091_v37  ;;  %v1210_v28 = vunpack.c.l.b16 %v3216_v43  ;;  %v1211_v63 = vunpack.c.l.b16 %v3218_v23 }
 0x115   : > { %v1254_v43 = vrot.slane %v1210_v28, 1  ;;  %v3298_v28 = vperm.slane %v406_v31, 0 }
 0x11a   : > { %v3223_v41 = vld [vmem:[#allocation1] sm:$0xf]  ;;  %v3225_v12 = vld [vmem:[#allocation1 + $0x9] sm:$0xf] }
 0x11b   : > { %1159 = vst [vmem:[#allocation1] ss:$9 sm:$0xff] %v1092_v2  ;;  %v1212_v37 = vunpack.c.l.b16 %v3223_v41  ;;  %v1213_v23 = vunpack.c.l.b16 %v3225_v12  ;;  %v1268_v2 = vrot.slane %v1211_v63, 1  ;;  %v1097_v41 = vld [vmem:[%s3582_s0 + $0x1e] sm:$0x3] }
 0x122   : > { %v3230_v48 = vld [vmem:[#allocation1] sm:$0xf]  ;;  %v3232_v57 = vld [vmem:[#allocation1 + $0x9] sm:$0xf] }
 0x123   : > { %1165 = vst [vmem:[#allocation1] ss:$9 sm:$0xff] %v1093_v24  ;;  %v1214_v45 = vunpack.c.l.b16 %v3230_v48  ;;  %v1215_v9 = vunpack.c.l.b16 %v3232_v57  ;;  %v1269_v48 = vsel %vm559_vm0, %v1213_v23, %v1268_v2 }
 0x125   : > { %v1256_v44 = vrot.slane %v1214_v45, 7  ;;  %v1270_v38 = vrot.slane %v1215_v9, 7 }
 0x127   : > { %v1271_v36 = vsel %vm562_vm1, %v1270_v38, %v1269_v48 }
 0x12a   : > { %v1166_v51 = vld [vmem:[#allocation1] sm:$0xf]  ;;  %v1168_v14 = vld [vmem:[#allocation1 + $0x9] sm:$0xf] }
 0x12b   : > { %1171 = vst [vmem:[#allocation1] ss:$9 sm:$0xff] %v1094_v61  ;;  %v1216_v39 = vunpack.c.l.b16 %v1166_v51  ;;  %v1217_v26 = vunpack.c.l.b16 %v1168_v14  ;;  %v1255_v61 = vsel %vm559_vm0, %v1212_v37, %v1254_v43 }
 0x12c   : > { %v1257_v12 = vsel %vm562_vm1, %v1256_v44, %v1255_v61 }
 0x12d   : > { %v1258_v53 = vrot.slane %v1216_v39, 6  ;;  %v1272_v27 = vrot.slane %v1217_v26, 6  ;;  %v1047_v39 = vlaneseq }
 0x12f   : > { %v1259_v62 = vsel %vm565_vm2, %v1258_v53, %v1257_v12  ;;  %v1273_v22 = vsel %vm565_vm2, %v1272_v27, %v1271_v36  ;;  %vm3312_vm13 = vcmp.lt.s32.totalorder %v1047_v39, 384 }
 0x132   : > { %v1172_v29 = vld [vmem:[#allocation1] sm:$0xf]  ;;  %v1174_v17 = vld [vmem:[#allocation1 + $0x9] sm:$0xf] }
 0x133   : > { %1177 = vst [vmem:[#allocation1] ss:$9 sm:$0xff] %v1095_v15  ;;  %v1218_v57 = vunpack.c.l.b16 %v1172_v29  ;;  %v1219_v54 = vunpack.c.l.b16 %v1174_v17 }
 0x135   : > { %v1260_v59 = vrot.slane %v1218_v57, 5  ;;  %v1274_v21 = vrot.slane %v1219_v54, 5 }
 0x137   : > { %v1261_v11 = vsel %vm3596_vm3, %v1260_v59, %v1259_v62  ;;  %v1275_v5 = vsel %vm3596_vm3, %v1274_v21, %v1273_v22 }
 0x13a   : > { %v1178_v24 = vld [vmem:[#allocation1] sm:$0xf]  ;;  %v1180_v55 = vld [vmem:[#allocation1 + $0x9] sm:$0xf] }
 0x13b   : > { %1183 = vst [vmem:[#allocation1] ss:$9 sm:$0xff] %v1096_v3  ;;  %v1220_v58 = vunpack.c.l.b16 %v1178_v24  ;;  %v1221_v51 = vunpack.c.l.b16 %v1180_v55 }
 0x13d   : > { %v1262_v50 = vrot.slane %v1220_v58, 4  ;;  %v1276_v35 = vrot.slane %v1221_v51, 4 }
 0x13f   : > { %v1263_v8 = vsel %vm571_vm4, %v1262_v50, %v1261_v11  ;;  %v1277_v6 = vsel %vm571_vm4, %v1276_v35, %v1275_v5 }
 0x142   : > { %v1184_v14 = vld [vmem:[#allocation1] sm:$0xf]  ;;  %v1186_v47 = vld [vmem:[#allocation1 + $0x9] sm:$0xf] }
 0x143   : > { %1189 = vst [vmem:[#allocation1] ss:$9 sm:$0xff] %v1097_v41  ;;  %v1222_v46 = vunpack.c.l.b16 %v1184_v14  ;;  %v1223_v49 = vunpack.c.l.b16 %v1186_v47 }
 0x145   : > { %v1264_v52 = vrot.slane %v1222_v46, 3  ;;  %v1278_v32 = vrot.slane %v1223_v49, 3 }
 0x147   : > { %v1265_v20 = vsel %vm574_vm5, %v1264_v52, %v1263_v8  ;;  %v1279_v0 = vsel %vm574_vm5, %v1278_v32, %v1277_v6 }
 0x14a   : > { %v1190_v7 = vld [vmem:[#allocation1] sm:$0xf]  ;;  %v1192_v16 = vld [vmem:[#allocation1 + $0x9] sm:$0xf] }
 0x14b   : > { %v1224_v18 = vunpack.c.l.b16 %v1190_v7  ;;  %v1225_v15 = vunpack.c.l.b16 %v1192_v16 }
 0x14d   : > { %v1266_v56 = vrot.slane %v1224_v18, 2  ;;  %v1280_v19 = vrot.slane %v1225_v15, 2 }
 0x14f   : > { %v1267_v1 = vsel %vm577_vm6, %v1266_v56, %v1265_v20  ;;  %v1281_v29 = vsel %vm577_vm6, %v1280_v19, %v1279_v0  ;;  %v890_v17 = vpop.f32.mrf.mxu0  ;;  %v904_v4 = vpop.f32.mrf.mxu1  ;;  %vm1005_vm6 = vcmask 1046529  }
 0x150   : > { %v1282_v30 = vpack.c.b16 %v1267_v1, %v3252_v40  ;;  %v1283_v33 = vpack.c.b16 %v1281_v29, %v1253_v60  ;;  %v891_v3 = vadd.f32 %v890_v17, %v3298_v28  ;;  %v3302_v40 = vperm.slane %v406_v31, 2 }
 0x152   : > { %1294 = vmatmul.bf16.vlgmr.msrb.gmra.mxu2 %v1282_v30  ;;  %1308 = vmatmul.bf16.vlgmr.msrb.gmra.mxu3 %v1283_v33  ;;  %v905_v60 = vadd.f32 %v904_v4, %v891_v3 }
 0x153   : > { %1322 = vmatmul.bf16.vlgmr.msra.gmra.mxu0 %v1282_v30  ;;  %1336 = vmatmul.bf16.vlgmr.msra.gmra.mxu1 %v1283_v33 }
 0x156   : > { %v918_v25 = vpop.f32.mrf.mxu2 }
 0x157   : > { %v892_v63 = vpop.f32.mrf.mxu0  ;;  %v906_v42 = vpop.f32.mrf.mxu1  ;;  %v919_v13 = vadd.f32 %v918_v25, %v3296_v34 }
 0x158   : > { %v932_v10 = vpop.f32.mrf.mxu3  ;;  %v893_v24 = vadd.f32 %v892_v63, %v3298_v28 }
 0x159   : > { %v933_v45 = vadd.f32 %v932_v10, %v919_v13 }
 0x15a   : > { %v907_v53 = vadd.f32 %v906_v42, %v893_v24 }
 0x15b   : > { %v971_v43 = vrot.slane %v933_v45, 7 }
 0x15d   : > { %v976_v61 = vsel %vm975_vm7, %v905_v60, %v971_v43  ;;  %v979_v48 = vsel %vm559_vm0, %v905_v60, %v971_v43  ;;  %v983_v57 = vsel %vm562_vm1, %v905_v60, %v971_v43  ;;  %v987_v54 = vsel %vm565_vm2, %v905_v60, %v971_v43 }
 0x15e   : > { %v920_v9 = vpop.f32.mrf.mxu2  ;;  %v991_v27 = vsel %vm3596_vm3, %v905_v60, %v971_v43  ;;  %v995_v36 = vsel %vm571_vm4, %v905_v60, %v971_v43  ;;  %v999_v58 = vsel %vm574_vm5, %v905_v60, %v971_v43  ;;  %v1004_v51 = vsel %vm1003_vm8, %v971_v43, %v905_v60 }
 0x15f   : > { %v946_v37 = vpop.f32.mrf.mxu0  ;;  %v960_v23 = vpop.f32.mrf.mxu1  ;;  %v921_v2 = vadd.f32 %v920_v9, %v3296_v34  ;;  %vm3665_vm3 = vcmask 1045508  }
 0x160   : > { %v947_v55 = vadd.f32 %v946_v37, %v3302_v40  ;;  %v934_v26 = vpop.f32.mrf.mxu3 }
 0x161   : > { %v935_v44 = vadd.f32 %v934_v26, %v921_v2 }
 0x162   : > { %1350 = vmatmul.bf16.vlgmr.msra.gmra.mxu2 %v1282_v30  ;;  %1364 = vmatmul.bf16.vlgmr.msra.gmra.mxu3 %v1283_v33  ;;  %v961_v38 = vadd.f32 %v960_v23, %v947_v55 }
 0x163   : > { %v973_v14 = vrot.slane %v935_v44, 7 }
 0x164   : > { %v972_v41 = vrot.slane %v961_v38, 6 }
 0x165   : > { %v1008_v20 = vsel %vm975_vm7, %v907_v53, %v973_v14  ;;  %v1010_v0 = vsel %vm559_vm0, %v907_v53, %v973_v14  ;;  %v1013_v56 = vsel %vm562_vm1, %v907_v53, %v973_v14  ;;  %v1016_v19 = vsel %vm565_vm2, %v907_v53, %v973_v14 }
 0x166   : > { %v978_v47 = vsel %vm977_vm9, %v976_v61, %v972_v41  ;;  %v981_v59 = vsel %vm980_vm10, %v979_v48, %v972_v41  ;;  %v985_v21 = vsel %vm984_vm11, %v983_v57, %v972_v41  ;;  %v989_v62 = vsel %vm988_vm12, %v987_v54, %v972_v41  ;;  %v3377_v48 = vld [vmem:[#allocation2] sm:$0x3]  }
 0x167   : > { %v982_v22 = vrot.slane %v981_v59, 1  ;;  %v986_v46 = vrot.slane %v985_v21, 2  ;;  %v990_v49 = vrot.slane %v989_v62, 3  ;;  %v993_v50 = vsel %vm3665_vm3, %v991_v27, %v972_v41  ;;  %1051 = vst.msk [vmem:[#allocation3] ss:$2 sm:$0x7] %vm3312_vm13, %v978_v47  ;;  %v948_v35 = vpop.f32.mrf.mxu0  ;;  %v962_v8 = vpop.f32.mrf.mxu1 }
 0x168   : > { %v994_v11 = vrot.slane %v993_v50, 4  ;;  %v997_v5 = vsel %vm996_vm14, %v995_v36, %v972_v41  ;;  %v1001_v52 = vsel %vm1000_vm15, %v972_v41, %v999_v58  ;;  %v1006_v32 = vsel %vm1005_vm6, %v972_v41, %v1004_v51 }
 0x169   : > { %v998_v6 = vrot.slane %v997_v5, 5  ;;  %1053 = vst.msk [vmem:[#allocation3 + $0x6] ss:$2 sm:$0x7] %vm3312_vm13, %v982_v22  ;;  %v949_v7 = vadd.f32 %v948_v35, %v3302_v40  ;;  %v1002_v16 = vrot.slane %v1001_v52, 6  ;;  %v1007_v18 = vrot.slane %v1006_v32, 7 }
 0x16a   : > { %1055 = vst.msk [vmem:[#allocation3 + $0xc] ss:$2 sm:$0x7] %vm3312_vm13, %v986_v46  ;;  %vm3666_vm3 = vcmask 1044484   ;;  %v1022_v17 = vsel %vm571_vm4, %v907_v53, %v973_v14  ;;  %v1025_v4 = vsel %vm574_vm5, %v907_v53, %v973_v14  ;;  %v1028_v30 = vsel %vm1003_vm8, %v973_v14, %v907_v53 }
 0x16b   : > { %1057 = vst.msk [vmem:[#allocation3 + $0x12] ss:$2 sm:$0x7] %vm3312_vm13, %v990_v49  ;;  %v963_v15 = vadd.f32 %v962_v8, %v949_v7  ;;  %v1019_v1 = vsel %vm3666_vm3, %v907_v53, %v973_v14  ;;  %vm3667_vm3 = vcmask 1045508  }
 0x16c   : > { %1059 = vst.msk [vmem:[#allocation3 + $0x18] ss:$2 sm:$0x7] %vm3312_vm13, %v994_v11 }
 0x16d   : > { %1061 = vst.msk [vmem:[#allocation3 + $0x1e] ss:$2 sm:$0x7] %vm3312_vm13, %v998_v6  ;;  %v974_v29 = vrot.slane %v963_v15, 6 }
 0x16e   : > { %1063 = vst.msk [vmem:[#allocation3 + $0x24] ss:$2 sm:$0x7] %vm3312_vm13, %v1002_v16 }
 0x16f   : > { %1065 = vst.msk [vmem:[#allocation3 + $0x2a] ss:$2 sm:$0x7] %vm3312_vm13, %v1007_v18  ;;  %v1009_v33 = vsel %vm977_vm9, %v1008_v20, %v974_v29  ;;  %v1011_v31 = vsel %vm980_vm10, %v1010_v0, %v974_v29  ;;  %v1014_v25 = vsel %vm984_vm11, %v1013_v56, %v974_v29  ;;  %v1017_v63 = vsel %vm988_vm12, %v1016_v19, %v974_v29 }
 0x170   : > { %v1012_v42 = vrot.slane %v1011_v31, 1  ;;  %v1015_v13 = vrot.slane %v1014_v25, 2  ;;  %v1018_v10 = vrot.slane %v1017_v63, 3  ;;  %v1020_v3 = vsel %vm3667_vm3, %v1019_v1, %v974_v29  ;;  %1067 = vst.msk [vmem:[#allocation3 + $0x30] ss:$2 sm:$0x7] %vm3312_vm13, %v1009_v33 }
 0x171   : > { %v1021_v45 = vrot.slane %v1020_v3, 4  ;;  %v1023_v9 = vsel %vm996_vm14, %v1022_v17, %v974_v29  ;;  %v1026_v60 = vsel %vm1000_vm15, %v974_v29, %v1025_v4  ;;  %v1029_v37 = vsel %vm1005_vm6, %v974_v29, %v1028_v30 }
 0x172   : > { %v1024_v43 = vrot.slane %v1023_v9, 5  ;;  %1069 = vst.msk [vmem:[#allocation3 + $0x36] ss:$2 sm:$0x7] %vm3312_vm13, %v1012_v42  ;;  %v1027_v23 = vrot.slane %v1026_v60, 6  ;;  %v1030_v2 = vrot.slane %v1029_v37, 7 }
 0x173   : > { %1071 = vst.msk [vmem:[#allocation3 + $0x3c] ss:$2 sm:$0x7] %vm3312_vm13, %v1015_v13  ;;  %vm3668_vm3 = vcmask 1044484  }
 0x174   : > { %1073 = vst.msk [vmem:[#allocation3 + $0x42] ss:$2 sm:$0x7] %vm3312_vm13, %v1018_v10 }
 0x175   : > { %1075 = vst.msk [vmem:[#allocation3 + $0x48] ss:$2 sm:$0x7] %vm3312_vm13, %v1021_v45 }
 0x176   : > { %1077 = vst.msk [vmem:[#allocation3 + $0x4e] ss:$2 sm:$0x7] %vm3312_vm13, %v1024_v43 }
 0x177   : > { %1079 = vst.msk [vmem:[#allocation3 + $0x54] ss:$2 sm:$0x7] %vm3312_vm13, %v1027_v23 }
 0x178   : > { %1081 = vst.msk [vmem:[#allocation3 + $0x5a] ss:$2 sm:$0x7] %vm3312_vm13, %v1030_v2 }
 0x1d0   : > { %v1323_v39 = vpop.f32.mrf.mxu0  ;;  %v1337_v26 = vpop.f32.mrf.mxu1 }
 0x1d1   : > { %v1324_v44 = vadd.f32 %v1323_v39, %v3296_v34 }
 0x1d3   : > { %v1338_v53 = vadd.f32 %v1337_v26, %v1324_v44 }
 0x1d5   : > { %v1295_v24 = vpop.f32.mrf.mxu2  ;;  %v1309_v55 = vpop.f32.mrf.mxu3  ;;  %v1376_v58 = vrot.slane %v1338_v53, 7 }
 0x1d6   : > { %v1296_v54 = vadd.f32 %v1295_v24, %v3298_v28 }
 0x1d8   : > { %v1325_v57 = vpop.f32.mrf.mxu0  ;;  %v1339_v41 = vpop.f32.mrf.mxu1  ;;  %v1310_v36 = vadd.f32 %v1309_v55, %v1296_v54 }
 0x1d9   : > { %v1326_v27 = vadd.f32 %v1325_v57, %v3296_v34 }
 0x1da   : > { %v1380_v22 = vsel %vm975_vm7, %v1310_v36, %v1376_v58  ;;  %v1382_v46 = vsel %vm559_vm0, %v1310_v36, %v1376_v58  ;;  %v1385_v49 = vsel %vm562_vm1, %v1310_v36, %v1376_v58  ;;  %v1388_v50 = vsel %vm565_vm2, %v1310_v36, %v1376_v58 }
 0x1db   : > { %v1340_v21 = vadd.f32 %v1339_v41, %v1326_v27  ;;  %v1391_v34 = vsel %vm3668_vm3, %v1310_v36, %v1376_v58  ;;  %v1394_v35 = vsel %vm571_vm4, %v1310_v36, %v1376_v58  ;;  %v1397_v5 = vsel %vm574_vm5, %v1310_v36, %v1376_v58 }
 0x1dc   : > { %v1400_v52 = vsel %vm1003_vm8, %v1376_v58, %v1310_v36  ;;  %vm3669_vm3 = vcmask 1045508  }
 0x1dd   : > { %v1297_v38 = vpop.f32.mrf.mxu2  ;;  %v1311_v61 = vpop.f32.mrf.mxu3  ;;  %v1378_v32 = vrot.slane %v1340_v21, 7 }
 0x1de   : > { %v1298_v59 = vadd.f32 %v1297_v38, %v3298_v28 }
 0x1e0   : > { %v1312_v28 = vadd.f32 %v1311_v61, %v1298_v59 }
 0x1e2   : > { %v1403_v42 = vsel %vm975_vm7, %v1312_v28, %v1378_v32  ;;  %v1405_v13 = vsel %vm559_vm0, %v1312_v28, %v1378_v32  ;;  %v1408_v10 = vsel %vm562_vm1, %v1312_v28, %v1378_v32  ;;  %v1417_v9 = vsel %vm571_vm4, %v1312_v28, %v1378_v32 }
 0x1e3   : > { %v1420_v60 = vsel %vm574_vm5, %v1312_v28, %v1378_v32  ;;  %v1423_v37 = vsel %vm1003_vm8, %v1378_v32, %v1312_v28  ;;  %vm3671_vm0 = vcmask 1045508  }
 0x1e5   : > { %v1351_v51 = vpop.f32.mrf.mxu2  ;;  %v1365_v47 = vpop.f32.mrf.mxu3 }
 0x1e6   : > { %v1352_v14 = vadd.f32 %v1351_v51, %v3302_v40 }
 0x1e8   : > { %v1366_v62 = vadd.f32 %v1365_v47, %v1352_v14 }
 0x1ea   : > { %v1377_v11 = vrot.slane %v1366_v62, 6 }
 0x1ec   : > { %v1381_v8 = vsel %vm977_vm9, %v1380_v22, %v1377_v11  ;;  %v1383_v6 = vsel %vm980_vm10, %v1382_v46, %v1377_v11  ;;  %v1386_v7 = vsel %vm984_vm11, %v1385_v49, %v1377_v11  ;;  %v1389_v16 = vsel %vm988_vm12, %v1388_v50, %v1377_v11 }
 0x1ed   : > { %v1384_v18 = vrot.slane %v1383_v6, 1  ;;  %v1387_v15 = vrot.slane %v1386_v7, 2  ;;  %v1390_v20 = vrot.slane %v1389_v16, 3  ;;  %v1392_v0 = vsel %vm3669_vm3, %v1391_v34, %v1377_v11  ;;  %1443 = vst.msk [vmem:[#allocation3 + $0x1] ss:$2 sm:$0x7] %vm3312_vm13, %v1381_v8  ;;  %v1353_v56 = vpop.f32.mrf.mxu2  ;;  %v1367_v31 = vpop.f32.mrf.mxu3 }
 0x1ee   : > { %v1393_v19 = vrot.slane %v1392_v0, 4  ;;  %v1395_v1 = vsel %vm996_vm14, %v1394_v35, %v1377_v11  ;;  %v1398_v29 = vsel %vm1000_vm15, %v1377_v11, %v1397_v5  ;;  %v1401_v17 = vsel %vm1005_vm6, %v1377_v11, %v1400_v52 }
 0x1ef   : > { %v1396_v4 = vrot.slane %v1395_v1, 5  ;;  %1445 = vst.msk [vmem:[#allocation3 + $0x7] ss:$2 sm:$0x7] %vm3312_vm13, %v1384_v18  ;;  %v1354_v30 = vadd.f32 %v1353_v56, %v3302_v40  ;;  %v1399_v33 = vrot.slane %v1398_v29, 6  ;;  %v1402_v25 = vrot.slane %v1401_v17, 7 }
 0x1f0   : > { %1447 = vst.msk [vmem:[#allocation3 + $0xd] ss:$2 sm:$0x7] %vm3312_vm13, %v1387_v15  ;;  %v1411_v40 = vsel %vm565_vm2, %v1312_v28, %v1378_v32  ;;  %vm3670_vm3 = vcmask 1044484  }
 0x1f1   : > { %1449 = vst.msk [vmem:[#allocation3 + $0x13] ss:$2 sm:$0x7] %vm3312_vm13, %v1390_v20  ;;  %v1368_v63 = vadd.f32 %v1367_v31, %v1354_v30  ;;  %v1414_v45 = vsel %vm3670_vm3, %v1312_v28, %v1378_v32 }
 0x1f2   : > { %1451 = vst.msk [vmem:[#allocation3 + $0x19] ss:$2 sm:$0x7] %vm3312_vm13, %v1393_v19 }
 0x1f3   : > { %1453 = vst.msk [vmem:[#allocation3 + $0x1f] ss:$2 sm:$0x7] %vm3312_vm13, %v1396_v4  ;;  %v1379_v3 = vrot.slane %v1368_v63, 6 }
 0x1f4   : > { %1455 = vst.msk [vmem:[#allocation3 + $0x25] ss:$2 sm:$0x7] %vm3312_vm13, %v1399_v33 }
 0x1f5   : > { %1457 = vst.msk [vmem:[#allocation3 + $0x2b] ss:$2 sm:$0x7] %vm3312_vm13, %v1402_v25  ;;  %v1404_v43 = vsel %vm977_vm9, %v1403_v42, %v1379_v3  ;;  %v1406_v23 = vsel %vm980_vm10, %v1405_v13, %v1379_v3  ;;  %v1409_v2 = vsel %vm984_vm11, %v1408_v10, %v1379_v3  ;;  %v1412_v24 = vsel %vm988_vm12, %v1411_v40, %v1379_v3 }
 0x1f6   : > { %v1407_v55 = vrot.slane %v1406_v23, 1  ;;  %v1410_v39 = vrot.slane %v1409_v2, 2  ;;  %v1413_v26 = vrot.slane %v1412_v24, 3  ;;  %v1415_v44 = vsel %vm3671_vm0, %v1414_v45, %v1379_v3  ;;  %1459 = vst.msk [vmem:[#allocation3 + $0x31] ss:$2 sm:$0x7] %vm3312_vm13, %v1404_v43 }
 0x1f7   : > { %v1416_v38 = vrot.slane %v1415_v44, 4  ;;  %v1418_v61 = vsel %vm996_vm14, %v1417_v9, %v1379_v3  ;;  %v1421_v57 = vsel %vm1000_vm15, %v1379_v3, %v1420_v60  ;;  %v1424_v54 = vsel %vm1005_vm6, %v1379_v3, %v1423_v37 }
 0x1f8   : > { %v1419_v53 = vrot.slane %v1418_v61, 5  ;;  %1461 = vst.msk [vmem:[#allocation3 + $0x37] ss:$2 sm:$0x7] %vm3312_vm13, %v1407_v55  ;;  %v1422_v27 = vrot.slane %v1421_v57, 6  ;;  %v1425_v41 = vrot.slane %v1424_v54, 7 }
 0x1f9   : > { %1463 = vst.msk [vmem:[#allocation3 + $0x3d] ss:$2 sm:$0x7] %vm3312_vm13, %v1410_v39 }
 0x1fa   : > { %1465 = vst.msk [vmem:[#allocation3 + $0x43] ss:$2 sm:$0x7] %vm3312_vm13, %v1413_v26 }
 0x1fb   : > { %1467 = vst.msk [vmem:[#allocation3 + $0x49] ss:$2 sm:$0x7] %vm3312_vm13, %v1416_v38 }
 0x1fc   : > { %1469 = vst.msk [vmem:[#allocation3 + $0x4f] ss:$2 sm:$0x7] %vm3312_vm13, %v1419_v53 }
 0x1fd   : > { %1471 = vst.msk [vmem:[#allocation3 + $0x55] ss:$2 sm:$0x7] %vm3312_vm13, %v1422_v27 }
 0x1fe   : > { %1473 = vst.msk [vmem:[#allocation3 + $0x5b] ss:$2 sm:$0x7] %vm3312_vm13, %v1425_v41 }
 0x1ff LB: >> { %v3672_v36 = vld [vmem:[#allocation49_spill] sm:$0xff]  ;;  %v3673_v58 = vld [vmem:[#allocation52_spill] sm:$0xff]  ;;  %v3674_v12 = vld [vmem:[#allocation51_spill] sm:$0xff]  ;;  %s2193_s7 = sshll.u32 %s2478_s20, 1  ;;  %s1515_s9 = smul.u32 15, %s2478_s20  ;;  %s2494_s30 = sphi %s3454_s30, %s1513_s30   ;;  %v2490_v48 = vphi %v3377_v48, %v3721_v48  }
 0x200   : >> { %v2282_v51 = vor.u32 %v3673_v58, %v3672_v36  ;;  %v3675_v14 = vld [vmem:[#allocation48_spill] sm:$0xff]  ;;  %v3676_v59 = vld [vmem:[#allocation43_spill] sm:$0xff]  ;;  %v3677_v21 = vld [vmem:[#allocation46_spill] sm:$0xff]  ;;  %s1517_s6 = ssub.s32 1, %s2193_s7 }
 0x201   : >> { %v2286_v47 = vor.u32 %v3675_v14, %v3674_v12  ;;  %v2270_v62 = vor.u32 %v3677_v21, %v3676_v59  ;;  %v3678_v22 = vld [vmem:[#allocation45_spill] sm:$0xff]  ;;  %v3679_v46 = vld [vmem:[#allocation42_spill] sm:$0xff]  ;;  %v3682_v11 = vld [vmem:[#allocation44_spill] sm:$0xff]  ;;  %s1518_s10 = smul.u32 %s2494_s30, %s1517_s6  ;;  %s1513_s30 = sadd.s32 1, %s2494_s30  }
 0x202   : >> { %1653 = vmatpush.bf16.msra.mxu0 %v2282_v51  ;;  %v2274_v49 = vor.u32 %v3679_v46, %v3678_v22  ;;  %v3680_v50 = vld [vmem:[#allocation50_spill] sm:$0xff]  ;;  %v3681_v34 = vld [vmem:[#allocation53_spill] sm:$0xff]  ;;  %v3683_v5 = vld [vmem:[#allocation47_spill] sm:$0xff]  ;;  %v1524_v22 = vpack.c.bf16 %v2490_v48, %v2490_v48  ;;  %p1510_p9 = scmp.ge.s32.totalorder %s1513_s30, 16  }
 0x203   : >> { %1666 = vmatpush.bf16.msra.mxu1 %v2286_v47  ;;  %v2290_v35 = vor.u32 %v3681_v34, %v3680_v50  ;;  %v2278_v52 = vor.u32 %v3683_v5, %v3682_v11  ;;  %v3684_v28 = vld [vmem:[#allocation37_spill] sm:$0xff]  ;;  %v3685_v32 = vld [vmem:[#allocation40_spill] sm:$0xff]  ;;  %v3686_v6 = vld [vmem:[#allocation39_spill] sm:$0xff]  ;;  %s3515_s11 = sadd.s32 %s1518_s10, %s1515_s9 }
 0x204   : >> { %v2258_v8 = vor.u32 %v3685_v32, %v3684_v28  ;;  %v3687_v7 = vld [vmem:[#allocation36_spill] sm:$0xff]  ;;  %v3688_v18 = vld [vmem:[#allocation38_spill] sm:$0xff]  ;;  %v3689_v15 = vld [vmem:[#allocation41_spill] sm:$0xff]  ;;  %s2369_s12 = smul.u32 6, %s3515_s11  ;;  %s1749_s14 = scalar_lea.vmem %s3449_s8, %s3515_s11 [#allocation4] }
 0x205   : >> { %1679 = vmatpush.bf16.msra.mxu2 %v2290_v35  ;;  %v2262_v16 = vor.u32 %v3687_v7, %v3686_v6  ;;  %v2266_v20 = vor.u32 %v3689_v15, %v3688_v18  ;;  %v3690_v0 = vld [vmem:[#allocation31_spill] sm:$0xff]  ;;  %v3691_v56 = vld [vmem:[#allocation34_spill] sm:$0xff]  ;;  %v3692_v1 = vld [vmem:[#allocation33_spill] sm:$0xff] }
 0x206   : >> { %1654 = vmatpush.bf16.msra.mxu0 %v2270_v62  ;;  %v2246_v19 = vor.u32 %v3691_v56, %v3690_v0  ;;  %v3693_v29 = vld [vmem:[#allocation30_spill] sm:$0xff]  ;;  %v3694_v4 = vld [vmem:[#allocation32_spill] sm:$0xff]  ;;  %v3695_v30 = vld [vmem:[#allocation35_spill] sm:$0xff]  ;;  %s1522_s13 = scalar_lea.vmem [#allocation3], %s2369_s12 }
 0x207   : >> { %1667 = vmatpush.bf16.msra.mxu1 %v2274_v49  ;;  %v2250_v17 = vor.u32 %v3693_v29, %v3692_v1  ;;  %v2254_v33 = vor.u32 %v3695_v30, %v3694_v4  ;;  %v3696_v31 = vld [vmem:[#allocation25_spill] sm:$0xff]  ;;  %v3697_v25 = vld [vmem:[#allocation28_spill] sm:$0xff]  ;;  %v3698_v42 = vld [vmem:[#allocation27_spill] sm:$0xff] }
 0x208   : >> { %v2234_v63 = vor.u32 %v3697_v25, %v3696_v31  ;;  %v3699_v13 = vld [vmem:[#allocation24_spill] sm:$0xff]  ;;  %v3700_v40 = vld [vmem:[#allocation26_spill] sm:$0xff]  ;;  %v3701_v3 = vld [vmem:[#allocation29_spill] sm:$0xff] }
 0x209   : >> { %1680 = vmatpush.bf16.msra.mxu2 %v2278_v52  ;;  %v2238_v10 = vor.u32 %v3699_v13, %v3698_v42  ;;  %v2242_v45 = vor.u32 %v3701_v3, %v3700_v40  ;;  %v3702_v9 = vld [vmem:[#allocation19_spill] sm:$0xff]  ;;  %v3703_v60 = vld [vmem:[#allocation22_spill] sm:$0xff]  ;;  %v3704_v43 = vld [vmem:[#allocation21_spill] sm:$0xff] }
 0x20a   : >> { %1655 = vmatpush.bf16.msra.mxu0 %v2258_v8  ;;  %v2222_v37 = vor.u32 %v3703_v60, %v3702_v9  ;;  %v3705_v23 = vld [vmem:[#allocation18_spill] sm:$0xff]  ;;  %v3706_v24 = vld [vmem:[#allocation20_spill] sm:$0xff]  ;;  %v3707_v55 = vld [vmem:[#allocation23_spill] sm:$0xff] }
 0x20b   : >> { %1668 = vmatpush.bf16.msra.mxu1 %v2262_v16  ;;  %v2226_v2 = vor.u32 %v3705_v23, %v3704_v43  ;;  %v2230_v39 = vor.u32 %v3707_v55, %v3706_v24  ;;  %v3708_v26 = vld [vmem:[#allocation13_spill] sm:$0xff]  ;;  %v3709_v44 = vld [vmem:[#allocation16_spill] sm:$0xff]  ;;  %v3710_v61 = vld [vmem:[#allocation15_spill] sm:$0xff] }
 0x20c   : >> { %v2210_v38 = vor.u32 %v3709_v44, %v3708_v26  ;;  %v3711_v57 = vld [vmem:[#allocation12_spill] sm:$0xff]  ;;  %v3712_v53 = vld [vmem:[#allocation14_spill] sm:$0xff]  ;;  %v3713_v27 = vld [vmem:[#allocation17_spill] sm:$0xff] }
 0x20d   : >> { %1681 = vmatpush.bf16.msra.mxu2 %v2266_v20  ;;  %v2214_v54 = vor.u32 %v3711_v57, %v3710_v61  ;;  %v2218_v41 = vor.u32 %v3713_v27, %v3712_v53  ;;  %v3714_v36 = vld [vmem:[#allocation7_spill] sm:$0xff]  ;;  %v3715_v58 = vld [vmem:[#allocation10_spill] sm:$0xff]  ;;  %v3716_v12 = vld [vmem:[#allocation9_spill] sm:$0xff] }
 0x20e   : >> { %1656 = vmatpush.bf16.msra.mxu0 %v2246_v19  ;;  %v2198_v51 = vor.u32 %v3715_v58, %v3714_v36  ;;  %v3717_v14 = vld [vmem:[#allocation6_spill] sm:$0xff]  ;;  %v3718_v59 = vld [vmem:[#allocation8_spill] sm:$0xff]  ;;  %v3719_v21 = vld [vmem:[#allocation11_spill] sm:$0xff] }
 0x20f   : >> { %1669 = vmatpush.bf16.msra.mxu1 %v2250_v17  ;;  %v2202_v47 = vor.u32 %v3717_v14, %v3716_v12  ;;  %v2206_v62 = vor.u32 %v3719_v21, %v3718_v59  ;;  %v1523_v46 = vld [vmem:[%s1522_s13] sm:$0x3f]  ;;  %v3720_v29 = vld [vmem:[#allocation5_spill] sm:$0xff] }
 0x210   : >> { %v1713_v49 = vrot.slane %v1523_v46, 2  ;;  %v1736_v17 = vperm.slane %v3720_v29, 0 }
 0x211   : >> { %1682 = vmatpush.bf16.msra.mxu2 %v2254_v33 }
 0x212   : >> { %1657 = vmatpush.bf16.msra.mxu0 %v2234_v63 }
 0x213   : >> { %1670 = vmatpush.bf16.msra.mxu1 %v2238_v10  ;;  %v1740_v10 = vrot.slane %v1523_v46, 4 }
 0x215   : >> { %1683 = vmatpush.bf16.msra.mxu2 %v2242_v45 }
 0x216   : >> { %1658 = vmatpush.bf16.msra.mxu0 %v2222_v37 }
 0x217   : >> { %1671 = vmatpush.bf16.msra.mxu1 %v2226_v2 }
 0x219   : >> { %1684 = vmatpush.bf16.msra.mxu2 %v2230_v39 }
 0x21a   : >> { %1659 = vmatpush.bf16.msra.mxu0 %v2210_v38 }
 0x21b   : >> { %1672 = vmatpush.bf16.msra.mxu1 %v2214_v54 }
 0x21d   : >> { %1685 = vmatpush.bf16.msra.mxu2 %v2218_v41 }
 0x21e   : >> { %1660 = vmatpush.bf16.msra.mxu0 %v2198_v51 }
 0x21f   : >> { %1673 = vmatpush.bf16.msra.mxu1 %v2202_v47 }
 0x221   : >> { %1686 = vmatpush.bf16.msra.mxu2 %v2206_v62  ;;  %1661 = vmatmul.bf16.vlgmr.msra.gmra.mxu0 %v1524_v22 }
 0x222   : >> { %1674 = vmatmul.bf16.vlgmr.msra.gmra.mxu1 %v1524_v22 }
 0x224   : >> { %1687 = vmatmul.bf16.vlgmr.msra.gmra.mxu2 %v1524_v22 }
 0x29e   : >> { %v1662_v50 = vpop.f32.mrf.mxu0 }
 0x29f   : >> { %v1675_v34 = vpop.f32.mrf.mxu1  ;;  %v1692_v35 = vadd.f32 %v1662_v50, %v1523_v46 }
 0x2a0   : >> { %v1715_v11 = vadd.f32 %v1713_v49, %v1675_v34 }
 0x2a1   : >> { %v2291_v5 = vmul.f32 -1.442695, %v1692_v35 }
 0x2a2   : >> { %v2292_v52 = vmul.f32 -1.442695, %v1715_v11 }
 0x2a3   : >> { %2430 = vpow2.f32 %v2291_v5 }
 0x2a4   : >> { %2432 = vpow2.f32 %v2292_v52 }
 0x2a6   : >> { %v1664_v28 = vpop.f32.mrf.mxu0 }
 0x2a7   : >> { %v1677_v32 = vpop.f32.mrf.mxu1  ;;  %v1688_v8 = vpop.f32.mrf.mxu2 }
 0x2a8   : >> { %v1738_v42 = vadd.f32 %v1736_v17, %v1688_v8 }
 0x2a9   : >> { %v2431_v6 = vpop.eup %2430 }
 0x2aa   : >> { %v2433_v7 = vpop.eup %2432  ;;  %v1696_v16 = vadd.f32 1.0, %v2431_v6 }
 0x2ab   : >> { %v1719_v18 = vadd.f32 1.0, %v2433_v7 }
 0x2ac   : >> { %2434 = vrcp.f32 %v1696_v16  ;;  %v1708_v30 = vand.u32 2147483648, %v1696_v16  ;;  %v1706_v31 = vand.u32 2147483647, %v1696_v16  ;;  %vm1702_vm2 = vweird.f32 %v1696_v16 }
 0x2ad   : >> { %2436 = vrcp.f32 %v1719_v18  ;;  %vm1725_vm7 = vweird.f32 %v1719_v18  ;;  %v1731_v9 = vand.u32 2147483648, %v1719_v18  ;;  %v1729_v37 = vand.u32 2147483647, %v1719_v18 }
 0x2ae   : >> { %v1709_v13 = vor.u32 1.1754944e-38, %v1708_v30  ;;  %vm1707_vm5 = vcmp.eq.f32.partialorder %v1706_v31, 8.507059e+37 }
 0x2af   : >> { %v1690_v15 = vpop.f32.mrf.mxu2  ;;  %v1732_v2 = vor.u32 1.1754944e-38, %v1731_v9  ;;  %vm1730_vm10 = vcmp.eq.f32.partialorder %v1729_v37, 8.507059e+37 }
 0x2b2   : >> { %v2435_v20 = vpop.eup %2434 }
 0x2b3   : >> { %v2437_v0 = vpop.eup %2436  ;;  %v1698_v56 = vmul.f32 %v2435_v20, %v1696_v16  ;;  %vm1703_vm1 = vweird.f32 %v2435_v20 }
 0x2b4   : >> { %v1721_v19 = vmul.f32 %v2437_v0, %v1719_v18  ;;  %vm1704_vm4 = vmor %vm1702_vm2, %vm1703_vm1  ;;  %vm1726_vm8 = vweird.f32 %v2437_v0 }
 0x2b5   : >> { %v1699_v1 = vsub.f32 1.0, %v1698_v56  ;;  %vm1727_vm9 = vmor %vm1725_vm7, %vm1726_vm8 }
 0x2b6   : >> { %v1722_v4 = vsub.f32 1.0, %v1721_v19 }
 0x2b7   : >> { %v1700_v33 = vmul.f32 %v2435_v20, %v1699_v1 }
 0x2b8   : >> { %v1723_v25 = vmul.f32 %v2437_v0, %v1722_v4 }
 0x2b9   : >> { %v1701_v63 = vadd.f32 %v2435_v20, %v1700_v33 }
 0x2ba   : >> { %v1724_v3 = vadd.f32 %v2437_v0, %v1723_v25 }
 0x2bb   : >> { %v1705_v40 = vsel %vm1704_vm4, %v2435_v20, %v1701_v63 }
 0x2bc   : >> { %v1710_v45 = vsel %vm1707_vm5, %v1709_v13, %v1705_v40  ;;  %v1728_v23 = vsel %vm1727_vm9, %v2437_v0, %v1724_v3 }
 0x2bd   : >> { %v1739_v60 = vmul.f32 %v1738_v42, %v1710_v45  ;;  %v1733_v24 = vsel %vm1730_vm10, %v1732_v2, %v1728_v23 }
 0x2be   : >> { %v1744_v55 = vsub.f32 1.0, %v1733_v24  ;;  %v1746_v44 = vmul.f32 %v2490_v48, %v1733_v24 }
 0x2bf   : >> { %v1742_v43 = vadd.f32 %v1740_v10, %v1739_v60 }
 0x2c1   : >> { %2438 = vtanh.f32 %v1742_v43 }
 0x2c7   : >> { %v2439_v39 = vpop.eup %2438 }
 0x2c8   : >> { %v1745_v26 = vmul.f32 %v2439_v39, %v1744_v55 }
 0x2ca   : >> { %v1747_v38 = vadd.f32 %v1746_v44, %v1745_v26   ;;  %1512 = sbr.rel (!%p1510_p9) target bundleno = 511 (0x1ff), region = 167 }
 0x2cc   : >> { %v1748_v61 = vpack.c.bf16 %v1747_v38, %v1747_v38  ;;  %v3721_v48 = vmov %v1747_v38  ;;  %1751 = vst [vmem:[#allocation2] sm:$0x3] (%p1510_p9), %v1747_v38 }
 0x2ce   : >> { %1750 = vst [vmem:[%s1749_s14] sm:$0x1] %v1748_v61 }
 0x2cf   : > { %1758 = sbr.rel (!%p2556_p3) target bundleno = 742 (0x2e6), region = 55  ;;  %s3533_s18 = scalar_lea.vmem (%p2556_p3), %s3587_s5, %s2478_s20 }
 0x2d5   : > { %v1782_v48 = vld [vmem:[%s3449_s8] sm:$0x1]  ;;  %v1784_v57 = vld [vmem:[%s3449_s8 + $0x1] sm:$0x1]  ;;  %v1786_v54 = vld [vmem:[%s3449_s8 + $0x2] sm:$0x1] }
 0x2d6   : > { %1783 = vst [vmem:[%s3533_s18] sm:$0x1] %v1782_v48  ;;  %v1788_v53 = vld [vmem:[%s3449_s8 + $0x3] sm:$0x1]  ;;  %v1790_v27 = vld [vmem:[%s3449_s8 + $0x4] sm:$0x1] }
 0x2d7   : > { %1785 = vst [vmem:[%s3533_s18 + $0x2] sm:$0x1] %v1784_v57  ;;  %v1792_v41 = vld [vmem:[%s3449_s8 + $0x5] sm:$0x1]  ;;  %v1794_v36 = vld [vmem:[%s3449_s8 + $0x6] sm:$0x1] }
 0x2d8   : > { %1787 = vst [vmem:[%s3533_s18 + $0x4] sm:$0x1] %v1786_v54  ;;  %v1796_v58 = vld [vmem:[%s3449_s8 + $0x7] sm:$0x1]  ;;  %v1798_v51 = vld [vmem:[%s3449_s8 + $0x8] sm:$0x1] }
 0x2d9   : > { %1789 = vst [vmem:[%s3533_s18 + $0x6] sm:$0x1] %v1788_v53  ;;  %v1800_v12 = vld [vmem:[%s3449_s8 + $0x9] sm:$0x1]  ;;  %v1802_v14 = vld [vmem:[%s3449_s8 + $0xa] sm:$0x1] }
 0x2da   : > { %1791 = vst [vmem:[%s3533_s18 + $0x8] sm:$0x1] %v1790_v27  ;;  %v1804_v47 = vld [vmem:[%s3449_s8 + $0xb] sm:$0x1]  ;;  %v1806_v59 = vld [vmem:[%s3449_s8 + $0xc] sm:$0x1] }
 0x2db   : > { %1793 = vst [vmem:[%s3533_s18 + $0xa] sm:$0x1] %v1792_v41  ;;  %v1808_v21 = vld [vmem:[%s3449_s8 + $0xd] sm:$0x1]  ;;  %v1810_v62 = vld [vmem:[%s3449_s8 + $0xe] sm:$0x1] }
 0x2dc   : > { %1795 = vst [vmem:[%s3533_s18 + $0xc] sm:$0x1] %v1794_v36  ;;  %v1812_v22 = vld [vmem:[%s3449_s8 + $0xf] sm:$0x1] }
 0x2dd   : > { %1797 = vst [vmem:[%s3533_s18 + $0xe] sm:$0x1] %v1796_v58 }
 0x2de   : > { %1799 = vst [vmem:[%s3533_s18 + $0x10] sm:$0x1] %v1798_v51 }
 0x2df   : > { %1801 = vst [vmem:[%s3533_s18 + $0x12] sm:$0x1] %v1800_v12 }
 0x2e0   : > { %1803 = vst [vmem:[%s3533_s18 + $0x14] sm:$0x1] %v1802_v14 }
 0x2e1   : > { %1805 = vst [vmem:[%s3533_s18 + $0x16] sm:$0x1] %v1804_v47 }
 0x2e2   : > { %1807 = vst [vmem:[%s3533_s18 + $0x18] sm:$0x1] %v1806_v59 }
 0x2e3   : > { %1809 = vst [vmem:[%s3533_s18 + $0x1a] sm:$0x1] %v1808_v21 }
 0x2e4   : > { %1811 = vst [vmem:[%s3533_s18 + $0x1c] sm:$0x1] %v1810_v62 }
 0x2e5   : > { %1813 = vst [vmem:[%s3533_s18 + $0x1e] sm:$0x1] %v1812_v22 }
 0x2e6 PF: > { %s15_s22 = sadd.s32 1, %s2486_s22   ;;  %s3722_s18 = smov %s2474_s19 }
 0x2e7   : > { %p12_p10 = scmp.ge.s32.totalorder %s15_s22, 4   ;;  %s3723_s19 = smov %s2565_s28 }
 0x2e8   : > { %s3724_s20 = smov %s2482_s21  ;;  %s3725_s21 = smov %s3727_s24 }
 0x2e9   :  { %14 = sbr.rel (!%p12_p10) target bundleno = 3 (0x3), region = 178 }

// kernel: rnn_key_signature_forward.4
= control target key start
LH: loop header
LB: loop body
LE: loop exit
PB: predicated region body
PF: predicated region fallthrough
CT: control target
= control target key end

     0   :  { %17 = vsyncpa [#allocation6], 0  ;;  %s6011_s21 = smov 0   ;;  %s6013_s22 = smov 0   ;;  %s6914_s0 = inlined_call_operand.vmem [shape: bf16[2,48,131], index: 0, kind: input, shape index: {}, may-alias: {0,1,2}]   ;;  %s6915_s1 = inlined_call_operand.vmem [shape: bf16[2,48,131], index: 1, kind: input, shape index: {}, may-alias: {0,1,2}]   ;;  %s6916_s2 = inlined_call_operand.vmem [shape: bf16[2,48,131], index: 2, kind: input, shape index: {}, may-alias: {0,1,2}]   ;;  %s6917_s3 = inlined_call_operand.vmem [shape: bf16[9,131,64], index: 3, kind: input, shape index: {}]   ;;  %s6918_s4 = inlined_call_operand.vmem [shape: f32[1,64], index: 4, kind: input, shape index: {}]   ;;  %s6919_s5 = inlined_call_operand.vmem [shape: f32[1,64], index: 5, kind: input, shape index: {}]   ;;  %s6920_s6 = inlined_call_operand.vmem [shape: bf16[9,64,128], index: 6, kind: input, shape index: {}]   ;;  %s6921_s7 = inlined_call_operand.vmem [shape: f32[1,128], index: 7, kind: input, shape index: {}]   ;;  %s6922_s8 = inlined_call_operand.vmem [shape: f32[1,128], index: 8, kind: input, shape index: {}]   ;;  %s6923_s9 = inlined_call_operand.hbm [shape: bf16[9,128,256], index: 9, kind: input, shape index: {}]   ;;  %s6924_s10 = inlined_call_operand.vmem [shape: f32[1,256], index: 10, kind: input, shape index: {}]   ;;  %s6925_s11 = inlined_call_operand.vmem [shape: f32[1,256], index: 11, kind: input, shape index: {}]   ;;  %s6926_s12 = inlined_call_operand.vmem [shape: bf16[2,16,256], index: 12, kind: output, shape index: {}]  }
   0x1   :  { %s6015_s23 = smov 0  }
   0x2 LB: > { %s4266_s24 = sadd.s32 4294967295, %s5939_s23   ;;  %s35_s25 = sadd.s32 1, %s5935_s22  ;;  %s5939_s23 = sphi %s6015_s23, %s23_s23   ;;  %s5935_s22 = sphi %s6013_s22, %s6936_s22   ;;  %s5931_s21 = sphi %s6011_s21, %s6935_s21  }
   0x3   : > { %p37_p0 = scmp.ge.s32.totalorder %s35_s25, 2  ;;  %p4268_p1 = scmp.ge.s32.totalorder %s5939_s23, 1 }
   0x4   : > { %p345_p2 = scmp.lt.s32.totalorder %s5939_s23, 3  ;;  %p5829_p4 = scmp.eq.s32.totalorder %s4266_s24, 0 }
   0x5   : > { %s6938_s25 = smov (%p37_p0, %s35_s25), 0  ;;  %s374_s28 = sshll.u32 %s6923_s9, 4  ;;  %s375_s28 = int_to_ptr.hbm [resolvable:$true] %s374_s28 }
   0x6   : > { %p346_p3 = pnand %p4268_p1, %p345_p2  ;;  %s5941_s29 = smov [#allocation5]  }
   0x7   : > { %s376_s30 = sshll.u32 %s5941_s29, 4  ;;  %s5942_s13 = smov 128   ;;  %s377_s30 = int_to_ptr.vmem [resolvable:$true] %s376_s30 }
   0x8   : > { %p5825_p5 = pneg %p346_p3  ;;  %s5943_s14 = smov 8  }
   0x9   : > { %444 = sbr.rel (%p346_p3) target bundleno = 878 (0x36e), region = 68 }
   0xa   : > { %p5826_p6 = pnand %p5829_p4, %p5825_p5 }
   0xc   : > { %5828 = dma.hbm_to_vmem [thread:$0]  (!%p5826_p6), %s375_s28, 18432, %s377_s30, [#allocation6], %s5942_s13, %s5942_s13, %s5943_s14  }
   0xe   : > { %5926 = dma.done.wait (%p5829_p4), [#allocation6], 18432  }
   0xf   : > { %5928 = vsyncadd (%p5829_p4), [#allocation6], 4294948864  ;;  %p520_p7 = scmp.lt.s32.totalorder %s5931_s21, 1  ;;  %vm573_vm0 = vcmask 1041408   ;;  %vm574_vm1 = vcmask 1045508   ;;  %vm603_vm2 = vcmask 1043458  }
  0x10   : > { %vm604_vm3 = vcmask 23558   ;;  %vm6040_vm4 = vmor %vm573_vm0, %vm574_vm1  ;;  %v5552_v1 = vld [vmem:[%s6917_s3 + $0x38] sm:$0xff]  ;;  %vm583_vm5 = vcmask 1043456   ;;  %vm584_vm6 = vcmask 23556   ;;  %vm588_vm7 = vcmask 21508   ;;  %v5551_v4 = vld [vmem:[%s6917_s3 + $0x30] sm:$0xff] }
  0x11   : > { %s6940_s21 = smov (!%p520_p7, %s5931_s21), 1  ;;  %v5560_v2 = vld [vmem:[%s6917_s3 + $0x7c] sm:$0xff]  ;;  %vm6053_vm8 = vmor %vm604_vm3, %vm603_vm2  ;;  %v5559_v5 = vld [vmem:[%s6917_s3 + $0x74] sm:$0xff]  ;;  %vm784_vm9 = vcmask 1040384   ;;  %888 = vmatpush.bf16.msra.mxu2 %v5552_v1  ;;  %v5944_v21 = vmov 65535   ;;  %vm777_vm12 = vcmask 23552  }
  0x12   : > { %s5819_s15 = smul.u32 48, %s6940_s21  ;;  %790 = vmatpush.bf16.msra.mxu0 %v5560_v2  ;;  %vm6068_vm10 = vmor %vm584_vm6, %vm583_vm5  ;;  %v642_v20 = vld [vmem:[%s6917_s3 + $0x40] sm:$0x3]  ;;  %v785_v22 = vsel %vm784_vm9, 4294967295, %v5944_v21  ;;  %v5550_v27 = vld [vmem:[%s6917_s3 + $0x28] sm:$0xff]  ;;  %vm950_vm14 = vcmask 1046528  }
  0x13   : > { %vm6074_vm11 = vmor %vm588_vm7, %vm573_vm0  ;;  %v863_v29 = vunpack.c.l.b16 %v642_v20  ;;  %v5558_v30 = vld [vmem:[%s6917_s3 + $0x6c] sm:$0xff]  ;;  %v4295_v31 = vld [vmem:[%s6917_s3 + $0x84] sm:$0x3]  ;;  %v6102_v33 = vsel %vm573_vm0, %v785_v22, 0  ;;  %vm683_vm13 = vsmask.f32 7424 }
  0x14   : > { %s528_s18 = scalar_lea.vmem %s6914_s0, %s5819_s15  ;;  %s5541_s19 = sadd.s32 16, %s5819_s15  ;;  %v759_v34 = vunpack.c.l.b16 %v4295_v31  ;;  %v5549_v39 = vld [vmem:[%s6917_s3 + $0x20] sm:$0xff]  ;;  %v4380_v43 = vld [vmem:[%s6917_s3 + $0xc8] sm:$0x3]  ;;  %v5548_v46 = vld [vmem:[%s6917_s3 + $0x18] sm:$0xff]  ;;  %vm1260_vm0 = vcmask 1045504  }
  0x15   : > { %s540_s30 = scalar_lea.vmem %s6915_s1, %s5541_s19  ;;  %s5543_s13 = sadd.s32 32, %s5819_s15  ;;  %v569_v6 = vld [vmem:[%s528_s18] sm:$0xcc]  ;;  %v570_v7 = vld [vmem:[%s528_s18 + $0x8] sm:$0xff]  ;;  %889 = vmatpush.bf16.msra.mxu2 %v5551_v4  ;;  %v872_v36 = vpack.c.b16 %v863_v29, %v863_v29  ;;  %v996_v44 = vunpack.c.l.b16 %v4380_v43  ;;  %v5567_v54 = vld [vmem:[%s6917_s3 + $0xb8] sm:$0xff]  ;;  %vm1570_vm2 = vcmask 1044480  }
  0x16   : > { %s553_s19 = scalar_lea.vmem %s6916_s2, %s5543_s13  ;;  %v4278_v8 = vrot.slane %v569_v6, 10  ;;  %v591_v9 = vld [vmem:[%s540_s30] sm:$0xff]  ;;  %v592_v10 = vld [vmem:[%s540_s30 + $0x8] sm:$0xff]  ;;  %v578_v11 = vrot.slane %v570_v7, 6  ;;  %791 = vmatpush.bf16.msra.mxu0 %v5559_v5  ;;  %v768_v37 = vpack.c.b16 %v759_v34, %v759_v34  ;;  %v5547_v62 = vld [vmem:[%s6917_s3 + $0x10] sm:$0xff]  ;;  %vm2136_vm7 = vcmask 523264  }
  0x17   : > { %v595_v13 = vrot.slane %v591_v9, 6  ;;  %v597_v14 = vrot.slane %v592_v10, 6  ;;  %v609_v15 = vld [vmem:[%s553_s19] sm:$0xff]  ;;  %v610_v16 = vld [vmem:[%s553_s19 + $0x8] sm:$0x33]  ;;  %v886_v38 = vand.u32 %v872_v36, %v6102_v33  ;;  %v1005_v51 = vpack.c.b16 %v996_v44, %v996_v44  ;;  %v5555_v0 = vld [vmem:[%s6917_s3 + $0x54] sm:$0xff] }
  0x18   : > { %v613_v18 = vrot.slane %v609_v15, 6  ;;  %v615_v19 = vrot.slane %v610_v16, 6  ;;  %v579_v23 = vsel %vm6040_vm4, %v4278_v8, %v578_v11  ;;  %v580_v24 = vrot.slane %v578_v11, 4  ;;  %v5557_v40 = vld [vmem:[%s6917_s3 + $0x64] sm:$0xff]  ;;  %v5556_v49 = vld [vmem:[%s6917_s3 + $0x5c] sm:$0xff]  ;;  %v5566_v4 = vld [vmem:[%s6917_s3 + $0xb0] sm:$0xff] }
  0x19   : > { %v596_v25 = vrot.slane %v595_v13, 4  ;;  %v599_v26 = vrot.slane %v597_v14, 4  ;;  %606 = vst.msk [vmem:[#allocation2 + $0x8] sm:$0xcc] %vm6053_vm8, %v595_v13  ;;  %890 = vmatpush.bf16.msra.mxu2 %v5550_v27  ;;  %v788_v41 = vand.u32 %v6102_v33, %v768_v37  ;;  %v5568_v42 = vld [vmem:[%s6917_s3 + $0xc0] sm:$0xff]  ;;  %914 = vmatpush.bf16.msra.mxu3 %v886_v38  ;;  %v1021_v58 = vand.u32 %v1005_v51, %v6102_v33  ;;  %v5546_v11 = vld [vmem:[%s6917_s3 + $0x8] sm:$0xff] }
  0x1a   : > { %586 = vst.msk [vmem:[#allocation2] sm:$0xff] %vm6068_vm10, %v579_v23  ;;  %v614_v28 = vrot.slane %v613_v18, 4  ;;  %792 = vmatpush.bf16.msra.mxu0 %v5558_v30  ;;  %v5554_v12 = vld [vmem:[%s6917_s3 + $0x4c] sm:$0xff]  ;;  %v5545_v21 = vld [vmem:[%s6917_s3] sm:$0xff]  ;;  %v5563_v38 = vld [vmem:[%s6917_s3 + $0x98] sm:$0xff]  ;;  %s5544_s15 = sshll.u32 %s6940_s21, 4 }
  0x1b   : > { %590 = vst.msk [vmem:[#allocation2 + $0x8] sm:$0x33] %vm6074_vm11, %v580_v24  ;;  %v598_v32 = vsel %vm6040_vm4, %v596_v25, %v597_v14  ;;  %816 = vmatpush.bf16.msra.mxu1 %v788_v41  ;;  %v5553_v22 = vld [vmem:[%s6917_s3 + $0x44] sm:$0xff]  ;;  %v4431_v25 = vld [vmem:[%s6917_s3 + $0x10c] sm:$0x3]  ;;  %v5575_v34 = vld [vmem:[%s6917_s3 + $0xfc] sm:$0xff]  ;;  %s565_s28 = scalar_lea.vmem %s6926_s12, %s5544_s15 }
  0x1c   : > { %607 = vst.msk [vmem:[#allocation2 + $0x10] sm:$0xff] %vm6068_vm10, %v598_v32  ;;  %v616_v35 = vsel %vm6040_vm4, %v614_v28, %v615_v19  ;;  %v1167_v27 = vunpack.c.l.b16 %v4431_v25  ;;  %v5564_v29 = vld [vmem:[%s6917_s3 + $0xa0] sm:$0xff]  ;;  %v5574_v41 = vld [vmem:[%s6917_s3 + $0xf4] sm:$0xff]  ;;  %v5561_v51 = vld [vmem:[%s6917_s3 + $0x88] sm:$0xff]  ;;  %vm1089_vm15 = vsmask.f32 6400 }
  0x1d   : > { %608 = vst.msk [vmem:[#allocation2 + $0x18] sm:$0x33] %vm6074_vm11, %v599_v26  ;;  %891 = vmatpush.bf16.msra.mxu2 %v5549_v39  ;;  %1049 = vmatpush.bf16.msrb.mxu3 %v1021_v58  ;;  %v5576_v26 = vld [vmem:[%s6917_s3 + $0x104] sm:$0xff]  ;;  %v5562_v44 = vld [vmem:[%s6917_s3 + $0x90] sm:$0xff]  ;;  %vm1399_vm1 = vsmask.f32 5376 }
  0x1e   : > { %619 = vst.msk [vmem:[#allocation2 + $0x18] sm:$0xcc] %vm6053_vm8, %v613_v18  ;;  %793 = vmatpush.bf16.msra.mxu0 %v5557_v40  ;;  %v5565_v18 = vld [vmem:[%s6917_s3 + $0xa8] sm:$0xff]  ;;  %v1176_v30 = vpack.c.b16 %v1167_v27, %v1167_v27  ;;  %vm1709_vm3 = vsmask.f32 4352  ;;  %vm2060_vm4 = vcmask 519168  }
  0x1f   : > { %620 = vst.msk [vmem:[#allocation2 + $0x20] sm:$0xff] %vm6068_vm10, %v616_v35  ;;  %1023 = vmatpush.bf16.msrb.mxu1 %v5568_v42 }
  0x20   : > { %v1192_v35 = vand.u32 %v1176_v30, %v6102_v33 }
  0x21   : > { %v622_v45 = vld [vmem:[#allocation2] sm:$0xff]  ;;  %892 = vmatpush.bf16.msra.mxu2 %v5548_v46 }
  0x22   : > { %v623_v47 = vld [vmem:[#allocation2 + $0x8] sm:$0xff]  ;;  %v668_v48 = vunpack.c.h.b16 %v622_v45  ;;  %v667_v50 = vunpack.c.l.b16 %v622_v45  ;;  %794 = vmatpush.bf16.msra.mxu0 %v5556_v49  ;;  %v926_v39 = vld [vmem:[#allocation2] sm:$0xee] }
  0x23   : > { %v6134_v52 = vunpack.c.h.b16 %v623_v47  ;;  %v6136_v53 = vld [vmem:[#allocation2 + $0x10] sm:$0xff]  ;;  %v6141_v55 = vunpack.c.l.b16 %v623_v47  ;;  %1024 = vmatpush.bf16.msrb.mxu1 %v5567_v54  ;;  %v947_v45 = vunpack.c.h.b16 %v926_v39  ;;  %v5584_v54 = vld [vmem:[%s6917_s3 + $0x148] sm:$0xff] }
  0x24   : > { %v672_v56 = vunpack.c.h.b16 %v6136_v53  ;;  %v671_v57 = vunpack.c.l.b16 %v6136_v53 }
  0x25   : > { %v678_v59 = vpack.c.b16 %v6134_v52, %v668_v48  ;;  %v6147_v60 = vld [vmem:[#allocation2 + $0x18] sm:$0xff]  ;;  %v677_v61 = vpack.c.b16 %v6141_v55, %v667_v50  ;;  %893 = vmatpush.bf16.msra.mxu2 %v5547_v62  ;;  %v5573_v48 = vld [vmem:[%s6917_s3 + $0xec] sm:$0xff]  ;;  %v949_v50 = vpack.c.b16 %v6134_v52, %v947_v45  ;;  %v5572_v62 = vld [vmem:[%s6917_s3 + $0xe4] sm:$0xff] }
  0x26   : > { %v674_v63 = vunpack.c.h.b16 %v6147_v60  ;;  %v673_v1 = vunpack.c.l.b16 %v6147_v60  ;;  %v643_v9 = vld [vmem:[#allocation2 + $0x20] sm:$0x11]  ;;  %795 = vmatpush.bf16.msra.mxu0 %v5555_v0  ;;  %v5580_v45 = vld [vmem:[%s6917_s3 + $0x128] sm:$0xff] }
  0x27   : > { %v699_v2 = vshll.u32 %v678_v59, 16  ;;  %4362 = vmatmul.msk.bf16.vlgmr.msra.gmra.mxu3 %vm777_vm12, %v678_v59  ;;  %v697_v3 = vshrl.u32 %v678_v59, 16  ;;  %v687_v5 = vshll.u32 %v677_v61, 16  ;;  %v685_v13 = vshrl.u32 %v677_v61, 16  ;;  %1025 = vmatpush.bf16.msrb.mxu1 %v5566_v4 }
  0x28   : > { %v6166_v6 = vpack.c.b16 %v674_v63, %v672_v56  ;;  %v6172_v7 = vpack.c.b16 %v673_v1, %v671_v57  ;;  %v676_v19 = vunpack.c.h.b16 %v643_v9  ;;  %v675_v32 = vunpack.c.l.b16 %v643_v9  ;;  %v5583_v9 = vld [vmem:[%s6917_s3 + $0x140] sm:$0xff] }
  0x29   : > { %v701_v8 = vrot.slane %v699_v2, 1  ;;  %v689_v14 = vrot.slane %v687_v5, 1  ;;  %894 = vmatpush.bf16.msra.mxu2 %v5546_v11  ;;  %v954_v2 = vrot.slane %v949_v50, 1  ;;  %v946_v4 = vunpack.c.l.b16 %v926_v39  ;;  %v5571_v11 = vld [vmem:[%s6917_s3 + $0xdc] sm:$0xff]  ;;  %v5592_v39 = vld [vmem:[%s6917_s3 + $0x18c] sm:$0xff] }
  0x2a   : > { %v6175_v10 = vshll.u32 %v6166_v6, 16  ;;  %v6184_v15 = vshll.u32 %v6172_v7, 16  ;;  %796 = vmatpush.bf16.msra.mxu0 %v5554_v12  ;;  %v6205_v28 = vpack.c.b16 %v676_v19, %v676_v19  ;;  %v6216_v36 = vshrl.u32 %v6166_v6, 16 }
  0x2b   : > { %v702_v16 = vor.u32 %v701_v8, %v697_v3  ;;  %v690_v23 = vor.u32 %v689_v14, %v685_v13  ;;  %1026 = vmatpush.bf16.msrb.mxu1 %v5565_v18  ;;  %v6222_v40 = vpack.c.b16 %v675_v32, %v675_v32  ;;  %v6234_v46 = vshrl.u32 %v6172_v7, 16  ;;  %v5582_v18 = vld [vmem:[%s6917_s3 + $0x138] sm:$0xff] }
  0x2c   : > { %v706_v17 = vrot.slane %v6175_v10, 1  ;;  %v694_v24 = vrot.slane %v6184_v15, 1  ;;  %v720_v37 = vshll.u32 %v6205_v28, 16  ;;  %v955_v3 = vrot.slane %v6166_v6, 1 }
  0x2d   : > { %895 = vmatpush.bf16.msra.mxu2 %v5545_v21  ;;  %v712_v47 = vshll.u32 %v6222_v40, 16  ;;  %v948_v14 = vpack.c.b16 %v6141_v55, %v946_v4  ;;  %v5570_v21 = vld [vmem:[%s6917_s3 + $0xd4] sm:$0xff]  ;;  %v1111_v27 = vrot.slane %v6175_v10, 2  ;;  %v1098_v32 = vrot.slane %v6234_v46, 1 }
  0x2e   : > { %v707_v20 = vsel %vm683_vm13, %v702_v16, %v706_v17  ;;  %797 = vmatpush.bf16.msra.mxu0 %v5553_v22  ;;  %v695_v31 = vsel %vm683_vm13, %v690_v23, %v694_v24  ;;  %v718_v42 = vor.u32 %v6216_v36, %v706_v17  ;;  %v722_v43 = vrot.slane %v720_v37, 1  ;;  %v1065_v37 = vld [vmem:[#allocation2 + $0x20] sm:$0x33] }
  0x2f   : > { %4328 = vmatmul.msk.bf16.vlgmr.msra.gmra.mxu1 %vm777_vm12, %v707_v20  ;;  %v710_v58 = vor.u32 %v6234_v46, %v694_v24  ;;  %v714_v59 = vrot.slane %v712_v47, 1  ;;  %v956_v13 = vsel %vm950_vm14, %v954_v2, %v955_v3  ;;  %v1103_v16 = vshrl.u32 %v949_v50, 16 }
  0x30   : > { %1027 = vmatpush.bf16.msrb.mxu1 %v5564_v29  ;;  %896 = vmatmul.bf16.vlgmr.msra.gmra.mxu2 %v677_v61  ;;  %v723_v49 = vsel %vm683_vm13, %v718_v42, %v722_v43  ;;  %v4482_v61 = vld [vmem:[%s6917_s3 + $0x150] sm:$0x3]  ;;  %v1106_v17 = vshll.u32 %v949_v50, 16  ;;  %v1091_v19 = vshrl.u32 %v948_v14, 16  ;;  %v1094_v20 = vshll.u32 %v948_v14, 16 }
  0x31   : > { %798 = vmatmul.bf16.vlgmr.msra.gmra.mxu0 %v695_v31  ;;  %1220 = vmatpush.bf16.msrb.mxu2 %v1192_v35  ;;  %v1306_v0 = vunpack.c.l.b16 %v4482_v61  ;;  %v715_v8 = vsel %vm683_vm13, %v710_v58, %v714_v59  ;;  %v951_v22 = vrot.slane %v948_v14, 1  ;;  %v952_v23 = vrot.slane %v6172_v7, 1  ;;  %v5581_v29 = vld [vmem:[%s6917_s3 + $0x130] sm:$0xff] }
  0x32   : > { %1194 = vmatpush.bf16.msrb.mxu0 %v5576_v26  ;;  %v1105_v24 = vrot.slane %v1103_v16, 1  ;;  %v1108_v25 = vrot.slane %v1106_v17, 2  ;;  %v1110_v26 = vrot.slane %v6216_v36, 1  ;;  %v1093_v30 = vrot.slane %v1091_v19, 1  ;;  %v5569_v35 = vld [vmem:[%s6917_s3 + $0xcc] sm:$0xff]  ;;  %v5589_v17 = vld [vmem:[%s6917_s3 + $0x174] sm:$0xff] }
  0x33   : > { %v1315_v5 = vpack.c.b16 %v1306_v0, %v1306_v0  ;;  %v1096_v31 = vrot.slane %v1094_v20, 2  ;;  %v1086_v47 = vunpack.c.h.b16 %v1065_v37  ;;  %v957_v14 = vrot.slane %v6222_v40, 1  ;;  %v5577_v20 = vld [vmem:[%s6917_s3 + $0x110] sm:$0xff] }
  0x34   : > { %1028 = vmatpush.bf16.msrb.mxu1 %v5563_v38  ;;  %v953_v38 = vsel %vm950_vm14, %v951_v22, %v952_v23  ;;  %v6294_v42 = vor.u32 %v1111_v27, %v1110_v26  ;;  %v5600_v26 = vld [vmem:[%s6917_s3 + $0x1d0] sm:$0xff] }
  0x35   : > { %v1331_v12 = vand.u32 %v1315_v5, %v6102_v33  ;;  %v1097_v43 = vor.u32 %v1096_v31, %v1093_v30  ;;  %v6315_v0 = vpack.c.b16 %v1086_v47, %v1086_v47  ;;  %v5590_v5 = vld [vmem:[%s6917_s3 + $0x17c] sm:$0xff]  ;;  %v4584_v30 = vld [vmem:[%s6917_s3 + $0x1d8] sm:$0x3] }
  0x36   : > { %1195 = vmatpush.bf16.msrb.mxu0 %v5575_v34  ;;  %v1099_v34 = vrot.slane %v6184_v15, 2 }
  0x37   : > { %4363 = vmatmul.msk.bf16.gmra.mxu3 %vm777_vm12, %v6166_v6 }
  0x38   : > { %1029 = vmatpush.bf16.msrb.mxu1 %v5562_v44  ;;  %1359 = vmatpush.bf16.msra.mxu3 %v1331_v12  ;;  %v6296_v44 = vor.u32 %v1099_v34, %v1098_v32  ;;  %v1127_v12 = vshll.u32 %v6315_v0, 16  ;;  %v1265_v32 = vrot.slane %v6166_v6, 2 }
  0x3a   : > { %1196 = vmatpush.bf16.msrb.mxu0 %v5574_v41  ;;  %v1109_v41 = vor.u32 %v1108_v25, %v1105_v24  ;;  %v1101_v61 = vsel %vm1089_vm15, %v1097_v43, %v6296_v44  ;;  %v1129_v19 = vrot.slane %v1127_v12, 2  ;;  %v958_v24 = vsel %vm950_vm14, %v952_v23, %v957_v14  ;;  %v5588_v25 = vld [vmem:[%s6917_s3 + $0x16c] sm:$0xff] }
  0x3b   : > { %v1616_v23 = vunpack.c.l.b16 %v4584_v30  ;;  %v1409_v14 = vrot.slane %v6184_v15, 3  ;;  %v1269_v30 = vrot.slane %v6315_v0, 2 }
  0x3c   : > { %1030 = vmatpush.bf16.msrb.mxu1 %v5561_v51  ;;  %v959_v51 = vrot.slane %v6205_v28, 1  ;;  %v1113_v59 = vsel %vm1089_vm15, %v1109_v41, %v6294_v42 }
  0x3e   : > { %1197 = vmatpush.bf16.msrb.mxu0 %v5573_v48  ;;  %v1085_v48 = vunpack.c.l.b16 %v1065_v37  ;;  %v960_v4 = vsel %vm950_vm14, %v955_v3, %v959_v51  ;;  %v5599_v37 = vld [vmem:[%s6917_s3 + $0x1c8] sm:$0xff] }
  0x3f   : > { %4329 = vmatmul.msk.bf16.gmra.mxu1 %vm777_vm12, %v723_v49  ;;  %v4533_v49 = vld [vmem:[%s6917_s3 + $0x194] sm:$0x3] }
  0x40   : > { %1333 = vmatpush.bf16.msra.mxu1 %v5584_v54  ;;  %901 = vmatmul.bf16.gmra.mxu2 %v6172_v7  ;;  %v1477_v50 = vunpack.c.l.b16 %v4533_v49  ;;  %v5591_v54 = vld [vmem:[%s6917_s3 + $0x184] sm:$0xff]  ;;  %v6317_v28 = vpack.c.b16 %v1085_v48, %v1085_v48  ;;  %v5586_v48 = vld [vmem:[%s6917_s3 + $0x15c] sm:$0xff] }
  0x41   : > { %803 = vmatmul.bf16.gmra.mxu0 %v715_v8  ;;  %v1236_v8 = vld [vmem:[#allocation2] sm:$0xcc] }
  0x42   : > { %1198 = vmatpush.bf16.msrb.mxu0 %v5572_v62  ;;  %v1486_v58 = vpack.c.b16 %v1477_v50, %v1477_v50  ;;  %v5579_v62 = vld [vmem:[%s6917_s3 + $0x120] sm:$0xff]  ;;  %v1115_v3 = vshrl.u32 %v6317_v28, 16  ;;  %v1257_v16 = vunpack.c.h.b16 %v1236_v8  ;;  %v1256_v34 = vunpack.c.l.b16 %v1236_v8 }
  0x43   : > { %v1421_v8 = vrot.slane %v6175_v10, 3 }
  0x44   : > { %1334 = vmatpush.bf16.msra.mxu1 %v5583_v9  ;;  %v1502_v2 = vand.u32 %v1486_v58, %v6102_v33  ;;  %v5578_v9 = vld [vmem:[%s6917_s3 + $0x118] sm:$0xff]  ;;  %v1259_v40 = vpack.c.b16 %v6134_v52, %v1257_v16  ;;  %v1258_v47 = vpack.c.b16 %v6141_v55, %v1256_v34  ;;  %v1375_v16 = vld [vmem:[#allocation2 + $0x20] sm:$0x77] }
  0x46   : > { %1199 = vmatpush.bf16.msrb.mxu0 %v5571_v11  ;;  %v1124_v11 = vshrl.u32 %v6315_v0, 16  ;;  %1530 = vmatpush.bf16.msra.mxu2 %v1502_v2  ;;  %v1264_v31 = vrot.slane %v1259_v40, 2  ;;  %v1416_v49 = vshll.u32 %v1259_v40, 16  ;;  %v1401_v50 = vshrl.u32 %v1258_v47, 16 }
  0x47   : > { %4413 = vmatmul.msk.bf16.vlgmr.msrb.gmra.mxu3 %vm777_vm12, %v956_v13  ;;  %v1118_v13 = vshll.u32 %v6317_v28, 16  ;;  %v1404_v51 = vshll.u32 %v1258_v47, 16  ;;  %v1261_v58 = vrot.slane %v1258_v47, 2  ;;  %v1546_v47 = vld [vmem:[#allocation2] sm:$0x88] }
  0x48   : > { %1335 = vmatpush.bf16.msra.mxu1 %v5582_v18  ;;  %v1126_v18 = vrot.slane %v1124_v11, 1  ;;  %v6400_v11 = vld [vmem:[%s6917_s3 + $0x250] sm:$0xff]  ;;  %v1403_v12 = vrot.slane %v1401_v50, 2  ;;  %v6467_v50 = vld [vmem:[%s6917_s3 + $0x238] sm:$0xff] }
  0x49   : > { %v1120_v22 = vrot.slane %v1118_v13, 2  ;;  %v1408_v13 = vrot.slane %v6234_v46, 2 }
  0x4a   : > { %1200 = vmatpush.bf16.msrb.mxu0 %v5570_v21  ;;  %v1117_v21 = vrot.slane %v1115_v3, 1  ;;  %v1130_v27 = vor.u32 %v1129_v19, %v1126_v18  ;;  %v1406_v3 = vrot.slane %v1404_v51, 3  ;;  %v5596_v18 = vld [vmem:[%s6917_s3 + $0x1b0] sm:$0xff]  ;;  %v1267_v51 = vrot.slane %v6317_v28, 2 }
  0x4b   : > { %v6480_v28 = vld [vmem:[%s6917_s3 + $0x230] sm:$0xff] }
  0x4c   : > { %1336 = vmatpush.bf16.msra.mxu1 %v5581_v29  ;;  %v1121_v29 = vor.u32 %v1120_v22, %v1117_v21  ;;  %v5607_v21 = vld [vmem:[%s6917_s3 + $0x20c] sm:$0xff]  ;;  %v1407_v22 = vor.u32 %v1406_v3, %v1403_v12 }
  0x4e   : > { %1201 = vmatpush.bf16.msrb.mxu0 %v5569_v35  ;;  %v5587_v35 = vld [vmem:[%s6917_s3 + $0x164] sm:$0xff]  ;;  %v1122_v41 = vsel %vm1089_vm15, %v6296_v44, %v1121_v29  ;;  %v1413_v44 = vshrl.u32 %v1259_v40, 16  ;;  %v1396_v40 = vunpack.c.h.b16 %v1375_v16 }
  0x4f   : > { %1031 = vmatmul.bf16.vlgmr.msrb.gmra.mxu1 %v953_v38  ;;  %v1625_v38 = vpack.c.b16 %v1616_v23, %v1616_v23  ;;  %v5595_v23 = vld [vmem:[%s6917_s3 + $0x1a8] sm:$0xff] }
  0x50   : > { %1337 = vmatpush.bf16.msra.mxu1 %v5580_v45  ;;  %4464 = vmatmul.msk.bf16.vlgmr.msrb.gmra.mxu2 %vm777_vm12, %v1113_v59  ;;  %v1266_v45 = vsel %vm1260_vm0, %v1264_v31, %v1265_v32  ;;  %v1262_v59 = vrot.slane %v6172_v7, 2  ;;  %v1415_v2 = vrot.slane %v1413_v44, 2  ;;  %v6438_v0 = vpack.c.b16 %v1396_v40, %v1396_v40  ;;  %v5605_v44 = vld [vmem:[%s6917_s3 + $0x1fc] sm:$0xff] }
  0x51   : > { %1202 = vmatmul.bf16.vlgmr.msrb.gmra.mxu0 %v1101_v61  ;;  %v1641_v43 = vand.u32 %v1625_v38, %v6102_v33  ;;  %v5585_v61 = vld [vmem:[%s6917_s3 + $0x154] sm:$0xff]  ;;  %v5601_v40 = vld [vmem:[%s6917_s3 + $0x1dc] sm:$0xff] }
  0x52   : > { %1504 = vmatpush.bf16.msra.mxu0 %v5592_v39  ;;  %v1131_v39 = vsel %vm1089_vm15, %v6294_v42, %v1130_v27  ;;  %v5598_v42 = vld [vmem:[%s6917_s3 + $0x1c0] sm:$0xff]  ;;  %v6424_v27 = vld [vmem:[%s6917_s3 + $0x248] sm:$0xff] }
  0x53   : > { %1669 = vmatpush.bf16.msrb.mxu3 %v1641_v43  ;;  %v1270_v43 = vsel %vm1260_vm0, %v1265_v32, %v1269_v30  ;;  %v1572_v30 = vrot.slane %v6172_v7, 3 }
  0x54   : > { %1338 = vmatpush.bf16.msra.mxu1 %v5579_v62  ;;  %v5597_v62 = vld [vmem:[%s6917_s3 + $0x1b8] sm:$0xff] }
  0x56   : > { %1505 = vmatpush.bf16.msra.mxu0 %v5591_v54  ;;  %v6382_v54 = vld [vmem:[%s6917_s3 + $0x258] sm:$0xff] }
  0x57   : > { %4414 = vmatmul.msk.bf16.gmra.mxu3 %vm777_vm12, %v960_v4  ;;  %v1418_v4 = vrot.slane %v1416_v49, 3 }
  0x58   : > { %1339 = vmatpush.bf16.msra.mxu1 %v5578_v9  ;;  %v5608_v9 = vld [vmem:[%s6917_s3 + $0x214] sm:$0xff] }
  0x59   : > { %v1419_v19 = vor.u32 %v1418_v4, %v1415_v2 }
  0x5a   : > { %1506 = vmatpush.bf16.msra.mxu0 %v5590_v5  ;;  %v1420_v5 = vrot.slane %v6216_v36, 2 }
  0x5c   : > { %1340 = vmatpush.bf16.msra.mxu1 %v5577_v20  ;;  %v6410_v20 = vor.u32 %v1421_v8, %v1420_v5  ;;  %v5604_v8 = vld [vmem:[%s6917_s3 + $0x1f4] sm:$0xff] }
  0x5e   : > { %1507 = vmatpush.bf16.msra.mxu0 %v5589_v17  ;;  %v1263_v17 = vsel %vm1260_vm0, %v1261_v58, %v1262_v59  ;;  %v1423_v34 = vsel %vm1399_vm1, %v1419_v19, %v6410_v20  ;;  %v1567_v58 = vunpack.c.h.b16 %v1546_v47 }
  0x5f   : > { %1036 = vmatmul.bf16.gmra.mxu1 %v958_v24  ;;  %v6416_v24 = vor.u32 %v1409_v14, %v1408_v13  ;;  %v5603_v14 = vld [vmem:[%s6917_s3 + $0x1ec] sm:$0xff] }
  0x60   : > { %1643 = vmatpush.bf16.msrb.mxu1 %v5600_v26  ;;  %4465 = vmatmul.msk.bf16.gmra.mxu2 %vm777_vm12, %v1131_v39  ;;  %v4635_v26 = vld [vmem:[%s6917_s3 + $0x21c] sm:$0x3]  ;;  %v6445_v39 = vld [vmem:[%s6917_s3 + $0x240] sm:$0xff]  ;;  %v1569_v12 = vpack.c.b16 %v6134_v52, %v1567_v58 }
  0x61   : > { %1207 = vmatmul.bf16.gmra.mxu0 %v1122_v41  ;;  %v1787_v29 = vunpack.c.l.b16 %v4635_v26 }
  0x62   : > { %1508 = vmatpush.bf16.msra.mxu0 %v5588_v25  ;;  %v1395_v25 = vunpack.c.l.b16 %v1375_v16  ;;  %v6494_v16 = vld [vmem:[%s6917_s3 + $0x228] sm:$0xff] }
  0x63   : > { %v1796_v31 = vpack.c.b16 %v1787_v29, %v1787_v29 }
  0x64   : > { %1644 = vmatpush.bf16.msrb.mxu1 %v5599_v37  ;;  %v5606_v37 = vld [vmem:[%s6917_s3 + $0x204] sm:$0xff]  ;;  %v6440_v38 = vpack.c.b16 %v1395_v25, %v1395_v25 }
  0x65   : > { %v1812_v41 = vand.u32 %v1796_v31, %v6102_v33 }
  0x66   : > { %1509 = vmatpush.bf16.msra.mxu0 %v5587_v35  ;;  %v1411_v35 = vsel %vm1399_vm1, %v1407_v22, %v6416_v24  ;;  %v1425_v32 = vshrl.u32 %v6440_v38, 16  ;;  %v1428_v49 = vshll.u32 %v6440_v38, 16 }
  0x67   : > { %4515 = vmatmul.msk.bf16.vlgmr.msra.gmra.mxu3 %vm777_vm12, %v1266_v45  ;;  %v5594_v45 = vld [vmem:[%s6917_s3 + $0x1a0] sm:$0xff]  ;;  %1840 = vmatpush.bf16.msrb.mxu2 %v1812_v41 }
  0x68   : > { %1645 = vmatpush.bf16.msrb.mxu1 %v5598_v42  ;;  %5811 = vmatpush.bf16.msra.mxu3 %v6382_v54  ;;  %v1437_v42 = vshll.u32 %v6438_v0, 16  ;;  %v1427_v4 = vrot.slane %v1425_v32, 2  ;;  %v1430_v5 = vrot.slane %v1428_v49, 3 }
  0x6a   : > { %1510 = vmatpush.bf16.msra.mxu0 %v5586_v48  ;;  %v1434_v48 = vshrl.u32 %v6438_v0, 16  ;;  %v1439_v2 = vrot.slane %v1437_v42, 3  ;;  %v1431_v13 = vor.u32 %v1430_v5, %v1427_v4 }
  0x6c   : > { %1646 = vmatpush.bf16.msrb.mxu1 %v5597_v62  ;;  %5812 = vmatpush.bf16.msra.mxu3 %v6400_v11  ;;  %v1436_v62 = vrot.slane %v1434_v48, 2  ;;  %v1432_v19 = vsel %vm1399_vm1, %v6416_v24, %v1431_v13  ;;  %v1726_v24 = vshll.u32 %v1569_v12, 16 }
  0x6e   : > { %1511 = vmatpush.bf16.msra.mxu0 %v5585_v61  ;;  %v5593_v61 = vld [vmem:[%s6917_s3 + $0x198] sm:$0xff]  ;;  %v1440_v3 = vor.u32 %v1439_v2, %v1436_v62  ;;  %v1728_v31 = vrot.slane %v1726_v24, 4 }
  0x6f   : > { %1341 = vmatmul.bf16.vlgmr.msra.gmra.mxu1 %v1263_v17  ;;  %v1575_v17 = vrot.slane %v6166_v6, 3  ;;  %v6509_v6 = vld [vmem:[%s6917_s3 + $0x220] sm:$0xff] }
  0x70   : > { %1647 = vmatpush.bf16.msrb.mxu1 %v5596_v18  ;;  %5813 = vmatpush.bf16.msra.mxu3 %v6424_v27  ;;  %v1566_v18 = vunpack.c.l.b16 %v1546_v47  ;;  %v1685_v47 = vld [vmem:[#allocation2 + $0x20] sm:$0xff] }
  0x71   : > { %4566 = vmatmul.msk.bf16.vlgmr.msra.gmra.mxu2 %vm777_vm12, %v1423_v34  ;;  %1512 = vmatmul.bf16.vlgmr.msra.gmra.mxu0 %v1411_v35  ;;  %v1730_v34 = vrot.slane %v6216_v36, 3  ;;  %v1731_v35 = vrot.slane %v6175_v10, 4  ;;  %v1705_v32 = vunpack.c.l.b16 %v1685_v47  ;;  %v1706_v36 = vunpack.c.h.b16 %v1685_v47  ;;  %v4686_v10 = vld [vmem:[%s6917_s3 + $0x260] sm:$0x3] }
  0x72   : > { %1814 = vmatpush.bf16.msrb.mxu0 %v5608_v9  ;;  %v1268_v9 = vsel %vm1260_vm0, %v1262_v59, %v1267_v51  ;;  %v1574_v59 = vrot.slane %v1569_v12, 3  ;;  %v1568_v22 = vpack.c.b16 %v6141_v55, %v1566_v18  ;;  %v1874_v18 = vpack.c.b16 %v671_v57, %v6141_v55 }
  0x73   : > { %v1732_v7 = vor.u32 %v1731_v35, %v1730_v34  ;;  %v1708_v58 = vpack.c.b16 %v1706_v36, %v1706_v36 }
  0x74   : > { %1648 = vmatpush.bf16.msrb.mxu1 %v5595_v23  ;;  %5814 = vmatpush.bf16.msra.mxu3 %v6445_v39  ;;  %v1711_v25 = vshrl.u32 %v1568_v22, 16  ;;  %v1714_v26 = vshll.u32 %v1568_v22, 16  ;;  %v1571_v29 = vrot.slane %v1568_v22, 3 }
  0x75   : > { %v1744_v4 = vshrl.u32 %v1708_v58, 16 }
  0x76   : > { %1815 = vmatpush.bf16.msrb.mxu0 %v5607_v21  ;;  %v5602_v21 = vld [vmem:[%s6917_s3 + $0x1e4] sm:$0xff]  ;;  %v1716_v41 = vrot.slane %v1714_v26, 4 }
  0x77   : > { %4516 = vmatmul.msk.bf16.gmra.mxu3 %vm777_vm12, %v1270_v43  ;;  %v1718_v43 = vrot.slane %v6234_v46, 3  ;;  %v1913_v46 = vunpack.c.l.b16 %v4686_v10 }
  0x78   : > { %1649 = vmatpush.bf16.msrb.mxu1 %v5594_v45  ;;  %5815 = vmatpush.bf16.msra.mxu3 %v6467_v50  ;;  %v1719_v45 = vrot.slane %v6184_v15, 4  ;;  %v1579_v15 = vrot.slane %v6438_v0, 3  ;;  %v1747_v0 = vshll.u32 %v1708_v58, 16 }
  0x7a   : > { %1816 = vmatpush.bf16.msrb.mxu0 %v5606_v37  ;;  %v1713_v37 = vrot.slane %v1711_v25, 3  ;;  %v1580_v2 = vsel %vm1570_vm2, %v1575_v17, %v1579_v15  ;;  %v1877_v25 = vpack.c.b16 %v1706_v36, %v674_v63 }
  0x7c   : > { %1650 = vmatpush.bf16.msrb.mxu1 %v5593_v61  ;;  %5816 = vmatpush.bf16.msra.mxu3 %v6480_v28  ;;  %v1717_v42 = vor.u32 %v1716_v41, %v1713_v37  ;;  %v1707_v61 = vpack.c.b16 %v1705_v32, %v1705_v32 }
  0x7e   : > { %1817 = vmatpush.bf16.msrb.mxu0 %v5605_v44  ;;  %v1720_v44 = vor.u32 %v1719_v45, %v1718_v43  ;;  %v1735_v5 = vshrl.u32 %v1707_v61, 16 }
  0x7f   : > { %1346 = vmatmul.bf16.gmra.mxu1 %v1268_v9  ;;  %v1746_v9 = vrot.slane %v1744_v4, 3 }
  0x80   : > { %1940 = vmatpush.bf16.msra.mxu1 %v6382_v54  ;;  %v1441_v54 = vsel %vm1399_vm1, %v6410_v20, %v1440_v3  ;;  %5817 = vmatpush.bf16.msra.mxu3 %v6494_v16  ;;  %v1723_v20 = vshrl.u32 %v1569_v12, 16  ;;  %v1721_v51 = vsel %vm1709_vm3, %v1717_v42, %v1720_v44  ;;  %v1737_v12 = vrot.slane %v1735_v5, 3 }
  0x81   : > { %4567 = vmatmul.msk.bf16.gmra.mxu2 %vm777_vm12, %v1441_v54  ;;  %1517 = vmatmul.bf16.gmra.mxu0 %v1432_v19 }
  0x82   : > { %1818 = vmatpush.bf16.msrb.mxu0 %v5604_v8  ;;  %v1725_v23 = vrot.slane %v1723_v20, 3  ;;  %v1577_v8 = vrot.slane %v6440_v38, 3  ;;  %v1876_v38 = vpack.c.b16 %v1705_v32, %v673_v1 }
  0x84   : > { %1941 = vmatpush.bf16.msra.mxu1 %v6400_v11  ;;  %v1576_v11 = vsel %vm1570_vm2, %v1574_v59, %v1575_v17  ;;  %5818 = vmatpush.bf16.msra.mxu3 %v6509_v6  ;;  %v1729_v48 = vor.u32 %v1728_v31, %v1725_v23 }
  0x86   : > { %1819 = vmatpush.bf16.msrb.mxu0 %v5603_v14  ;;  %v1733_v49 = vsel %vm1709_vm3, %v1729_v48, %v1732_v7 }
  0x87   : > { %4617 = vmatmul.msk.bf16.vlgmr.msrb.gmra.mxu3 %vm777_vm12, %v1576_v11 }
  0x88   : > { %1942 = vmatpush.bf16.msra.mxu1 %v6424_v27  ;;  %v1573_v27 = vsel %vm1570_vm2, %v1571_v29, %v1572_v30 }
  0x8a   : > { %1820 = vmatpush.bf16.msrb.mxu0 %v5602_v21 }
  0x8c   : > { %1943 = vmatpush.bf16.msra.mxu1 %v6445_v39  ;;  %v1922_v39 = vpack.c.b16 %v1913_v46, %v1913_v46 }
  0x8e   : > { %1821 = vmatpush.bf16.msrb.mxu0 %v5601_v40  ;;  %v1938_v62 = vand.u32 %v1922_v39, %v6102_v33  ;;  %v1749_v33 = vrot.slane %v1747_v0, 4 }
  0x8f   : > { %1651 = vmatmul.bf16.vlgmr.msrb.gmra.mxu1 %v1573_v27 }
  0x90   : > { %1944 = vmatpush.bf16.msra.mxu1 %v6467_v50  ;;  %v1738_v50 = vshll.u32 %v1707_v61, 16  ;;  %1966 = vmatpush.bf16.msrb.mxu3 %v1938_v62  ;;  %v1750_v13 = vor.u32 %v1749_v33, %v1746_v9 }
  0x91   : > { %4668 = vmatmul.msk.bf16.vlgmr.msrb.gmra.mxu2 %vm777_vm12, %v1733_v49  ;;  %1822 = vmatmul.bf16.vlgmr.msrb.gmra.mxu0 %v1721_v51 }
  0x92   : > { %v1740_v3 = vrot.slane %v1738_v50, 4  ;;  %v1751_v59 = vsel %vm1709_vm3, %v1732_v7, %v1750_v13 }
  0x94   : > { %1945 = vmatpush.bf16.msra.mxu1 %v6480_v28  ;;  %v1578_v28 = vsel %vm1570_vm2, %v1572_v30, %v1577_v8  ;;  %v1741_v14 = vor.u32 %v1740_v3, %v1737_v12 }
  0x96   : > { %v1742_v17 = vsel %vm1709_vm3, %v1720_v44, %v1741_v14 }
  0x97   : > { %4618 = vmatmul.msk.bf16.gmra.mxu3 %vm777_vm12, %v1580_v2 }
  0x98   : > { %1946 = vmatpush.bf16.msra.mxu1 %v6494_v16 }
  0x9c   : > { %1947 = vmatpush.bf16.msra.mxu1 %v6509_v6  ;;  %v1875_v6 = vpack.c.b16 %v672_v56, %v6134_v52 }
  0x9f   : > { %1656 = vmatmul.bf16.gmra.mxu1 %v1578_v28 }
  0xa1   : > { %4669 = vmatmul.msk.bf16.gmra.mxu2 %vm777_vm12, %v1751_v59  ;;  %1827 = vmatmul.bf16.gmra.mxu0 %v1742_v17 }
  0xa7   : > { %1953 = vmatmul.bf16.vlgmr.msra.gmra.mxu3 %v1876_v38 }
  0xaa   : > { %v916_v16 = vpop.f32.mrf.mxu3 }
  0xac   : > { %v818_v54 = vpop.f32.mrf.mxu1 }
  0xae   : > { %v799_v21 = vpop.f32.mrf.mxu0 }
  0xaf   : > { %1948 = vmatmul.bf16.vlgmr.msra.gmra.mxu1 %v1874_v18 }
  0xb2   : > { %v6551_v19 = vpop.f32.mrf.mxu3 }
  0xb3   : > { %v897_v1 = vpop.f32.mrf.mxu2 }
  0xb4   : > { %v6556_v11 = vpop.f32.mrf.mxu1 }
  0xb6   : > { %v6559_v20 = vpop.f32.mrf.mxu0 }
  0xb7   : > { %4719 = vmatmul.msk.bf16.vlgmr.msrb.gmra.mxu3 %vm777_vm12, %v1875_v6 }
  0xba   : > { %v921_v22 = vpop.f32.mrf.mxu3 }
  0xbb   : > { %v6561_v40 = vpop.f32.mrf.mxu2 }
  0xbc   : > { %v823_v24 = vpop.f32.mrf.mxu1 }
  0xbe   : > { %v804_v57 = vpop.f32.mrf.mxu0 }
  0xbf   : > { %v824_v26 = vadd.f32 %v823_v24, %v804_v57 }
  0xc2   : > { %v923_v55 = vpop.f32.mrf.mxu3 }
  0xc3   : > { %v902_v52 = vpop.f32.mrf.mxu2 }
  0xc4   : > { %v825_v29 = vpop.f32.mrf.mxu1  ;;  %v903_v53 = vadd.f32 %v902_v52, %v824_v26 }
  0xc6   : > { %v806_v30 = vpop.f32.mrf.mxu0  ;;  %v922_v23 = vadd.f32 %v921_v22, %v903_v53 }
  0xc7   : > { %4720 = vmatmul.msk.bf16.gmra.mxu3 %vm777_vm12, %v1877_v25 }
  0xca   : > { %v1051_v56 = vpop.f32.mrf.mxu3 }
  0xcb   : > { %v904_v34 = vpop.f32.mrf.mxu2  ;;  %v821_v56 = vadd.f32 %v6556_v11, %v6559_v20  ;;  %v5945_v20 = vmov 0.0|0.0  }
  0xcc   : > { %v1032_v31 = vpop.f32.mrf.mxu1  ;;  %v5620_v34 = vld [vmem:[%s6920_s6 + $0x18] sm:$0xff]  ;;  %2061 = vst.msk [vmem:[#allocation3] sm:$0xf] %vm2060_vm4, %v5945_v20 }
  0xcd   : > { %v900_v31 = vadd.f32 %v6561_v40, %v821_v56  ;;  %2195 = vmatpush.bf16.msra.mxu2 %v5620_v34  ;;  %2064 = vst.msk [vmem:[#allocation3 + $0xc] sm:$0xf] %vm2060_vm4, %v5945_v20 }
  0xce   : > { %v1203_v37 = vpop.f32.mrf.mxu0 }
  0xd2   : > { %v1053_v35 = vpop.f32.mrf.mxu3 }
  0xd3   : > { %v1222_v43 = vpop.f32.mrf.mxu2 }
  0xd4   : > { %v1034_v41 = vpop.f32.mrf.mxu1  ;;  %v919_v43 = vadd.f32 %v6551_v19, %v900_v31  ;;  %v5618_v19 = vld [vmem:[%s6920_s6 + $0x8] sm:$0xff]  ;;  %v2276_v20 = vld [vmem:[#allocation3 + $0xc] sm:$0x3] }
  0xd5   : > { %v1054_v37 = vadd.f32 %v1053_v35, %v1034_v41  ;;  %v2209_v31 = vld [vmem:[#allocation3] sm:$0xe] }
  0xd6   : > { %v1205_v47 = vpop.f32.mrf.mxu0 }
  0xda   : > { %v1056_v45 = vpop.f32.mrf.mxu3 }
  0xdb   : > { %v1224_v48 = vpop.f32.mrf.mxu2 }
  0xdc   : > { %v1037_v27 = vpop.f32.mrf.mxu1 }
  0xdd   : > { %v1057_v60 = vadd.f32 %v1056_v45, %v1037_v27  ;;  %v1225_v45 = vadd.f32 %v1224_v48, %v1205_v47  ;;  %v5619_v27 = vld [vmem:[%s6920_s6 + $0x10] sm:$0xff] }
  0xde   : > { %v1208_v42 = vpop.f32.mrf.mxu0  ;;  %2196 = vmatpush.bf16.msra.mxu2 %v5619_v27  ;;  %v5644_v27 = vld [vmem:[%s6920_s6 + $0xd8] sm:$0xff] }
  0xdf   : > { %v1063_v63 = vadd.f32 %v1057_v60, %v922_v23  ;;  %v1062_v60 = vadd.f32 %v1054_v37, %v919_v43 }
  0xe1   : > { %v1233_v40 = vadd.f32 %v1225_v45, %v1062_v60  ;;  %v2220_v45 = vunpack.c.l.b16 %v2209_v31 }
  0xe2   : > { %v1058_v7 = vpop.f32.mrf.mxu3  ;;  %2197 = vmatpush.bf16.msra.mxu2 %v5618_v19  ;;  %v5648_v19 = vld [vmem:[%s6920_s6 + $0xf8] sm:$0xff] }
  0xe3   : > { %v1227_v32 = vpop.f32.mrf.mxu2 }
  0xe4   : > { %v1039_v44 = vpop.f32.mrf.mxu1  ;;  %v1228_v36 = vadd.f32 %v1227_v32, %v1208_v42  ;;  %v5617_v42 = vld [vmem:[%s6920_s6] sm:$0xff] }
  0xe6   : > { %v1210_v46 = vpop.f32.mrf.mxu0  ;;  %v1234_v15 = vadd.f32 %v1228_v36, %v1063_v63  ;;  %2198 = vmatpush.bf16.msra.mxu2 %v5617_v42 }
  0xea   : > { %v1361_v10 = vpop.f32.mrf.mxu3 }
  0xeb   : > { %v1229_v49 = vpop.f32.mrf.mxu2  ;;  %v5628_v10 = vld [vmem:[%s6920_s6 + $0x58] sm:$0xff] }
  0xec   : > { %v1342_v39 = vpop.f32.mrf.mxu1  ;;  %2259 = vmatpush.bf16.msrb.mxu1 %v5628_v10  ;;  %v5624_v49 = vld [vmem:[%s6920_s6 + $0x38] sm:$0xff] }
  0xed   : > { %v5861_v39 = vld [vmem:[%s6918_s4] ss:$0 sm:$0xff]  ;;  %2147 = vmatpush.bf16.msra.mxu0 %v5624_v49 }
  0xee   : > { %v1513_v58 = vpop.f32.mrf.mxu0 }
  0xf2   : > { %v1363_v51 = vpop.f32.mrf.mxu3 }
  0xf4   : > { %v1344_v61 = vpop.f32.mrf.mxu1  ;;  %v1532_v62 = vpop.f32.mrf.mxu2 }
  0xf5   : > { %v1364_v63 = vadd.f32 %v1363_v51, %v1344_v61  ;;  %v5862_v61 = vld [vmem:[%s6919_s5] ss:$0 sm:$0xff]  ;;  %v5627_v62 = vld [vmem:[%s6920_s6 + $0x50] sm:$0xff] }
  0xf6   : > { %v1515_v4 = vpop.f32.mrf.mxu0  ;;  %2260 = vmatpush.bf16.msrb.mxu1 %v5627_v62 }
  0xf7   : > { %v1372_v35 = vadd.f32 %v1364_v63, %v1233_v40  ;;  %v5636_v63 = vld [vmem:[%s6920_s6 + $0x98] sm:$0xff] }
  0xfa   : > { %v1366_v2 = vpop.f32.mrf.mxu3 }
  0xfc   : > { %v1347_v0 = vpop.f32.mrf.mxu1  ;;  %v1534_v8 = vpop.f32.mrf.mxu2 }
  0xfd   : > { %v1367_v5 = vadd.f32 %v1366_v2, %v1347_v0  ;;  %v1535_v7 = vadd.f32 %v1534_v8, %v1515_v4  ;;  %v5632_v2 = vld [vmem:[%s6920_s6 + $0x78] sm:$0xff]  ;;  %v5623_v4 = vld [vmem:[%s6920_s6 + $0x30] sm:$0xff]  ;;  %v5626_v8 = vld [vmem:[%s6920_s6 + $0x48] sm:$0xff] }
  0xfe   : > { %v1518_v33 = vpop.f32.mrf.mxu0  ;;  %2340 = vmatpush.bf16.msra.mxu3 %v5632_v2  ;;  %2148 = vmatpush.bf16.msra.mxu0 %v5623_v4  ;;  %v2357_v4 = vld [vmem:[#allocation3] sm:$0xc] }
  0xff   : > { %v1373_v50 = vadd.f32 %v1367_v5, %v1234_v15  ;;  %v1543_v47 = vadd.f32 %v1535_v7, %v1372_v35  ;;  %2261 = vmatpush.bf16.msrb.mxu1 %v5626_v8  ;;  %v5643_v7 = vld [vmem:[%s6920_s6 + $0xd0] sm:$0xff] }
 0x100   : > { %v5635_v35 = vld [vmem:[%s6920_s6 + $0x90] sm:$0xff] }
 0x102   : > { %v1368_v9 = vpop.f32.mrf.mxu3 }
 0x104   : > { %v1349_v12 = vpop.f32.mrf.mxu1  ;;  %v1537_v3 = vpop.f32.mrf.mxu2 }
 0x105   : > { %v1538_v28 = vadd.f32 %v1537_v3, %v1518_v33  ;;  %v5622_v3 = vld [vmem:[%s6920_s6 + $0x28] sm:$0xff] }
 0x106   : > { %v1520_v14 = vpop.f32.mrf.mxu0  ;;  %2149 = vmatpush.bf16.msra.mxu0 %v5622_v3 }
 0x107   : > { %v6566_v59 = vadd.f32 %v1538_v28, %v1373_v50  ;;  %v5631_v50 = vld [vmem:[%s6920_s6 + $0x70] sm:$0xff] }
 0x108   : > { %2341 = vmatpush.bf16.msra.mxu3 %v5631_v50 }
 0x10a   : > { %v1671_v13 = vpop.f32.mrf.mxu3 }
 0x10c   : > { %v1652_v17 = vpop.f32.mrf.mxu1  ;;  %v1539_v38 = vpop.f32.mrf.mxu2 }
 0x10d   : > { %v5630_v17 = vld [vmem:[%s6920_s6 + $0x68] sm:$0xff] }
 0x10e   : > { %v1823_v18 = vpop.f32.mrf.mxu0  ;;  %2342 = vmatpush.bf16.msra.mxu3 %v5630_v17 }
 0x10f   : > { %v5621_v18 = vld [vmem:[%s6920_s6 + $0x20] sm:$0xff] }
 0x110   : > { %2150 = vmatpush.bf16.msra.mxu0 %v5621_v18 }
 0x112   : > { %v1673_v16 = vpop.f32.mrf.mxu3 }
 0x114   : > { %v1654_v54 = vpop.f32.mrf.mxu1  ;;  %v1842_v21 = vpop.f32.mrf.mxu2  ;;  %2407 = vmatpush.bf16.msrb.mxu0 %v5636_v63 }
 0x115   : > { %v1674_v41 = vadd.f32 %v1673_v16, %v1654_v54 }
 0x116   : > { %v1825_v1 = vpop.f32.mrf.mxu0 }
 0x117   : > { %v1682_v32 = vadd.f32 %v1674_v41, %v1543_v47  ;;  %v5642_v47 = vld [vmem:[%s6920_s6 + $0xc8] sm:$0xff] }
 0x118   : > { %2408 = vmatpush.bf16.msrb.mxu0 %v5635_v35 }
 0x11a   : > { %v1676_v6 = vpop.f32.mrf.mxu3 }
 0x11c   : > { %v1657_v22 = vpop.f32.mrf.mxu1  ;;  %v1844_v24 = vpop.f32.mrf.mxu2 }
 0x11d   : > { %v1845_v48 = vadd.f32 %v1844_v24, %v1825_v1  ;;  %v1677_v51 = vadd.f32 %v1676_v6, %v1657_v22  ;;  %v5629_v1 = vld [vmem:[%s6920_s6 + $0x60] sm:$0xff]  ;;  %v5640_v24 = vld [vmem:[%s6920_s6 + $0xb8] sm:$0xff] }
 0x11e   : > { %v1828_v57 = vpop.f32.mrf.mxu0  ;;  %2343 = vmatpush.bf16.msra.mxu3 %v5629_v1  ;;  %2488 = vmatpush.bf16.msrb.mxu2 %v5640_v24 }
 0x11f   : > { %v1853_v46 = vadd.f32 %v1845_v48, %v1682_v32  ;;  %v1683_v9 = vadd.f32 %v1677_v51, %v6566_v59  ;;  %v5625_v59 = vld [vmem:[%s6920_s6 + $0x40] sm:$0xff]  ;;  %v5647_v48 = vld [vmem:[%s6920_s6 + $0xf0] sm:$0xff] }
 0x120   : > { %2262 = vmatpush.bf16.msrb.mxu1 %v5625_v59  ;;  %v5641_v51 = vld [vmem:[%s6920_s6 + $0xc0] sm:$0xff]  ;;  %v2368_v59 = vunpack.c.l.b16 %v2357_v4 }
 0x122   : > { %v1678_v55 = vpop.f32.mrf.mxu3  ;;  %2636 = vmatpush.bf16.msrb.mxu3 %v5648_v19 }
 0x124   : > { %v1659_v25 = vpop.f32.mrf.mxu1  ;;  %v1847_v26 = vpop.f32.mrf.mxu2  ;;  %2555 = vmatpush.bf16.msra.mxu1 %v5644_v27 }
 0x125   : > { %v1848_v0 = vadd.f32 %v1847_v26, %v1828_v57  ;;  %v5639_v26 = vld [vmem:[%s6920_s6 + $0xb0] sm:$0xff] }
 0x126   : > { %v1830_v52 = vpop.f32.mrf.mxu0  ;;  %2489 = vmatpush.bf16.msrb.mxu2 %v5639_v26  ;;  %2637 = vmatpush.bf16.msrb.mxu3 %v5647_v48 }
 0x127   : > { %v1854_v28 = vadd.f32 %v1848_v0, %v1683_v9  ;;  %v5633_v9 = vld [vmem:[%s6920_s6 + $0x80] sm:$0xff] }
 0x128   : > { %2556 = vmatpush.bf16.msra.mxu1 %v5643_v7 }
 0x12a   : > { %v1954_v29 = vpop.f32.mrf.mxu3 }
 0x12c   : > { %v1949_v53 = vpop.f32.mrf.mxu1  ;;  %v1849_v30 = vpop.f32.mrf.mxu2  ;;  %2557 = vmatpush.bf16.msra.mxu1 %v5642_v47 }
 0x12d   : > { %v5638_v53 = vld [vmem:[%s6920_s6 + $0xa8] sm:$0xff]  ;;  %v5637_v30 = vld [vmem:[%s6920_s6 + $0xa0] sm:$0xff] }
 0x12e   : > { %2490 = vmatpush.bf16.msrb.mxu2 %v5638_v53 }
 0x130   : > { %2558 = vmatpush.bf16.msra.mxu1 %v5641_v51 }
 0x132   : > { %v1956_v23 = vpop.f32.mrf.mxu3  ;;  %2491 = vmatpush.bf16.msrb.mxu2 %v5637_v30 }
 0x134   : > { %v1951_v44 = vpop.f32.mrf.mxu1 }
 0x13a   : > { %v1968_v11 = vpop.f32.mrf.mxu3 }
 0x13b   : > { %v2077_v11 = vld [vmem:[#allocation3 + $0xc] sm:$0x1] }
 0x13c   : > { %v2094_v42 = vunpack.c.l.b16 %v2077_v11 }
 0x142   : > { %v1970_v36 = vpop.f32.mrf.mxu3 }
 0x143   : > { %v1971_v15 = vadd.f32 %v1970_v36, %v1951_v44  ;;  %v2287_v44 = vunpack.c.l.b16 %v2276_v20  ;;  %v5652_v20 = vld [vmem:[%s6920_s6 + $0x118] sm:$0xff] }
 0x145   : > { %v1979_v58 = vadd.f32 %v1971_v15, %v1853_v46  ;;  %v2424_v46 = vld [vmem:[#allocation3 + $0xc] sm:$0x7]  ;;  %v5634_v15 = vld [vmem:[%s6920_s6 + $0x88] sm:$0xff] }
 0x146   : > { %v2435_v0 = vunpack.c.l.b16 %v2424_v46  ;;  %2409 = vmatpush.bf16.msrb.mxu0 %v5634_v15 }
 0x147   : > { %v1987_v5 = vmul.f32 %v5861_v39, %v1979_v58  ;;  %v5646_v58 = vld [vmem:[%s6920_s6 + $0xe8] sm:$0xff] }
 0x148   : > { %2638 = vmatpush.bf16.msrb.mxu3 %v5646_v58 }
 0x149   : > { %v1995_v33 = vadd.f32 %v5862_v61, %v1987_v5 }
 0x14a   : > { %v1973_v12 = vpop.f32.mrf.mxu3  ;;  %2410 = vmatpush.bf16.msrb.mxu0 %v5633_v9 }
 0x14b   : > { %v2003_v13 = vmin.f32 %v1995_v33, 0.0  ;;  %v1974_v14 = vadd.f32 %v1973_v12, %v1954_v29  ;;  %vm1999_vm5 = vcmp.gt.f32.partialorder %v1995_v33, 0.0 }
 0x14d   : > { %v2008_v38 = vmul.f32 1.442695, %v2003_v13  ;;  %v1980_v16 = vadd.f32 %v1974_v14, %v1854_v28 }
 0x14f   : > { %5865 = vpow2.f32 %v2008_v38  ;;  %v1988_v54 = vmul.f32 %v5861_v39, %v1980_v16 }
 0x151   : > { %v1996_v21 = vadd.f32 %v5862_v61, %v1988_v54 }
 0x152   : > { %v1975_v6 = vpop.f32.mrf.mxu3 }
 0x153   : > { %v2004_v22 = vmin.f32 %v1996_v21, 0.0  ;;  %vm2000_vm6 = vcmp.gt.f32.partialorder %v1996_v21, 0.0  ;;  %v5645_v6 = vld [vmem:[%s6920_s6 + $0xe0] sm:$0xff] }
 0x154   : > { %2639 = vmatpush.bf16.msrb.mxu3 %v5645_v6  ;;  %v5667_v6 = vld [vmem:[#allocation5 + $0x64] sm:$0xf0] }
 0x155   : > { %v5866_v55 = vpop.eup %5865  ;;  %v2010_v57 = vmul.f32 1.442695, %v2004_v22 }
 0x156   : > { %v4722_v25 = vadd.f32 -1.0, %v5866_v55 }
 0x157   : > { %5867 = vpow2.f32 %v2010_v57 }
 0x158   : > { %v2019_v29 = vsel %vm1999_vm5, %v1995_v33, %v4722_v25 }
 0x159   : > { %v2057_v52 = vpack.c.bf16 %v2019_v29, %v2019_v29 }
 0x15b   : > { %2062 = vst.msk [vmem:[#allocation3 + $0x4] sm:$0xf] %vm2060_vm4, %v2057_v52 }
 0x15d   : > { %v5868_v56 = vpop.eup %5867 }
 0x15e   : > { %v4723_v23 = vadd.f32 -1.0, %v5868_v56 }
 0x160   : > { %v2020_v34 = vsel %vm2000_vm6, %v1996_v21, %v4723_v23 }
 0x161   : > { %v2058_v37 = vpack.c.bf16 %v2020_v34, %v2020_v34 }
 0x162   : > { %v5799_v43 = vld [vmem:[#allocation3] sm:$0xff]  }
 0x163   : > { %2063 = vst.msk [vmem:[#allocation3 + $0x8] sm:$0xf] %vm2060_vm4, %v2058_v37  ;;  %v6646_v60 = vunpack.c.h.b16 %v5799_v43  ;;  %4767 = vmatmul.msk.bf16.vlgmr.msra.gmra.mxu2 %vm2136_vm7, %v5799_v43  ;;  %v2100_v41 = vshll.u32 %v5799_v43, 16  ;;  %v2098_v61 = vshrl.u32 %v5799_v43, 16  ;;  %v2505_v43 = vld [vmem:[#allocation3] sm:$0x8] }
 0x164   : > { %v2516_v11 = vunpack.c.l.b16 %v2505_v43  ;;  %v5662_v43 = vld [vmem:[#allocation5 + $0x44] sm:$0xf] }
 0x165   : > { %v2221_v40 = vpack.c.b16 %v6646_v60, %v2220_v45  ;;  %v2102_v49 = vrot.slane %v2100_v41, 1  ;;  %v2369_v55 = vpack.c.b16 %v6646_v60, %v2368_v59  ;;  %v5650_v41 = vld [vmem:[%s6920_s6 + $0x108] sm:$0xff] }
 0x166   : > { %v2517_v7 = vpack.c.b16 %v6646_v60, %v2516_v11  ;;  %v5685_v11 = vld [vmem:[#allocation5 + $0xf4] sm:$0xf0] }
 0x167   : > { %v2290_v36 = vshrl.u32 %v2221_v40, 16  ;;  %v2293_v10 = vshll.u32 %v2221_v40, 16  ;;  %v2222_v5 = vrot.slane %v2221_v40, 1  ;;  %v2103_v17 = vor.u32 %v2102_v49, %v2098_v61  ;;  %v5651_v40 = vld [vmem:[%s6920_s6 + $0x110] sm:$0xff] }
 0x168   : > { %v2438_v29 = vshrl.u32 %v2369_v55, 16  ;;  %v2441_v52 = vshll.u32 %v2369_v55, 16  ;;  %v2586_v47 = vshrl.u32 %v2517_v7, 16  ;;  %v2589_v48 = vshll.u32 %v2517_v7, 16 }
 0x169   : > { %v2292_v50 = vrot.slane %v2290_v36, 1  ;;  %v2295_v8 = vrot.slane %v2293_v10, 2  ;;  %v5649_v10 = vld [vmem:[%s6920_s6 + $0x100] sm:$0xff]  ;;  %v2518_v46 = vrot.slane %v2517_v7, 3  ;;  %v2370_v58 = vrot.slane %v2369_v55, 2 }
 0x16a   : > { %v6668_v32 = vld [vmem:[#allocation3 + $0x8] sm:$0xff]   ;;  %v2440_v30 = vrot.slane %v2438_v29, 2  ;;  %v2443_v23 = vrot.slane %v2441_v52, 3  ;;  %v2591_v49 = vrot.slane %v2589_v48, 4  ;;  %v5665_v29 = vld [vmem:[#allocation5 + $0x54] sm:$0xf0] }
 0x16b   : > { %v6674_v39 = vunpack.c.l.b16 %v6668_v32  ;;  %v2296_v22 = vor.u32 %v2295_v8, %v2292_v50  ;;  %v2583_v45 = vunpack.c.h.b16 %v6668_v32  ;;  %v2594_v19 = vshrl.u32 %v6668_v32, 16  ;;  %v5664_v52 = vld [vmem:[#allocation5 + $0x54] sm:$0xf] }
 0x16c   : > { %v2444_v34 = vor.u32 %v2443_v23, %v2440_v30  ;;  %v2597_v35 = vshll.u32 %v6668_v32, 16  ;;  %v2588_v32 = vrot.slane %v2586_v47, 3  ;;  %v5684_v7 = vld [vmem:[#allocation5 + $0xf4] sm:$0xf]  ;;  %v5661_v47 = vld [vmem:[#allocation5 + $0x34] sm:$0xf0] }
 0x16d   : > { %v2096_v62 = vpack.c.b16 %v2094_v42, %v6674_v39  ;;  %v6684_v2 = vpack.c.b16 %v2287_v44, %v6674_v39  ;;  %v2662_v33 = vpack.c.b16 %v6674_v39, %v6646_v60  ;;  %v2161_v14 = vpack.c.b16 %v6674_v39, %v6674_v39  ;;  %v5660_v48 = vld [vmem:[#allocation5 + $0x34] sm:$0xf] }
 0x16e   : > { %v6698_v21 = vpack.c.b16 %v2435_v0, %v6674_v39  ;;  %v2596_v44 = vrot.slane %v2594_v19, 3  ;;  %v2599_v36 = vrot.slane %v2597_v35, 4  ;;  %v2592_v4 = vor.u32 %v2591_v49, %v2588_v32  ;;  %v5014_v19 = vld [vmem:[#allocation5 + $0xf8] sm:$0xf0]  ;;  %v5048_v35 = vld [vmem:[#allocation5 + $0x30] sm:$0xf] }
 0x16f   : > { %v2223_v12 = vrot.slane %v2096_v62, 1  ;;  %v2105_v3 = vshll.u32 %v2096_v62, 16  ;;  %v2298_v28 = vshrl.u32 %v6684_v2, 16  ;;  %v2301_v13 = vshll.u32 %v6684_v2, 16  ;;  %v5040_v49 = vld [vmem:[#allocation5 + $0x20] sm:$0xf] }
 0x170   : > { %v2446_v25 = vshrl.u32 %v6698_v21, 16  ;;  %v2449_v26 = vshll.u32 %v6698_v21, 16  ;;  %v2109_v37 = vshrl.u32 %v2096_v62, 16  ;;  %v2519_v42 = vrot.slane %v6698_v21, 3  ;;  %v5072_v21 = vld [vmem:[#allocation5 + $0x60] sm:$0xf] }
 0x171   : > { %v2224_v38 = vsel %vm950_vm14, %v2222_v5, %v2223_v12  ;;  %v2107_v16 = vrot.slane %v2105_v3, 1  ;;  %v2300_v18 = vrot.slane %v2298_v28, 1  ;;  %v2303_v54 = vrot.slane %v2301_v13, 2  ;;  %v5080_v13 = vld [vmem:[#allocation5 + $0x70] sm:$0xf] }
 0x172   : > { %4793 = vmatmul.msk.bf16.vlgmr.msrb.gmra.mxu1 %vm2136_vm7, %v2224_v38  ;;  %v2448_v53 = vrot.slane %v2446_v25, 2  ;;  %v2451_v56 = vrot.slane %v2449_v26, 3  ;;  %v2371_v15 = vrot.slane %v6684_v2, 2  ;;  %v2520_v51 = vsel %vm1570_vm2, %v2518_v46, %v2519_v42  ;;  %v5082_v38 = vld [vmem:[#allocation5 + $0x78] sm:$0xf0] }
 0x173   : > { %4768 = vmatmul.msk.bf16.gmra.mxu2 %vm2136_vm7, %v2161_v14  ;;  %v2108_v1 = vsel %vm683_vm13, %v2103_v17, %v2107_v16  ;;  %v2304_v24 = vor.u32 %v2303_v54, %v2300_v18  ;;  %v2111_v63 = vor.u32 %v2109_v37, %v2107_v16  ;;  %v2600_v61 = vor.u32 %v2599_v36, %v2596_v44  ;;  %v5669_v14 = vld [vmem:[#allocation5 + $0x74] sm:$0xf0]  ;;  %v5668_v17 = vld [vmem:[#allocation5 + $0x74] sm:$0xf]  ;;  %v5064_v26 = vld [vmem:[#allocation5 + $0x50] sm:$0xf] }
 0x174   : > { %4749 = vmatmul.msk.bf16.vlgmr.msra.gmra.mxu0 %vm2136_vm7, %v2108_v1  ;;  %v2452_v31 = vor.u32 %v2451_v56, %v2448_v53  ;;  %v2372_v62 = vsel %vm1260_vm0, %v2370_v58, %v2371_v15  ;;  %v2663_v2 = vpack.c.b16 %v2583_v45, %v2583_v45  ;;  %v5081_v59 = vor.u32 %v5669_v14, %v5080_v13  ;;  %v5666_v1 = vld [vmem:[#allocation5 + $0x64] sm:$0xf]  ;;  %v5066_v56 = vld [vmem:[#allocation5 + $0x58] sm:$0xf0]  ;;  %v5663_v37 = vld [vmem:[#allocation5 + $0x44] sm:$0xf0] }
 0x175   : > { %v2305_v57 = vsel %vm1089_vm15, %v2296_v22, %v2304_v24  ;;  %2698 = vmatpush.bf16.msra.mxu0 %v5652_v20  ;;  %v2601_v0 = vsel %vm1709_vm3, %v2592_v4, %v2600_v61  ;;  %v5085_v54 = vor.u32 %v5668_v17, %v5082_v38  ;;  %v5073_v22 = vor.u32 %v5667_v6, %v5072_v21  ;;  %v5658_v58 = vld [vmem:[#allocation5 + $0x24] sm:$0xf]  ;;  %v5683_v4 = vld [vmem:[#allocation5 + $0xe4] sm:$0xf0]  ;;  %v5006_v14 = vld [vmem:[#allocation5 + $0xe8] sm:$0xf0] }
 0x176   : > { %4819 = vmatmul.msk.bf16.vlgmr.msra.gmra.mxu3 %vm2136_vm7, %v2305_v57  ;;  %v2453_v27 = vsel %vm1399_vm1, %v2444_v34, %v2452_v31  ;;  %v5065_v53 = vor.u32 %v5665_v29, %v5064_v26  ;;  %v5056_v34 = vld [vmem:[#allocation5 + $0x40] sm:$0xf]  ;;  %v5042_v17 = vld [vmem:[#allocation5 + $0x28] sm:$0xf0]  ;;  %v5032_v6 = vld [vmem:[#allocation5 + $0x10] sm:$0xf] }
 0x177   : > { %3028 = vmatpush.bf16.msra.mxu3 %v5081_v59  ;;  %v5057_v45 = vor.u32 %v5663_v37, %v5056_v34  ;;  %v5045_v38 = vor.u32 %v5658_v58, %v5042_v17  ;;  %v5655_v34 = vld [vmem:[#allocation5 + $0x4] sm:$0xf0]  ;;  %v5654_v37 = vld [vmem:[#allocation5 + $0x4] sm:$0xf]  ;;  %v4980_v58 = vld [vmem:[#allocation5 + $0xb0] sm:$0xf] }
 0x179   : > { %2699 = vmatpush.bf16.msra.mxu0 %v5651_v40 }
 0x17b   : > { %3029 = vmatpush.bf16.msra.mxu3 %v5073_v22  ;;  %v5656_v22 = vld [vmem:[#allocation5 + $0x14] sm:$0xf] }
 0x17d   : > { %2700 = vmatpush.bf16.msra.mxu0 %v5650_v41  ;;  %v5017_v41 = vor.u32 %v5684_v7, %v5014_v19  ;;  %v4990_v19 = vld [vmem:[#allocation5 + $0xc8] sm:$0xf0] }
 0x17f   : > { %3030 = vmatpush.bf16.msra.mxu3 %v5065_v53  ;;  %2928 = vmatpush.bf16.msrb.mxu1 %v5017_v41  ;;  %v5034_v53 = vld [vmem:[#allocation5 + $0x18] sm:$0xf0]  ;;  %v5208_v41 = vld [vmem:[#allocation5 + $0x1f0] sm:$0xf] }
 0x181   : > { %2701 = vmatpush.bf16.msra.mxu0 %v5649_v10  ;;  %v5049_v10 = vor.u32 %v5661_v47, %v5048_v35  ;;  %v5026_v35 = vld [vmem:[#allocation5 + $0x8] sm:$0xf0] }
 0x182   : > { %4794 = vmatmul.msk.bf16.gmra.mxu1 %vm2136_vm7, %v2223_v12 }
 0x183   : > { %4871 = vmatmul.msk.bf16.vlgmr.msrb.gmra.mxu2 %vm2136_vm7, %v2453_v27  ;;  %v5058_v27 = vld [vmem:[#allocation5 + $0x48] sm:$0xf0]  ;;  %3031 = vmatpush.bf16.msra.mxu3 %v5057_v45 }
 0x184   : > { %4750 = vmatmul.msk.bf16.gmra.mxu0 %vm2136_vm7, %v2111_v63  ;;  %v5012_v63 = vld [vmem:[#allocation5 + $0xf0] sm:$0xf]  ;;  %v5061_v20 = vor.u32 %v5662_v43, %v5058_v27  ;;  %v4988_v27 = vld [vmem:[#allocation5 + $0xc0] sm:$0xf] }
 0x185   : > { %v5013_v40 = vor.u32 %v5685_v11, %v5012_v63  ;;  %v5679_v63 = vld [vmem:[#allocation5 + $0xc4] sm:$0xf0]  ;;  %v5678_v11 = vld [vmem:[#allocation5 + $0xc4] sm:$0xf] }
 0x186   : > { %4820 = vmatmul.msk.bf16.gmra.mxu3 %vm2136_vm7, %v2304_v24  ;;  %v5074_v24 = vld [vmem:[#allocation5 + $0x68] sm:$0xf0]  ;;  %v4989_v7 = vor.u32 %v5679_v63, %v4988_v27  ;;  %v4993_v47 = vor.u32 %v5678_v11, %v4990_v19  ;;  %v4964_v27 = vld [vmem:[#allocation5 + $0x90] sm:$0xf]  ;;  %v5673_v63 = vld [vmem:[#allocation5 + $0x94] sm:$0xf0] }
 0x187   : > { %v5077_v57 = vor.u32 %v5666_v1, %v5074_v24  ;;  %2914 = vmatpush.bf16.msra.mxu2 %v5013_v40  ;;  %3032 = vmatpush.bf16.msra.mxu3 %v5049_v10  ;;  %v5657_v1 = vld [vmem:[#allocation5 + $0x14] sm:$0xf0]  ;;  %v4996_v24 = vld [vmem:[#allocation5 + $0xd0] sm:$0xf]  ;;  %v5716_v10 = vld [vmem:[#allocation5 + $0x1f4] sm:$0xf] }
 0x188   : > { %v5033_v26 = vor.u32 %v5657_v1, %v5032_v6  ;;  %v5714_v6 = vld [vmem:[#allocation5 + $0x1e4] sm:$0xf]  ;;  %v5202_v1 = vld [vmem:[#allocation5 + $0x1e8] sm:$0xf0]  ;;  %v5672_v11 = vld [vmem:[#allocation5 + $0x94] sm:$0xf] }
 0x189   : > { %v5184_v19 = vld [vmem:[#allocation5 + $0x1c0] sm:$0xf] }
 0x192   : > { %4897 = vmatmul.msk.bf16.vlgmr.msra.gmra.mxu1 %vm2136_vm7, %v2520_v51  ;;  %v5659_v51 = vld [vmem:[#allocation5 + $0x24] sm:$0xf0] }
 0x193   : > { %4872 = vmatmul.msk.bf16.gmra.mxu2 %vm2136_vm7, %v2452_v31  ;;  %v5069_v31 = vor.u32 %v5664_v52, %v5066_v56  ;;  %v4998_v52 = vld [vmem:[#allocation5 + $0xd8] sm:$0xf0] }
 0x194   : > { %4845 = vmatmul.msk.bf16.vlgmr.msrb.gmra.mxu0 %vm2136_vm7, %v2372_v62  ;;  %v5004_v62 = vld [vmem:[#allocation5 + $0xe0] sm:$0xf] }
 0x195   : > { %3042 = vmatpush.bf16.msrb.mxu0 %v5085_v54  ;;  %v5005_v13 = vor.u32 %v5683_v4, %v5004_v62  ;;  %v5677_v62 = vld [vmem:[#allocation5 + $0xb4] sm:$0xf0]  ;;  %v5676_v4 = vld [vmem:[#allocation5 + $0xb4] sm:$0xf] }
 0x196   : > { %4923 = vmatmul.msk.bf16.vlgmr.msrb.gmra.mxu3 %vm2136_vm7, %v2601_v0  ;;  %v5682_v0 = vld [vmem:[#allocation5 + $0xe4] sm:$0xf] }
 0x197   : > { %v5009_v59 = vor.u32 %v5682_v0, %v5006_v14  ;;  %2915 = vmatpush.bf16.msra.mxu2 %v5005_v13  ;;  %v4981_v0 = vor.u32 %v5677_v62, %v4980_v58  ;;  %v5200_v13 = vld [vmem:[#allocation5 + $0x1e0] sm:$0xf]  ;;  %v5715_v14 = vld [vmem:[#allocation5 + $0x1e4] sm:$0xf0]  ;;  %v5670_v58 = vld [vmem:[#allocation5 + $0x84] sm:$0xf] }
 0x199   : > { %3043 = vmatpush.bf16.msrb.mxu0 %v5077_v57  ;;  %2929 = vmatpush.bf16.msrb.mxu1 %v5009_v59  ;;  %v5681_v57 = vld [vmem:[#allocation5 + $0xd4] sm:$0xf0] }
 0x19a   : > { %v4997_v29 = vor.u32 %v5681_v57, %v4996_v24  ;;  %v4972_v57 = vld [vmem:[#allocation5 + $0xa0] sm:$0xf] }
 0x19c   : > { %2916 = vmatpush.bf16.msra.mxu2 %v4997_v29 }
 0x19d   : > { %3044 = vmatpush.bf16.msrb.mxu0 %v5069_v31  ;;  %v5024_v31 = vld [vmem:[#allocation5] sm:$0xf] }
 0x1a0   : > { %2917 = vmatpush.bf16.msra.mxu2 %v4989_v7  ;;  %v4966_v7 = vld [vmem:[#allocation5 + $0x98] sm:$0xf0] }
 0x1a1   : > { %3045 = vmatpush.bf16.msrb.mxu0 %v5061_v20  ;;  %v5025_v20 = vor.u32 %v5655_v34, %v5024_v31  ;;  %v5712_v31 = vld [vmem:[#allocation5 + $0x1d4] sm:$0xf]  ;;  %v5194_v34 = vld [vmem:[#allocation5 + $0x1d8] sm:$0xf0] }
 0x1a2   : > { %4898 = vmatmul.msk.bf16.gmra.mxu1 %vm2136_vm7, %v2519_v42  ;;  %v5050_v42 = vld [vmem:[#allocation5 + $0x38] sm:$0xf0] }
 0x1a3   : > { %v5053_v46 = vor.u32 %v5660_v48, %v5050_v42  ;;  %v5029_v48 = vor.u32 %v5654_v37, %v5026_v35  ;;  %v5717_v42 = vld [vmem:[#allocation5 + $0x1f4] sm:$0xf0]  ;;  %v5711_v35 = vld [vmem:[#allocation5 + $0x1c4] sm:$0xf0] }
 0x1a4   : > { %4846 = vmatmul.msk.bf16.gmra.mxu0 %vm2136_vm7, %v2371_v15  ;;  %2918 = vmatpush.bf16.msra.mxu2 %v4981_v0 }
 0x1a5   : > { %3046 = vmatpush.bf16.msrb.mxu0 %v5053_v46  ;;  %v5210_v46 = vld [vmem:[#allocation5 + $0x1f8] sm:$0xf0] }
 0x1a6   : > { %4924 = vmatmul.msk.bf16.gmra.mxu3 %vm2136_vm7, %v2600_v61 }
 0x1a9   : > { %3047 = vmatpush.bf16.msrb.mxu0 %v5045_v38  ;;  %v5201_v38 = vor.u32 %v5715_v14, %v5200_v13  ;;  %v5700_v13 = vld [vmem:[#allocation5 + $0x174] sm:$0xf]  ;;  %v5146_v14 = vld [vmem:[#allocation5 + $0x178] sm:$0xf0] }
 0x1b4   : > { %4949 = vmatmul.msk.bf16.vlgmr.msra.gmra.mxu0 %vm2136_vm7, %v2662_v33 }
 0x1c4   : > { %4950 = vmatmul.msk.bf16.gmra.mxu0 %vm2136_vm7, %v2663_v2  ;;  %v5041_v2 = vor.u32 %v5659_v51, %v5040_v49  ;;  %v5213_v49 = vor.u32 %v5716_v10, %v5210_v46  ;;  %v5186_v10 = vld [vmem:[#allocation5 + $0x1c8] sm:$0xf0] }
 0x1c6   : > { %3033 = vmatpush.bf16.msra.mxu3 %v5041_v2  ;;  %v4982_v2 = vld [vmem:[#allocation5 + $0xb8] sm:$0xf0] }
 0x1c7   : > { %v4985_v59 = vor.u32 %v5676_v4, %v4982_v2  ;;  %v4958_v4 = vld [vmem:[#allocation5 + $0x88] sm:$0xf0] }
 0x1ca   : > { %3034 = vmatpush.bf16.msra.mxu3 %v5033_v26  ;;  %v5674_v26 = vld [vmem:[#allocation5 + $0xa4] sm:$0xf] }
 0x1ce   : > { %3035 = vmatpush.bf16.msra.mxu3 %v5025_v20  ;;  %v4965_v20 = vor.u32 %v5673_v63, %v4964_v27  ;;  %v5160_v63 = vld [vmem:[#allocation5 + $0x190] sm:$0xf] }
 0x1e6   : > { %v6749_v5 = vpop.f32.mrf.mxu2 }
 0x1ee   : > { %v6751_v50 = vpop.f32.mrf.mxu2 }
 0x1ef   : > { %v6753_v8 = vpop.f32.mrf.mxu1 }
 0x1f1   : > { %v6755_v9 = vpop.f32.mrf.mxu0 }
 0x1f2   : > { %v2201_v43 = vadd.f32 %v6749_v5, %v6755_v9 }
 0x1f4   : > { %v2273_v51 = vadd.f32 %v6753_v8, %v2201_v43 }
 0x1f6   : > { %v6757_v12 = vpop.f32.mrf.mxu2 }
 0x1f7   : > { %v6759_v3 = vpop.f32.mrf.mxu1 }
 0x1f9   : > { %v6761_v28 = vpop.f32.mrf.mxu0  ;;  %v6763_v60 = vpop.f32.mrf.mxu3 }
 0x1fa   : > { %v2354_v17 = vadd.f32 %v6763_v60, %v2273_v51  ;;  %v2203_v8 = vadd.f32 %v6751_v50, %v6761_v28  ;;  %v4974_v60 = vld [vmem:[#allocation5 + $0xa8] sm:$0xf0]  ;;  %v5197_v28 = vor.u32 %v5712_v31, %v5194_v34  ;;  %v5671_v51 = vld [vmem:[#allocation5 + $0x84] sm:$0xf0] }
 0x1fb   : > { %v5138_v34 = vld [vmem:[#allocation5 + $0x168] sm:$0xf0] }
 0x1fe   : > { %v2207_v39 = vpop.f32.mrf.mxu2 }
 0x1ff   : > { %v6765_v33 = vpop.f32.mrf.mxu1 }
 0x201   : > { %v6767_v16 = vpop.f32.mrf.mxu0  ;;  %v6769_v18 = vpop.f32.mrf.mxu3 }
 0x206   : > { %v6771_v55 = vpop.f32.mrf.mxu2 }
 0x207   : > { %v2271_v25 = vpop.f32.mrf.mxu1 }
 0x208   : > { %v5680_v25 = vld [vmem:[#allocation5 + $0xd4] sm:$0xf] }
 0x209   : > { %v2159_v30 = vpop.f32.mrf.mxu0  ;;  %v6773_v23 = vpop.f32.mrf.mxu3  ;;  %v5001_v56 = vor.u32 %v5680_v25, %v4998_v52  ;;  %v5675_v25 = vld [vmem:[#allocation5 + $0xa4] sm:$0xf0] }
 0x20a   : > { %v5037_v30 = vor.u32 %v5656_v22, %v5034_v53  ;;  %v5205_v22 = vor.u32 %v5714_v6, %v5202_v1  ;;  %v4973_v52 = vor.u32 %v5675_v25, %v4972_v57  ;;  %v5192_v53 = vld [vmem:[#allocation5 + $0x1d0] sm:$0xf]  ;;  %v5149_v6 = vor.u32 %v5700_v13, %v5146_v14  ;;  %v5178_v25 = vld [vmem:[#allocation5 + $0x1b8] sm:$0xf0]  ;;  %v5154_v13 = vld [vmem:[#allocation5 + $0x188] sm:$0xf0] }
 0x20b   : > { %2930 = vmatpush.bf16.msrb.mxu1 %v5001_v56  ;;  %v4977_v56 = vor.u32 %v5674_v26, %v4974_v60  ;;  %v5176_v1 = vld [vmem:[#allocation5 + $0x1b0] sm:$0xf]  ;;  %v5168_v26 = vld [vmem:[#allocation5 + $0x1a0] sm:$0xf] }
 0x20c   : > { %3048 = vmatpush.bf16.msrb.mxu0 %v5037_v30  ;;  %v5713_v30 = vld [vmem:[#allocation5 + $0x1d4] sm:$0xf0]  ;;  %2919 = vmatpush.bf16.msra.mxu2 %v4973_v52  ;;  %v5136_v60 = vld [vmem:[#allocation5 + $0x160] sm:$0xf] }
 0x20d   : > { %v5193_v50 = vor.u32 %v5713_v30, %v5192_v53  ;;  %v5699_v53 = vld [vmem:[#allocation5 + $0x164] sm:$0xf0] }
 0x20e   : > { %v6775_v44 = vpop.f32.mrf.mxu2  ;;  %v5137_v31 = vor.u32 %v5699_v53, %v5136_v60 }
 0x20f   : > { %v6777_v36 = vpop.f32.mrf.mxu1  ;;  %2931 = vmatpush.bf16.msrb.mxu1 %v4993_v47  ;;  %v4969_v47 = vor.u32 %v5672_v11, %v4966_v7  ;;  %v5705_v11 = vld [vmem:[#allocation5 + $0x194] sm:$0xf0] }
 0x210   : > { %3049 = vmatpush.bf16.msrb.mxu0 %v5029_v48  ;;  %v5185_v48 = vor.u32 %v5711_v35, %v5184_v19  ;;  %2920 = vmatpush.bf16.msra.mxu2 %v4965_v20  ;;  %v5128_v20 = vld [vmem:[#allocation5 + $0x150] sm:$0xf]  ;;  %v5697_v7 = vld [vmem:[#allocation5 + $0x154] sm:$0xf0]  ;;  %v5704_v19 = vld [vmem:[#allocation5 + $0x194] sm:$0xf] }
 0x211   : > { %v2352_v15 = vpop.f32.mrf.mxu3  ;;  %v6779_v32 = vpop.f32.mrf.mxu0 }
 0x212   : > { %v5209_v15 = vor.u32 %v5717_v42, %v5208_v41  ;;  %v2421_v24 = vadd.f32 %v6779_v32, %v2354_v17  ;;  %v2274_v32 = vadd.f32 %v6759_v3, %v2203_v8  ;;  %v5710_v42 = vld [vmem:[#allocation5 + $0x1c4] sm:$0xf]  ;;  %v2206_v3 = vadd.f32 %v6757_v12, %v6767_v16  ;;  %v5144_v12 = vld [vmem:[#allocation5 + $0x170] sm:$0xf]  ;;  %v5701_v16 = vld [vmem:[#allocation5 + $0x174] sm:$0xf0] }
 0x213   : > { %2932 = vmatpush.bf16.msrb.mxu1 %v4985_v59  ;;  %v5145_v2 = vor.u32 %v5701_v16, %v5144_v12  ;;  %v5708_v8 = vld [vmem:[#allocation5 + $0x1b4] sm:$0xf]  ;;  %v5152_v16 = vld [vmem:[#allocation5 + $0x180] sm:$0xf] }
 0x214   : > { %3312 = vmatpush.bf16.msrb.mxu3 %v5209_v15  ;;  %3326 = vmatpush.bf16.msra.mxu0 %v5213_v49  ;;  %v2355_v41 = vadd.f32 %v6769_v18, %v2274_v32  ;;  %v6814_v49 = vld [vmem:[%s6921_s7] ss:$0 sm:$0xff]  ;;  %v4956_v18 = vld [vmem:[#allocation5 + $0x80] sm:$0xf]  ;;  %v2275_v17 = vadd.f32 %v6765_v33, %v2206_v3  ;;  %v5181_v33 = vor.u32 %v5708_v8, %v5178_v25 }
 0x215   : > { %v4957_v62 = vor.u32 %v5671_v51, %v4956_v18  ;;  %v5114_v8 = vld [vmem:[#allocation5 + $0x138] sm:$0xf0] }
 0x216   : > { %v6781_v61 = vpop.f32.mrf.mxu2  ;;  %v2356_v52 = vadd.f32 %v6773_v23, %v2275_v17  ;;  %v5112_v17 = vld [vmem:[#allocation5 + $0x130] sm:$0xf] }
 0x217   : > { %v6783_v39 = vpop.f32.mrf.mxu1  ;;  %2933 = vmatpush.bf16.msrb.mxu1 %v4977_v56  ;;  %2921 = vmatpush.bf16.msra.mxu2 %v4957_v62  ;;  %v5698_v56 = vld [vmem:[#allocation5 + $0x164] sm:$0xf] }
 0x218   : > { %3313 = vmatpush.bf16.msrb.mxu3 %v5201_v38  ;;  %3327 = vmatpush.bf16.msra.mxu0 %v5205_v22  ;;  %v5709_v22 = vld [vmem:[#allocation5 + $0x1b4] sm:$0xf0]  ;;  %v5141_v32 = vor.u32 %v5698_v56, %v5138_v34  ;;  %v5694_v62 = vld [vmem:[#allocation5 + $0x144] sm:$0xf] }
 0x219   : > { %v6785_v54 = vpop.f32.mrf.mxu0  ;;  %v6787_v21 = vpop.f32.mrf.mxu3  ;;  %v5177_v57 = vor.u32 %v5709_v22, %v5176_v1  ;;  %v5693_v1 = vld [vmem:[#allocation5 + $0x134] sm:$0xf0]  ;;  %v5692_v22 = vld [vmem:[#allocation5 + $0x134] sm:$0xf] }
 0x21a   : > { %v2422_v46 = vadd.f32 %v6785_v54, %v2355_v41  ;;  %v4961_v54 = vor.u32 %v5670_v58, %v4958_v4  ;;  %v5122_v4 = vld [vmem:[#allocation5 + $0x148] sm:$0xf0] }
 0x21b   : > { %2934 = vmatpush.bf16.msrb.mxu1 %v4969_v47  ;;  %3161 = vmatpush.bf16.msrb.mxu2 %v5145_v2  ;;  %v5696_v47 = vld [vmem:[#allocation5 + $0x154] sm:$0xf]  ;;  %v5125_v12 = vor.u32 %v5694_v62, %v5122_v4  ;;  %v5338_v62 = vld [vmem:[#allocation5 + $0x2f8] sm:$0xf0] }
 0x21c   : > { %3314 = vmatpush.bf16.msrb.mxu3 %v5193_v50  ;;  %3328 = vmatpush.bf16.msra.mxu0 %v5197_v28  ;;  %v5170_v50 = vld [vmem:[#allocation5 + $0x1a8] sm:$0xf0] }
 0x21e   : > { %v2500_v45 = vpop.f32.mrf.mxu2 }
 0x21f   : > { %v6791_v40 = vpop.f32.mrf.mxu1  ;;  %v2502_v45 = vadd.f32 %v6771_v55, %v2421_v24  ;;  %v5189_v55 = vor.u32 %v5710_v42, %v5186_v10  ;;  %2935 = vmatpush.bf16.msrb.mxu1 %v4961_v54  ;;  %3162 = vmatpush.bf16.msrb.mxu2 %v5137_v31  ;;  %v5161_v42 = vor.u32 %v5705_v11, %v5160_v63  ;;  %v5702_v54 = vld [vmem:[#allocation5 + $0x184] sm:$0xf] }
 0x220   : > { %3315 = vmatpush.bf16.msrb.mxu3 %v5185_v48  ;;  %v5130_v48 = vld [vmem:[#allocation5 + $0x158] sm:$0xf0]  ;;  %v5157_v14 = vor.u32 %v5702_v54, %v5154_v13 }
 0x221   : > { %v6793_v5 = vpop.f32.mrf.mxu0  ;;  %v6795_v9 = vpop.f32.mrf.mxu3  ;;  %v2569_v15 = vadd.f32 %v6777_v36, %v2502_v45  ;;  %3329 = vmatpush.bf16.msra.mxu0 %v5189_v55  ;;  %v6820_v36 = vld [vmem:[%s6922_s8] ss:$0 sm:$0xff]  ;;  %v5133_v3 = vor.u32 %v5696_v47, %v5130_v48 }
 0x222   : > { %v2423_v28 = vadd.f32 %v6793_v5, %v2356_v52  ;;  %v5129_v5 = vor.u32 %v5697_v7, %v5128_v20  ;;  %v5162_v55 = vld [vmem:[#allocation5 + $0x198] sm:$0xf0]  ;;  %v5691_v52 = vld [vmem:[#allocation5 + $0x124] sm:$0xf0]  ;;  %v5088_v20 = vld [vmem:[#allocation5 + $0x100] sm:$0xf] }
 0x223   : > { %v2650_v0 = vadd.f32 %v6787_v21, %v2569_v15  ;;  %v2503_v21 = vadd.f32 %v6775_v44, %v2422_v46  ;;  %3175 = vmatpush.bf16.msra.mxu1 %v5149_v6  ;;  %v5120_v46 = vld [vmem:[#allocation5 + $0x140] sm:$0xf]  ;;  %v5695_v15 = vld [vmem:[#allocation5 + $0x144] sm:$0xf0]  ;;  %v5165_v58 = vor.u32 %v5704_v19, %v5162_v55 }
 0x224   : > { %3316 = vmatpush.bf16.msrb.mxu3 %v5177_v57  ;;  %3163 = vmatpush.bf16.msrb.mxu2 %v5129_v5  ;;  %v5687_v7 = vld [vmem:[#allocation5 + $0x104] sm:$0xf0] }
 0x225   : > { %3330 = vmatpush.bf16.msra.mxu0 %v5181_v33  ;;  %v2570_v23 = vadd.f32 %v6783_v39, %v2503_v21  ;;  %v2504_v39 = vadd.f32 %v6781_v61, %v2423_v28  ;;  %v5113_v21 = vor.u32 %v5693_v1, %v5112_v17  ;;  %v5690_v33 = vld [vmem:[#allocation5 + $0x124] sm:$0xf]  ;;  %v5098_v28 = vld [vmem:[#allocation5 + $0x118] sm:$0xf0]  ;;  %v5330_v17 = vld [vmem:[#allocation5 + $0x2e8] sm:$0xf0] }
 0x227   : > { %v2567_v29 = vpop.f32.mrf.mxu1  ;;  %3176 = vmatpush.bf16.msra.mxu1 %v5141_v32  ;;  %v2651_v35 = vadd.f32 %v6795_v9, %v2570_v23  ;;  %v5121_v9 = vor.u32 %v5695_v15, %v5120_v46 }
 0x228   : > { %v5707_v29 = vld [vmem:[#allocation5 + $0x1a4] sm:$0xf0] }
 0x229   : > { %v2419_v37 = vpop.f32.mrf.mxu0  ;;  %v6802_v43 = vpop.f32.mrf.mxu3  ;;  %v5169_v44 = vor.u32 %v5707_v29, %v5168_v26  ;;  %3164 = vmatpush.bf16.msrb.mxu2 %v5121_v9  ;;  %v5104_v26 = vld [vmem:[#allocation5 + $0x120] sm:$0xf]  ;;  %v5748_v9 = vld [vmem:[#allocation5 + $0x2f4] sm:$0xf] }
 0x22a   : > { %v5706_v37 = vld [vmem:[#allocation5 + $0x1a4] sm:$0xf]  ;;  %v5341_v54 = vor.u32 %v5748_v9, %v5338_v62 }
 0x22b   : > { %v5173_v45 = vor.u32 %v5706_v37, %v5170_v50  ;;  %3317 = vmatpush.bf16.msrb.mxu3 %v5169_v44  ;;  %3177 = vmatpush.bf16.msra.mxu1 %v5133_v3  ;;  %v5689_v37 = vld [vmem:[#allocation5 + $0x114] sm:$0xf0]  ;;  %v5688_v50 = vld [vmem:[#allocation5 + $0x114] sm:$0xf] }
 0x22c   : > { %v5101_v11 = vor.u32 %v5688_v50, %v5098_v28  ;;  %v5272_v28 = vld [vmem:[#allocation5 + $0x270] sm:$0xf] }
 0x22d   : > { %3331 = vmatpush.bf16.msra.mxu0 %v5173_v45  ;;  %3165 = vmatpush.bf16.msrb.mxu2 %v5113_v21  ;;  %v5745_v21 = vld [vmem:[#allocation5 + $0x2d4] sm:$0xf0] }
 0x22f   : > { %3318 = vmatpush.bf16.msrb.mxu3 %v5161_v42  ;;  %3178 = vmatpush.bf16.msra.mxu1 %v5125_v12  ;;  %v5089_v42 = vor.u32 %v5687_v7, %v5088_v20  ;;  %v5328_v12 = vld [vmem:[#allocation5 + $0x2e0] sm:$0xf]  ;;  %v5304_v20 = vld [vmem:[#allocation5 + $0x2b0] sm:$0xf] }
 0x231   : > { %v2648_v59 = vpop.f32.mrf.mxu3  ;;  %v2703_v38 = vpop.f32.mrf.mxu0  ;;  %3332 = vmatpush.bf16.msra.mxu0 %v5165_v58 }
 0x232   : > { %v2712_v24 = vadd.f32 %v2703_v38, %v2650_v0  ;;  %v5703_v0 = vld [vmem:[#allocation5 + $0x184] sm:$0xf0]  ;;  %v2571_v59 = vadd.f32 %v6791_v40, %v2504_v39  ;;  %v2022_v38 = vlaneseq  ;;  %v5106_v40 = vld [vmem:[#allocation5 + $0x128] sm:$0xf0] }
 0x233   : > { %v5153_v2 = vor.u32 %v5703_v0, %v5152_v16  ;;  %v5109_v34 = vor.u32 %v5690_v33, %v5106_v40  ;;  %v5743_v33 = vld [vmem:[#allocation5 + $0x2c4] sm:$0xf0]  ;;  %v5742_v40 = vld [vmem:[#allocation5 + $0x2c4] sm:$0xf] }
 0x234   : > { %v2719_v30 = vmul.f32 %v6814_v49, %v2712_v24  ;;  %v5117_v24 = vor.u32 %v5692_v22, %v5114_v8  ;;  %v2652_v57 = vadd.f32 %v6802_v43, %v2571_v59  ;;  %v2023_v60 = vshrl.u32 %v2022_v38, 7  ;;  %v5096_v43 = vld [vmem:[#allocation5 + $0x110] sm:$0xf] }
 0x235   : > { %3319 = vmatpush.bf16.msrb.mxu3 %v5153_v2  ;;  %3333 = vmatpush.bf16.msra.mxu0 %v5157_v14  ;;  %v5097_v63 = vor.u32 %v5689_v37, %v5096_v43  ;;  %v5746_v2 = vld [vmem:[#allocation5 + $0x2e4] sm:$0xf]  ;;  %v5320_v22 = vld [vmem:[#allocation5 + $0x2d0] sm:$0xf] }
 0x236   : > { %v6829_v27 = vadd.f32 %v6820_v36, %v2719_v30  ;;  %v5105_v30 = vor.u32 %v5691_v52, %v5104_v26  ;;  %3179 = vmatpush.bf16.msra.mxu1 %v5117_v24  ;;  %v2748_v45 = vadd.s32 4294967292, %v2023_v60  ;;  %v2025_v39 = vadd.s32 16, %v2023_v60  ;;  %v5744_v24 = vld [vmem:[#allocation5 + $0x2d4] sm:$0xf]  ;;  %v5312_v52 = vld [vmem:[#allocation5 + $0x2c0] sm:$0xf] }
 0x237   : > { %v5333_v1 = vor.u32 %v5746_v2, %v5330_v17  ;;  %v5321_v26 = vor.u32 %v5745_v21, %v5320_v22  ;;  %v5314_v60 = vld [vmem:[#allocation5 + $0x2c8] sm:$0xf0]  ;;  %v5313_v37 = vor.u32 %v5743_v33, %v5312_v52  ;;  %v5739_v2 = vld [vmem:[#allocation5 + $0x2a4] sm:$0xf0]  ;;  %v5729_v22 = vld [vmem:[#allocation5 + $0x254] sm:$0xf0] }
 0x238   : > { %v2732_v41 = vmin.f32 %v6829_v27, 0.0  ;;  %3166 = vmatpush.bf16.msrb.mxu2 %v5105_v30  ;;  %vm2729_vm8 = vcmp.gt.f32.partialorder %v6829_v27, 0.0  ;;  %vm2751_vm9 = vcmp.ge.s32.totalorder %v2748_v45, 0  ;;  %v2750_v15 = vadd.s32 4294967292, %v2025_v39  ;;  %v5732_v45 = vld [vmem:[#allocation5 + $0x274] sm:$0xf] }
 0x239   : > { %v2705_v10 = vpop.f32.mrf.mxu0  ;;  %v5317_v50 = vor.u32 %v5742_v40, %v5314_v60  ;;  %v5288_v52 = vld [vmem:[#allocation5 + $0x290] sm:$0xf]  ;;  %v5737_v33 = vld [vmem:[#allocation5 + $0x294] sm:$0xf0]  ;;  %v5736_v40 = vld [vmem:[#allocation5 + $0x294] sm:$0xf] }
 0x23a   : > { %v2735_v18 = vmul.f32 1.442695, %v2732_v41  ;;  %v2713_v51 = vadd.f32 %v2705_v10, %v2651_v35  ;;  %3180 = vmatpush.bf16.msra.mxu1 %v5109_v34  ;;  %v5686_v35 = vld [vmem:[#allocation5 + $0x104] sm:$0xf]  ;;  %v5090_v41 = vld [vmem:[#allocation5 + $0x108] sm:$0xf0] }
 0x23b   : > { %v5093_v10 = vor.u32 %v5686_v35, %v5090_v41  ;;  %vm2756_vm11 = vcmp.lt.s32.totalorder %v2750_v15, 16  ;;  %v5741_v35 = vld [vmem:[#allocation5 + $0x2b4] sm:$0xf0]  ;;  %v5740_v41 = vld [vmem:[#allocation5 + $0x2b4] sm:$0xf] }
 0x23c   : > { %v2720_v61 = vmul.f32 %v6814_v49, %v2713_v51  ;;  %5869 = vpow2.f32 %v2735_v18  ;;  %3167 = vmatpush.bf16.msrb.mxu2 %v5097_v63  ;;  %v5336_v18 = vld [vmem:[#allocation5 + $0x2f0] sm:$0xf]  ;;  %v5749_v51 = vld [vmem:[#allocation5 + $0x2f4] sm:$0xf0]  ;;  %v5305_v9 = vor.u32 %v5741_v35, %v5304_v20  ;;  %v5290_v60 = vld [vmem:[#allocation5 + $0x298] sm:$0xf0] }
 0x23d   : > { %v5337_v0 = vor.u32 %v5749_v51, %v5336_v18  ;;  %v5464_v20 = vld [vmem:[#allocation5 + $0x3f0] sm:$0xf] }
 0x23e   : > { %v2727_v6 = vadd.f32 %v6820_v36, %v2720_v61  ;;  %3181 = vmatpush.bf16.msra.mxu1 %v5101_v11  ;;  %v5747_v61 = vld [vmem:[#allocation5 + $0x2e4] sm:$0xf0]  ;;  %v5274_v11 = vld [vmem:[#allocation5 + $0x278] sm:$0xf0] }
 0x240   : > { %v2733_v25 = vmin.f32 %v2727_v6, 0.0  ;;  %vm2730_vm10 = vcmp.gt.f32.partialorder %v2727_v6, 0.0  ;;  %3168 = vmatpush.bf16.msrb.mxu2 %v5089_v42 }
 0x241   : > { %v2708_v29 = vpop.f32.mrf.mxu0 }
 0x242   : > { %v2737_v53 = vmul.f32 1.442695, %v2733_v25  ;;  %v2714_v56 = vadd.f32 %v2708_v29, %v2652_v57  ;;  %v5870_v31 = vpop.eup %5869  ;;  %3182 = vmatpush.bf16.msra.mxu1 %v5093_v10  ;;  %v5322_v57 = vld [vmem:[#allocation5 + $0x2d8] sm:$0xf0]  ;;  %v5277_v10 = vor.u32 %v5732_v45, %v5274_v11  ;;  %v5735_v45 = vld [vmem:[#allocation5 + $0x284] sm:$0xf0] }
 0x243   : > { %v4951_v32 = vadd.f32 -1.0, %v5870_v31  ;;  %v5325_v29 = vor.u32 %v5744_v24, %v5322_v57  ;;  %v5282_v11 = vld [vmem:[#allocation5 + $0x288] sm:$0xf0] }
 0x244   : > { %5871 = vpow2.f32 %v2737_v53  ;;  %v2721_v44 = vmul.f32 %v6814_v49, %v2714_v56 }
 0x245   : > { %v2744_v47 = vsel %vm2729_vm8, %v6829_v27, %v4951_v32  ;;  %v5733_v32 = vld [vmem:[#allocation5 + $0x274] sm:$0xf0] }
 0x246   : > { %v2728_v23 = vadd.f32 %v6820_v36, %v2721_v44  ;;  %v2766_v3 = vsel %vm2751_vm9, %v2744_v47, 0.0  ;;  %v5306_v47 = vld [vmem:[#allocation5 + $0x2b8] sm:$0xf0]  ;;  %v5273_v39 = vor.u32 %v5733_v32, %v5272_v28  ;;  %v5289_v28 = vor.u32 %v5737_v33, %v5288_v52  ;;  %v5224_v33 = vld [vmem:[#allocation5 + $0x210] sm:$0xf] }
 0x247   : > { %v5309_v62 = vor.u32 %v5740_v41, %v5306_v47  ;;  %v5293_v32 = vor.u32 %v5736_v40, %v5290_v60  ;;  %v5721_v40 = vld [vmem:[#allocation5 + $0x214] sm:$0xf0]  ;;  %v5720_v60 = vld [vmem:[#allocation5 + $0x214] sm:$0xf] }
 0x248   : > { %v2734_v19 = vmin.f32 %v2728_v23, 0.0  ;;  %vm2731_vm12 = vcmp.gt.f32.partialorder %v2728_v23, 0.0 }
 0x249   : > { %v2710_v49 = vpop.f32.mrf.mxu0 }
 0x24a   : > { %v5872_v5 = vpop.eup %5871  ;;  %v2739_v48 = vmul.f32 1.442695, %v2734_v19 }
 0x24b   : > { %v4952_v36 = vadd.f32 -1.0, %v5872_v5 }
 0x24c   : > { %5873 = vpow2.f32 %v2739_v48 }
 0x24d   : > { %v2745_v55 = vsel %vm2730_vm10, %v2727_v6, %v4952_v36  ;;  %v5329_v6 = vor.u32 %v5747_v61, %v5328_v12  ;;  %v5296_v12 = vld [vmem:[#allocation5 + $0x2a0] sm:$0xf] }
 0x24e   : > { %v6842_v46 = vpack.c.bf16 %v2745_v55, %v2766_v3  ;;  %v5264_v3 = vld [vmem:[#allocation5 + $0x260] sm:$0xf]  ;;  %v5731_v55 = vld [vmem:[#allocation5 + $0x264] sm:$0xf0]  ;;  %v5297_v24 = vor.u32 %v5739_v2, %v5296_v12 }
 0x250   : > { %5806 = vst [vmem:[#allocation4] sm:$0xff] %v6842_v46   ;;  %v6846_v8 = vunpack.c.h.b16 %v6842_v46  ;;  %v2824_v53 = vshll.u32 %v6842_v46, 16  ;;  %v2822_v19 = vshrl.u32 %v6842_v46, 16 }
 0x252   : > { %v5874_v27 = vpop.eup %5873  ;;  %v2826_v63 = vrot.slane %v2824_v53, 1 }
 0x253   : > { %v4953_v58 = vadd.f32 -1.0, %v5874_v27 }
 0x254   : > { %v2827_v27 = vor.u32 %v2826_v63, %v2822_v19  ;;  %v5734_v63 = vld [vmem:[#allocation5 + $0x284] sm:$0xf]  ;;  %v5781_v19 = vld [vmem:[#allocation5 + $0x3f4] sm:$0xf0] }
 0x255   : > { %v2746_v4 = vsel %vm2731_vm12, %v2728_v23, %v4953_v58  ;;  %v5730_v58 = vld [vmem:[#allocation5 + $0x264] sm:$0xf] }
 0x256   : > { %v2768_v16 = vsel %vm2756_vm11, %v2746_v4, 0.0  ;;  %v5266_v4 = vld [vmem:[#allocation5 + $0x268] sm:$0xf0] }
 0x257   : > { %v2771_v13 = vpack.c.bf16 %v2768_v16, %v2768_v16  ;;  %v5653_v14 = vld [vmem:[#allocation4] sm:$0xff] }
 0x258   : > { %v3056_v59 = vld [vmem:[#allocation4] sm:$0xe]  ;;  %3036 = vmatmul.bf16.vlgmr.msra.gmra.mxu3 %v5653_v14  ;;  %3050 = vmatmul.bf16.vlgmr.msrb.gmra.mxu0 %v5653_v14  ;;  %v5298_v14 = vld [vmem:[#allocation5 + $0x2a8] sm:$0xf0] }
 0x259   : > { %v3075_v38 = vunpack.c.l.b16 %v3056_v59  ;;  %2774 = vst [vmem:[#allocation4 + $0x8] sm:$0xf] %v2771_v13  ;;  %3600 = vmatpush.bf16.msra.mxu3 %v5337_v0  ;;  %3614 = vmatpush.bf16.msrb.mxu0 %v5341_v54  ;;  %v3344_v16 = vld [vmem:[#allocation4] sm:$0xc]  ;;  %v5738_v13 = vld [vmem:[#allocation5 + $0x2a4] sm:$0xf] }
 0x25a   : > { %v3363_v21 = vunpack.c.l.b16 %v3344_v16  ;;  %v5301_v57 = vor.u32 %v5738_v13, %v5298_v14  ;;  %v5778_v16 = vld [vmem:[#allocation5 + $0x3e4] sm:$0xf]  ;;  %v5232_v14 = vld [vmem:[#allocation5 + $0x220] sm:$0xf] }
 0x25b   : > { %v6849_v25 = vpack.c.b16 %v6846_v8, %v3075_v38  ;;  %v5265_v38 = vor.u32 %v5731_v55, %v5264_v3  ;;  %v5285_v55 = vor.u32 %v5734_v63, %v5282_v11  ;;  %v5225_v63 = vor.u32 %v5721_v40, %v5224_v33 }
 0x25d   : > { %3601 = vmatpush.bf16.msra.mxu3 %v5329_v6  ;;  %3615 = vmatpush.bf16.msrb.mxu0 %v5333_v1  ;;  %v3215_v31 = vshrl.u32 %v6849_v25, 16  ;;  %v3218_v43 = vshll.u32 %v6849_v25, 16  ;;  %v5269_v6 = vor.u32 %v5730_v58, %v5266_v4  ;;  %v5256_v1 = vld [vmem:[#allocation5 + $0x250] sm:$0xf]  ;;  %v3077_v12 = vrot.slane %v6849_v25, 1 }
 0x25f   : > { %v3217_v49 = vrot.slane %v3215_v31, 1  ;;  %v3220_v48 = vrot.slane %v3218_v43, 2  ;;  %v5257_v31 = vor.u32 %v5729_v22, %v5256_v1  ;;  %v5250_v43 = vld [vmem:[#allocation5 + $0x248] sm:$0xf0]  ;;  %v5448_v22 = vld [vmem:[#allocation5 + $0x3d0] sm:$0xf] }
 0x260   : > { %v2795_v56 = vld [vmem:[#allocation4 + $0x8] sm:$0x1] }
 0x261   : > { %v3193_v30 = vld [vmem:[#allocation4 + $0x8] sm:$0x3]  ;;  %v2818_v34 = vunpack.c.l.b16 %v2795_v56  ;;  %3602 = vmatpush.bf16.msra.mxu3 %v5321_v26  ;;  %3616 = vmatpush.bf16.msrb.mxu0 %v5325_v29  ;;  %v3221_v54 = vor.u32 %v3220_v48, %v3217_v49  ;;  %v5728_v26 = vld [vmem:[#allocation5 + $0x254] sm:$0xf]  ;;  %v5248_v56 = vld [vmem:[#allocation5 + $0x240] sm:$0xf] }
 0x262   : > { %v3212_v44 = vunpack.c.l.b16 %v3193_v30  ;;  %v3481_v15 = vld [vmem:[#allocation4 + $0x8] sm:$0x7]  ;;  %v5727_v30 = vld [vmem:[#allocation5 + $0x244] sm:$0xf0]  ;;  %v5780_v49 = vld [vmem:[#allocation5 + $0x3f4] sm:$0xf] }
 0x263   : > { %v6854_v23 = vpack.c.b16 %v2818_v34, %v2818_v34  ;;  %v3500_v17 = vunpack.c.l.b16 %v3481_v15  ;;  %v5258_v29 = vld [vmem:[#allocation5 + $0x258] sm:$0xf0]  ;;  %v5249_v47 = vor.u32 %v5727_v30, %v5248_v56  ;;  %v5465_v15 = vor.u32 %v5781_v19, %v5464_v20  ;;  %v5718_v20 = vld [vmem:[#allocation5 + $0x204] sm:$0xf]  ;;  %v5218_v19 = vld [vmem:[#allocation5 + $0x208] sm:$0xf0] }
 0x264   : > { %v6856_v7 = vpack.c.b16 %v3212_v44, %v3212_v44  ;;  %v5261_v34 = vor.u32 %v5728_v26, %v5258_v29  ;;  %v5726_v44 = vld [vmem:[#allocation5 + $0x244] sm:$0xf]  ;;  %v5226_v56 = vld [vmem:[#allocation5 + $0x218] sm:$0xf0] }
 0x265   : > { %v2829_v5 = vshll.u32 %v6854_v23, 16  ;;  %3603 = vmatpush.bf16.msra.mxu3 %v5313_v37  ;;  %3617 = vmatpush.bf16.msrb.mxu0 %v5317_v50  ;;  %v6864_v53 = vpack.c.b16 %v3500_v17, %v3500_v17  ;;  %v5280_v37 = vld [vmem:[#allocation5 + $0x280] sm:$0xf]  ;;  %v6867_v50 = vpack.c.b16 %v6846_v8, %v3363_v21  ;;  %v5253_v48 = vor.u32 %v5726_v44, %v5250_v43  ;;  %v5777_v21 = vld [vmem:[#allocation5 + $0x3d4] sm:$0xf0] }
 0x266   : > { %v3223_v42 = vshrl.u32 %v6856_v7, 16  ;;  %v3226_v36 = vshll.u32 %v6856_v7, 16  ;;  %v5281_v3 = vor.u32 %v5735_v45, %v5280_v37  ;;  %v3078_v58 = vrot.slane %v6854_v23, 1  ;;  %v5234_v23 = vld [vmem:[#allocation5 + $0x228] sm:$0xf0] }
 0x267   : > { %v2831_v46 = vrot.slane %v2829_v5, 1  ;;  %v3511_v35 = vshrl.u32 %v6864_v53, 16  ;;  %v3514_v41 = vshll.u32 %v6864_v53, 16  ;;  %v5466_v5 = vld [vmem:[#allocation5 + $0x3f8] sm:$0xf0]  ;;  %v5229_v11 = vor.u32 %v5720_v60, %v5226_v56 }
 0x268   : > { %v3225_v18 = vrot.slane %v3223_v42, 1  ;;  %v3228_v51 = vrot.slane %v3226_v36, 2  ;;  %v5240_v42 = vld [vmem:[#allocation5 + $0x230] sm:$0xf]  ;;  %v5725_v36 = vld [vmem:[#allocation5 + $0x234] sm:$0xf0] }
 0x269   : > { %v2832_v0 = vsel %vm683_vm13, %v2827_v27, %v2831_v46  ;;  %3604 = vmatpush.bf16.msra.mxu3 %v5305_v9  ;;  %3618 = vmatpush.bf16.msrb.mxu0 %v5309_v62  ;;  %v5724_v27 = vld [vmem:[#allocation5 + $0x234] sm:$0xf]  ;;  %v5242_v46 = vld [vmem:[#allocation5 + $0x238] sm:$0xf0]  ;;  %v5779_v9 = vld [vmem:[#allocation5 + $0x3e4] sm:$0xf0] }
 0x26a   : > { %v3229_v61 = vor.u32 %v3228_v51, %v3225_v18  ;;  %2922 = vmatmul.bf16.vlgmr.msra.gmra.mxu2 %v2832_v0  ;;  %2936 = vmatmul.bf16.vlgmr.msrb.gmra.mxu1 %v2832_v0  ;;  %v5456_v18 = vld [vmem:[#allocation5 + $0x3e0] sm:$0xf]  ;;  %v5469_v51 = vor.u32 %v5780_v49, %v5466_v5  ;;  %v3513_v62 = vrot.slane %v3511_v35, 2  ;;  %v3516_v4 = vrot.slane %v3514_v41, 3  ;;  %v5458_v0 = vld [vmem:[#allocation5 + $0x3e8] sm:$0xf0] }
 0x26b   : > { %3449 = vmatpush.bf16.msra.mxu2 %v5273_v39  ;;  %3463 = vmatpush.bf16.msrb.mxu1 %v5277_v10  ;;  %v3503_v39 = vshrl.u32 %v6867_v50, 16  ;;  %v3506_v10 = vshll.u32 %v6867_v50, 16  ;;  %v5457_v17 = vor.u32 %v5779_v9, %v5456_v18  ;;  %v5461_v25 = vor.u32 %v5778_v16, %v5458_v0  ;;  %v5440_v44 = vld [vmem:[#allocation5 + $0x3c0] sm:$0xf]  ;;  %v5775_v43 = vld [vmem:[#allocation5 + $0x3c4] sm:$0xf0] }
 0x26c   : > { %v3230_v59 = vsel %vm1089_vm15, %v3221_v54, %v3229_v61  ;;  %v5241_v54 = vor.u32 %v5725_v36, %v5240_v42  ;;  %v5245_v61 = vor.u32 %v5724_v27, %v5242_v46  ;;  %v3517_v1 = vor.u32 %v3516_v4, %v3513_v62  ;;  %v5774_v37 = vld [vmem:[#allocation5 + $0x3c4] sm:$0xf]  ;;  %v5719_v45 = vld [vmem:[#allocation5 + $0x204] sm:$0xf0]  ;;  %v5400_v35 = vld [vmem:[#allocation5 + $0x370] sm:$0xf] }
 0x26d   : > { %3320 = vmatmul.bf16.vlgmr.msrb.gmra.mxu3 %v3230_v59  ;;  %3334 = vmatmul.bf16.vlgmr.msra.gmra.mxu0 %v3230_v59  ;;  %v3505_v2 = vrot.slane %v3503_v39, 2  ;;  %v3508_v13 = vrot.slane %v3506_v10, 3  ;;  %v5723_v59 = vld [vmem:[#allocation5 + $0x224] sm:$0xf0]  ;;  %v5765_v41 = vld [vmem:[#allocation5 + $0x374] sm:$0xf0]  ;;  %v5221_v27 = vor.u32 %v5718_v20, %v5218_v19 }
 0x26e   : > { %3605 = vmatpush.bf16.msra.mxu3 %v5297_v24  ;;  %3619 = vmatpush.bf16.msrb.mxu0 %v5301_v57  ;;  %v5776_v24 = vld [vmem:[#allocation5 + $0x3d4] sm:$0xf]  ;;  %v5450_v57 = vld [vmem:[#allocation5 + $0x3d8] sm:$0xf0]  ;;  %v5233_v29 = vor.u32 %v5723_v59, %v5232_v14  ;;  %v5432_v36 = vld [vmem:[#allocation5 + $0x3b0] sm:$0xf]  ;;  %v5401_v18 = vor.u32 %v5765_v41, %v5400_v35 }
 0x26f   : > { %3450 = vmatpush.bf16.msra.mxu2 %v5265_v38  ;;  %3464 = vmatpush.bf16.msrb.mxu1 %v5269_v6  ;;  %v5722_v38 = vld [vmem:[#allocation5 + $0x224] sm:$0xf]  ;;  %v3079_v6 = vsel %vm950_vm14, %v3077_v12, %v3078_v58  ;;  %v3509_v26 = vor.u32 %v3508_v13, %v3505_v2  ;;  %v5764_v49 = vld [vmem:[#allocation5 + $0x374] sm:$0xf]  ;;  %v3769_v5 = vld [vmem:[#allocation4 + $0x8] sm:$0xf] }
 0x270   : > { %v5237_v52 = vor.u32 %v5722_v38, %v5234_v23  ;;  %v5402_v42 = vld [vmem:[#allocation5 + $0x378] sm:$0xf0]  ;;  %v5773_v39 = vld [vmem:[#allocation5 + $0x3b4] sm:$0xf0]  ;;  %v5772_v10 = vld [vmem:[#allocation5 + $0x3b4] sm:$0xf]  ;;  %v6877_v46 = vunpack.c.l.b16 %v3769_v5 }
 0x271   : > { %v3518_v30 = vsel %vm1399_vm1, %v3509_v26, %v3517_v1  ;;  %v3365_v58 = vrot.slane %v6867_v50, 2  ;;  %v3366_v9 = vrot.slane %v6856_v7, 2  ;;  %v5392_v62 = vld [vmem:[#allocation5 + $0x360] sm:$0xf]  ;;  %v5763_v4 = vld [vmem:[#allocation5 + $0x364] sm:$0xf0]  ;;  %v5433_v12 = vor.u32 %v5773_v39, %v5432_v36 }
 0x272   : > { %3606 = vmatpush.bf16.msra.mxu3 %v5289_v28  ;;  %3620 = vmatpush.bf16.msrb.mxu0 %v5293_v32  ;;  %v5442_v28 = vld [vmem:[#allocation5 + $0x3c8] sm:$0xf0]  ;;  %v5216_v32 = vld [vmem:[#allocation5 + $0x200] sm:$0xf]  ;;  %v5762_v0 = vld [vmem:[#allocation5 + $0x364] sm:$0xf]  ;;  %v3789_v50 = vpack.c.b16 %v6877_v46, %v6877_v46  ;;  %v5393_v59 = vor.u32 %v5763_v4, %v5392_v62 }
 0x273   : > { %3451 = vmatpush.bf16.msra.mxu2 %v5257_v31  ;;  %3465 = vmatpush.bf16.msrb.mxu1 %v5261_v34  ;;  %v5449_v31 = vor.u32 %v5777_v21, %v5448_v22  ;;  %v5453_v34 = vor.u32 %v5776_v24, %v5450_v57  ;;  %v5771_v13 = vld [vmem:[#allocation5 + $0x3a4] sm:$0xf0]  ;;  %v5770_v14 = vld [vmem:[#allocation5 + $0x3a4] sm:$0xf]  ;;  %v3367_v7 = vsel %vm1260_vm0, %v3365_v58, %v3366_v9  ;;  %v5384_v23 = vld [vmem:[#allocation5 + $0x350] sm:$0xf] }
 0x274   : > { %v5760_v22 = vld [vmem:[#allocation5 + $0x354] sm:$0xf]  ;;  %v5386_v21 = vld [vmem:[#allocation5 + $0x358] sm:$0xf0]  ;;  %v5416_v24 = vld [vmem:[#allocation5 + $0x390] sm:$0xf] }
 0x275   : > { %v5769_v26 = vld [vmem:[#allocation5 + $0x394] sm:$0xf0]  ;;  %v3799_v33 = vshrl.u32 %v3789_v50, 16  ;;  %v3802_v40 = vshll.u32 %v3789_v50, 16  ;;  %v5389_v56 = vor.u32 %v5760_v22, %v5386_v21  ;;  %v5410_v20 = vld [vmem:[#allocation5 + $0x388] sm:$0xf0] }
 0x276   : > { %3607 = vmatpush.bf16.msra.mxu3 %v5281_v3  ;;  %3621 = vmatpush.bf16.msrb.mxu0 %v5285_v55  ;;  %v5434_v3 = vld [vmem:[#allocation5 + $0x3b8] sm:$0xf0]  ;;  %v3632_v55 = vld [vmem:[#allocation4] sm:$0x8]  ;;  %v5368_v36 = vld [vmem:[#allocation5 + $0x330] sm:$0xf] }
 0x277   : > { %3452 = vmatpush.bf16.msra.mxu2 %v5249_v47  ;;  %3466 = vmatpush.bf16.msrb.mxu1 %v5253_v48  ;;  %v5441_v47 = vor.u32 %v5775_v43, %v5440_v44  ;;  %v5445_v48 = vor.u32 %v5774_v37, %v5442_v28  ;;  %v5437_v16 = vor.u32 %v5772_v10, %v5434_v3  ;;  %v3651_v2 = vunpack.c.l.b16 %v3632_v55  ;;  %v5378_v37 = vld [vmem:[#allocation5 + $0x348] sm:$0xf0]  ;;  %v5408_v28 = vld [vmem:[#allocation5 + $0x380] sm:$0xf]  ;;  %v5757_v39 = vld [vmem:[#allocation5 + $0x334] sm:$0xf0] }
 0x278   : > { %v5417_v44 = vor.u32 %v5769_v26, %v5416_v24  ;;  %v3801_v19 = vrot.slane %v3799_v33, 3  ;;  %v3804_v35 = vrot.slane %v3802_v40, 4  ;;  %v5756_v10 = vld [vmem:[#allocation5 + $0x334] sm:$0xf]  ;;  %v5370_v3 = vld [vmem:[#allocation5 + $0x338] sm:$0xf0] }
 0x279   : > { %v6885_v57 = vpack.c.b16 %v6846_v8, %v3651_v2  ;;  %v5755_v58 = vld [vmem:[#allocation5 + $0x324] sm:$0xf0]  ;;  %v5754_v9 = vld [vmem:[#allocation5 + $0x324] sm:$0xf]  ;;  %v5362_v62 = vld [vmem:[#allocation5 + $0x328] sm:$0xf0] }
 0x27a   : > { %3888 = vmatpush.bf16.msrb.mxu3 %v5465_v15  ;;  %3902 = vmatpush.bf16.msra.mxu0 %v5469_v51  ;;  %v5217_v15 = vor.u32 %v5719_v45, %v5216_v32  ;;  %v5405_v51 = vor.u32 %v5764_v49, %v5402_v42  ;;  %v3805_v55 = vor.u32 %v3804_v35, %v3801_v19  ;;  %v5354_v2 = vld [vmem:[#allocation5 + $0x318] sm:$0xf0]  ;;  %v5751_v50 = vld [vmem:[#allocation5 + $0x304] sm:$0xf0]  ;;  %v3654_v26 = vrot.slane %v6864_v53, 3 }
 0x27b   : > { %3169 = vmatmul.bf16.vlgmr.msrb.gmra.mxu2 %v3079_v6  ;;  %3183 = vmatmul.bf16.vlgmr.msra.gmra.mxu1 %v3079_v6  ;;  %v5761_v6 = vld [vmem:[#allocation5 + $0x354] sm:$0xf0]  ;;  %v3791_v32 = vshrl.u32 %v6885_v57, 16  ;;  %v3794_v45 = vshll.u32 %v6885_v57, 16  ;;  %v5794_v33 = vld [vmem:[#allocation5 + $0x464] sm:$0xf] }
 0x27c   : > { %3453 = vmatpush.bf16.msra.mxu2 %v5241_v54  ;;  %3467 = vmatpush.bf16.msrb.mxu1 %v5245_v61  ;;  %v5394_v54 = vld [vmem:[#allocation5 + $0x368] sm:$0xf0]  ;;  %v5424_v61 = vld [vmem:[#allocation5 + $0x3a0] sm:$0xf]  ;;  %v5385_v60 = vor.u32 %v5761_v6, %v5384_v23  ;;  %v5797_v23 = vld [vmem:[#allocation5 + $0x474] sm:$0xf0] }
 0x27d   : > { %3608 = vmatmul.bf16.vlgmr.msra.gmra.mxu3 %v3518_v30  ;;  %3622 = vmatmul.bf16.vlgmr.msrb.gmra.mxu0 %v3518_v30  ;;  %v5397_v38 = vor.u32 %v5762_v0, %v5394_v54  ;;  %v5376_v30 = vld [vmem:[#allocation5 + $0x340] sm:$0xf]  ;;  %v3796_v42 = vrot.slane %v3794_v45, 4  ;;  %v5352_v0 = vld [vmem:[#allocation5 + $0x310] sm:$0xf] }
 0x27e   : > { %3889 = vmatpush.bf16.msrb.mxu3 %v5457_v17  ;;  %3903 = vmatpush.bf16.msra.mxu0 %v5461_v25  ;;  %v5426_v17 = vld [vmem:[#allocation5 + $0x3a8] sm:$0xf0]  ;;  %v5425_v25 = vor.u32 %v5771_v13, %v5424_v61  ;;  %v5753_v54 = vld [vmem:[#allocation5 + $0x314] sm:$0xf0]  ;;  %v5752_v61 = vld [vmem:[#allocation5 + $0x314] sm:$0xf] }
 0x27f   : > { %v5429_v1 = vor.u32 %v5770_v14, %v5426_v17  ;;  %v5353_v13 = vor.u32 %v5753_v54, %v5352_v0  ;;  %v5357_v14 = vor.u32 %v5752_v61, %v5354_v2  ;;  %v5344_v17 = vld [vmem:[#allocation5 + $0x300] sm:$0xf]  ;;  %v5796_v6 = vld [vmem:[#allocation5 + $0x474] sm:$0xf]  ;;  %v5522_v40 = vld [vmem:[#allocation5 + $0x468] sm:$0xf0]  ;;  %v3937_v54 = vpack.c.b16 %v6877_v46, %v6846_v8 }
 0x280   : > { %3454 = vmatpush.bf16.msra.mxu2 %v5233_v29  ;;  %3468 = vmatpush.bf16.msrb.mxu1 %v5237_v52  ;;  %v5768_v29 = vld [vmem:[#allocation5 + $0x394] sm:$0xf]  ;;  %v5418_v52 = vld [vmem:[#allocation5 + $0x398] sm:$0xf0]  ;;  %v5791_v45 = vld [vmem:[#allocation5 + $0x444] sm:$0xf0] }
 0x281   : > { %v5421_v43 = vor.u32 %v5768_v29, %v5418_v52  ;;  %v5520_v29 = vld [vmem:[#allocation5 + $0x460] sm:$0xf]  ;;  %v5795_v52 = vld [vmem:[#allocation5 + $0x464] sm:$0xf0]  ;;  %v5496_v19 = vld [vmem:[#allocation5 + $0x430] sm:$0xf] }
 0x282   : > { %3890 = vmatpush.bf16.msrb.mxu3 %v5449_v31  ;;  %3904 = vmatpush.bf16.msra.mxu0 %v5453_v34  ;;  %v5759_v31 = vld [vmem:[#allocation5 + $0x344] sm:$0xf0]  ;;  %v5758_v34 = vld [vmem:[#allocation5 + $0x344] sm:$0xf]  ;;  %v5789_v35 = vld [vmem:[#allocation5 + $0x434] sm:$0xf0] }
 0x283   : > { %v5377_v41 = vor.u32 %v5759_v31, %v5376_v30  ;;  %v5381_v49 = vor.u32 %v5758_v34, %v5378_v37  ;;  %v5525_v30 = vor.u32 %v5794_v33, %v5522_v40  ;;  %v5512_v31 = vld [vmem:[#allocation5 + $0x450] sm:$0xf]  ;;  %v5514_v37 = vld [vmem:[#allocation5 + $0x458] sm:$0xf0] }
 0x284   : > { %3455 = vmatpush.bf16.msra.mxu2 %v5225_v63  ;;  %3469 = vmatpush.bf16.msrb.mxu1 %v5229_v11  ;;  %v5767_v63 = vld [vmem:[#allocation5 + $0x384] sm:$0xf0]  ;;  %v5766_v11 = vld [vmem:[#allocation5 + $0x384] sm:$0xf] }
 0x285   : > { %v5409_v5 = vor.u32 %v5767_v63, %v5408_v28  ;;  %v5790_v63 = vld [vmem:[#allocation5 + $0x444] sm:$0xf] }
 0x286   : > { %3891 = vmatpush.bf16.msrb.mxu3 %v5441_v47  ;;  %3905 = vmatpush.bf16.msra.mxu0 %v5445_v48  ;;  %v5413_v47 = vor.u32 %v5766_v11, %v5410_v20  ;;  %v3793_v48 = vrot.slane %v3791_v32, 3  ;;  %v5504_v32 = vld [vmem:[#allocation5 + $0x440] sm:$0xf] }
 0x287   : > { %v5505_v11 = vor.u32 %v5791_v45, %v5504_v32 }
 0x288   : > { %3456 = vmatpush.bf16.msra.mxu2 %v5217_v15  ;;  %3470 = vmatpush.bf16.msrb.mxu1 %v5221_v27  ;;  %v3797_v15 = vor.u32 %v3796_v42, %v3793_v48  ;;  %v5369_v27 = vor.u32 %v5757_v39, %v5368_v36  ;;  %v5488_v48 = vld [vmem:[#allocation5 + $0x420] sm:$0xf]  ;;  %v5787_v42 = vld [vmem:[#allocation5 + $0x424] sm:$0xf0]  ;;  %v5786_v36 = vld [vmem:[#allocation5 + $0x424] sm:$0xf] }
 0x289   : > { %v5490_v39 = vld [vmem:[#allocation5 + $0x428] sm:$0xf0] }
 0x28a   : > { %3892 = vmatpush.bf16.msrb.mxu3 %v5433_v12  ;;  %3906 = vmatpush.bf16.msra.mxu0 %v5437_v16  ;;  %v3806_v4 = vsel %vm1709_vm3, %v3797_v15, %v3805_v55  ;;  %v5365_v16 = vor.u32 %v5754_v9, %v5362_v62  ;;  %v5480_v55 = vld [vmem:[#allocation5 + $0x410] sm:$0xf]  ;;  %v5785_v15 = vld [vmem:[#allocation5 + $0x414] sm:$0xf0]  ;;  %v5472_v9 = vld [vmem:[#allocation5 + $0x400] sm:$0xf] }
 0x28b   : > { %3457 = vmatmul.bf16.vlgmr.msra.gmra.mxu2 %v3367_v7  ;;  %3471 = vmatmul.bf16.vlgmr.msrb.gmra.mxu1 %v3367_v7  ;;  %v5750_v7 = vld [vmem:[#allocation5 + $0x304] sm:$0xf]  ;;  %v5783_v62 = vld [vmem:[#allocation5 + $0x404] sm:$0xf0] }
 0x28c   : > { %3737 = vmatpush.bf16.msrb.mxu2 %v5401_v18  ;;  %3751 = vmatpush.bf16.msra.mxu1 %v5405_v51  ;;  %v5373_v18 = vor.u32 %v5756_v10, %v5370_v3  ;;  %v5360_v51 = vld [vmem:[#allocation5 + $0x320] sm:$0xf]  ;;  %v5489_v10 = vor.u32 %v5787_v42, %v5488_v48  ;;  %v5493_v3 = vor.u32 %v5786_v36, %v5490_v39  ;;  %v4061_v42 = vld [vmem:[%s6925_s11] sm:$0x3] }
 0x28d   : > { %v5361_v12 = vor.u32 %v5755_v58, %v5360_v51  ;;  %v5481_v51 = vor.u32 %v5785_v15, %v5480_v55 }
 0x28e   : > { %3893 = vmatpush.bf16.msrb.mxu3 %v5425_v25  ;;  %3907 = vmatpush.bf16.msra.mxu0 %v5429_v1  ;;  %v5530_v25 = vld [vmem:[#allocation5 + $0x478] sm:$0xf0]  ;;  %v5345_v1 = vor.u32 %v5751_v50, %v5344_v17 }
 0x28f   : > { %v5533_v24 = vor.u32 %v5796_v6, %v5530_v25 }
 0x290   : > { %3738 = vmatpush.bf16.msrb.mxu2 %v5393_v59  ;;  %3752 = vmatpush.bf16.msra.mxu1 %v5397_v38  ;;  %v5346_v59 = vld [vmem:[#allocation5 + $0x308] sm:$0xf0]  ;;  %v5528_v38 = vld [vmem:[#allocation5 + $0x470] sm:$0xf] }
 0x291   : > { %v5349_v22 = vor.u32 %v5750_v7, %v5346_v59  ;;  %v5529_v21 = vor.u32 %v5797_v23, %v5528_v38 }
 0x292   : > { %3894 = vmatpush.bf16.msrb.mxu3 %v5417_v44  ;;  %3908 = vmatpush.bf16.msra.mxu0 %v5421_v43  ;;  %v5793_v44 = vld [vmem:[#allocation5 + $0x454] sm:$0xf0]  ;;  %v5792_v43 = vld [vmem:[#allocation5 + $0x454] sm:$0xf] }
 0x293   : > { %v5513_v53 = vor.u32 %v5793_v44, %v5512_v31  ;;  %v5517_v28 = vor.u32 %v5792_v43, %v5514_v37 }
 0x294   : > { %3739 = vmatpush.bf16.msrb.mxu2 %v5385_v60  ;;  %3753 = vmatpush.bf16.msra.mxu1 %v5389_v56  ;;  %v3653_v60 = vrot.slane %v6885_v57, 3  ;;  %v5521_v56 = vor.u32 %v5795_v52, %v5520_v29  ;;  %v5506_v57 = vld [vmem:[#allocation5 + $0x448] sm:$0xf0] }
 0x295   : > { %v5509_v20 = vor.u32 %v5790_v63, %v5506_v57 }
 0x296   : > { %3895 = vmatpush.bf16.msrb.mxu3 %v5409_v5  ;;  %3909 = vmatpush.bf16.msra.mxu0 %v5413_v47  ;;  %v3655_v34 = vsel %vm1570_vm2, %v3653_v60, %v3654_v26  ;;  %v5497_v5 = vor.u32 %v5789_v35, %v5496_v19 }
 0x298   : > { %3740 = vmatpush.bf16.msrb.mxu2 %v5377_v41  ;;  %3754 = vmatpush.bf16.msra.mxu1 %v5381_v49  ;;  %v5788_v41 = vld [vmem:[#allocation5 + $0x434] sm:$0xf]  ;;  %v5498_v49 = vld [vmem:[#allocation5 + $0x438] sm:$0xf0] }
 0x299   : > { %3896 = vmatmul.bf16.vlgmr.msrb.gmra.mxu3 %v3806_v4  ;;  %3910 = vmatmul.bf16.vlgmr.msra.gmra.mxu0 %v3806_v4  ;;  %v5501_v47 = vor.u32 %v5788_v41, %v5498_v49  ;;  %v5782_v4 = vld [vmem:[#allocation5 + $0x404] sm:$0xf] }
 0x29c   : > { %3741 = vmatpush.bf16.msrb.mxu2 %v5369_v27  ;;  %3755 = vmatpush.bf16.msra.mxu1 %v5373_v18  ;;  %v5784_v27 = vld [vmem:[#allocation5 + $0x414] sm:$0xf]  ;;  %v5482_v18 = vld [vmem:[#allocation5 + $0x418] sm:$0xf0] }
 0x29d   : > { %v5485_v58 = vor.u32 %v5784_v27, %v5482_v18 }
 0x2a0   : > { %3742 = vmatpush.bf16.msrb.mxu2 %v5361_v12  ;;  %3756 = vmatpush.bf16.msra.mxu1 %v5365_v16  ;;  %v5474_v12 = vld [vmem:[#allocation5 + $0x408] sm:$0xf0]  ;;  %v5473_v16 = vor.u32 %v5783_v62, %v5472_v9 }
 0x2a1   : > { %v5477_v0 = vor.u32 %v5782_v4, %v5474_v12 }
 0x2a4   : > { %3743 = vmatpush.bf16.msrb.mxu2 %v5353_v13  ;;  %3757 = vmatpush.bf16.msra.mxu1 %v5357_v14 }
 0x2a8   : > { %3744 = vmatpush.bf16.msrb.mxu2 %v5345_v1  ;;  %3758 = vmatpush.bf16.msra.mxu1 %v5349_v22 }
 0x2ab   : > { %3745 = vmatmul.bf16.vlgmr.msrb.gmra.mxu2 %v3655_v34  ;;  %3759 = vmatmul.bf16.vlgmr.msra.gmra.mxu1 %v3655_v34 }
 0x2ac   : > { %4019 = vmatpush.bf16.msra.mxu2 %v5529_v21  ;;  %4033 = vmatpush.bf16.msrb.mxu1 %v5533_v24 }
 0x2b0   : > { %4020 = vmatpush.bf16.msra.mxu2 %v5521_v56  ;;  %4034 = vmatpush.bf16.msrb.mxu1 %v5525_v30 }
 0x2b4   : > { %4021 = vmatpush.bf16.msra.mxu2 %v5513_v53  ;;  %4035 = vmatpush.bf16.msrb.mxu1 %v5517_v28 }
 0x2b8   : > { %4022 = vmatpush.bf16.msra.mxu2 %v5505_v11  ;;  %4036 = vmatpush.bf16.msrb.mxu1 %v5509_v20 }
 0x2bc   : > { %4023 = vmatpush.bf16.msra.mxu2 %v5497_v5  ;;  %4037 = vmatpush.bf16.msrb.mxu1 %v5501_v47  ;;  %v4051_v5 = vld [vmem:[%s6924_s10] sm:$0x3] }
 0x2c0   : > { %4024 = vmatpush.bf16.msra.mxu2 %v5489_v10  ;;  %4038 = vmatpush.bf16.msrb.mxu1 %v5493_v3  ;;  %v4054_v10 = vperm.slane %v4051_v5, 1 }
 0x2c4   : > { %4025 = vmatpush.bf16.msra.mxu2 %v5481_v51  ;;  %4039 = vmatpush.bf16.msrb.mxu1 %v5485_v58  ;;  %v4064_v51 = vperm.slane %v4061_v42, 1 }
 0x2c8   : > { %4026 = vmatpush.bf16.msra.mxu2 %v5473_v16  ;;  %4040 = vmatpush.bf16.msrb.mxu1 %v5477_v0  ;;  %v4053_v0 = vperm.slane %v4051_v5, 0 }
 0x2cb   : > { %4027 = vmatmul.bf16.vlgmr.msra.gmra.mxu2 %v3937_v54  ;;  %4041 = vmatmul.bf16.vlgmr.msrb.gmra.mxu1 %v3937_v54 }
 0x2d5   : > { %v3051_v14 = vpop.f32.mrf.mxu0 }
 0x2db   : > { %v3037_v7 = vpop.f32.mrf.mxu3 }
 0x2dd   : > { %v3053_v59 = vpop.f32.mrf.mxu0 }
 0x2e3   : > { %v3039_v6 = vpop.f32.mrf.mxu3 }
 0x2e7   : > { %v2937_v61 = vpop.f32.mrf.mxu1 }
 0x2e8   : > { %v3052_v33 = vadd.f32 %v3051_v14, %v2937_v61 }
 0x2ea   : > { %v3335_v25 = vpop.f32.mrf.mxu0 }
 0x2ed   : > { %v2923_v2 = vpop.f32.mrf.mxu2 }
 0x2ee   : > { %v3038_v30 = vadd.f32 %v3037_v7, %v2923_v2 }
 0x2ef   : > { %v2939_v13 = vpop.f32.mrf.mxu1 }
 0x2f0   : > { %v3321_v22 = vpop.f32.mrf.mxu3  ;;  %v3054_v43 = vadd.f32 %v3053_v59, %v2939_v13 }
 0x2f2   : > { %v3337_v24 = vpop.f32.mrf.mxu0 }
 0x2f5   : > { %v2925_v17 = vpop.f32.mrf.mxu2 }
 0x2f6   : > { %v3040_v57 = vadd.f32 %v3039_v6, %v2925_v17  ;;  %v4063_v17 = vperm.slane %v4061_v42, 0 }
 0x2f8   : > { %v3184_v50 = vpop.f32.mrf.mxu1  ;;  %v3323_v8 = vpop.f32.mrf.mxu3 }
 0x2f9   : > { %v3190_v60 = vadd.f32 %v3184_v50, %v3052_v33 }
 0x2fa   : > { %v3623_v29 = vpop.f32.mrf.mxu0 }
 0x2fb   : > { %v3341_v31 = vadd.f32 %v3335_v25, %v3190_v60 }
 0x2fe   : > { %v3170_v38 = vpop.f32.mrf.mxu2 }
 0x2ff   : > { %v3189_v37 = vadd.f32 %v3170_v38, %v3038_v30 }
 0x300   : > { %v3186_v23 = vpop.f32.mrf.mxu1  ;;  %v3609_v56 = vpop.f32.mrf.mxu3 }
 0x301   : > { %v3192_v28 = vadd.f32 %v3186_v23, %v3054_v43  ;;  %v3340_v45 = vadd.f32 %v3321_v22, %v3189_v37 }
 0x302   : > { %v3625_v34 = vpop.f32.mrf.mxu0 }
 0x303   : > { %v3343_v19 = vadd.f32 %v3337_v24, %v3192_v28 }
 0x306   : > { %v3172_v1 = vpop.f32.mrf.mxu2 }
 0x307   : > { %v3191_v41 = vadd.f32 %v3172_v1, %v3040_v57 }
 0x308   : > { %v3472_v21 = vpop.f32.mrf.mxu1  ;;  %v3611_v11 = vpop.f32.mrf.mxu3 }
 0x309   : > { %v3478_v53 = vadd.f32 %v3472_v21, %v3341_v31  ;;  %v3342_v3 = vadd.f32 %v3323_v8, %v3191_v41 }
 0x30b   : > { %v3629_v63 = vadd.f32 %v3623_v29, %v3478_v53 }
 0x30e   : > { %v3458_v26 = vpop.f32.mrf.mxu2 }
 0x30f   : > { %v3477_v20 = vadd.f32 %v3458_v26, %v3340_v45 }
 0x310   : > { %v3474_v46 = vpop.f32.mrf.mxu1 }
 0x311   : > { %v3480_v47 = vadd.f32 %v3474_v46, %v3343_v19  ;;  %v3628_v36 = vadd.f32 %v3609_v56, %v3477_v20 }
 0x313   : > { %v3631_v27 = vadd.f32 %v3625_v34, %v3480_v47 }
 0x316   : > { %v3460_v52 = vpop.f32.mrf.mxu2  ;;  %v3911_v49 = vpop.f32.mrf.mxu0 }
 0x317   : > { %v3479_v58 = vadd.f32 %v3460_v52, %v3342_v3 }
 0x319   : > { %v3630_v61 = vadd.f32 %v3611_v11, %v3479_v58 }
 0x31c   : > { %v3897_v9 = vpop.f32.mrf.mxu3 }
 0x31e   : > { %v3913_v54 = vpop.f32.mrf.mxu0 }
 0x324   : > { %v3899_v22 = vpop.f32.mrf.mxu3 }
 0x328   : > { %v3760_v40 = vpop.f32.mrf.mxu1 }
 0x329   : > { %v3766_v35 = vadd.f32 %v3760_v40, %v3629_v63 }
 0x32b   : > { %v3917_v39 = vadd.f32 %v3911_v49, %v3766_v35 }
 0x32e   : > { %v3746_v44 = vpop.f32.mrf.mxu2 }
 0x32f   : > { %v3765_v15 = vadd.f32 %v3746_v44, %v3628_v36 }
 0x330   : > { %v3762_v32 = vpop.f32.mrf.mxu1 }
 0x331   : > { %v3768_v62 = vadd.f32 %v3762_v32, %v3631_v27  ;;  %v3916_v16 = vadd.f32 %v3897_v9, %v3765_v15 }
 0x333   : > { %v3919_v50 = vadd.f32 %v3913_v54, %v3768_v62 }
 0x336   : > { %v3748_v48 = vpop.f32.mrf.mxu2 }
 0x337   : > { %v3767_v59 = vadd.f32 %v3748_v48, %v3630_v61 }
 0x339   : > { %v3918_v26 = vadd.f32 %v3899_v22, %v3767_v59 }
 0x348   : > { %v4042_v55 = vpop.f32.mrf.mxu1 }
 0x349   : > { %v4048_v18 = vadd.f32 %v4042_v55, %v3917_v39 }
 0x34b   : > { %v4058_v4 = vmul.f32 %v4054_v10, %v4048_v18 }
 0x34d   : > { %v4068_v12 = vadd.f32 %v4064_v51, %v4058_v4 }
 0x34e   : > { %v4028_v2 = vpop.f32.mrf.mxu2 }
 0x34f   : > { %v4076_v13 = vmin.f32 %v4068_v12, 0.0  ;;  %v4047_v14 = vadd.f32 %v4028_v2, %v3916_v16  ;;  %vm4072_vm13 = vcmp.gt.f32.partialorder %v4068_v12, 0.0 }
 0x350   : > { %v4044_v7 = vpop.f32.mrf.mxu1 }
 0x351   : > { %v4081_v38 = vmul.f32 1.442695, %v4076_v13  ;;  %v4057_v23 = vmul.f32 %v4053_v0, %v4047_v14  ;;  %v4050_v6 = vadd.f32 %v4044_v7, %v3919_v50 }
 0x353   : > { %v4067_v25 = vadd.f32 %v4063_v17, %v4057_v23  ;;  %v4060_v1 = vmul.f32 %v4054_v10, %v4050_v6  ;;  %5875 = vpow2.f32 %v4081_v38 }
 0x355   : > { %v4075_v21 = vmin.f32 %v4067_v25, 0.0  ;;  %v4070_v24 = vadd.f32 %v4064_v51, %v4060_v1  ;;  %vm4071_vm14 = vcmp.gt.f32.partialorder %v4067_v25, 0.0 }
 0x356   : > { %v4030_v8 = vpop.f32.mrf.mxu2 }
 0x357   : > { %v4079_v46 = vmul.f32 1.442695, %v4075_v21  ;;  %v4078_v29 = vmin.f32 %v4070_v24, 0.0  ;;  %v4049_v52 = vadd.f32 %v4030_v8, %v3918_v26  ;;  %vm4074_vm15 = vcmp.gt.f32.partialorder %v4070_v24, 0.0 }
 0x359   : > { %5877 = vpow2.f32 %v4079_v46  ;;  %v4085_v33 = vmul.f32 1.442695, %v4078_v29  ;;  %v4059_v40 = vmul.f32 %v4053_v0, %v4049_v52  ;;  %v5876_v60 = vpop.eup %5875 }
 0x35a   : > { %v5535_v31 = vadd.f32 -1.0, %v5876_v60 }
 0x35b   : > { %v4069_v56 = vadd.f32 %v4063_v17, %v4059_v40  ;;  %5879 = vpow2.f32 %v4085_v33 }
 0x35c   : > { %v4092_v37 = vsel %vm4072_vm13, %v4068_v12, %v5535_v31 }
 0x35d   : > { %v4077_v30 = vmin.f32 %v4069_v56, 0.0  ;;  %vm4073_vm0 = vcmp.gt.f32.partialorder %v4069_v56, 0.0 }
 0x35f   : > { %v5878_v34 = vpop.eup %5877  ;;  %v4083_v44 = vmul.f32 1.442695, %v4077_v30 }
 0x360   : > { %v5534_v43 = vadd.f32 -1.0, %v5878_v34 }
 0x361   : > { %5881 = vpow2.f32 %v4083_v44  ;;  %v5880_v28 = vpop.eup %5879 }
 0x362   : > { %v4091_v53 = vsel %vm4071_vm14, %v4067_v25, %v5534_v43  ;;  %v5537_v45 = vadd.f32 -1.0, %v5880_v28 }
 0x363   : > { %v4112_v32 = vpack.c.bf16 %v4092_v37, %v4091_v53 }
 0x364   : > { %v4094_v11 = vsel %vm4074_vm15, %v4070_v24, %v5537_v45 }
 0x365   : > { %4114 = vst [vmem:[%s565_s28] sm:$0xff] %v4112_v32 }
 0x367   : > { %v5882_v63 = vpop.eup %5881 }
 0x368   : > { %v5536_v57 = vadd.f32 -1.0, %v5882_v63 }
 0x36a   : > { %v4093_v20 = vsel %vm4073_vm0, %v4069_v56, %v5536_v57 }
 0x36b   : > { %v4113_v19 = vpack.c.bf16 %v4094_v11, %v4093_v20 }
 0x36d   : > { %4115 = vst [vmem:[%s565_s28 + $0x8] sm:$0xff] %v4113_v19 }
 0x36e PF: > { %s23_s23 = sadd.s32 1, %s5939_s23   ;;  %s6935_s21 = smov %s5935_s22 }
 0x36f   : > { %p20_p8 = scmp.ge.s32.totalorder %s23_s23, 4   ;;  %s6936_s22 = smov %s6938_s25 }
 0x371   :  { %22 = sbr.rel (!%p20_p8) target bundleno = 2 (0x2), region = 133 }
 0x376   :  { %4148 = vsyncpa [#allocation6], 1 }
 0x377   :  { %4150 = vsyncpa [#allocation6 + $0x1], 1 }

</bundles_post_ra>
